<compile_context>
chip_gen: v7x
topology: tpu7x:2x2x1
jax: 0.10.0
libtpu: 0.0.40
codegen_flags: <defaults>
</compile_context>

<pallas_src>
import numpy as np
import jax
import jax.numpy as jnp
from jax.experimental import pallas as pl
from jax.experimental.pallas import tpu as pltpu


# ------------------------------ fused Pallas kernel ------------------------------

def _actor_critic_kernel(
    # per-sample inputs
    glyph_ref, msg_ref, ndesc_ref, ndir_ref,
    # Toeplitz-expanded conv weights + biases in (W*C) row layout
    t1_ref, b1r_ref, t2_ref, b2r_ref,
    # fully connected weights / biases
    wfc1_ref, bfc1_ref, wfc2_ref, bfc2_ref, wfc3_ref, bfc3_ref,
    wfc5_ref, bfc5_ref, wfc6_ref, bfc6_ref,
    w4g_ref, w4m_ref, w4d_ref, w4dir_ref, b4_ref,
    wv_ref, bv_ref, wa_ref, ba_ref,
    # outputs
    probs_ref, value_ref,
    # VMEM scratch (activations, (H, W*C) layout)
    c1_ref, cp1_ref, p1_ref, c2_ref, cp2_ref, p2_ref,
):
    f32 = jnp.float32
    bf16 = jnp.bfloat16

    # ---- conv1 (1 -> 20, 5x5, valid) + ReLU: 5 Toeplitz matmuls, out (24, 40*20) ----
    acc = jnp.dot(glyph_ref[0:24, :].astype(bf16), t1_ref[0], preferred_element_type=f32)
    for di in range(1, 5):
        acc = acc + jnp.dot(glyph_ref[di:di + 24, :].astype(bf16), t1_ref[di],
                            preferred_element_type=f32)
    c1_ref[...] = jnp.maximum(acc + b1r_ref[...], 0.0)

    # ---- maxpool1 2x2/2: (24, 40, 20) -> (12, 20, 20), flattened (H, W*C) layout ----
    for j in range(20):                                   # pool along W (20-lane blocks)
        cp1_ref[:, j * 20:(j + 1) * 20] = jnp.maximum(
            c1_ref[:, (2 * j) * 20:(2 * j) * 20 + 20],
            c1_ref[:, (2 * j + 1) * 20:(2 * j + 1) * 20 + 20])
    for i in range(12):                                   # pool along H (sublane pairs)
        p1_ref[i:i + 1, :] = jnp.maximum(cp1_ref[2 * i:2 * i + 1, :],
                                         cp1_ref[2 * i + 1:2 * i + 2, :])

    # ---- conv2 (20 -> 50, 5x5, valid) + ReLU: 5 Toeplitz matmuls, out (8, 16*50) ----
    acc = jnp.dot(p1_ref[0:8, :].astype(bf16), t2_ref[0], preferred_element_type=f32)
    for di in range(1, 5):
        acc = acc + jnp.dot(p1_ref[di:di + 8, :].astype(bf16), t2_ref[di],
                            preferred_element_type=f32)
    c2_ref[...] = jnp.maximum(acc + b2r_ref[...], 0.0)

    # ---- maxpool2 2x2/2: (8, 16, 50) -> (4, 8, 50) ----
    for j in range(8):
        cp2_ref[:, j * 50:(j + 1) * 50] = jnp.maximum(
            c2_ref[:, (2 * j) * 50:(2 * j) * 50 + 50],
            c2_ref[:, (2 * j + 1) * 50:(2 * j + 1) * 50 + 50])
    for i in range(4):
        p2_ref[i:i + 1, :] = jnp.maximum(cp2_ref[2 * i:2 * i + 1, :],
                                         cp2_ref[2 * i + 1:2 * i + 2, :])

    # ---- fc1 (1600 -> 512 padded) + ReLU; flatten realized as 4 row-block matmuls ----
    h = jnp.dot(p2_ref[0:1, :].astype(bf16), wfc1_ref[0:400, :], preferred_element_type=f32)
    for i in range(1, 4):
        h = h + jnp.dot(p2_ref[i:i + 1, :].astype(bf16),
                        wfc1_ref[i * 400:(i + 1) * 400, :], preferred_element_type=f32)
    g = jnp.maximum(h + bfc1_ref[...], 0.0)                                    # (1, 512)

    # fc2 + ReLU (glyph branch -> 128)
    g = jnp.maximum(jnp.dot(g.astype(bf16), wfc2_ref[...],
                            preferred_element_type=f32) + bfc2_ref[...], 0.0)   # (1, 128)
    # fc3 + ReLU (message branch 256 -> 128)
    m = jnp.maximum(jnp.dot(msg_ref[...].astype(bf16), wfc3_ref[...],
                            preferred_element_type=f32) + bfc3_ref[...], 0.0)   # (1, 128)
    # fc5 + ReLU (neighbour descriptions 9 -> 8)
    d = jnp.maximum(jnp.dot(ndesc_ref[...], wfc5_ref[...],
                            preferred_element_type=f32) + bfc5_ref[...], 0.0)   # (1, 8)
    # fc6 + ReLU (neighbour directions 9 -> 1), as a lane reduction
    r = jnp.maximum(jnp.sum(ndir_ref[...] * wfc6_ref[...], axis=-1, keepdims=True)
                    + bfc6_ref[...], 0.0)                                       # (1, 1)

    # fc4 + ReLU on cat([g, m, d, r], 1): split-weight matmuls == concat + matmul
    comb = (jnp.dot(g, w4g_ref[...], preferred_element_type=f32)
            + jnp.dot(m, w4m_ref[...], preferred_element_type=f32)
            + jnp.dot(d, w4d_ref[...], preferred_element_type=f32)
            + r * w4dir_ref[...]
            + b4_ref[...])
    comb = jnp.maximum(comb, 0.0)                                               # (1, 128)

    # value head (128 -> 1): lane reduction
    value_ref[...] = jnp.sum(comb * wv_ref[...], axis=-1, keepdims=True) + bv_ref[...]

    # action head (128 -> a_size) + softmax(dim=-1); reciprocal on the EUP
    logits = jnp.dot(comb, wa_ref[...], preferred_element_type=f32) + ba_ref[...]
    z = logits - jnp.max(logits, axis=-1, keepdims=True)
    e = jnp.exp(z)
    probs_ref[...] = e * pl.reciprocal(jnp.sum(e, axis=-1, keepdims=True), approx=True)


# ----------------------------------- wrapper --------------------------------------

def actor_critic_forward(params, glyphs, message, neighbor_descriptions, neighbor_directions):
    """glyphs: (B, 28, 44) float32 (single input channel).
    Returns (action_probs (B, a_size), state_value (B, 1))."""
    B = glyphs.shape[0]
    a_size = params["w_a"].shape[1]

    msg = message.astype(jnp.float32)[:, None, :]                   # (B, 1, 256)
    nde = neighbor_descriptions.astype(jnp.float32)[:, None, :]     # (B, 1, 9)
    ndi = neighbor_directions.astype(jnp.float32)[:, None, :]       # (B, 1, 9)

    weights = (params["t1"], params["b1r"], params["t2"], params["b2r"],
               params["w_fc1"], params["b_fc1"], params["w_fc2"], params["b_fc2"],
               params["w_fc3"], params["b_fc3"], params["w_fc5"], params["b_fc5"],
               params["w_fc6"], params["b_fc6"],
               params["w_fc4_g"], params["w_fc4_m"], params["w_fc4_d"], params["w_fc4_dir"],
               params["b_fc4"],
               params["w_v"], params["b_v"], params["w_a"], params["b_a"])

    def whole(x):
        # Whole-array VMEM-resident block; block index constant across the batch grid,
        # so the weight is DMA'd once and reused (no K tiling / no re-fetch).
        idx = (0,) * x.ndim
        return pl.BlockSpec(x.shape, lambda b: idx)

    in_specs = ([pl.BlockSpec((None, 28, 44), lambda b: (b, 0, 0)),
                 pl.BlockSpec((None, 1, 256), lambda b: (b, 0, 0)),
                 pl.BlockSpec((None, 1, 9), lambda b: (b, 0, 0)),
                 pl.BlockSpec((None, 1, 9), lambda b: (b, 0, 0))]
                + [whole(w) for w in weights])

    out_shape = (jax.ShapeDtypeStruct((B, 1, a_size), jnp.float32),
                 jax.ShapeDtypeStruct((B, 1, 1), jnp.float32))
    out_specs = (pl.BlockSpec((None, 1, a_size), lambda b: (b, 0, 0)),
                 pl.BlockSpec((None, 1, 1), lambda b: (b, 0, 0)))

    scratch_shapes = [
        pltpu.VMEM((24, 800), jnp.float32),   # conv1 output  (24, 40*20)
        pltpu.VMEM((24, 400), jnp.float32),   # pool1, W-direction pooled
        pltpu.VMEM((12, 400), jnp.float32),   # pool1 output  (12, 20*20)
        pltpu.VMEM((8, 800), jnp.float32),    # conv2 output  (8, 16*50)
        pltpu.VMEM((8, 400), jnp.float32),    # pool2, W-direction pooled
        pltpu.VMEM((4, 400), jnp.float32),    # pool2 output  (4, 8*50)
    ]

    probs, value = pl.pallas_call(
        _actor_critic_kernel,
        out_shape=out_shape,
        grid=(B,),
        in_specs=in_specs,
        out_specs=out_specs,
        scratch_shapes=scratch_shapes,
        compiler_params=pltpu.CompilerParams(
            dimension_semantics=("parallel",),        # shards batch over 2 TCs on v7x
            vmem_limit_bytes=32 * 1024 * 1024,        # raise v5e's 16 MiB scoped default
        ),
    )(glyphs.astype(jnp.float32), msg, nde, ndi, *weights)

    return probs[:, 0, :], value[:, 0, :]


# -------------------------------- parameter init ----------------------------------

def _bf16_round(a):
    return np.asarray(jnp.asarray(a).astype(jnp.bfloat16).astype(jnp.float32))


def init_params(key, a_size=4):
    ks = jax.random.split(key, 23)

    def rnd(k, shape, scale=0.05):
        return np.asarray(scale * jax.random.normal(k, shape, dtype=jnp.float32))

    # Conv weights in (kh, kw[, cin], cout) layout.  Real PyTorch weights
    # (cout, cin, kh, kw) must be transposed to this layout before the expansion below.
    w1 = _bf16_round(rnd(ks[0], (5, 5, 20)))          # conv1 (cin = 1)
    b1 = rnd(ks[1], (20,))
    w2 = _bf16_round(rnd(ks[2], (5, 5, 20, 50)))      # conv2
    b2 = rnd(ks[3], (50,))

    # Toeplitz expansion: the (kernel-column, cin) contraction is folded into one
    # lane-dense matmul per kernel row:
    #   t1[di, j+dj, j*20+c]          = w1[di, dj, c]
    #   t2[di, (j+dj)*20+ci, j*50+co] = w2[di, dj, ci, co]
    t1 = np.zeros((5, 44, 800), np.float32)
    for dj in range(5):
        for j in range(40):
            t1[:, j + dj, j * 20:(j + 1) * 20] = w1[:, dj, :]
    t2 = np.zeros((5, 400, 800), np.float32)
    for dj in range(5):
        for j in range(16):
            t2[:, (j + dj) * 20:(j + dj) * 20 + 20, j * 50:(j + 1) * 50] = w2[:, dj, :, :]
    b1r = np.tile(b1, 40)[None, :]                    # (1, 800) bias in (W*C) layout
    b2r = np.tile(b2, 16)[None, :]                    # (1, 800)

    # fc1 rows are in the kernel's (H=4, W=8, C=50) flatten order (i*400 + j*50 + c).
    # Real PyTorch weights (NCHW flatten: c*32 + i*8 + j) need a one-time row permutation.
    # fc1 output / fc2 input zero-padded 500 -> 512 (exact semantics, lane aligned).
    w_fc1 = np.zeros((1600, 512), np.float32)
    w_fc1[:, :500] = rnd(ks[4], (1600, 500))
    b_fc1 = np.zeros((1, 512), np.float32)
    b_fc1[:, :500] = rnd(ks[5], (1, 500))
    w_fc2 = np.zeros((512, 128), np.float32)
    w_fc2[:500, :] = rnd(ks[6], (500, 128))
    b_fc2 = rnd(ks[7], (1, 128))
    w_fc3 = rnd(ks[8], (256, 128))
    b_fc3 = rnd(ks[9], (1, 128))
    w_fc5 = rnd(ks[10], (9, 8))
    b_fc5 = rnd(ks[11], (1, 8))
    w_fc6 = rnd(ks[12], (1, 9))                       # fc6: 9 -> 1 (lane reduction)
    b_fc6 = rnd(ks[13], (1, 1))
    # fc4 (265 -> 128) split along input dim: [128 glyph | 128 msg | 8 desc | 1 dir]
    w_fc4_g = rnd(ks[14], (128, 128))
    w_fc4_m = rnd(ks[15], (128, 128))
    w_fc4_d = rnd(ks[16], (8, 128))
    w_fc4_dir = rnd(ks[17], (1, 128))
    b_fc4 = rnd(ks[18], (1, 128))
    w_v = rnd(ks[19], (1, 128))                       # value head 128 -> 1
    b_v = rnd(ks[20], (1, 1))
    w_a = rnd(ks[21], (128, a_size))
    b_a = rnd(ks[22], (1, a_size))

    bf = lambda a: jnp.asarray(a, dtype=jnp.bfloat16)   # big weights -> bf16 (half the DMA)
    f32 = lambda a: jnp.asarray(a, dtype=jnp.float32)
    return {
        "t1": bf(t1), "b1r": f32(b1r), "t2": bf(t2), "b2r": f32(b2r),
        "w_fc1": bf(w_fc1), "b_fc1": f32(b_fc1),
        "w_fc2": bf(w_fc2), "b_fc2": f32(b_fc2),
        "w_fc3": bf(w_fc3), "b_fc3": f32(b_fc3),
        "w_fc5": f32(w_fc5), "b_fc5": f32(b_fc5),
        "w_fc6": f32(w_fc6), "b_fc6": f32(b_fc6),
        "w_fc4_g": f32(w_fc4_g), "w_fc4_m": f32(w_fc4_m),
        "w_fc4_d": f32(w_fc4_d), "w_fc4_dir": f32(w_fc4_dir), "b_fc4": f32(b_fc4),
        "w_v": f32(w_v), "b_v": f32(b_v), "w_a": f32(w_a), "b_a": f32(b_a),
        # originals kept only for the pure-JAX parity reference below
        "ref_w1": f32(w1), "ref_b1": f32(b1), "ref_w2": f32(w2), "ref_b2": f32(b2),
    }


# ------------------------- pure-JAX reference (parity test) ------------------------

def reference_forward(params, glyphs, message, neighbor_descriptions, neighbor_directions):
    f32 = jnp.float32
    relu = lambda v: jnp.maximum(v, 0.0)
    B = glyphs.shape[0]
    w1, b1 = params["ref_w1"], params["ref_b1"]
    w2, b2 = params["ref_w2"], params["ref_b2"]

    x = glyphs.astype(f32)                                              # (B, 28, 44)
    c1 = jnp.zeros((B, 24, 40, 20), f32)
    for di in range(5):
        for dj in range(5):
            c1 = c1 + x[:, di:di + 24, dj:dj + 40, None] * w1[di, dj][None, None, None, :]
    c1 = relu(c1 + b1[None, None, None, :])
    p1 = jnp.maximum(jnp.maximum(c1[:, 0::2, 0::2], c1[:, 0::2, 1::2]),
                     jnp.maximum(c1[:, 1::2, 0::2], c1[:, 1::2, 1::2]))  # (B,12,20,20)
    c2 = jnp.zeros((B, 8, 16, 50), f32)
    for di in range(5):
        for dj in range(5):
            c2 = c2 + jnp.einsum("bhwc,cd->bhwd", p1[:, di:di + 8, dj:dj + 16, :], w2[di, dj])
    c2 = relu(c2 + b2[None, None, None, :])
    p2 = jnp.maximum(jnp.maximum(c2[:, 0::2, 0::2], c2[:, 0::2, 1::2]),
                     jnp.maximum(c2[:, 1::2, 0::2], c2[:, 1::2, 1::2]))  # (B,4,8,50)
    flat = p2.reshape(B, 1600)                                           # (H, W, C) order

    g = relu(flat @ params["w_fc1"].astype(f32) + params["b_fc1"])
    g = relu(g @ params["w_fc2"].astype(f32) + params["b_fc2"])
    m = relu(message.astype(f32) @ params["w_fc3"].astype(f32) + params["b_fc3"])
    d = relu(neighbor_descriptions.astype(f32) @ params["w_fc5"] + params["b_fc5"])
    r = relu(jnp.sum(neighbor_directions.astype(f32) * params["w_fc6"], axis=-1,
                     keepdims=True) + params["b_fc6"])
    comb = relu(g @ params["w_fc4_g"] + m @ params["w_fc4_m"] + d @ params["w_fc4_d"]
                + r * params["w_fc4_dir"] + params["b_fc4"])
    value = jnp.sum(comb * params["w_v"], axis=-1, keepdims=True) + params["b_v"]
    logits = comb @ params["w_a"] + params["b_a"]
    return jax.nn.softmax(logits, axis=-1), value


# -------------------------------------- main ---------------------------------------

if __name__ == "__main__":
    key = jax.random.PRNGKey(0)
    kp, kg, km, kd, kr = jax.random.split(key, 5)

    B, a_size = 2, 4
    params = init_params(kp, a_size=a_size)

    # Smallest input shapes consistent with fc1's in_features = 1600 (= 50 * 4 * 8):
    #   glyphs (B, 28, 44) single channel, message (B, 256), neighbour arrays (B, 9).
    glyphs = jax.random.normal(kg, (B, 28, 44), dtype=jnp.float32)
    message = jax.random.normal(km, (B, 256), dtype=jnp.float32)
    neighbor_descriptions = jax.random.normal(kd, (B, 9), dtype=jnp.float32)
    neighbor_directions = jax.random.normal(kr, (B, 9), dtype=jnp.float32)

    fwd = jax.jit(actor_critic_forward)
    action_probs, state_value = fwd(params, glyphs, message,
                                    neighbor_descriptions, neighbor_directions)
    jax.block_until_ready(action_probs)
    jax.block_until_ready(state_value)

    assert action_probs.shape == (B, a_size) and state_value.shape == (B, 1)
    assert bool(jnp.all(jnp.isfinite(action_probs))) and bool(jnp.all(jnp.isfinite(state_value)))
    assert bool(jnp.allclose(jnp.sum(action_probs, axis=-1), 1.0, atol=5e-3))

    # Parity vs. pure-JAX reference (bf16 weights / bf16 activations / approx reciprocal
    # in the kernel => loose tolerances).
    ref_probs, ref_value = jax.jit(reference_forward)(
        params, glyphs, message, neighbor_descriptions, neighbor_directions)
    assert bool(jnp.allclose(action_probs, ref_probs, atol=1e-2))
    assert bool(jnp.allclose(state_value, ref_value, atol=2e-2))

    print("KERNEL_OK")
</pallas_src>

<mosaic_0001>
module attributes {stable_mosaic.version = 11 : i64} {
  func.func @_actor_critic_kernel(%arg0: i32, %arg1: memref<1x28x44xf32, #tpu.memory_space<vmem>>, %arg2: memref<1x1x256xf32, #tpu.memory_space<vmem>>, %arg3: memref<1x1x9xf32, #tpu.memory_space<vmem>>, %arg4: memref<1x1x9xf32, #tpu.memory_space<vmem>>, %arg5: memref<5x44x800xbf16, #tpu.memory_space<vmem>>, %arg6: memref<1x800xf32, #tpu.memory_space<vmem>>, %arg7: memref<5x400x800xbf16, #tpu.memory_space<vmem>>, %arg8: memref<1x800xf32, #tpu.memory_space<vmem>>, %arg9: memref<1600x512xbf16, #tpu.memory_space<vmem>>, %arg10: memref<1x512xf32, #tpu.memory_space<vmem>>, %arg11: memref<512x128xbf16, #tpu.memory_space<vmem>>, %arg12: memref<1x128xf32, #tpu.memory_space<vmem>>, %arg13: memref<256x128xbf16, #tpu.memory_space<vmem>>, %arg14: memref<1x128xf32, #tpu.memory_space<vmem>>, %arg15: memref<9x8xf32, #tpu.memory_space<vmem>>, %arg16: memref<1x8xf32, #tpu.memory_space<vmem>>, %arg17: memref<1x9xf32, #tpu.memory_space<vmem>>, %arg18: memref<1x1xf32, #tpu.memory_space<vmem>>, %arg19: memref<128x128xf32, #tpu.memory_space<vmem>>, %arg20: memref<128x128xf32, #tpu.memory_space<vmem>>, %arg21: memref<8x128xf32, #tpu.memory_space<vmem>>, %arg22: memref<1x128xf32, #tpu.memory_space<vmem>>, %arg23: memref<1x128xf32, #tpu.memory_space<vmem>>, %arg24: memref<1x128xf32, #tpu.memory_space<vmem>>, %arg25: memref<1x1xf32, #tpu.memory_space<vmem>>, %arg26: memref<128x4xf32, #tpu.memory_space<vmem>>, %arg27: memref<1x4xf32, #tpu.memory_space<vmem>>, %arg28: memref<1x1x4xf32, #tpu.memory_space<vmem>>, %arg29: memref<1x1x1xf32, #tpu.memory_space<vmem>>, %arg30: memref<24x800xf32, #tpu.memory_space<vmem>>, %arg31: memref<24x400xf32, #tpu.memory_space<vmem>>, %arg32: memref<12x400xf32, #tpu.memory_space<vmem>>, %arg33: memref<8x800xf32, #tpu.memory_space<vmem>>, %arg34: memref<8x400xf32, #tpu.memory_space<vmem>>, %arg35: memref<4x400xf32, #tpu.memory_space<vmem>>) attributes {dimension_semantics = [#tpu.dimension_semantics<parallel>], iteration_bounds = array<i64: 2>, scalar_prefetch = 0 : i64, scratch_operands = 6 : i64, tpu.core_type = #tpu.core_type<tc>, window_params = [{transform_indices = @transform_0, window_bounds = array<i64: 1, 28, 44>}, {transform_indices = @transform_1, window_bounds = array<i64: 1, 1, 256>}, {transform_indices = @transform_2, window_bounds = array<i64: 1, 1, 9>}, {transform_indices = @transform_3, window_bounds = array<i64: 1, 1, 9>}, {pipeline_mode = #tpu.pipeline_mode<synchronous>, transform_indices = @transform_4, window_bounds = array<i64: 5, 44, 800>}, {pipeline_mode = #tpu.pipeline_mode<synchronous>, transform_indices = @transform_5, window_bounds = array<i64: 1, 800>}, {pipeline_mode = #tpu.pipeline_mode<synchronous>, transform_indices = @transform_6, window_bounds = array<i64: 5, 400, 800>}, {pipeline_mode = #tpu.pipeline_mode<synchronous>, transform_indices = @transform_7, window_bounds = array<i64: 1, 800>}, {pipeline_mode = #tpu.pipeline_mode<synchronous>, transform_indices = @transform_8, window_bounds = array<i64: 1600, 512>}, {pipeline_mode = #tpu.pipeline_mode<synchronous>, transform_indices = @transform_9, window_bounds = array<i64: 1, 512>}, {pipeline_mode = #tpu.pipeline_mode<synchronous>, transform_indices = @transform_10, window_bounds = array<i64: 512, 128>}, {pipeline_mode = #tpu.pipeline_mode<synchronous>, transform_indices = @transform_11, window_bounds = array<i64: 1, 128>}, {pipeline_mode = #tpu.pipeline_mode<synchronous>, transform_indices = @transform_12, window_bounds = array<i64: 256, 128>}, {pipeline_mode = #tpu.pipeline_mode<synchronous>, transform_indices = @transform_13, window_bounds = array<i64: 1, 128>}, {pipeline_mode = #tpu.pipeline_mode<synchronous>, transform_indices = @transform_14, window_bounds = array<i64: 9, 8>}, {pipeline_mode = #tpu.pipeline_mode<synchronous>, transform_indices = @transform_15, window_bounds = array<i64: 1, 8>}, {pipeline_mode = #tpu.pipeline_mode<synchronous>, transform_indices = @transform_16, window_bounds = array<i64: 1, 9>}, {pipeline_mode = #tpu.pipeline_mode<synchronous>, transform_indices = @transform_17, window_bounds = array<i64: 1, 1>}, {pipeline_mode = #tpu.pipeline_mode<synchronous>, transform_indices = @transform_18, window_bounds = array<i64: 128, 128>}, {pipeline_mode = #tpu.pipeline_mode<synchronous>, transform_indices = @transform_19, window_bounds = array<i64: 128, 128>}, {pipeline_mode = #tpu.pipeline_mode<synchronous>, transform_indices = @transform_20, window_bounds = array<i64: 8, 128>}, {pipeline_mode = #tpu.pipeline_mode<synchronous>, transform_indices = @transform_21, window_bounds = array<i64: 1, 128>}, {pipeline_mode = #tpu.pipeline_mode<synchronous>, transform_indices = @transform_22, window_bounds = array<i64: 1, 128>}, {pipeline_mode = #tpu.pipeline_mode<synchronous>, transform_indices = @transform_23, window_bounds = array<i64: 1, 128>}, {pipeline_mode = #tpu.pipeline_mode<synchronous>, transform_indices = @transform_24, window_bounds = array<i64: 1, 1>}, {pipeline_mode = #tpu.pipeline_mode<synchronous>, transform_indices = @transform_25, window_bounds = array<i64: 128, 4>}, {pipeline_mode = #tpu.pipeline_mode<synchronous>, transform_indices = @transform_26, window_bounds = array<i64: 1, 4>}, {transform_indices = @transform_27, window_bounds = array<i64: 1, 1, 4>}, {transform_indices = @transform_28, window_bounds = array<i64: 1, 1, 1>}]} {
    %c0 = arith.constant 0 : index
    %c0_0 = arith.constant 0 : index
    %c0_1 = arith.constant 0 : index
    %0 = vector.load %arg1[%c0, %c0_0, %c0_1] : memref<1x28x44xf32, #tpu.memory_space<vmem>>, vector<1x24x44xf32>
    %1 = vector.shape_cast %0 : vector<1x24x44xf32> to vector<24x44xf32>
    %2 = arith.truncf %1 : vector<24x44xf32> to vector<24x44xbf16>
    %c0_2 = arith.constant 0 : index
    %c0_3 = arith.constant 0 : index
    %c0_4 = arith.constant 0 : index
    %3 = vector.load %arg5[%c0_2, %c0_3, %c0_4] : memref<5x44x800xbf16, #tpu.memory_space<vmem>>, vector<1x44x800xbf16>
    %4 = vector.shape_cast %3 : vector<1x44x800xbf16> to vector<44x800xbf16>
    %cst = arith.constant dense<0.000000e+00> : vector<24x800xf32>
    %5 = tpu.matmul %2, %4, %cst {dimension_numbers = #tpu.dot_dimension_numbers<[1], [0], [0], [1], [0, 0, 1, 1], [], []>} : vector<24x44xbf16>, vector<44x800xbf16>, vector<24x800xf32> -> vector<24x800xf32>
    %c0_5 = arith.constant 0 : index
    %c1 = arith.constant 1 : index
    %c0_6 = arith.constant 0 : index
    %6 = vector.load %arg1[%c0_5, %c1, %c0_6] : memref<1x28x44xf32, #tpu.memory_space<vmem>>, vector<1x24x44xf32>
    %7 = vector.shape_cast %6 : vector<1x24x44xf32> to vector<24x44xf32>
    %8 = arith.truncf %7 : vector<24x44xf32> to vector<24x44xbf16>
    %c1_7 = arith.constant 1 : index
    %c0_8 = arith.constant 0 : index
    %c0_9 = arith.constant 0 : index
    %9 = vector.load %arg5[%c1_7, %c0_8, %c0_9] : memref<5x44x800xbf16, #tpu.memory_space<vmem>>, vector<1x44x800xbf16>
    %10 = vector.shape_cast %9 : vector<1x44x800xbf16> to vector<44x800xbf16>
    %cst_10 = arith.constant dense<0.000000e+00> : vector<24x800xf32>
    %11 = tpu.matmul %8, %10, %cst_10 {dimension_numbers = #tpu.dot_dimension_numbers<[1], [0], [0], [1], [0, 0, 1, 1], [], []>} : vector<24x44xbf16>, vector<44x800xbf16>, vector<24x800xf32> -> vector<24x800xf32>
    %12 = arith.addf %5, %11 : vector<24x800xf32>
    %c0_11 = arith.constant 0 : index
    %c2 = arith.constant 2 : index
    %c0_12 = arith.constant 0 : index
    %13 = vector.load %arg1[%c0_11, %c2, %c0_12] : memref<1x28x44xf32, #tpu.memory_space<vmem>>, vector<1x24x44xf32>
    %14 = vector.shape_cast %13 : vector<1x24x44xf32> to vector<24x44xf32>
    %15 = arith.truncf %14 : vector<24x44xf32> to vector<24x44xbf16>
    %c2_13 = arith.constant 2 : index
    %c0_14 = arith.constant 0 : index
    %c0_15 = arith.constant 0 : index
    %16 = vector.load %arg5[%c2_13, %c0_14, %c0_15] : memref<5x44x800xbf16, #tpu.memory_space<vmem>>, vector<1x44x800xbf16>
    %17 = vector.shape_cast %16 : vector<1x44x800xbf16> to vector<44x800xbf16>
    %cst_16 = arith.constant dense<0.000000e+00> : vector<24x800xf32>
    %18 = tpu.matmul %15, %17, %cst_16 {dimension_numbers = #tpu.dot_dimension_numbers<[1], [0], [0], [1], [0, 0, 1, 1], [], []>} : vector<24x44xbf16>, vector<44x800xbf16>, vector<24x800xf32> -> vector<24x800xf32>
    %19 = arith.addf %12, %18 : vector<24x800xf32>
    %c0_17 = arith.constant 0 : index
    %c3 = arith.constant 3 : index
    %c0_18 = arith.constant 0 : index
    %20 = vector.load %arg1[%c0_17, %c3, %c0_18] : memref<1x28x44xf32, #tpu.memory_space<vmem>>, vector<1x24x44xf32>
    %21 = vector.shape_cast %20 : vector<1x24x44xf32> to vector<24x44xf32>
    %22 = arith.truncf %21 : vector<24x44xf32> to vector<24x44xbf16>
    %c3_19 = arith.constant 3 : index
    %c0_20 = arith.constant 0 : index
    %c0_21 = arith.constant 0 : index
    %23 = vector.load %arg5[%c3_19, %c0_20, %c0_21] : memref<5x44x800xbf16, #tpu.memory_space<vmem>>, vector<1x44x800xbf16>
    %24 = vector.shape_cast %23 : vector<1x44x800xbf16> to vector<44x800xbf16>
    %cst_22 = arith.constant dense<0.000000e+00> : vector<24x800xf32>
    %25 = tpu.matmul %22, %24, %cst_22 {dimension_numbers = #tpu.dot_dimension_numbers<[1], [0], [0], [1], [0, 0, 1, 1], [], []>} : vector<24x44xbf16>, vector<44x800xbf16>, vector<24x800xf32> -> vector<24x800xf32>
    %26 = arith.addf %19, %25 : vector<24x800xf32>
    %c0_23 = arith.constant 0 : index
    %c4 = arith.constant 4 : index
    %c0_24 = arith.constant 0 : index
    %27 = vector.load %arg1[%c0_23, %c4, %c0_24] : memref<1x28x44xf32, #tpu.memory_space<vmem>>, vector<1x24x44xf32>
    %28 = vector.shape_cast %27 : vector<1x24x44xf32> to vector<24x44xf32>
    %29 = arith.truncf %28 : vector<24x44xf32> to vector<24x44xbf16>
    %c4_25 = arith.constant 4 : index
    %c0_26 = arith.constant 0 : index
    %c0_27 = arith.constant 0 : index
    %30 = vector.load %arg5[%c4_25, %c0_26, %c0_27] : memref<5x44x800xbf16, #tpu.memory_space<vmem>>, vector<1x44x800xbf16>
    %31 = vector.shape_cast %30 : vector<1x44x800xbf16> to vector<44x800xbf16>
    %cst_28 = arith.constant dense<0.000000e+00> : vector<24x800xf32>
    %32 = tpu.matmul %29, %31, %cst_28 {dimension_numbers = #tpu.dot_dimension_numbers<[1], [0], [0], [1], [0, 0, 1, 1], [], []>} : vector<24x44xbf16>, vector<44x800xbf16>, vector<24x800xf32> -> vector<24x800xf32>
    %33 = arith.addf %26, %32 : vector<24x800xf32>
    %c0_29 = arith.constant 0 : index
    %c0_30 = arith.constant 0 : index
    %34 = vector.load %arg6[%c0_29, %c0_30] : memref<1x800xf32, #tpu.memory_space<vmem>>, vector<1x800xf32>
    %35 = vector.broadcast %34 : vector<1x800xf32> to vector<24x800xf32>
    %36 = arith.addf %33, %35 : vector<24x800xf32>
    %cst_31 = arith.constant 0.000000e+00 : f32
    %37 = vector.broadcast %cst_31 : f32 to vector<24x800xf32>
    %38 = arith.maximumf %36, %37 : vector<24x800xf32>
    %c0_32 = arith.constant 0 : index
    %c0_33 = arith.constant 0 : index
    %39 = vector.load %arg30[%c0_32, %c0_33] : memref<24x800xf32, #tpu.memory_space<vmem>>, vector<24x800xf32>
    tpu.vector_store %arg30[%c0_32, %c0_33], %38 {strides = array<i32>} : memref<24x800xf32, #tpu.memory_space<vmem>>, vector<24x800xf32>,
    %c0_34 = arith.constant 0 : index
    %c0_35 = arith.constant 0 : index
    %40 = vector.load %arg30[%c0_34, %c0_35] : memref<24x800xf32, #tpu.memory_space<vmem>>, vector<24x20xf32>
    %c0_36 = arith.constant 0 : index
    %c20 = arith.constant 20 : index
    %41 = vector.load %arg30[%c0_36, %c20] : memref<24x800xf32, #tpu.memory_space<vmem>>, vector<24x20xf32>
    %42 = arith.maximumf %40, %41 : vector<24x20xf32>
    %c0_37 = arith.constant 0 : index
    %c0_38 = arith.constant 0 : index
    %43 = vector.load %arg31[%c0_37, %c0_38] : memref<24x400xf32, #tpu.memory_space<vmem>>, vector<24x20xf32>
    tpu.vector_store %arg31[%c0_37, %c0_38], %42 {strides = array<i32>} : memref<24x400xf32, #tpu.memory_space<vmem>>, vector<24x20xf32>,
    %c0_39 = arith.constant 0 : index
    %c40 = arith.constant 40 : index
    %44 = vector.load %arg30[%c0_39, %c40] : memref<24x800xf32, #tpu.memory_space<vmem>>, vector<24x20xf32>
    %c0_40 = arith.constant 0 : index
    %c60 = arith.constant 60 : index
    %45 = vector.load %arg30[%c0_40, %c60] : memref<24x800xf32, #tpu.memory_space<vmem>>, vector<24x20xf32>
    %46 = arith.maximumf %44, %45 : vector<24x20xf32>
    %c0_41 = arith.constant 0 : index
    %c20_42 = arith.constant 20 : index
    %47 = vector.load %arg31[%c0_41, %c20_42] : memref<24x400xf32, #tpu.memory_space<vmem>>, vector<24x20xf32>
    tpu.vector_store %arg31[%c0_41, %c20_42], %46 {strides = array<i32>} : memref<24x400xf32, #tpu.memory_space<vmem>>, vector<24x20xf32>,
    %c0_43 = arith.constant 0 : index
    %c80 = arith.constant 80 : index
    %48 = vector.load %arg30[%c0_43, %c80] : memref<24x800xf32, #tpu.memory_space<vmem>>, vector<24x20xf32>
    %c0_44 = arith.constant 0 : index
    %c100 = arith.constant 100 : index
    %49 = vector.load %arg30[%c0_44, %c100] : memref<24x800xf32, #tpu.memory_space<vmem>>, vector<24x20xf32>
    %50 = arith.maximumf %48, %49 : vector<24x20xf32>
    %c0_45 = arith.constant 0 : index
    %c40_46 = arith.constant 40 : index
    %51 = vector.load %arg31[%c0_45, %c40_46] : memref<24x400xf32, #tpu.memory_space<vmem>>, vector<24x20xf32>
    tpu.vector_store %arg31[%c0_45, %c40_46], %50 {strides = array<i32>} : memref<24x400xf32, #tpu.memory_space<vmem>>, vector<24x20xf32>,
    %c0_47 = arith.constant 0 : index
    %c120 = arith.constant 120 : index
    %52 = vector.load %arg30[%c0_47, %c120] : memref<24x800xf32, #tpu.memory_space<vmem>>, vector<24x20xf32>
    %c0_48 = arith.constant 0 : index
    %c140 = arith.constant 140 : index
    %53 = vector.load %arg30[%c0_48, %c140] : memref<24x800xf32, #tpu.memory_space<vmem>>, vector<24x20xf32>
    %54 = arith.maximumf %52, %53 : vector<24x20xf32>
    %c0_49 = arith.constant 0 : index
    %c60_50 = arith.constant 60 : index
    %55 = vector.load %arg31[%c0_49, %c60_50] : memref<24x400xf32, #tpu.memory_space<vmem>>, vector<24x20xf32>
    tpu.vector_store %arg31[%c0_49, %c60_50], %54 {strides = array<i32>} : memref<24x400xf32, #tpu.memory_space<vmem>>, vector<24x20xf32>,
    %c0_51 = arith.constant 0 : index
    %c160 = arith.constant 160 : index
    %56 = vector.load %arg30[%c0_51, %c160] : memref<24x800xf32, #tpu.memory_space<vmem>>, vector<24x20xf32>
    %c0_52 = arith.constant 0 : index
    %c180 = arith.constant 180 : index
    %57 = vector.load %arg30[%c0_52, %c180] : memref<24x800xf32, #tpu.memory_space<vmem>>, vector<24x20xf32>
    %58 = arith.maximumf %56, %57 : vector<24x20xf32>
    %c0_53 = arith.constant 0 : index
    %c80_54 = arith.constant 80 : index
    %59 = vector.load %arg31[%c0_53, %c80_54] : memref<24x400xf32, #tpu.memory_space<vmem>>, vector<24x20xf32>
    tpu.vector_store %arg31[%c0_53, %c80_54], %58 {strides = array<i32>} : memref<24x400xf32, #tpu.memory_space<vmem>>, vector<24x20xf32>,
    %c0_55 = arith.constant 0 : index
    %c200 = arith.constant 200 : index
    %60 = vector.load %arg30[%c0_55, %c200] : memref<24x800xf32, #tpu.memory_space<vmem>>, vector<24x20xf32>
    %c0_56 = arith.constant 0 : index
    %c220 = arith.constant 220 : index
    %61 = vector.load %arg30[%c0_56, %c220] : memref<24x800xf32, #tpu.memory_space<vmem>>, vector<24x20xf32>
    %62 = arith.maximumf %60, %61 : vector<24x20xf32>
    %c0_57 = arith.constant 0 : index
    %c100_58 = arith.constant 100 : index
    %63 = vector.load %arg31[%c0_57, %c100_58] : memref<24x400xf32, #tpu.memory_space<vmem>>, vector<24x20xf32>
    tpu.vector_store %arg31[%c0_57, %c100_58], %62 {strides = array<i32>} : memref<24x400xf32, #tpu.memory_space<vmem>>, vector<24x20xf32>,
    %c0_59 = arith.constant 0 : index
    %c240 = arith.constant 240 : index
    %64 = vector.load %arg30[%c0_59, %c240] : memref<24x800xf32, #tpu.memory_space<vmem>>, vector<24x20xf32>
    %c0_60 = arith.constant 0 : index
    %c260 = arith.constant 260 : index
    %65 = vector.load %arg30[%c0_60, %c260] : memref<24x800xf32, #tpu.memory_space<vmem>>, vector<24x20xf32>
    %66 = arith.maximumf %64, %65 : vector<24x20xf32>
    %c0_61 = arith.constant 0 : index
    %c120_62 = arith.constant 120 : index
    %67 = vector.load %arg31[%c0_61, %c120_62] : memref<24x400xf32, #tpu.memory_space<vmem>>, vector<24x20xf32>
    tpu.vector_store %arg31[%c0_61, %c120_62], %66 {strides = array<i32>} : memref<24x400xf32, #tpu.memory_space<vmem>>, vector<24x20xf32>,
    %c0_63 = arith.constant 0 : index
    %c280 = arith.constant 280 : index
    %68 = vector.load %arg30[%c0_63, %c280] : memref<24x800xf32, #tpu.memory_space<vmem>>, vector<24x20xf32>
    %c0_64 = arith.constant 0 : index
    %c300 = arith.constant 300 : index
    %69 = vector.load %arg30[%c0_64, %c300] : memref<24x800xf32, #tpu.memory_space<vmem>>, vector<24x20xf32>
    %70 = arith.maximumf %68, %69 : vector<24x20xf32>
    %c0_65 = arith.constant 0 : index
    %c140_66 = arith.constant 140 : index
    %71 = vector.load %arg31[%c0_65, %c140_66] : memref<24x400xf32, #tpu.memory_space<vmem>>, vector<24x20xf32>
    tpu.vector_store %arg31[%c0_65, %c140_66], %70 {strides = array<i32>} : memref<24x400xf32, #tpu.memory_space<vmem>>, vector<24x20xf32>,
    %c0_67 = arith.constant 0 : index
    %c320 = arith.constant 320 : index
    %72 = vector.load %arg30[%c0_67, %c320] : memref<24x800xf32, #tpu.memory_space<vmem>>, vector<24x20xf32>
    %c0_68 = arith.constant 0 : index
    %c340 = arith.constant 340 : index
    %73 = vector.load %arg30[%c0_68, %c340] : memref<24x800xf32, #tpu.memory_space<vmem>>, vector<24x20xf32>
    %74 = arith.maximumf %72, %73 : vector<24x20xf32>
    %c0_69 = arith.constant 0 : index
    %c160_70 = arith.constant 160 : index
    %75 = vector.load %arg31[%c0_69, %c160_70] : memref<24x400xf32, #tpu.memory_space<vmem>>, vector<24x20xf32>
    tpu.vector_store %arg31[%c0_69, %c160_70], %74 {strides = array<i32>} : memref<24x400xf32, #tpu.memory_space<vmem>>, vector<24x20xf32>,
    %c0_71 = arith.constant 0 : index
    %c360 = arith.constant 360 : index
    %76 = vector.load %arg30[%c0_71, %c360] : memref<24x800xf32, #tpu.memory_space<vmem>>, vector<24x20xf32>
    %c0_72 = arith.constant 0 : index
    %c380 = arith.constant 380 : index
    %77 = vector.load %arg30[%c0_72, %c380] : memref<24x800xf32, #tpu.memory_space<vmem>>, vector<24x20xf32>
    %78 = arith.maximumf %76, %77 : vector<24x20xf32>
    %c0_73 = arith.constant 0 : index
    %c180_74 = arith.constant 180 : index
    %79 = vector.load %arg31[%c0_73, %c180_74] : memref<24x400xf32, #tpu.memory_space<vmem>>, vector<24x20xf32>
    tpu.vector_store %arg31[%c0_73, %c180_74], %78 {strides = array<i32>} : memref<24x400xf32, #tpu.memory_space<vmem>>, vector<24x20xf32>,
    %c0_75 = arith.constant 0 : index
    %c400 = arith.constant 400 : index
    %80 = vector.load %arg30[%c0_75, %c400] : memref<24x800xf32, #tpu.memory_space<vmem>>, vector<24x20xf32>
    %c0_76 = arith.constant 0 : index
    %c420 = arith.constant 420 : index
    %81 = vector.load %arg30[%c0_76, %c420] : memref<24x800xf32, #tpu.memory_space<vmem>>, vector<24x20xf32>
    %82 = arith.maximumf %80, %81 : vector<24x20xf32>
    %c0_77 = arith.constant 0 : index
    %c200_78 = arith.constant 200 : index
    %83 = vector.load %arg31[%c0_77, %c200_78] : memref<24x400xf32, #tpu.memory_space<vmem>>, vector<24x20xf32>
    tpu.vector_store %arg31[%c0_77, %c200_78], %82 {strides = array<i32>} : memref<24x400xf32, #tpu.memory_space<vmem>>, vector<24x20xf32>,
    %c0_79 = arith.constant 0 : index
    %c440 = arith.constant 440 : index
    %84 = vector.load %arg30[%c0_79, %c440] : memref<24x800xf32, #tpu.memory_space<vmem>>, vector<24x20xf32>
    %c0_80 = arith.constant 0 : index
    %c460 = arith.constant 460 : index
    %85 = vector.load %arg30[%c0_80, %c460] : memref<24x800xf32, #tpu.memory_space<vmem>>, vector<24x20xf32>
    %86 = arith.maximumf %84, %85 : vector<24x20xf32>
    %c0_81 = arith.constant 0 : index
    %c220_82 = arith.constant 220 : index
    %87 = vector.load %arg31[%c0_81, %c220_82] : memref<24x400xf32, #tpu.memory_space<vmem>>, vector<24x20xf32>
    tpu.vector_store %arg31[%c0_81, %c220_82], %86 {strides = array<i32>} : memref<24x400xf32, #tpu.memory_space<vmem>>, vector<24x20xf32>,
    %c0_83 = arith.constant 0 : index
    %c480 = arith.constant 480 : index
    %88 = vector.load %arg30[%c0_83, %c480] : memref<24x800xf32, #tpu.memory_space<vmem>>, vector<24x20xf32>
    %c0_84 = arith.constant 0 : index
    %c500 = arith.constant 500 : index
    %89 = vector.load %arg30[%c0_84, %c500] : memref<24x800xf32, #tpu.memory_space<vmem>>, vector<24x20xf32>
    %90 = arith.maximumf %88, %89 : vector<24x20xf32>
    %c0_85 = arith.constant 0 : index
    %c240_86 = arith.constant 240 : index
    %91 = vector.load %arg31[%c0_85, %c240_86] : memref<24x400xf32, #tpu.memory_space<vmem>>, vector<24x20xf32>
    tpu.vector_store %arg31[%c0_85, %c240_86], %90 {strides = array<i32>} : memref<24x400xf32, #tpu.memory_space<vmem>>, vector<24x20xf32>,
    %c0_87 = arith.constant 0 : index
    %c520 = arith.constant 520 : index
    %92 = vector.load %arg30[%c0_87, %c520] : memref<24x800xf32, #tpu.memory_space<vmem>>, vector<24x20xf32>
    %c0_88 = arith.constant 0 : index
    %c540 = arith.constant 540 : index
    %93 = vector.load %arg30[%c0_88, %c540] : memref<24x800xf32, #tpu.memory_space<vmem>>, vector<24x20xf32>
    %94 = arith.maximumf %92, %93 : vector<24x20xf32>
    %c0_89 = arith.constant 0 : index
    %c260_90 = arith.constant 260 : index
    %95 = vector.load %arg31[%c0_89, %c260_90] : memref<24x400xf32, #tpu.memory_space<vmem>>, vector<24x20xf32>
    tpu.vector_store %arg31[%c0_89, %c260_90], %94 {strides = array<i32>} : memref<24x400xf32, #tpu.memory_space<vmem>>, vector<24x20xf32>,
    %c0_91 = arith.constant 0 : index
    %c560 = arith.constant 560 : index
    %96 = vector.load %arg30[%c0_91, %c560] : memref<24x800xf32, #tpu.memory_space<vmem>>, vector<24x20xf32>
    %c0_92 = arith.constant 0 : index
    %c580 = arith.constant 580 : index
    %97 = vector.load %arg30[%c0_92, %c580] : memref<24x800xf32, #tpu.memory_space<vmem>>, vector<24x20xf32>
    %98 = arith.maximumf %96, %97 : vector<24x20xf32>
    %c0_93 = arith.constant 0 : index
    %c280_94 = arith.constant 280 : index
    %99 = vector.load %arg31[%c0_93, %c280_94] : memref<24x400xf32, #tpu.memory_space<vmem>>, vector<24x20xf32>
    tpu.vector_store %arg31[%c0_93, %c280_94], %98 {strides = array<i32>} : memref<24x400xf32, #tpu.memory_space<vmem>>, vector<24x20xf32>,
    %c0_95 = arith.constant 0 : index
    %c600 = arith.constant 600 : index
    %100 = vector.load %arg30[%c0_95, %c600] : memref<24x800xf32, #tpu.memory_space<vmem>>, vector<24x20xf32>
    %c0_96 = arith.constant 0 : index
    %c620 = arith.constant 620 : index
    %101 = vector.load %arg30[%c0_96, %c620] : memref<24x800xf32, #tpu.memory_space<vmem>>, vector<24x20xf32>
    %102 = arith.maximumf %100, %101 : vector<24x20xf32>
    %c0_97 = arith.constant 0 : index
    %c300_98 = arith.constant 300 : index
    %103 = vector.load %arg31[%c0_97, %c300_98] : memref<24x400xf32, #tpu.memory_space<vmem>>, vector<24x20xf32>
    tpu.vector_store %arg31[%c0_97, %c300_98], %102 {strides = array<i32>} : memref<24x400xf32, #tpu.memory_space<vmem>>, vector<24x20xf32>,
    %c0_99 = arith.constant 0 : index
    %c640 = arith.constant 640 : index
    %104 = vector.load %arg30[%c0_99, %c640] : memref<24x800xf32, #tpu.memory_space<vmem>>, vector<24x20xf32>
    %c0_100 = arith.constant 0 : index
    %c660 = arith.constant 660 : index
    %105 = vector.load %arg30[%c0_100, %c660] : memref<24x800xf32, #tpu.memory_space<vmem>>, vector<24x20xf32>
    %106 = arith.maximumf %104, %105 : vector<24x20xf32>
    %c0_101 = arith.constant 0 : index
    %c320_102 = arith.constant 320 : index
    %107 = vector.load %arg31[%c0_101, %c320_102] : memref<24x400xf32, #tpu.memory_space<vmem>>, vector<24x20xf32>
    tpu.vector_store %arg31[%c0_101, %c320_102], %106 {strides = array<i32>} : memref<24x400xf32, #tpu.memory_space<vmem>>, vector<24x20xf32>,
    %c0_103 = arith.constant 0 : index
    %c680 = arith.constant 680 : index
    %108 = vector.load %arg30[%c0_103, %c680] : memref<24x800xf32, #tpu.memory_space<vmem>>, vector<24x20xf32>
    %c0_104 = arith.constant 0 : index
    %c700 = arith.constant 700 : index
    %109 = vector.load %arg30[%c0_104, %c700] : memref<24x800xf32, #tpu.memory_space<vmem>>, vector<24x20xf32>
    %110 = arith.maximumf %108, %109 : vector<24x20xf32>
    %c0_105 = arith.constant 0 : index
    %c340_106 = arith.constant 340 : index
    %111 = vector.load %arg31[%c0_105, %c340_106] : memref<24x400xf32, #tpu.memory_space<vmem>>, vector<24x20xf32>
    tpu.vector_store %arg31[%c0_105, %c340_106], %110 {strides = array<i32>} : memref<24x400xf32, #tpu.memory_space<vmem>>, vector<24x20xf32>,
    %c0_107 = arith.constant 0 : index
    %c720 = arith.constant 720 : index
    %112 = vector.load %arg30[%c0_107, %c720] : memref<24x800xf32, #tpu.memory_space<vmem>>, vector<24x20xf32>
    %c0_108 = arith.constant 0 : index
    %c740 = arith.constant 740 : index
    %113 = vector.load %arg30[%c0_108, %c740] : memref<24x800xf32, #tpu.memory_space<vmem>>, vector<24x20xf32>
    %114 = arith.maximumf %112, %113 : vector<24x20xf32>
    %c0_109 = arith.constant 0 : index
    %c360_110 = arith.constant 360 : index
    %115 = vector.load %arg31[%c0_109, %c360_110] : memref<24x400xf32, #tpu.memory_space<vmem>>, vector<24x20xf32>
    tpu.vector_store %arg31[%c0_109, %c360_110], %114 {strides = array<i32>} : memref<24x400xf32, #tpu.memory_space<vmem>>, vector<24x20xf32>,
    %c0_111 = arith.constant 0 : index
    %c760 = arith.constant 760 : index
    %116 = vector.load %arg30[%c0_111, %c760] : memref<24x800xf32, #tpu.memory_space<vmem>>, vector<24x20xf32>
    %c0_112 = arith.constant 0 : index
    %c780 = arith.constant 780 : index
    %117 = vector.load %arg30[%c0_112, %c780] : memref<24x800xf32, #tpu.memory_space<vmem>>, vector<24x20xf32>
    %118 = arith.maximumf %116, %117 : vector<24x20xf32>
    %c0_113 = arith.constant 0 : index
    %c380_114 = arith.constant 380 : index
    %119 = vector.load %arg31[%c0_113, %c380_114] : memref<24x400xf32, #tpu.memory_space<vmem>>, vector<24x20xf32>
    tpu.vector_store %arg31[%c0_113, %c380_114], %118 {strides = array<i32>} : memref<24x400xf32, #tpu.memory_space<vmem>>, vector<24x20xf32>,
    %c0_115 = arith.constant 0 : index
    %c0_116 = arith.constant 0 : index
    %120 = vector.load %arg31[%c0_115, %c0_116] : memref<24x400xf32, #tpu.memory_space<vmem>>, vector<1x400xf32>
    %c1_117 = arith.constant 1 : index
    %c0_118 = arith.constant 0 : index
    %121 = vector.load %arg31[%c1_117, %c0_118] : memref<24x400xf32, #tpu.memory_space<vmem>>, vector<1x400xf32>
    %122 = arith.maximumf %120, %121 : vector<1x400xf32>
    %c0_119 = arith.constant 0 : index
    %c0_120 = arith.constant 0 : index
    %123 = vector.load %arg32[%c0_119, %c0_120] : memref<12x400xf32, #tpu.memory_space<vmem>>, vector<1x400xf32>
    tpu.vector_store %arg32[%c0_119, %c0_120], %122 {strides = array<i32>} : memref<12x400xf32, #tpu.memory_space<vmem>>, vector<1x400xf32>,
    %c2_121 = arith.constant 2 : index
    %c0_122 = arith.constant 0 : index
    %124 = vector.load %arg31[%c2_121, %c0_122] : memref<24x400xf32, #tpu.memory_space<vmem>>, vector<1x400xf32>
    %c3_123 = arith.constant 3 : index
    %c0_124 = arith.constant 0 : index
    %125 = vector.load %arg31[%c3_123, %c0_124] : memref<24x400xf32, #tpu.memory_space<vmem>>, vector<1x400xf32>
    %126 = arith.maximumf %124, %125 : vector<1x400xf32>
    %c1_125 = arith.constant 1 : index
    %c0_126 = arith.constant 0 : index
    %127 = vector.load %arg32[%c1_125, %c0_126] : memref<12x400xf32, #tpu.memory_space<vmem>>, vector<1x400xf32>
    tpu.vector_store %arg32[%c1_125, %c0_126], %126 {strides = array<i32>} : memref<12x400xf32, #tpu.memory_space<vmem>>, vector<1x400xf32>,
    %c4_127 = arith.constant 4 : index
    %c0_128 = arith.constant 0 : index
    %128 = vector.load %arg31[%c4_127, %c0_128] : memref<24x400xf32, #tpu.memory_space<vmem>>, vector<1x400xf32>
    %c5 = arith.constant 5 : index
    %c0_129 = arith.constant 0 : index
    %129 = vector.load %arg31[%c5, %c0_129] : memref<24x400xf32, #tpu.memory_space<vmem>>, vector<1x400xf32>
    %130 = arith.maximumf %128, %129 : vector<1x400xf32>
    %c2_130 = arith.constant 2 : index
    %c0_131 = arith.constant 0 : index
    %131 = vector.load %arg32[%c2_130, %c0_131] : memref<12x400xf32, #tpu.memory_space<vmem>>, vector<1x400xf32>
    tpu.vector_store %arg32[%c2_130, %c0_131], %130 {strides = array<i32>} : memref<12x400xf32, #tpu.memory_space<vmem>>, vector<1x400xf32>,
    %c6 = arith.constant 6 : index
    %c0_132 = arith.constant 0 : index
    %132 = vector.load %arg31[%c6, %c0_132] : memref<24x400xf32, #tpu.memory_space<vmem>>, vector<1x400xf32>
    %c7 = arith.constant 7 : index
    %c0_133 = arith.constant 0 : index
    %133 = vector.load %arg31[%c7, %c0_133] : memref<24x400xf32, #tpu.memory_space<vmem>>, vector<1x400xf32>
    %134 = arith.maximumf %132, %133 : vector<1x400xf32>
    %c3_134 = arith.constant 3 : index
    %c0_135 = arith.constant 0 : index
    %135 = vector.load %arg32[%c3_134, %c0_135] : memref<12x400xf32, #tpu.memory_space<vmem>>, vector<1x400xf32>
    tpu.vector_store %arg32[%c3_134, %c0_135], %134 {strides = array<i32>} : memref<12x400xf32, #tpu.memory_space<vmem>>, vector<1x400xf32>,
    %c8 = arith.constant 8 : index
    %c0_136 = arith.constant 0 : index
    %136 = vector.load %arg31[%c8, %c0_136] : memref<24x400xf32, #tpu.memory_space<vmem>>, vector<1x400xf32>
    %c9 = arith.constant 9 : index
    %c0_137 = arith.constant 0 : index
    %137 = vector.load %arg31[%c9, %c0_137] : memref<24x400xf32, #tpu.memory_space<vmem>>, vector<1x400xf32>
    %138 = arith.maximumf %136, %137 : vector<1x400xf32>
    %c4_138 = arith.constant 4 : index
    %c0_139 = arith.constant 0 : index
    %139 = vector.load %arg32[%c4_138, %c0_139] : memref<12x400xf32, #tpu.memory_space<vmem>>, vector<1x400xf32>
    tpu.vector_store %arg32[%c4_138, %c0_139], %138 {strides = array<i32>} : memref<12x400xf32, #tpu.memory_space<vmem>>, vector<1x400xf32>,
    %c10 = arith.constant 10 : index
    %c0_140 = arith.constant 0 : index
    %140 = vector.load %arg31[%c10, %c0_140] : memref<24x400xf32, #tpu.memory_space<vmem>>, vector<1x400xf32>
    %c11 = arith.constant 11 : index
    %c0_141 = arith.constant 0 : index
    %141 = vector.load %arg31[%c11, %c0_141] : memref<24x400xf32, #tpu.memory_space<vmem>>, vector<1x400xf32>
    %142 = arith.maximumf %140, %141 : vector<1x400xf32>
    %c5_142 = arith.constant 5 : index
    %c0_143 = arith.constant 0 : index
    %143 = vector.load %arg32[%c5_142, %c0_143] : memref<12x400xf32, #tpu.memory_space<vmem>>, vector<1x400xf32>
    tpu.vector_store %arg32[%c5_142, %c0_143], %142 {strides = array<i32>} : memref<12x400xf32, #tpu.memory_space<vmem>>, vector<1x400xf32>,
    %c12 = arith.constant 12 : index
    %c0_144 = arith.constant 0 : index
    %144 = vector.load %arg31[%c12, %c0_144] : memref<24x400xf32, #tpu.memory_space<vmem>>, vector<1x400xf32>
    %c13 = arith.constant 13 : index
    %c0_145 = arith.constant 0 : index
    %145 = vector.load %arg31[%c13, %c0_145] : memref<24x400xf32, #tpu.memory_space<vmem>>, vector<1x400xf32>
    %146 = arith.maximumf %144, %145 : vector<1x400xf32>
    %c6_146 = arith.constant 6 : index
    %c0_147 = arith.constant 0 : index
    %147 = vector.load %arg32[%c6_146, %c0_147] : memref<12x400xf32, #tpu.memory_space<vmem>>, vector<1x400xf32>
    tpu.vector_store %arg32[%c6_146, %c0_147], %146 {strides = array<i32>} : memref<12x400xf32, #tpu.memory_space<vmem>>, vector<1x400xf32>,
    %c14 = arith.constant 14 : index
    %c0_148 = arith.constant 0 : index
    %148 = vector.load %arg31[%c14, %c0_148] : memref<24x400xf32, #tpu.memory_space<vmem>>, vector<1x400xf32>
    %c15 = arith.constant 15 : index
    %c0_149 = arith.constant 0 : index
    %149 = vector.load %arg31[%c15, %c0_149] : memref<24x400xf32, #tpu.memory_space<vmem>>, vector<1x400xf32>
    %150 = arith.maximumf %148, %149 : vector<1x400xf32>
    %c7_150 = arith.constant 7 : index
    %c0_151 = arith.constant 0 : index
    %151 = vector.load %arg32[%c7_150, %c0_151] : memref<12x400xf32, #tpu.memory_space<vmem>>, vector<1x400xf32>
    tpu.vector_store %arg32[%c7_150, %c0_151], %150 {strides = array<i32>} : memref<12x400xf32, #tpu.memory_space<vmem>>, vector<1x400xf32>,
    %c16 = arith.constant 16 : index
    %c0_152 = arith.constant 0 : index
    %152 = vector.load %arg31[%c16, %c0_152] : memref<24x400xf32, #tpu.memory_space<vmem>>, vector<1x400xf32>
    %c17 = arith.constant 17 : index
    %c0_153 = arith.constant 0 : index
    %153 = vector.load %arg31[%c17, %c0_153] : memref<24x400xf32, #tpu.memory_space<vmem>>, vector<1x400xf32>
    %154 = arith.maximumf %152, %153 : vector<1x400xf32>
    %c8_154 = arith.constant 8 : index
    %c0_155 = arith.constant 0 : index
    %155 = vector.load %arg32[%c8_154, %c0_155] : memref<12x400xf32, #tpu.memory_space<vmem>>, vector<1x400xf32>
    tpu.vector_store %arg32[%c8_154, %c0_155], %154 {strides = array<i32>} : memref<12x400xf32, #tpu.memory_space<vmem>>, vector<1x400xf32>,
    %c18 = arith.constant 18 : index
    %c0_156 = arith.constant 0 : index
    %156 = vector.load %arg31[%c18, %c0_156] : memref<24x400xf32, #tpu.memory_space<vmem>>, vector<1x400xf32>
    %c19 = arith.constant 19 : index
    %c0_157 = arith.constant 0 : index
    %157 = vector.load %arg31[%c19, %c0_157] : memref<24x400xf32, #tpu.memory_space<vmem>>, vector<1x400xf32>
    %158 = arith.maximumf %156, %157 : vector<1x400xf32>
    %c9_158 = arith.constant 9 : index
    %c0_159 = arith.constant 0 : index
    %159 = vector.load %arg32[%c9_158, %c0_159] : memref<12x400xf32, #tpu.memory_space<vmem>>, vector<1x400xf32>
    tpu.vector_store %arg32[%c9_158, %c0_159], %158 {strides = array<i32>} : memref<12x400xf32, #tpu.memory_space<vmem>>, vector<1x400xf32>,
    %c20_160 = arith.constant 20 : index
    %c0_161 = arith.constant 0 : index
    %160 = vector.load %arg31[%c20_160, %c0_161] : memref<24x400xf32, #tpu.memory_space<vmem>>, vector<1x400xf32>
    %c21 = arith.constant 21 : index
    %c0_162 = arith.constant 0 : index
    %161 = vector.load %arg31[%c21, %c0_162] : memref<24x400xf32, #tpu.memory_space<vmem>>, vector<1x400xf32>
    %162 = arith.maximumf %160, %161 : vector<1x400xf32>
    %c10_163 = arith.constant 10 : index
    %c0_164 = arith.constant 0 : index
    %163 = vector.load %arg32[%c10_163, %c0_164] : memref<12x400xf32, #tpu.memory_space<vmem>>, vector<1x400xf32>
    tpu.vector_store %arg32[%c10_163, %c0_164], %162 {strides = array<i32>} : memref<12x400xf32, #tpu.memory_space<vmem>>, vector<1x400xf32>,
    %c22 = arith.constant 22 : index
    %c0_165 = arith.constant 0 : index
    %164 = vector.load %arg31[%c22, %c0_165] : memref<24x400xf32, #tpu.memory_space<vmem>>, vector<1x400xf32>
    %c23 = arith.constant 23 : index
    %c0_166 = arith.constant 0 : index
    %165 = vector.load %arg31[%c23, %c0_166] : memref<24x400xf32, #tpu.memory_space<vmem>>, vector<1x400xf32>
    %166 = arith.maximumf %164, %165 : vector<1x400xf32>
    %c11_167 = arith.constant 11 : index
    %c0_168 = arith.constant 0 : index
    %167 = vector.load %arg32[%c11_167, %c0_168] : memref<12x400xf32, #tpu.memory_space<vmem>>, vector<1x400xf32>
    tpu.vector_store %arg32[%c11_167, %c0_168], %166 {strides = array<i32>} : memref<12x400xf32, #tpu.memory_space<vmem>>, vector<1x400xf32>,
    %c0_169 = arith.constant 0 : index
    %c0_170 = arith.constant 0 : index
    %168 = vector.load %arg32[%c0_169, %c0_170] : memref<12x400xf32, #tpu.memory_space<vmem>>, vector<8x400xf32>
    %169 = arith.truncf %168 : vector<8x400xf32> to vector<8x400xbf16>
    %c0_171 = arith.constant 0 : index
    %c0_172 = arith.constant 0 : index
    %c0_173 = arith.constant 0 : index
    %170 = vector.load %arg7[%c0_171, %c0_172, %c0_173] : memref<5x400x800xbf16, #tpu.memory_space<vmem>>, vector<1x400x800xbf16>
    %171 = vector.shape_cast %170 : vector<1x400x800xbf16> to vector<400x800xbf16>
    %cst_174 = arith.constant dense<0.000000e+00> : vector<8x800xf32>
    %172 = tpu.matmul %169, %171, %cst_174 {dimension_numbers = #tpu.dot_dimension_numbers<[1], [0], [0], [1], [0, 0, 1, 1], [], []>} : vector<8x400xbf16>, vector<400x800xbf16>, vector<8x800xf32> -> vector<8x800xf32>
    %c1_175 = arith.constant 1 : index
    %c0_176 = arith.constant 0 : index
    %173 = vector.load %arg32[%c1_175, %c0_176] : memref<12x400xf32, #tpu.memory_space<vmem>>, vector<8x400xf32>
    %174 = arith.truncf %173 : vector<8x400xf32> to vector<8x400xbf16>
    %c1_177 = arith.constant 1 : index
    %c0_178 = arith.constant 0 : index
    %c0_179 = arith.constant 0 : index
    %175 = vector.load %arg7[%c1_177, %c0_178, %c0_179] : memref<5x400x800xbf16, #tpu.memory_space<vmem>>, vector<1x400x800xbf16>
    %176 = vector.shape_cast %175 : vector<1x400x800xbf16> to vector<400x800xbf16>
    %cst_180 = arith.constant dense<0.000000e+00> : vector<8x800xf32>
    %177 = tpu.matmul %174, %176, %cst_180 {dimension_numbers = #tpu.dot_dimension_numbers<[1], [0], [0], [1], [0, 0, 1, 1], [], []>} : vector<8x400xbf16>, vector<400x800xbf16>, vector<8x800xf32> -> vector<8x800xf32>
    %178 = arith.addf %172, %177 : vector<8x800xf32>
    %c2_181 = arith.constant 2 : index
    %c0_182 = arith.constant 0 : index
    %179 = vector.load %arg32[%c2_181, %c0_182] : memref<12x400xf32, #tpu.memory_space<vmem>>, vector<8x400xf32>
    %180 = arith.truncf %179 : vector<8x400xf32> to vector<8x400xbf16>
    %c2_183 = arith.constant 2 : index
    %c0_184 = arith.constant 0 : index
    %c0_185 = arith.constant 0 : index
    %181 = vector.load %arg7[%c2_183, %c0_184, %c0_185] : memref<5x400x800xbf16, #tpu.memory_space<vmem>>, vector<1x400x800xbf16>
    %182 = vector.shape_cast %181 : vector<1x400x800xbf16> to vector<400x800xbf16>
    %cst_186 = arith.constant dense<0.000000e+00> : vector<8x800xf32>
    %183 = tpu.matmul %180, %182, %cst_186 {dimension_numbers = #tpu.dot_dimension_numbers<[1], [0], [0], [1], [0, 0, 1, 1], [], []>} : vector<8x400xbf16>, vector<400x800xbf16>, vector<8x800xf32> -> vector<8x800xf32>
    %184 = arith.addf %178, %183 : vector<8x800xf32>
    %c3_187 = arith.constant 3 : index
    %c0_188 = arith.constant 0 : index
    %185 = vector.load %arg32[%c3_187, %c0_188] : memref<12x400xf32, #tpu.memory_space<vmem>>, vector<8x400xf32>
    %186 = arith.truncf %185 : vector<8x400xf32> to vector<8x400xbf16>
    %c3_189 = arith.constant 3 : index
    %c0_190 = arith.constant 0 : index
    %c0_191 = arith.constant 0 : index
    %187 = vector.load %arg7[%c3_189, %c0_190, %c0_191] : memref<5x400x800xbf16, #tpu.memory_space<vmem>>, vector<1x400x800xbf16>
    %188 = vector.shape_cast %187 : vector<1x400x800xbf16> to vector<400x800xbf16>
    %cst_192 = arith.constant dense<0.000000e+00> : vector<8x800xf32>
    %189 = tpu.matmul %186, %188, %cst_192 {dimension_numbers = #tpu.dot_dimension_numbers<[1], [0], [0], [1], [0, 0, 1, 1], [], []>} : vector<8x400xbf16>, vector<400x800xbf16>, vector<8x800xf32> -> vector<8x800xf32>
    %190 = arith.addf %184, %189 : vector<8x800xf32>
    %c4_193 = arith.constant 4 : index
    %c0_194 = arith.constant 0 : index
    %191 = vector.load %arg32[%c4_193, %c0_194] : memref<12x400xf32, #tpu.memory_space<vmem>>, vector<8x400xf32>
    %192 = arith.truncf %191 : vector<8x400xf32> to vector<8x400xbf16>
    %c4_195 = arith.constant 4 : index
    %c0_196 = arith.constant 0 : index
    %c0_197 = arith.constant 0 : index
    %193 = vector.load %arg7[%c4_195, %c0_196, %c0_197] : memref<5x400x800xbf16, #tpu.memory_space<vmem>>, vector<1x400x800xbf16>
    %194 = vector.shape_cast %193 : vector<1x400x800xbf16> to vector<400x800xbf16>
    %cst_198 = arith.constant dense<0.000000e+00> : vector<8x800xf32>
    %195 = tpu.matmul %192, %194, %cst_198 {dimension_numbers = #tpu.dot_dimension_numbers<[1], [0], [0], [1], [0, 0, 1, 1], [], []>} : vector<8x400xbf16>, vector<400x800xbf16>, vector<8x800xf32> -> vector<8x800xf32>
    %196 = arith.addf %190, %195 : vector<8x800xf32>
    %c0_199 = arith.constant 0 : index
    %c0_200 = arith.constant 0 : index
    %197 = vector.load %arg8[%c0_199, %c0_200] : memref<1x800xf32, #tpu.memory_space<vmem>>, vector<1x800xf32>
    %198 = vector.broadcast %197 : vector<1x800xf32> to vector<8x800xf32>
    %199 = arith.addf %196, %198 : vector<8x800xf32>
    %cst_201 = arith.constant 0.000000e+00 : f32
    %200 = vector.broadcast %cst_201 : f32 to vector<8x800xf32>
    %201 = arith.maximumf %199, %200 : vector<8x800xf32>
    %c0_202 = arith.constant 0 : index
    %c0_203 = arith.constant 0 : index
    %202 = vector.load %arg33[%c0_202, %c0_203] : memref<8x800xf32, #tpu.memory_space<vmem>>, vector<8x800xf32>
    tpu.vector_store %arg33[%c0_202, %c0_203], %201 {strides = array<i32>} : memref<8x800xf32, #tpu.memory_space<vmem>>, vector<8x800xf32>,
    %c0_204 = arith.constant 0 : index
    %c0_205 = arith.constant 0 : index
    %203 = vector.load %arg33[%c0_204, %c0_205] : memref<8x800xf32, #tpu.memory_space<vmem>>, vector<8x50xf32>
    %c0_206 = arith.constant 0 : index
    %c50 = arith.constant 50 : index
    %204 = vector.load %arg33[%c0_206, %c50] : memref<8x800xf32, #tpu.memory_space<vmem>>, vector<8x50xf32>
    %205 = arith.maximumf %203, %204 : vector<8x50xf32>
    %c0_207 = arith.constant 0 : index
    %c0_208 = arith.constant 0 : index
    %206 = vector.load %arg34[%c0_207, %c0_208] : memref<8x400xf32, #tpu.memory_space<vmem>>, vector<8x50xf32>
    tpu.vector_store %arg34[%c0_207, %c0_208], %205 {strides = array<i32>} : memref<8x400xf32, #tpu.memory_space<vmem>>, vector<8x50xf32>,
    %c0_209 = arith.constant 0 : index
    %c100_210 = arith.constant 100 : index
    %207 = vector.load %arg33[%c0_209, %c100_210] : memref<8x800xf32, #tpu.memory_space<vmem>>, vector<8x50xf32>
    %c0_211 = arith.constant 0 : index
    %c150 = arith.constant 150 : index
    %208 = vector.load %arg33[%c0_211, %c150] : memref<8x800xf32, #tpu.memory_space<vmem>>, vector<8x50xf32>
    %209 = arith.maximumf %207, %208 : vector<8x50xf32>
    %c0_212 = arith.constant 0 : index
    %c50_213 = arith.constant 50 : index
    %210 = vector.load %arg34[%c0_212, %c50_213] : memref<8x400xf32, #tpu.memory_space<vmem>>, vector<8x50xf32>
    tpu.vector_store %arg34[%c0_212, %c50_213], %209 {strides = array<i32>} : memref<8x400xf32, #tpu.memory_space<vmem>>, vector<8x50xf32>,
    %c0_214 = arith.constant 0 : index
    %c200_215 = arith.constant 200 : index
    %211 = vector.load %arg33[%c0_214, %c200_215] : memref<8x800xf32, #tpu.memory_space<vmem>>, vector<8x50xf32>
    %c0_216 = arith.constant 0 : index
    %c250 = arith.constant 250 : index
    %212 = vector.load %arg33[%c0_216, %c250] : memref<8x800xf32, #tpu.memory_space<vmem>>, vector<8x50xf32>
    %213 = arith.maximumf %211, %212 : vector<8x50xf32>
    %c0_217 = arith.constant 0 : index
    %c100_218 = arith.constant 100 : index
    %214 = vector.load %arg34[%c0_217, %c100_218] : memref<8x400xf32, #tpu.memory_space<vmem>>, vector<8x50xf32>
    tpu.vector_store %arg34[%c0_217, %c100_218], %213 {strides = array<i32>} : memref<8x400xf32, #tpu.memory_space<vmem>>, vector<8x50xf32>,
    %c0_219 = arith.constant 0 : index
    %c300_220 = arith.constant 300 : index
    %215 = vector.load %arg33[%c0_219, %c300_220] : memref<8x800xf32, #tpu.memory_space<vmem>>, vector<8x50xf32>
    %c0_221 = arith.constant 0 : index
    %c350 = arith.constant 350 : index
    %216 = vector.load %arg33[%c0_221, %c350] : memref<8x800xf32, #tpu.memory_space<vmem>>, vector<8x50xf32>
    %217 = arith.maximumf %215, %216 : vector<8x50xf32>
    %c0_222 = arith.constant 0 : index
    %c150_223 = arith.constant 150 : index
    %218 = vector.load %arg34[%c0_222, %c150_223] : memref<8x400xf32, #tpu.memory_space<vmem>>, vector<8x50xf32>
    tpu.vector_store %arg34[%c0_222, %c150_223], %217 {strides = array<i32>} : memref<8x400xf32, #tpu.memory_space<vmem>>, vector<8x50xf32>,
    %c0_224 = arith.constant 0 : index
    %c400_225 = arith.constant 400 : index
    %219 = vector.load %arg33[%c0_224, %c400_225] : memref<8x800xf32, #tpu.memory_space<vmem>>, vector<8x50xf32>
    %c0_226 = arith.constant 0 : index
    %c450 = arith.constant 450 : index
    %220 = vector.load %arg33[%c0_226, %c450] : memref<8x800xf32, #tpu.memory_space<vmem>>, vector<8x50xf32>
    %221 = arith.maximumf %219, %220 : vector<8x50xf32>
    %c0_227 = arith.constant 0 : index
    %c200_228 = arith.constant 200 : index
    %222 = vector.load %arg34[%c0_227, %c200_228] : memref<8x400xf32, #tpu.memory_space<vmem>>, vector<8x50xf32>
    tpu.vector_store %arg34[%c0_227, %c200_228], %221 {strides = array<i32>} : memref<8x400xf32, #tpu.memory_space<vmem>>, vector<8x50xf32>,
    %c0_229 = arith.constant 0 : index
    %c500_230 = arith.constant 500 : index
    %223 = vector.load %arg33[%c0_229, %c500_230] : memref<8x800xf32, #tpu.memory_space<vmem>>, vector<8x50xf32>
    %c0_231 = arith.constant 0 : index
    %c550 = arith.constant 550 : index
    %224 = vector.load %arg33[%c0_231, %c550] : memref<8x800xf32, #tpu.memory_space<vmem>>, vector<8x50xf32>
    %225 = arith.maximumf %223, %224 : vector<8x50xf32>
    %c0_232 = arith.constant 0 : index
    %c250_233 = arith.constant 250 : index
    %226 = vector.load %arg34[%c0_232, %c250_233] : memref<8x400xf32, #tpu.memory_space<vmem>>, vector<8x50xf32>
    tpu.vector_store %arg34[%c0_232, %c250_233], %225 {strides = array<i32>} : memref<8x400xf32, #tpu.memory_space<vmem>>, vector<8x50xf32>,
    %c0_234 = arith.constant 0 : index
    %c600_235 = arith.constant 600 : index
    %227 = vector.load %arg33[%c0_234, %c600_235] : memref<8x800xf32, #tpu.memory_space<vmem>>, vector<8x50xf32>
    %c0_236 = arith.constant 0 : index
    %c650 = arith.constant 650 : index
    %228 = vector.load %arg33[%c0_236, %c650] : memref<8x800xf32, #tpu.memory_space<vmem>>, vector<8x50xf32>
    %229 = arith.maximumf %227, %228 : vector<8x50xf32>
    %c0_237 = arith.constant 0 : index
    %c300_238 = arith.constant 300 : index
    %230 = vector.load %arg34[%c0_237, %c300_238] : memref<8x400xf32, #tpu.memory_space<vmem>>, vector<8x50xf32>
    tpu.vector_store %arg34[%c0_237, %c300_238], %229 {strides = array<i32>} : memref<8x400xf32, #tpu.memory_space<vmem>>, vector<8x50xf32>,
    %c0_239 = arith.constant 0 : index
    %c700_240 = arith.constant 700 : index
    %231 = vector.load %arg33[%c0_239, %c700_240] : memref<8x800xf32, #tpu.memory_space<vmem>>, vector<8x50xf32>
    %c0_241 = arith.constant 0 : index
    %c750 = arith.constant 750 : index
    %232 = vector.load %arg33[%c0_241, %c750] : memref<8x800xf32, #tpu.memory_space<vmem>>, vector<8x50xf32>
    %233 = arith.maximumf %231, %232 : vector<8x50xf32>
    %c0_242 = arith.constant 0 : index
    %c350_243 = arith.constant 350 : index
    %234 = vector.load %arg34[%c0_242, %c350_243] : memref<8x400xf32, #tpu.memory_space<vmem>>, vector<8x50xf32>
    tpu.vector_store %arg34[%c0_242, %c350_243], %233 {strides = array<i32>} : memref<8x400xf32, #tpu.memory_space<vmem>>, vector<8x50xf32>,
    %c0_244 = arith.constant 0 : index
    %c0_245 = arith.constant 0 : index
    %235 = vector.load %arg34[%c0_244, %c0_245] : memref<8x400xf32, #tpu.memory_space<vmem>>, vector<1x400xf32>
    %c1_246 = arith.constant 1 : index
    %c0_247 = arith.constant 0 : index
    %236 = vector.load %arg34[%c1_246, %c0_247] : memref<8x400xf32, #tpu.memory_space<vmem>>, vector<1x400xf32>
    %237 = arith.maximumf %235, %236 : vector<1x400xf32>
    %c0_248 = arith.constant 0 : index
    %c0_249 = arith.constant 0 : index
    %238 = vector.load %arg35[%c0_248, %c0_249] : memref<4x400xf32, #tpu.memory_space<vmem>>, vector<1x400xf32>
    tpu.vector_store %arg35[%c0_248, %c0_249], %237 {strides = array<i32>} : memref<4x400xf32, #tpu.memory_space<vmem>>, vector<1x400xf32>,
    %c2_250 = arith.constant 2 : index
    %c0_251 = arith.constant 0 : index
    %239 = vector.load %arg34[%c2_250, %c0_251] : memref<8x400xf32, #tpu.memory_space<vmem>>, vector<1x400xf32>
    %c3_252 = arith.constant 3 : index
    %c0_253 = arith.constant 0 : index
    %240 = vector.load %arg34[%c3_252, %c0_253] : memref<8x400xf32, #tpu.memory_space<vmem>>, vector<1x400xf32>
    %241 = arith.maximumf %239, %240 : vector<1x400xf32>
    %c1_254 = arith.constant 1 : index
    %c0_255 = arith.constant 0 : index
    %242 = vector.load %arg35[%c1_254, %c0_255] : memref<4x400xf32, #tpu.memory_space<vmem>>, vector<1x400xf32>
    tpu.vector_store %arg35[%c1_254, %c0_255], %241 {strides = array<i32>} : memref<4x400xf32, #tpu.memory_space<vmem>>, vector<1x400xf32>,
    %c4_256 = arith.constant 4 : index
    %c0_257 = arith.constant 0 : index
    %243 = vector.load %arg34[%c4_256, %c0_257] : memref<8x400xf32, #tpu.memory_space<vmem>>, vector<1x400xf32>
    %c5_258 = arith.constant 5 : index
    %c0_259 = arith.constant 0 : index
    %244 = vector.load %arg34[%c5_258, %c0_259] : memref<8x400xf32, #tpu.memory_space<vmem>>, vector<1x400xf32>
    %245 = arith.maximumf %243, %244 : vector<1x400xf32>
    %c2_260 = arith.constant 2 : index
    %c0_261 = arith.constant 0 : index
    %246 = vector.load %arg35[%c2_260, %c0_261] : memref<4x400xf32, #tpu.memory_space<vmem>>, vector<1x400xf32>
    tpu.vector_store %arg35[%c2_260, %c0_261], %245 {strides = array<i32>} : memref<4x400xf32, #tpu.memory_space<vmem>>, vector<1x400xf32>,
    %c6_262 = arith.constant 6 : index
    %c0_263 = arith.constant 0 : index
    %247 = vector.load %arg34[%c6_262, %c0_263] : memref<8x400xf32, #tpu.memory_space<vmem>>, vector<1x400xf32>
    %c7_264 = arith.constant 7 : index
    %c0_265 = arith.constant 0 : index
    %248 = vector.load %arg34[%c7_264, %c0_265] : memref<8x400xf32, #tpu.memory_space<vmem>>, vector<1x400xf32>
    %249 = arith.maximumf %247, %248 : vector<1x400xf32>
    %c3_266 = arith.constant 3 : index
    %c0_267 = arith.constant 0 : index
    %250 = vector.load %arg35[%c3_266, %c0_267] : memref<4x400xf32, #tpu.memory_space<vmem>>, vector<1x400xf32>
    tpu.vector_store %arg35[%c3_266, %c0_267], %249 {strides = array<i32>} : memref<4x400xf32, #tpu.memory_space<vmem>>, vector<1x400xf32>,
    %c0_268 = arith.constant 0 : index
    %c0_269 = arith.constant 0 : index
    %251 = vector.load %arg35[%c0_268, %c0_269] : memref<4x400xf32, #tpu.memory_space<vmem>>, vector<1x400xf32>
    %252 = arith.truncf %251 : vector<1x400xf32> to vector<1x400xbf16>
    %c0_270 = arith.constant 0 : index
    %c0_271 = arith.constant 0 : index
    %253 = vector.load %arg9[%c0_270, %c0_271] : memref<1600x512xbf16, #tpu.memory_space<vmem>>, vector<400x512xbf16>
    %cst_272 = arith.constant dense<0.000000e+00> : vector<1x512xf32>
    %254 = tpu.matmul %252, %253, %cst_272 {dimension_numbers = #tpu.dot_dimension_numbers<[1], [0], [0], [1], [0, 0, 1, 1], [], []>} : vector<1x400xbf16>, vector<400x512xbf16>, vector<1x512xf32> -> vector<1x512xf32>
    %c1_273 = arith.constant 1 : index
    %c0_274 = arith.constant 0 : index
    %255 = vector.load %arg35[%c1_273, %c0_274] : memref<4x400xf32, #tpu.memory_space<vmem>>, vector<1x400xf32>
    %256 = arith.truncf %255 : vector<1x400xf32> to vector<1x400xbf16>
    %c400_275 = arith.constant 400 : index
    %c0_276 = arith.constant 0 : index
    %257 = vector.load %arg9[%c400_275, %c0_276] : memref<1600x512xbf16, #tpu.memory_space<vmem>>, vector<400x512xbf16>
    %cst_277 = arith.constant dense<0.000000e+00> : vector<1x512xf32>
    %258 = tpu.matmul %256, %257, %cst_277 {dimension_numbers = #tpu.dot_dimension_numbers<[1], [0], [0], [1], [0, 0, 1, 1], [], []>} : vector<1x400xbf16>, vector<400x512xbf16>, vector<1x512xf32> -> vector<1x512xf32>
    %259 = arith.addf %254, %258 : vector<1x512xf32>
    %c2_278 = arith.constant 2 : index
    %c0_279 = arith.constant 0 : index
    %260 = vector.load %arg35[%c2_278, %c0_279] : memref<4x400xf32, #tpu.memory_space<vmem>>, vector<1x400xf32>
    %261 = arith.truncf %260 : vector<1x400xf32> to vector<1x400xbf16>
    %c800 = arith.constant 800 : index
    %c0_280 = arith.constant 0 : index
    %262 = vector.load %arg9[%c800, %c0_280] : memref<1600x512xbf16, #tpu.memory_space<vmem>>, vector<400x512xbf16>
    %cst_281 = arith.constant dense<0.000000e+00> : vector<1x512xf32>
    %263 = tpu.matmul %261, %262, %cst_281 {dimension_numbers = #tpu.dot_dimension_numbers<[1], [0], [0], [1], [0, 0, 1, 1], [], []>} : vector<1x400xbf16>, vector<400x512xbf16>, vector<1x512xf32> -> vector<1x512xf32>
    %264 = arith.addf %259, %263 : vector<1x512xf32>
    %c3_282 = arith.constant 3 : index
    %c0_283 = arith.constant 0 : index
    %265 = vector.load %arg35[%c3_282, %c0_283] : memref<4x400xf32, #tpu.memory_space<vmem>>, vector<1x400xf32>
    %266 = arith.truncf %265 : vector<1x400xf32> to vector<1x400xbf16>
    %c1200 = arith.constant 1200 : index
    %c0_284 = arith.constant 0 : index
    %267 = vector.load %arg9[%c1200, %c0_284] : memref<1600x512xbf16, #tpu.memory_space<vmem>>, vector<400x512xbf16>
    %cst_285 = arith.constant dense<0.000000e+00> : vector<1x512xf32>
    %268 = tpu.matmul %266, %267, %cst_285 {dimension_numbers = #tpu.dot_dimension_numbers<[1], [0], [0], [1], [0, 0, 1, 1], [], []>} : vector<1x400xbf16>, vector<400x512xbf16>, vector<1x512xf32> -> vector<1x512xf32>
    %269 = arith.addf %264, %268 : vector<1x512xf32>
    %c0_286 = arith.constant 0 : index
    %c0_287 = arith.constant 0 : index
    %270 = vector.load %arg10[%c0_286, %c0_287] : memref<1x512xf32, #tpu.memory_space<vmem>>, vector<1x512xf32>
    %271 = arith.addf %269, %270 : vector<1x512xf32>
    %cst_288 = arith.constant 0.000000e+00 : f32
    %272 = vector.broadcast %cst_288 : f32 to vector<1x512xf32>
    %273 = arith.maximumf %271, %272 : vector<1x512xf32>
    %274 = arith.truncf %273 : vector<1x512xf32> to vector<1x512xbf16>
    %c0_289 = arith.constant 0 : index
    %c0_290 = arith.constant 0 : index
    %275 = vector.load %arg11[%c0_289, %c0_290] : memref<512x128xbf16, #tpu.memory_space<vmem>>, vector<512x128xbf16>
    %cst_291 = arith.constant dense<0.000000e+00> : vector<1x128xf32>
    %276 = tpu.matmul %274, %275, %cst_291 {dimension_numbers = #tpu.dot_dimension_numbers<[1], [0], [0], [1], [0, 0, 1, 1], [], []>} : vector<1x512xbf16>, vector<512x128xbf16>, vector<1x128xf32> -> vector<1x128xf32>
    %c0_292 = arith.constant 0 : index
    %c0_293 = arith.constant 0 : index
    %277 = vector.load %arg12[%c0_292, %c0_293] : memref<1x128xf32, #tpu.memory_space<vmem>>, vector<1x128xf32>
    %278 = arith.addf %276, %277 : vector<1x128xf32>
    %cst_294 = arith.constant 0.000000e+00 : f32
    %279 = vector.broadcast %cst_294 : f32 to vector<1x128xf32>
    %280 = arith.maximumf %278, %279 : vector<1x128xf32>
    %c0_295 = arith.constant 0 : index
    %c0_296 = arith.constant 0 : index
    %c0_297 = arith.constant 0 : index
    %281 = vector.load %arg2[%c0_295, %c0_296, %c0_297] : memref<1x1x256xf32, #tpu.memory_space<vmem>>, vector<1x1x256xf32>
    %282 = vector.shape_cast %281 : vector<1x1x256xf32> to vector<1x256xf32>
    %283 = arith.truncf %282 : vector<1x256xf32> to vector<1x256xbf16>
    %c0_298 = arith.constant 0 : index
    %c0_299 = arith.constant 0 : index
    %284 = vector.load %arg13[%c0_298, %c0_299] : memref<256x128xbf16, #tpu.memory_space<vmem>>, vector<256x128xbf16>
    %cst_300 = arith.constant dense<0.000000e+00> : vector<1x128xf32>
    %285 = tpu.matmul %283, %284, %cst_300 {dimension_numbers = #tpu.dot_dimension_numbers<[1], [0], [0], [1], [0, 0, 1, 1], [], []>} : vector<1x256xbf16>, vector<256x128xbf16>, vector<1x128xf32> -> vector<1x128xf32>
    %c0_301 = arith.constant 0 : index
    %c0_302 = arith.constant 0 : index
    %286 = vector.load %arg14[%c0_301, %c0_302] : memref<1x128xf32, #tpu.memory_space<vmem>>, vector<1x128xf32>
    %287 = arith.addf %285, %286 : vector<1x128xf32>
    %cst_303 = arith.constant 0.000000e+00 : f32
    %288 = vector.broadcast %cst_303 : f32 to vector<1x128xf32>
    %289 = arith.maximumf %287, %288 : vector<1x128xf32>
    %c0_304 = arith.constant 0 : index
    %c0_305 = arith.constant 0 : index
    %c0_306 = arith.constant 0 : index
    %290 = vector.load %arg3[%c0_304, %c0_305, %c0_306] : memref<1x1x9xf32, #tpu.memory_space<vmem>>, vector<1x1x9xf32>
    %291 = vector.shape_cast %290 : vector<1x1x9xf32> to vector<1x9xf32>
    %c0_307 = arith.constant 0 : index
    %c0_308 = arith.constant 0 : index
    %292 = vector.load %arg15[%c0_307, %c0_308] : memref<9x8xf32, #tpu.memory_space<vmem>>, vector<9x8xf32>
    %cst_309 = arith.constant dense<0.000000e+00> : vector<1x8xf32>
    %293 = tpu.matmul %291, %292, %cst_309 {dimension_numbers = #tpu.dot_dimension_numbers<[1], [0], [0], [1], [0, 0, 1, 1], [], []>} : vector<1x9xf32>, vector<9x8xf32>, vector<1x8xf32> -> vector<1x8xf32>
    %c0_310 = arith.constant 0 : index
    %c0_311 = arith.constant 0 : index
    %294 = vector.load %arg16[%c0_310, %c0_311] : memref<1x8xf32, #tpu.memory_space<vmem>>, vector<1x8xf32>
    %295 = arith.addf %293, %294 : vector<1x8xf32>
    %cst_312 = arith.constant 0.000000e+00 : f32
    %296 = vector.broadcast %cst_312 : f32 to vector<1x8xf32>
    %297 = arith.maximumf %295, %296 : vector<1x8xf32>
    %c0_313 = arith.constant 0 : index
    %c0_314 = arith.constant 0 : index
    %c0_315 = arith.constant 0 : index
    %298 = vector.load %arg4[%c0_313, %c0_314, %c0_315] : memref<1x1x9xf32, #tpu.memory_space<vmem>>, vector<1x1x9xf32>
    %299 = vector.shape_cast %298 : vector<1x1x9xf32> to vector<1x9xf32>
    %c0_316 = arith.constant 0 : index
    %c0_317 = arith.constant 0 : index
    %300 = vector.load %arg17[%c0_316, %c0_317] : memref<1x9xf32, #tpu.memory_space<vmem>>, vector<1x9xf32>
    %301 = arith.mulf %299, %300 : vector<1x9xf32>
    %cst_318 = arith.constant dense<0.000000e+00> : vector<1xf32>
    %302 = vector.multi_reduction <add>, %301, %cst_318 [1] : vector<1x9xf32> to vector<1xf32>
    %303 = vector.shape_cast %302 : vector<1xf32> to vector<1x1xf32>
    %c0_319 = arith.constant 0 : index
    %c0_320 = arith.constant 0 : index
    %304 = vector.load %arg18[%c0_319, %c0_320] : memref<1x1xf32, #tpu.memory_space<vmem>>, vector<1x1xf32>
    %305 = arith.addf %303, %304 : vector<1x1xf32>
    %cst_321 = arith.constant 0.000000e+00 : f32
    %306 = vector.broadcast %cst_321 : f32 to vector<1x1xf32>
    %307 = arith.maximumf %305, %306 : vector<1x1xf32>
    %c0_322 = arith.constant 0 : index
    %c0_323 = arith.constant 0 : index
    %308 = vector.load %arg19[%c0_322, %c0_323] : memref<128x128xf32, #tpu.memory_space<vmem>>, vector<128x128xf32>
    %cst_324 = arith.constant dense<0.000000e+00> : vector<1x128xf32>
    %309 = tpu.matmul %280, %308, %cst_324 {dimension_numbers = #tpu.dot_dimension_numbers<[1], [0], [0], [1], [0, 0, 1, 1], [], []>} : vector<1x128xf32>, vector<128x128xf32>, vector<1x128xf32> -> vector<1x128xf32>
    %c0_325 = arith.constant 0 : index
    %c0_326 = arith.constant 0 : index
    %310 = vector.load %arg20[%c0_325, %c0_326] : memref<128x128xf32, #tpu.memory_space<vmem>>, vector<128x128xf32>
    %cst_327 = arith.constant dense<0.000000e+00> : vector<1x128xf32>
    %311 = tpu.matmul %289, %310, %cst_327 {dimension_numbers = #tpu.dot_dimension_numbers<[1], [0], [0], [1], [0, 0, 1, 1], [], []>} : vector<1x128xf32>, vector<128x128xf32>, vector<1x128xf32> -> vector<1x128xf32>
    %312 = arith.addf %309, %311 : vector<1x128xf32>
    %c0_328 = arith.constant 0 : index
    %c0_329 = arith.constant 0 : index
    %313 = vector.load %arg21[%c0_328, %c0_329] : memref<8x128xf32, #tpu.memory_space<vmem>>, vector<8x128xf32>
    %cst_330 = arith.constant dense<0.000000e+00> : vector<1x128xf32>
    %314 = tpu.matmul %297, %313, %cst_330 {dimension_numbers = #tpu.dot_dimension_numbers<[1], [0], [0], [1], [0, 0, 1, 1], [], []>} : vector<1x8xf32>, vector<8x128xf32>, vector<1x128xf32> -> vector<1x128xf32>
    %315 = arith.addf %312, %314 : vector<1x128xf32>
    %c0_331 = arith.constant 0 : index
    %c0_332 = arith.constant 0 : index
    %316 = vector.load %arg22[%c0_331, %c0_332] : memref<1x128xf32, #tpu.memory_space<vmem>>, vector<1x128xf32>
    %317 = vector.broadcast %307 : vector<1x1xf32> to vector<1x128xf32>
    %318 = arith.mulf %317, %316 : vector<1x128xf32>
    %319 = arith.addf %315, %318 : vector<1x128xf32>
    %c0_333 = arith.constant 0 : index
    %c0_334 = arith.constant 0 : index
    %320 = vector.load %arg23[%c0_333, %c0_334] : memref<1x128xf32, #tpu.memory_space<vmem>>, vector<1x128xf32>
    %321 = arith.addf %319, %320 : vector<1x128xf32>
    %cst_335 = arith.constant 0.000000e+00 : f32
    %322 = vector.broadcast %cst_335 : f32 to vector<1x128xf32>
    %323 = arith.maximumf %321, %322 : vector<1x128xf32>
    %c0_336 = arith.constant 0 : index
    %c0_337 = arith.constant 0 : index
    %324 = vector.load %arg24[%c0_336, %c0_337] : memref<1x128xf32, #tpu.memory_space<vmem>>, vector<1x128xf32>
    %325 = arith.mulf %323, %324 : vector<1x128xf32>
    %cst_338 = arith.constant dense<0.000000e+00> : vector<1xf32>
    %326 = vector.multi_reduction <add>, %325, %cst_338 [1] : vector<1x128xf32> to vector<1xf32>
    %327 = vector.shape_cast %326 : vector<1xf32> to vector<1x1xf32>
    %c0_339 = arith.constant 0 : index
    %c0_340 = arith.constant 0 : index
    %328 = vector.load %arg25[%c0_339, %c0_340] : memref<1x1xf32, #tpu.memory_space<vmem>>, vector<1x1xf32>
    %329 = arith.addf %327, %328 : vector<1x1xf32>
    %c0_341 = arith.constant 0 : index
    %c0_342 = arith.constant 0 : index
    %c0_343 = arith.constant 0 : index
    %330 = vector.load %arg29[%c0_341, %c0_342, %c0_343] : memref<1x1x1xf32, #tpu.memory_space<vmem>>, vector<1x1x1xf32>
    %331 = vector.shape_cast %330 : vector<1x1x1xf32> to vector<1x1xf32>
    %332 = vector.shape_cast %329 : vector<1x1xf32> to vector<1x1x1xf32>
    tpu.vector_store %arg29[%c0_341, %c0_342, %c0_343], %332 {strides = array<i32>} : memref<1x1x1xf32, #tpu.memory_space<vmem>>, vector<1x1x1xf32>,
    %c0_344 = arith.constant 0 : index
    %c0_345 = arith.constant 0 : index
    %333 = vector.load %arg26[%c0_344, %c0_345] : memref<128x4xf32, #tpu.memory_space<vmem>>, vector<128x4xf32>
    %cst_346 = arith.constant dense<0.000000e+00> : vector<1x4xf32>
    %334 = tpu.matmul %323, %333, %cst_346 {dimension_numbers = #tpu.dot_dimension_numbers<[1], [0], [0], [1], [0, 0, 1, 1], [], []>} : vector<1x128xf32>, vector<128x4xf32>, vector<1x4xf32> -> vector<1x4xf32>
    %c0_347 = arith.constant 0 : index
    %c0_348 = arith.constant 0 : index
    %335 = vector.load %arg27[%c0_347, %c0_348] : memref<1x4xf32, #tpu.memory_space<vmem>>, vector<1x4xf32>
    %336 = arith.addf %334, %335 : vector<1x4xf32>
    %cst_349 = arith.constant dense<0xFF800000> : vector<1xf32>
    %337 = vector.multi_reduction <maximumf>, %336, %cst_349 [1] : vector<1x4xf32> to vector<1xf32>
    %338 = vector.shape_cast %337 : vector<1xf32> to vector<1x1xf32>
    %339 = vector.broadcast %338 : vector<1x1xf32> to vector<1x4xf32>
    %340 = arith.subf %336, %339 : vector<1x4xf32>
    %341 = math.exp %340 : vector<1x4xf32>
    %cst_350 = arith.constant dense<0.000000e+00> : vector<1xf32>
    %342 = vector.multi_reduction <add>, %341, %cst_350 [1] : vector<1x4xf32> to vector<1xf32>
    %343 = vector.shape_cast %342 : vector<1xf32> to vector<1x1xf32>
    %344 = tpu.reciprocal %343 {approx = true} : vector<1x1xf32> -> vector<1x1xf32>
    %345 = vector.broadcast %344 : vector<1x1xf32> to vector<1x4xf32>
    %346 = arith.mulf %341, %345 : vector<1x4xf32>
    %c0_351 = arith.constant 0 : index
    %c0_352 = arith.constant 0 : index
    %c0_353 = arith.constant 0 : index
    %347 = vector.load %arg28[%c0_351, %c0_352, %c0_353] : memref<1x1x4xf32, #tpu.memory_space<vmem>>, vector<1x1x4xf32>
    %348 = vector.shape_cast %347 : vector<1x1x4xf32> to vector<1x4xf32>
    %349 = vector.shape_cast %346 : vector<1x4xf32> to vector<1x1x4xf32>
    tpu.vector_store %arg28[%c0_351, %c0_352, %c0_353], %349 {strides = array<i32>} : memref<1x1x4xf32, #tpu.memory_space<vmem>>, vector<1x1x4xf32>,
    return
  }
  func.func @transform_0(%arg0: i32) -> (i32, i32, i32) {
    %c0_i32 = arith.constant 0 : i32
    %c0_i32_0 = arith.constant 0 : i32
    %c0_i32_1 = arith.constant 0 : i32
    return %arg0, %c0_i32, %c0_i32_0 : i32, i32, i32
  }
  func.func @transform_1(%arg0: i32) -> (i32, i32, i32) {
    %c0_i32 = arith.constant 0 : i32
    %c0_i32_0 = arith.constant 0 : i32
    %c0_i32_1 = arith.constant 0 : i32
    return %arg0, %c0_i32, %c0_i32_0 : i32, i32, i32
  }
  func.func @transform_2(%arg0: i32) -> (i32, i32, i32) {
    %c0_i32 = arith.constant 0 : i32
    %c0_i32_0 = arith.constant 0 : i32
    %c0_i32_1 = arith.constant 0 : i32
    return %arg0, %c0_i32, %c0_i32_0 : i32, i32, i32
  }
  func.func @transform_3(%arg0: i32) -> (i32, i32, i32) {
    %c0_i32 = arith.constant 0 : i32
    %c0_i32_0 = arith.constant 0 : i32
    %c0_i32_1 = arith.constant 0 : i32
    return %arg0, %c0_i32, %c0_i32_0 : i32, i32, i32
  }
  func.func @transform_4(%arg0: i32) -> (i32, i32, i32) {
    %c0_i32 = arith.constant 0 : i32
    %c0_i32_0 = arith.constant 0 : i32
    %c0_i32_1 = arith.constant 0 : i32
    %c0_i32_2 = arith.constant 0 : i32
    return %c0_i32, %c0_i32_0, %c0_i32_1 : i32, i32, i32
  }
  func.func @transform_5(%arg0: i32) -> (i32, i32) {
    %c0_i32 = arith.constant 0 : i32
    %c0_i32_0 = arith.constant 0 : i32
    %c0_i32_1 = arith.constant 0 : i32
    return %c0_i32, %c0_i32_0 : i32, i32
  }
  func.func @transform_6(%arg0: i32) -> (i32, i32, i32) {
    %c0_i32 = arith.constant 0 : i32
    %c0_i32_0 = arith.constant 0 : i32
    %c0_i32_1 = arith.constant 0 : i32
    %c0_i32_2 = arith.constant 0 : i32
    return %c0_i32, %c0_i32_0, %c0_i32_1 : i32, i32, i32
  }
  func.func @transform_7(%arg0: i32) -> (i32, i32) {
    %c0_i32 = arith.constant 0 : i32
    %c0_i32_0 = arith.constant 0 : i32
    %c0_i32_1 = arith.constant 0 : i32
    return %c0_i32, %c0_i32_0 : i32, i32
  }
  func.func @transform_8(%arg0: i32) -> (i32, i32) {
    %c0_i32 = arith.constant 0 : i32
    %c0_i32_0 = arith.constant 0 : i32
    %c0_i32_1 = arith.constant 0 : i32
    return %c0_i32, %c0_i32_0 : i32, i32
  }
  func.func @transform_9(%arg0: i32) -> (i32, i32) {
    %c0_i32 = arith.constant 0 : i32
    %c0_i32_0 = arith.constant 0 : i32
    %c0_i32_1 = arith.constant 0 : i32
    return %c0_i32, %c0_i32_0 : i32, i32
  }
  func.func @transform_10(%arg0: i32) -> (i32, i32) {
    %c0_i32 = arith.constant 0 : i32
    %c0_i32_0 = arith.constant 0 : i32
    %c0_i32_1 = arith.constant 0 : i32
    return %c0_i32, %c0_i32_0 : i32, i32
  }
  func.func @transform_11(%arg0: i32) -> (i32, i32) {
    %c0_i32 = arith.constant 0 : i32
    %c0_i32_0 = arith.constant 0 : i32
    %c0_i32_1 = arith.constant 0 : i32
    return %c0_i32, %c0_i32_0 : i32, i32
  }
  func.func @transform_12(%arg0: i32) -> (i32, i32) {
    %c0_i32 = arith.constant 0 : i32
    %c0_i32_0 = arith.constant 0 : i32
    %c0_i32_1 = arith.constant 0 : i32
    return %c0_i32, %c0_i32_0 : i32, i32
  }
  func.func @transform_13(%arg0: i32) -> (i32, i32) {
    %c0_i32 = arith.constant 0 : i32
    %c0_i32_0 = arith.constant 0 : i32
    %c0_i32_1 = arith.constant 0 : i32
    return %c0_i32, %c0_i32_0 : i32, i32
  }
  func.func @transform_14(%arg0: i32) -> (i32, i32) {
    %c0_i32 = arith.constant 0 : i32
    %c0_i32_0 = arith.constant 0 : i32
    %c0_i32_1 = arith.constant 0 : i32
    return %c0_i32, %c0_i32_0 : i32, i32
  }
  func.func @transform_15(%arg0: i32) -> (i32, i32) {
    %c0_i32 = arith.constant 0 : i32
    %c0_i32_0 = arith.constant 0 : i32
    %c0_i32_1 = arith.constant 0 : i32
    return %c0_i32, %c0_i32_0 : i32, i32
  }
  func.func @transform_16(%arg0: i32) -> (i32, i32) {
    %c0_i32 = arith.constant 0 : i32
    %c0_i32_0 = arith.constant 0 : i32
    %c0_i32_1 = arith.constant 0 : i32
    return %c0_i32, %c0_i32_0 : i32, i32
  }
  func.func @transform_17(%arg0: i32) -> (i32, i32) {
    %c0_i32 = arith.constant 0 : i32
    %c0_i32_0 = arith.constant 0 : i32
    %c0_i32_1 = arith.constant 0 : i32
    return %c0_i32, %c0_i32_0 : i32, i32
  }
  func.func @transform_18(%arg0: i32) -> (i32, i32) {
    %c0_i32 = arith.constant 0 : i32
    %c0_i32_0 = arith.constant 0 : i32
    %c0_i32_1 = arith.constant 0 : i32
    return %c0_i32, %c0_i32_0 : i32, i32
  }
  func.func @transform_19(%arg0: i32) -> (i32, i32) {
    %c0_i32 = arith.constant 0 : i32
    %c0_i32_0 = arith.constant 0 : i32
    %c0_i32_1 = arith.constant 0 : i32
    return %c0_i32, %c0_i32_0 : i32, i32
  }
  func.func @transform_20(%arg0: i32) -> (i32, i32) {
    %c0_i32 = arith.constant 0 : i32
    %c0_i32_0 = arith.constant 0 : i32
    %c0_i32_1 = arith.constant 0 : i32
    return %c0_i32, %c0_i32_0 : i32, i32
  }
  func.func @transform_21(%arg0: i32) -> (i32, i32) {
    %c0_i32 = arith.constant 0 : i32
    %c0_i32_0 = arith.constant 0 : i32
    %c0_i32_1 = arith.constant 0 : i32
    return %c0_i32, %c0_i32_0 : i32, i32
  }
  func.func @transform_22(%arg0: i32) -> (i32, i32) {
    %c0_i32 = arith.constant 0 : i32
    %c0_i32_0 = arith.constant 0 : i32
    %c0_i32_1 = arith.constant 0 : i32
    return %c0_i32, %c0_i32_0 : i32, i32
  }
  func.func @transform_23(%arg0: i32) -> (i32, i32) {
    %c0_i32 = arith.constant 0 : i32
    %c0_i32_0 = arith.constant 0 : i32
    %c0_i32_1 = arith.constant 0 : i32
    return %c0_i32, %c0_i32_0 : i32, i32
  }
  func.func @transform_24(%arg0: i32) -> (i32, i32) {
    %c0_i32 = arith.constant 0 : i32
    %c0_i32_0 = arith.constant 0 : i32
    %c0_i32_1 = arith.constant 0 : i32
    return %c0_i32, %c0_i32_0 : i32, i32
  }
  func.func @transform_25(%arg0: i32) -> (i32, i32) {
    %c0_i32 = arith.constant 0 : i32
    %c0_i32_0 = arith.constant 0 : i32
    %c0_i32_1 = arith.constant 0 : i32
    return %c0_i32, %c0_i32_0 : i32, i32
  }
  func.func @transform_26(%arg0: i32) -> (i32, i32) {
    %c0_i32 = arith.constant 0 : i32
    %c0_i32_0 = arith.constant 0 : i32
    %c0_i32_1 = arith.constant 0 : i32
    return %c0_i32, %c0_i32_0 : i32, i32
  }
  func.func @transform_27(%arg0: i32) -> (i32, i32, i32) {
    %c0_i32 = arith.constant 0 : i32
    %c0_i32_0 = arith.constant 0 : i32
    %c0_i32_1 = arith.constant 0 : i32
    return %arg0, %c0_i32, %c0_i32_0 : i32, i32, i32
  }
  func.func @transform_28(%arg0: i32) -> (i32, i32, i32) {
    %c0_i32 = arith.constant 0 : i32
    %c0_i32_0 = arith.constant 0 : i32
    %c0_i32_1 = arith.constant 0 : i32
    return %arg0, %c0_i32, %c0_i32_0 : i32, i32, i32
  }
}

</mosaic_0001>

<bundles_post_ra>
// kernel: actor_critic_forward.1
= control target key start
LH: loop header
LB: loop body
LE: loop exit
PB: predicated region body
PF: predicated region fallthrough
CT: control target
= control target key end

     0   :  { %s23326_s0 = inlined_call_operand.vmem [shape: f32[2,28,44], index: 0, kind: input, shape index: {}]   ;;  %s23327_s1 = inlined_call_operand.vmem [shape: f32[2,1,256], index: 1, kind: input, shape index: {}]   ;;  %s23328_s2 = inlined_call_operand.hbm [shape: f32[2,1,9], index: 2, kind: input, shape index: {}]   ;;  %s23329_s3 = inlined_call_operand.hbm [shape: f32[2,1,9], index: 3, kind: input, shape index: {}]   ;;  %s23330_s4 = inlined_call_operand.hbm [shape: bf16[5,44,800], index: 4, kind: input, shape index: {}]   ;;  %s23331_s5 = inlined_call_operand.hbm [shape: f32[1,800], index: 5, kind: input, shape index: {}]   ;;  %s23332_s6 = inlined_call_operand.hbm [shape: bf16[5,400,800], index: 6, kind: input, shape index: {}]   ;;  %s23333_s7 = inlined_call_operand.hbm [shape: f32[1,800], index: 7, kind: input, shape index: {}]   ;;  %s23334_s8 = inlined_call_operand.hbm [shape: bf16[1600,512], index: 8, kind: input, shape index: {}]   ;;  %s23335_s9 = inlined_call_operand.hbm [shape: f32[1,512], index: 9, kind: input, shape index: {}]   ;;  %s23336_s10 = inlined_call_operand.hbm [shape: bf16[512,128], index: 10, kind: input, shape index: {}]   ;;  %s23337_s11 = inlined_call_operand.hbm [shape: f32[1,128], index: 11, kind: input, shape index: {}]   ;;  %s23338_s12 = inlined_call_operand.hbm [shape: bf16[256,128], index: 12, kind: input, shape index: {}]   ;;  %s23339_s13 = inlined_call_operand.hbm [shape: f32[1,128], index: 13, kind: input, shape index: {}]   ;;  %s23340_s14 = inlined_call_operand.vmem [shape: f32[9,8], index: 14, kind: input, shape index: {}]   ;;  %s23341_s15 = inlined_call_operand.hbm [shape: f32[1,8], index: 15, kind: input, shape index: {}]   ;;  %s23342_s16 = inlined_call_operand.hbm [shape: f32[1,9], index: 16, kind: input, shape index: {}]   ;;  %s23343_s17 = inlined_call_operand.<no memory space> [shape: f32[1,1], index: 17, kind: input, shape index: {}]   ;;  %s23344_s18 = inlined_call_operand.hbm [shape: f32[128,128], index: 18, kind: input, shape index: {}]   ;;  %s23345_s19 = inlined_call_operand.hbm [shape: f32[128,128], index: 19, kind: input, shape index: {}]   ;;  %s23346_s20 = inlined_call_operand.hbm [shape: f32[8,128], index: 20, kind: input, shape index: {}]   ;;  %s23347_s21 = inlined_call_operand.hbm [shape: f32[1,128], index: 21, kind: input, shape index: {}]   ;;  %s23348_s22 = inlined_call_operand.hbm [shape: f32[1,128], index: 22, kind: input, shape index: {}]   ;;  %s23349_s23 = inlined_call_operand.hbm [shape: f32[1,128], index: 23, kind: input, shape index: {}]   ;;  %s23350_s25 = inlined_call_operand.vmem [shape: f32[128,4], index: 25, kind: input, shape index: {}]   ;;  %s23351_s26 = inlined_call_operand.hbm [shape: f32[1,4], index: 26, kind: input, shape index: {}]   ;;  %s23352_s27 = inlined_call_operand.hbm [shape: f32[2,1,4], index: 27, kind: output, shape index: {0}]   ;;  %s23353_s28 = inlined_call_operand.vmem [shape: f32[2,1,1], index: 28, kind: output, shape index: {1}]   ;;  %s23354_s24 = inlined_call_operand.<no memory space> [shape: f32[1,1], index: 24, kind: input, shape index: {}]  }
   0x1   :  { %23387 = sst [smem:[#allocation60_spill]] %s23326_s0  ;;  %v34_v0 = vstv %s23343_s17  ;;  %v36_v1 = vstv %s23354_s24 }
   0x2   :  { %23388 = sst [smem:[#allocation61_spill]] %s23327_s1  ;;  %35 = vst [vmem:[#allocation8] sm:$0x1] %v34_v0  ;;  %37 = vst [vmem:[#allocation9] sm:$0x1] %v36_v1 }
   0x3   :  { %23389 = sst [smem:[#allocation62_spill]] %s23328_s2 }
   0x4   :  { %23390 = sst [smem:[#allocation63_spill]] %s23329_s3 }
   0x5   :  { %23391 = sst [smem:[#allocation64_spill]] %s23330_s4 }
   0x6   :  { %23392 = sst [smem:[#allocation65_spill]] %s23331_s5 }
   0x7   :  { %23393 = sst [smem:[#allocation66_spill]] %s23332_s6 }
   0x8   :  { %23394 = sst [smem:[#allocation67_spill]] %s23333_s7 }
   0x9   :  { %23395 = sst [smem:[#allocation68_spill]] %s23334_s8 }
   0xa   :  { %23396 = sst [smem:[#allocation69_spill]] %s23335_s9 }
   0xb   :  { %23397 = sst [smem:[#allocation70_spill]] %s23336_s10 }
   0xc   :  { %23398 = sst [smem:[#allocation71_spill]] %s23337_s11 }
   0xd   :  { %23399 = sst [smem:[#allocation72_spill]] %s23338_s12 }
   0xe   :  { %23400 = sst [smem:[#allocation73_spill]] %s23339_s13 }
   0xf   :  { %23401 = sst [smem:[#allocation74_spill]] %s23340_s14 }
  0x10   :  { %23402 = sst [smem:[#allocation75_spill]] %s23341_s15 }
  0x11   :  { %23403 = sst [smem:[#allocation76_spill]] %s23342_s16 }
  0x12   :  { %23404 = sst [smem:[#allocation77_spill]] %s23344_s18 }
  0x13   :  { %23405 = sst [smem:[#allocation78_spill]] %s23345_s19 }
  0x14   :  { %23406 = sst [smem:[#allocation79_spill]] %s23346_s20 }
  0x15   :  { %23407 = sst [smem:[#allocation80_spill]] %s23347_s21 }
  0x16   :  { %23408 = sst [smem:[#allocation81_spill]] %s23349_s23 }
  0x17   :  { %23409 = sst [smem:[#allocation82_spill]] %s23350_s25 }
  0x18   :  { %23410 = sst [smem:[#allocation83_spill]] %s23352_s27 }
  0x19   :  { %23411 = sst [smem:[#allocation84_spill]] %s23353_s28 }
  0x1a   :  { %38 = vsyncpa [#allocation11], 0 }
  0x1b   :  { %40 = vsyncpa [#allocation11 + $0x1], 0 }
  0x1c   :  { %41 = vsyncpa [#allocation14], 0 }
  0x1d   :  { %43 = vsyncpa [#allocation14 + $0x1], 0 }
  0x1e   :  { %44 = vsyncpa [#allocation17], 0 }
  0x1f   :  { %45 = vsyncpa [#allocation20], 0 }
  0x20   :  { %46 = vsyncpa [#allocation23], 0 }
  0x21   :  { %47 = vsyncpa [#allocation26], 0 }
  0x22   :  { %48 = vsyncpa [#allocation29], 0 }
  0x23   :  { %49 = vsyncpa [#allocation32], 0 }
  0x24   :  { %50 = vsyncpa [#allocation35], 0 }
  0x25   :  { %51 = vsyncpa [#allocation38], 0 }
  0x26   :  { %52 = vsyncpa [#allocation41], 0 }
  0x27   :  { %53 = vsyncpa [#allocation12], 0 }
  0x28   :  { %55 = vsyncpa [#allocation12 + $0x1], 0  ;;  %s21459_s17 = smov 0   ;;  %s21461_s24 = smov 0  }
  0x29   :  { %s21463_s3 = smov 0   ;;  %s21465_s6 = smov 0  }
  0x2a LB: > { %23412 = sst [smem:[#allocation57_spill]] %s21236_s17  ;;  %s21250_s10 = smov [#allocation15]   ;;  %s21248_s6 = sphi %s21465_s6, %s23489_s6   ;;  %s21244_s3 = sphi %s21463_s3, %s23488_s3   ;;  %s21240_s24 = sphi %s21461_s24, %s23487_s24   ;;  %s21236_s17 = sphi %s21459_s17, %s23486_s17  }
  0x2b   : > { %s717_s0 = sshll.u32 %s21250_s10, 4  ;;  %s21480_s11 = sadd.s32 4294967295, %s21248_s6   ;;  %s21485_s0 = int_to_ptr.vmem [resolvable:$true] %s717_s0 }
  0x2c   : > { %23413 = sst [smem:[#allocation58_spill]] %s21480_s11  ;;  %p16077_p0 = scmp.ge.s32.totalorder %s21248_s6, 1 }
  0x2d   : > { %p23376_p1 = scmp.eq.s32.totalorder %s21480_s11, 0  ;;  %p705_p2 = scmp.lt.s32.totalorder %s21248_s6, 3 }
  0x2e   : > { %s21251_s2 = smov [#allocation16]   ;;  %s21252_s1 = smov [#allocation19]  }
  0x2f   : > { %p21487_p3 = pnand %p16077_p0, %p705_p2  ;;  %s731_s7 = sshll.u32 %s21251_s2, 4  ;;  %s21500_s7 = int_to_ptr.vmem [resolvable:$true] %s731_s7 }
  0x30   : > { %s755_s4 = sshll.u32 %s21252_s1, 4  ;;  %s23417_s9 = sld [smem:[#allocation64_spill]]  ;;  %s21502_s4 = int_to_ptr.vmem [resolvable:$true] %s755_s4 }
  0x31   : > { %s23414_s29 = scalar_select %p21487_p3, 1, 0 }
  0x32   : > { %p18276_p5 = pneg %p21487_p3 }
  0x33   : > { %23415 = sst [smem:[#allocation59_spill]] %s23414_s29 }
  0x34   : > { %p21496_p6 = pnand %p18276_p5, %p23376_p1 }
  0x36   : > { %s20546_s30 = scalar_lea.hbm %s23417_s9, 13440  ;;  %p21512_p8 = pneg %p21496_p6 }
  0x37   : > { %p20547_p7 = scmp.ne.s32.totalorder %s23417_s9, %s20546_s30  ;;  %p20553_p11 = scmp.lt.u32.totalorder %s20546_s30, %s23417_s9 }
  0x39   : > { %p20549_p9 = pnand %p21512_p8, %p20547_p7 }
  0x3b   : > { %p20550_p10 = pneg %p20549_p9 }
  0x3d   : > { %p20555_p12 = pnand %p20553_p11, %p20550_p10 }
  0x3f   : > { %20558 = shalt.err (!%p20555_p12)
}
  0x40   : > { %s20559_s27 = scalar_lea.vmem %s21485_s0, 13440  ;;  %p20567_p5 = scmp.lt.s32.totalorder %s21485_s0, %s21485_s0 }
  0x41   : > { %p20560_p13 = scmp.ne.s32.totalorder %s21485_s0, %s20559_s27  ;;  %p20568_p4 = scmp.lt.s32.totalorder %s20559_s27, %s20559_s27 }
  0x43   : > { %p20562_p0 = pnand %p20560_p13, %p21512_p8  ;;  %p20569_p7 = por %p20568_p4, %p20567_p5 }
  0x45   : > { %p20563_p2 = pneg %p20562_p0 }
  0x47   : > { %p20570_p9 = pnand %p20569_p7, %p20563_p2 }
  0x49   : > { %20573 = shalt.err (!%p20570_p9)
}
  0x4a   : > { %s23373_s8 = smov 448   ;;  %s23374_s28 = smov 28  }
  0x4b   : > { %18279 = dma.hbm_to_vmem [thread:$0]  (!%p21496_p6), %s23417_s9, 13440, %s21485_s0, [#allocation14], %s23373_s8, %s23373_s8, %s23374_s28  }
  0x4c   : > { %s23419_s25 = sld [smem:[#allocation65_spill]] }
  0x52   : > { %s20574_s27 = scalar_lea.hbm %s23419_s25, 112 }
  0x53   : > { %p20575_p4 = scmp.ne.s32.totalorder %s23419_s25, %s20574_s27  ;;  %p20581_p12 = scmp.lt.u32.totalorder %s20574_s27, %s23419_s25 }
  0x55   : > { %p20577_p10 = pnand %p20575_p4, %p21512_p8 }
  0x57   : > { %p20578_p11 = pneg %p20577_p10 }
  0x59   : > { %p20583_p13 = pnand %p20581_p12, %p20578_p11 }
  0x5b   : > { %20586 = shalt.err (!%p20583_p13)
}
  0x5c   : > { %s20587_s0 = scalar_lea.vmem %s21500_s7, 112  ;;  %s20594_s14 = scalar_lea.vmem %s21500_s7, 128 }
  0x5d   : > { %p20588_p0 = scmp.ne.s32.totalorder %s21500_s7, %s20587_s0  ;;  %p20595_p7 = scmp.lt.s32.totalorder %s21500_s7, %s21500_s7 }
  0x5e   : > { %p20596_p9 = scmp.lt.s32.totalorder %s20594_s14, %s20587_s0 }
  0x5f   : > { %p20590_p2 = pnand %p20588_p0, %p21512_p8 }
  0x60   : > { %p20597_p4 = por %p20596_p9, %p20595_p7 }
  0x61   : > { %p20591_p5 = pneg %p20590_p2 }
  0x63   : > { %p20598_p10 = pnand %p20597_p4, %p20591_p5 }
  0x65   : > { %20601 = shalt.err (!%p20598_p10)
}
  0x66   : > { %18282 = dma.hbm_to_vmem [thread:$0]  (!%p21496_p6), %s23419_s25, 112, %s21500_s7, [#allocation17]  }
  0x67   : > { %s23420_s30 = sld [smem:[#allocation67_spill]] }
  0x6d   : > { %s20602_s10 = scalar_lea.hbm %s23420_s30, 112 }
  0x6e   : > { %p20603_p11 = scmp.ne.s32.totalorder %s23420_s30, %s20602_s10  ;;  %p20609_p0 = scmp.lt.u32.totalorder %s20602_s10, %s23420_s30 }
  0x70   : > { %p20605_p12 = pnand %p20603_p11, %p21512_p8 }
  0x72   : > { %p20606_p13 = pneg %p20605_p12 }
  0x74   : > { %p20611_p2 = pnand %p20609_p0, %p20606_p13 }
  0x76   : > { %20614 = shalt.err (!%p20611_p2)
}
  0x77   : > { %s20615_s7 = scalar_lea.vmem %s21502_s4, 112  ;;  %s20622_s17 = scalar_lea.vmem %s21502_s4, 128 }
  0x78   : > { %p20616_p5 = scmp.ne.s32.totalorder %s21502_s4, %s20615_s7  ;;  %p20623_p4 = scmp.lt.s32.totalorder %s21502_s4, %s21502_s4 }
  0x79   : > { %p20624_p10 = scmp.lt.s32.totalorder %s20622_s17, %s20615_s7 }
  0x7a   : > { %p20618_p7 = pnand %p20616_p5, %p21512_p8 }
  0x7b   : > { %p20625_p11 = por %p20624_p10, %p20623_p4 }
  0x7c   : > { %p20619_p9 = pneg %p20618_p7 }
  0x7e   : > { %p20626_p12 = pnand %p20625_p11, %p20619_p9 }
  0x80   : > { %20629 = shalt.err (!%p20626_p12)
}
  0x81   : > { %18288 = dma.hbm_to_vmem [thread:$0]  (!%p21496_p6), %s23420_s30, 112, %s21502_s4, [#allocation20]  }
  0x82   : > { %s21255_s5 = smov [#allocation22]   ;;  %s21256_s1 = smov [#allocation25]  }
  0x83   : > { %s779_s10 = sshll.u32 %s21255_s5, 4  ;;  %s803_s27 = sshll.u32 %s21256_s1, 4  ;;  %s780_s10 = int_to_ptr.vmem [resolvable:$true] %s779_s10  ;;  %s804_s27 = int_to_ptr.vmem [resolvable:$true] %s803_s27 }
  0x84   : > { %s23421_s8 = sld [smem:[#allocation69_spill]] }
  0x8a   : > { %s20630_s7 = scalar_lea.hbm %s23421_s8, 64 }
  0x8b   : > { %p20631_p13 = scmp.ne.s32.totalorder %s23421_s8, %s20630_s7  ;;  %p20637_p5 = scmp.lt.u32.totalorder %s20630_s7, %s23421_s8 }
  0x8d   : > { %p20633_p0 = pnand %p20631_p13, %p21512_p8 }
  0x8f   : > { %p20634_p2 = pneg %p20633_p0 }
  0x91   : > { %p20639_p7 = pnand %p20637_p5, %p20634_p2 }
  0x93   : > { %20642 = shalt.err (!%p20639_p7)
}
  0x94   : > { %s20643_s4 = scalar_lea.vmem %s780_s10, 64  ;;  %p20651_p11 = scmp.lt.s32.totalorder %s780_s10, %s780_s10 }
  0x95   : > { %p20644_p9 = scmp.ne.s32.totalorder %s780_s10, %s20643_s4  ;;  %p20652_p12 = scmp.lt.s32.totalorder %s20643_s4, %s20643_s4 }
  0x97   : > { %p20646_p4 = pnand %p20644_p9, %p21512_p8  ;;  %p20653_p1 = por %p20652_p12, %p20651_p11 }
  0x99   : > { %p20647_p10 = pneg %p20646_p4 }
  0x9b   : > { %p20654_p3 = pnand %p20653_p1, %p20647_p10 }
  0x9d   : > { %20657 = shalt.err (!%p20654_p3)
}
  0x9e   : > { %18294 = dma.hbm_to_vmem [thread:$0]  (!%p21496_p6), %s23421_s8, 64, %s780_s10, [#allocation23]  }
  0x9f   : > { %s23422_s1 = sld [smem:[#allocation71_spill]] }
  0xa5   : > { %s20658_s0 = scalar_lea.hbm %s23422_s1, 16 }
  0xa6   : > { %p20659_p13 = scmp.ne.s32.totalorder %s23422_s1, %s20658_s0  ;;  %p20665_p3 = scmp.lt.u32.totalorder %s20658_s0, %s23422_s1 }
  0xa8   : > { %p20661_p0 = pnand %p20659_p13, %p21512_p8 }
  0xaa   : > { %p20662_p1 = pneg %p20661_p0 }
  0xac   : > { %p20667_p2 = pnand %p20665_p3, %p20662_p1 }
  0xae   : > { %20670 = shalt.err (!%p20667_p2)
}
  0xaf   : > { %s20671_s4 = scalar_lea.vmem %s804_s27, 16  ;;  %s20678_s10 = scalar_lea.vmem %s804_s27, 32 }
  0xb0   : > { %p20672_p5 = scmp.ne.s32.totalorder %s804_s27, %s20671_s4  ;;  %p20679_p4 = scmp.lt.s32.totalorder %s804_s27, %s804_s27 }
  0xb1   : > { %p20680_p10 = scmp.lt.s32.totalorder %s20678_s10, %s20671_s4 }
  0xb2   : > { %p20674_p7 = pnand %p20672_p5, %p21512_p8 }
  0xb3   : > { %p20681_p11 = por %p20680_p10, %p20679_p4 }
  0xb4   : > { %p20675_p9 = pneg %p20674_p7 }
  0xb6   : > { %p20682_p12 = pnand %p20681_p11, %p20675_p9 }
  0xb8   : > { %20685 = shalt.err (!%p20682_p12)
}
  0xb9   : > { %18300 = dma.hbm_to_vmem [thread:$0]  (!%p21496_p6), %s23422_s1, 16, %s804_s27, [#allocation26]  }
  0xba   : > { %s21257_s9 = smov [#allocation28]   ;;  %s21258_s0 = smov [#allocation31]  }
  0xbb   : > { %s827_s5 = sshll.u32 %s21257_s9, 4  ;;  %s852_s14 = sshll.u32 %s21258_s0, 4  ;;  %s828_s5 = int_to_ptr.vmem [resolvable:$true] %s827_s5  ;;  %s853_s14 = int_to_ptr.vmem [resolvable:$true] %s852_s14 }
  0xbc   : > { %s23423_s13 = sld [smem:[#allocation73_spill]] }
  0xc2   : > { %s20686_s11 = scalar_lea.hbm %s23423_s13, 16 }
  0xc3   : > { %p20687_p13 = scmp.ne.s32.totalorder %s23423_s13, %s20686_s11  ;;  %p20693_p3 = scmp.lt.u32.totalorder %s20686_s11, %s23423_s13 }
  0xc5   : > { %p20689_p0 = pnand %p20687_p13, %p21512_p8 }
  0xc7   : > { %p20690_p1 = pneg %p20689_p0 }
  0xc9   : > { %p20695_p2 = pnand %p20693_p3, %p20690_p1 }
  0xcb   : > { %20698 = shalt.err (!%p20695_p2)
}
  0xcc   : > { %s20699_s27 = scalar_lea.vmem %s828_s5, 16  ;;  %s20706_s29 = scalar_lea.vmem %s828_s5, 32 }
  0xcd   : > { %p20700_p5 = scmp.ne.s32.totalorder %s828_s5, %s20699_s27  ;;  %p20707_p4 = scmp.lt.s32.totalorder %s828_s5, %s828_s5 }
  0xce   : > { %p20708_p10 = scmp.lt.s32.totalorder %s20706_s29, %s20699_s27 }
  0xcf   : > { %p20702_p7 = pnand %p20700_p5, %p21512_p8 }
  0xd0   : > { %p20709_p11 = por %p20708_p10, %p20707_p4 }
  0xd1   : > { %p20703_p9 = pneg %p20702_p7 }
  0xd3   : > { %p20710_p12 = pnand %p20709_p11, %p20703_p9 }
  0xd5   : > { %20713 = shalt.err (!%p20710_p12)
}
  0xd6   : > { %18306 = dma.hbm_to_vmem [thread:$0]  (!%p21496_p6), %s23423_s13, 16, %s828_s5, [#allocation29]  }
  0xd7   : > { %s23424_s16 = sld [smem:[#allocation76_spill]] }
  0xdd   : > { %s20714_s17 = scalar_lea.hbm %s23424_s16, 16 }
  0xde   : > { %p20715_p13 = scmp.ne.s32.totalorder %s23424_s16, %s20714_s17  ;;  %p20721_p3 = scmp.lt.u32.totalorder %s20714_s17, %s23424_s16 }
  0xe0   : > { %p20717_p0 = pnand %p20715_p13, %p21512_p8 }
  0xe2   : > { %p20718_p1 = pneg %p20717_p0 }
  0xe4   : > { %p20723_p2 = pnand %p20721_p3, %p20718_p1 }
  0xe6   : > { %20726 = shalt.err (!%p20723_p2)
}
  0xe7   : > { %s20727_s27 = scalar_lea.vmem %s853_s14, 16  ;;  %s20734_s5 = scalar_lea.vmem %s853_s14, 32 }
  0xe8   : > { %p20728_p5 = scmp.ne.s32.totalorder %s853_s14, %s20727_s27  ;;  %p20735_p4 = scmp.lt.s32.totalorder %s853_s14, %s853_s14 }
  0xe9   : > { %p20736_p10 = scmp.lt.s32.totalorder %s20734_s5, %s20727_s27 }
  0xea   : > { %p20730_p7 = pnand %p20728_p5, %p21512_p8 }
  0xeb   : > { %p20737_p11 = por %p20736_p10, %p20735_p4 }
  0xec   : > { %p20731_p9 = pneg %p20730_p7 }
  0xee   : > { %p20738_p12 = pnand %p20737_p11, %p20731_p9 }
  0xf0   : > { %20741 = shalt.err (!%p20738_p12)
}
  0xf1   : > { %18312 = dma.hbm_to_vmem [thread:$0]  (!%p21496_p6), %s23424_s16, 16, %s853_s14, [#allocation32]  }
  0xf2   : > { %s21259_s0 = smov [#allocation34]   ;;  %s21260_s7 = smov [#allocation37]  }
  0xf3   : > { %s878_s8 = sshll.u32 %s21259_s0, 4  ;;  %s903_s17 = sshll.u32 %s21260_s7, 4  ;;  %s879_s8 = int_to_ptr.vmem [resolvable:$true] %s878_s8  ;;  %s904_s17 = int_to_ptr.vmem [resolvable:$true] %s903_s17 }
  0xf4   : > { %s23425_s19 = sld [smem:[#allocation78_spill]] }
  0xfa   : > { %s20742_s10 = scalar_lea.hbm %s23425_s19, 2048 }
  0xfb   : > { %p20743_p13 = scmp.ne.s32.totalorder %s23425_s19, %s20742_s10  ;;  %p20749_p3 = scmp.lt.u32.totalorder %s20742_s10, %s23425_s19 }
  0xfd   : > { %p20745_p0 = pnand %p20743_p13, %p21512_p8 }
  0xff   : > { %p20746_p1 = pneg %p20745_p0 }
 0x101   : > { %p20751_p2 = pnand %p20749_p3, %p20746_p1 }
 0x103   : > { %20754 = shalt.err (!%p20751_p2)
}
 0x104   : > { %s20755_s14 = scalar_lea.vmem %s879_s8, 2048  ;;  %p20763_p4 = scmp.lt.s32.totalorder %s879_s8, %s879_s8 }
 0x105   : > { %p20756_p5 = scmp.ne.s32.totalorder %s879_s8, %s20755_s14  ;;  %p20764_p10 = scmp.lt.s32.totalorder %s20755_s14, %s20755_s14 }
 0x107   : > { %p20758_p7 = pnand %p20756_p5, %p21512_p8  ;;  %p20765_p11 = por %p20764_p10, %p20763_p4 }
 0x109   : > { %p20759_p9 = pneg %p20758_p7 }
 0x10b   : > { %p20766_p12 = pnand %p20765_p11, %p20759_p9 }
 0x10d   : > { %20769 = shalt.err (!%p20766_p12)
}
 0x10e   : > { %s23379_s9 = smov 128   ;;  %s23380_s0 = smov 8  }
 0x10f   : > { %18318 = dma.hbm_to_vmem [thread:$0]  (!%p21496_p6), %s23425_s19, 2048, %s879_s8, [#allocation35], %s23379_s9, %s23379_s9, %s23380_s0  }
 0x110   : > { %s23426_s21 = sld [smem:[#allocation80_spill]] }
 0x116   : > { %s20770_s28 = scalar_lea.hbm %s23426_s21, 16 }
 0x117   : > { %p20771_p13 = scmp.ne.s32.totalorder %s23426_s21, %s20770_s28  ;;  %p20777_p3 = scmp.lt.u32.totalorder %s20770_s28, %s23426_s21 }
 0x119   : > { %p20773_p0 = pnand %p20771_p13, %p21512_p8 }
 0x11b   : > { %p20774_p1 = pneg %p20773_p0 }
 0x11d   : > { %p20779_p2 = pnand %p20777_p3, %p20774_p1 }
 0x11f   : > { %20782 = shalt.err (!%p20779_p2)
}
 0x120   : > { %s20783_s7 = scalar_lea.vmem %s904_s17, 16  ;;  %s20790_s8 = scalar_lea.vmem %s904_s17, 32 }
 0x121   : > { %p20784_p5 = scmp.ne.s32.totalorder %s904_s17, %s20783_s7  ;;  %p20791_p4 = scmp.lt.s32.totalorder %s904_s17, %s904_s17 }
 0x122   : > { %p20792_p10 = scmp.lt.s32.totalorder %s20790_s8, %s20783_s7 }
 0x123   : > { %p20786_p7 = pnand %p20784_p5, %p21512_p8 }
 0x124   : > { %p20793_p11 = por %p20792_p10, %p20791_p4 }
 0x125   : > { %p20787_p9 = pneg %p20786_p7 }
 0x127   : > { %p20794_p12 = pnand %p20793_p11, %p20787_p9 }
 0x129   : > { %20797 = shalt.err (!%p20794_p12)
}
 0x12a   : > { %18324 = dma.hbm_to_vmem [thread:$0]  (!%p21496_p6), %s23426_s21, 16, %s904_s17, [#allocation38]  }
 0x12b   : > { %s21263_s10 = smov [#allocation40]   ;;  %s21264_s27 = smov [#allocation18]  }
 0x12c   : > { %s925_s28 = sshll.u32 %s21263_s10, 4  ;;  %s741_s5 = sshll.u32 %s21264_s27, 4  ;;  %s926_s28 = int_to_ptr.vmem [resolvable:$true] %s925_s28  ;;  %s742_s5 = int_to_ptr.vmem [resolvable:$true] %s741_s5 }
 0x12d   : > { %s23427_s23 = sld [smem:[#allocation81_spill]] }
 0x133   : > { %s20798_s9 = scalar_lea.hbm %s23427_s23, 16 }
 0x134   : > { %p20799_p13 = scmp.ne.s32.totalorder %s23427_s23, %s20798_s9  ;;  %p20805_p3 = scmp.lt.u32.totalorder %s20798_s9, %s23427_s23 }
 0x136   : > { %p20801_p0 = pnand %p20799_p13, %p21512_p8 }
 0x138   : > { %p20802_p1 = pneg %p20801_p0 }
 0x13a   : > { %p20807_p2 = pnand %p20805_p3, %p20802_p1 }
 0x13c   : > { %20810 = shalt.err (!%p20807_p2)
}
 0x13d   : > { %s20811_s17 = scalar_lea.vmem %s926_s28, 16  ;;  %s20818_s4 = scalar_lea.vmem %s926_s28, 32 }
 0x13e   : > { %p20812_p5 = scmp.ne.s32.totalorder %s926_s28, %s20811_s17  ;;  %p20819_p4 = scmp.lt.s32.totalorder %s926_s28, %s926_s28 }
 0x13f   : > { %p20820_p10 = scmp.lt.s32.totalorder %s20818_s4, %s20811_s17 }
 0x140   : > { %p20814_p7 = pnand %p20812_p5, %p21512_p8 }
 0x141   : > { %p20821_p11 = por %p20820_p10, %p20819_p4 }
 0x142   : > { %p20815_p9 = pneg %p20814_p7 }
 0x144   : > { %p20822_p12 = pnand %p20821_p11, %p20815_p9 }
 0x146   : > { %20825 = shalt.err (!%p20822_p12)
}
 0x147   : > { %18330 = dma.hbm_to_vmem [thread:$0]  (!%p21496_p6), %s23427_s23, 16, %s926_s28, [#allocation41]  }
 0x148   : > { %s23428_s29 = sld [smem:[#allocation66_spill]] }
 0x14e   : > { %s20826_s14 = scalar_lea.hbm %s23428_s29, 112000 }
 0x14f   : > { %p20827_p13 = scmp.ne.s32.totalorder %s23428_s29, %s20826_s14  ;;  %p20833_p3 = scmp.lt.u32.totalorder %s20826_s14, %s23428_s29 }
 0x151   : > { %p20829_p0 = pnand %p20827_p13, %p21512_p8 }
 0x153   : > { %p20830_p1 = pneg %p20829_p0 }
 0x155   : > { %p20835_p2 = pnand %p20833_p3, %p20830_p1 }
 0x157   : > { %20838 = shalt.err (!%p20835_p2)
}
 0x158   : > { %s20839_s4 = scalar_lea.vmem %s742_s5, 112000  ;;  %p20847_p4 = scmp.lt.s32.totalorder %s742_s5, %s742_s5 }
 0x159   : > { %p20840_p5 = scmp.ne.s32.totalorder %s742_s5, %s20839_s4  ;;  %p20848_p10 = scmp.lt.s32.totalorder %s20839_s4, %s20839_s4 }
 0x15b   : > { %p20842_p7 = pnand %p20840_p5, %p21512_p8  ;;  %p20849_p11 = por %p20848_p10, %p20847_p4 }
 0x15d   : > { %p20843_p9 = pneg %p20842_p7 }
 0x15f   : > { %p20850_p12 = pnand %p20849_p11, %p20843_p9 }
 0x161   : > { %20853 = shalt.err (!%p20850_p12)
}
 0x162   : > { %s23429_s28 = smov 28   ;;  %s23430_s10 = smov 448  }
 0x163   : > { %18285 = dma.hbm_to_vmem [thread:$0]  (!%p21496_p6), %s23428_s29, 112000, %s742_s5, [#allocation17], %s23430_s10, %s23430_s10, %s23429_s28  }
 0x164   : > { %s21265_s0 = smov [#allocation21]   ;;  %s23431_s11 = sld [smem:[#allocation68_spill]] }
 0x165   : > { %s765_s14 = sshll.u32 %s21265_s0, 4  ;;  %s766_s14 = int_to_ptr.vmem [resolvable:$true] %s765_s14 }
 0x16a   : > { %s20854_s17 = scalar_lea.hbm %s23431_s11, 51200 }
 0x16b   : > { %p20855_p13 = scmp.ne.s32.totalorder %s23431_s11, %s20854_s17  ;;  %p20861_p3 = scmp.lt.u32.totalorder %s20854_s17, %s23431_s11 }
 0x16d   : > { %p20857_p0 = pnand %p20855_p13, %p21512_p8 }
 0x16f   : > { %p20858_p1 = pneg %p20857_p0 }
 0x171   : > { %p20863_p2 = pnand %p20861_p3, %p20858_p1 }
 0x173   : > { %20866 = shalt.err (!%p20863_p2)
}
 0x174   : > { %s20867_s5 = scalar_lea.vmem %s766_s14, 51200  ;;  %p20875_p4 = scmp.lt.s32.totalorder %s766_s14, %s766_s14 }
 0x175   : > { %p20868_p5 = scmp.ne.s32.totalorder %s766_s14, %s20867_s5  ;;  %p20876_p10 = scmp.lt.s32.totalorder %s20867_s5, %s20867_s5 }
 0x177   : > { %p20870_p7 = pnand %p20868_p5, %p21512_p8  ;;  %p20877_p11 = por %p20876_p10, %p20875_p4 }
 0x179   : > { %p20871_p9 = pneg %p20870_p7 }
 0x17b   : > { %p20878_p12 = pnand %p20877_p11, %p20871_p9 }
 0x17d   : > { %20881 = shalt.err (!%p20878_p12)
}
 0x17e   : > { %s21266_s1 = smov 256   ;;  %s21267_s28 = smov 16  }
 0x17f   : > { %18291 = dma.hbm_to_vmem [thread:$0]  (!%p21496_p6), %s23431_s11, 51200, %s766_s14, [#allocation20], %s21266_s1, %s21266_s1, %s21267_s28  }
 0x180   : > { %s21268_s10 = smov [#allocation24]   ;;  %s23432_s7 = sld [smem:[#allocation70_spill]] }
 0x181   : > { %s789_s27 = sshll.u32 %s21268_s10, 4  ;;  %s790_s27 = int_to_ptr.vmem [resolvable:$true] %s789_s27 }
 0x186   : > { %s20882_s8 = scalar_lea.hbm %s23432_s7, 4096 }
 0x187   : > { %p20883_p13 = scmp.ne.s32.totalorder %s23432_s7, %s20882_s8  ;;  %p20889_p3 = scmp.lt.u32.totalorder %s20882_s8, %s23432_s7 }
 0x189   : > { %p20885_p0 = pnand %p20883_p13, %p21512_p8 }
 0x18b   : > { %p20886_p1 = pneg %p20885_p0 }
 0x18d   : > { %p20891_p2 = pnand %p20889_p3, %p20886_p1 }
 0x18f   : > { %20894 = shalt.err (!%p20891_p2)
}
 0x190   : > { %s20895_s14 = scalar_lea.vmem %s790_s27, 4096  ;;  %p20903_p4 = scmp.lt.s32.totalorder %s790_s27, %s790_s27 }
 0x191   : > { %p20896_p5 = scmp.ne.s32.totalorder %s790_s27, %s20895_s14  ;;  %p20904_p10 = scmp.lt.s32.totalorder %s20895_s14, %s20895_s14 }
 0x193   : > { %p20898_p7 = pnand %p20896_p5, %p21512_p8  ;;  %p20905_p11 = por %p20904_p10, %p20903_p4 }
 0x195   : > { %p20899_p9 = pneg %p20898_p7 }
 0x197   : > { %p20906_p12 = pnand %p20905_p11, %p20899_p9 }
 0x199   : > { %20909 = shalt.err (!%p20906_p12)
}
 0x19a   : > { %s21269_s1 = smov 64   ;;  %s21270_s28 = smov 4  }
 0x19b   : > { %18297 = dma.hbm_to_vmem [thread:$0]  (!%p21496_p6), %s23432_s7, 4096, %s790_s27, [#allocation23], %s21269_s1, %s21269_s1, %s21270_s28  }
 0x19c   : > { %s21271_s16 = smov [#allocation27]   ;;  %s21272_s9 = smov [#allocation30]  }
 0x19d   : > { %s813_s10 = sshll.u32 %s21271_s16, 4  ;;  %s841_s0 = sshll.u32 %s21272_s9, 4  ;;  %s814_s10 = int_to_ptr.vmem [resolvable:$true] %s813_s10  ;;  %s842_s0 = int_to_ptr.vmem [resolvable:$true] %s841_s0 }
 0x19e   : > { %s23433_s4 = sld [smem:[#allocation72_spill]] }
 0x1a4   : > { %s20910_s5 = scalar_lea.hbm %s23433_s4, 2048 }
 0x1a5   : > { %p20911_p13 = scmp.ne.s32.totalorder %s23433_s4, %s20910_s5  ;;  %p20917_p3 = scmp.lt.u32.totalorder %s20910_s5, %s23433_s4 }
 0x1a7   : > { %p20913_p0 = pnand %p20911_p13, %p21512_p8 }
 0x1a9   : > { %p20914_p1 = pneg %p20913_p0 }
 0x1ab   : > { %p20919_p2 = pnand %p20917_p3, %p20914_p1 }
 0x1ad   : > { %20922 = shalt.err (!%p20919_p2)
}
 0x1ae   : > { %s20923_s27 = scalar_lea.vmem %s814_s10, 2048  ;;  %p20931_p4 = scmp.lt.s32.totalorder %s814_s10, %s814_s10 }
 0x1af   : > { %p20924_p5 = scmp.ne.s32.totalorder %s814_s10, %s20923_s27  ;;  %p20932_p10 = scmp.lt.s32.totalorder %s20923_s27, %s20923_s27 }
 0x1b1   : > { %p20926_p7 = pnand %p20924_p5, %p21512_p8  ;;  %p20933_p11 = por %p20932_p10, %p20931_p4 }
 0x1b3   : > { %p20927_p9 = pneg %p20926_p7 }
 0x1b5   : > { %p20934_p12 = pnand %p20933_p11, %p20927_p9 }
 0x1b7   : > { %20937 = shalt.err (!%p20934_p12)
}
 0x1b8   : > { %18303 = dma.hbm_to_vmem [thread:$0]  (!%p21496_p6), %s23433_s4, 2048, %s814_s10, [#allocation26], %s21269_s1, %s21269_s1, %s21270_s28  }
 0x1b9   : > { %s23434_s15 = sld [smem:[#allocation75_spill]] }
 0x1bf   : > { %s20938_s13 = scalar_lea.hbm %s23434_s15, 16 }
 0x1c0   : > { %p20939_p13 = scmp.ne.s32.totalorder %s23434_s15, %s20938_s13  ;;  %p20945_p3 = scmp.lt.u32.totalorder %s20938_s13, %s23434_s15 }
 0x1c2   : > { %p20941_p0 = pnand %p20939_p13, %p21512_p8 }
 0x1c4   : > { %p20942_p1 = pneg %p20941_p0 }
 0x1c6   : > { %p20947_p2 = pnand %p20945_p3, %p20942_p1 }
 0x1c8   : > { %20950 = shalt.err (!%p20947_p2)
}
 0x1c9   : > { %s20951_s5 = scalar_lea.vmem %s842_s0, 16  ;;  %s20958_s1 = scalar_lea.vmem %s842_s0, 32 }
 0x1ca   : > { %p20952_p5 = scmp.ne.s32.totalorder %s842_s0, %s20951_s5  ;;  %p20959_p4 = scmp.lt.s32.totalorder %s842_s0, %s842_s0 }
 0x1cb   : > { %p20960_p10 = scmp.lt.s32.totalorder %s20958_s1, %s20951_s5 }
 0x1cc   : > { %p20954_p7 = pnand %p20952_p5, %p21512_p8 }
 0x1cd   : > { %p20961_p11 = por %p20960_p10, %p20959_p4 }
 0x1ce   : > { %p20955_p9 = pneg %p20954_p7 }
 0x1d0   : > { %p20962_p12 = pnand %p20961_p11, %p20955_p9 }
 0x1d2   : > { %20965 = shalt.err (!%p20962_p12)
}
 0x1d3   : > { %18309 = dma.hbm_to_vmem [thread:$0]  (!%p21496_p6), %s23434_s15, 16, %s842_s0, [#allocation29]  }
 0x1d4   : > { %s21273_s14 = smov [#allocation33]   ;;  %s21274_s11 = smov [#allocation36]  }
 0x1d5   : > { %s865_s27 = sshll.u32 %s21273_s14, 4  ;;  %s892_s19 = sshll.u32 %s21274_s11, 4  ;;  %s866_s27 = int_to_ptr.vmem [resolvable:$true] %s865_s27  ;;  %s893_s19 = int_to_ptr.vmem [resolvable:$true] %s892_s19 }
 0x1d6   : > { %s23435_s18 = sld [smem:[#allocation77_spill]] }
 0x1dc   : > { %s20966_s13 = scalar_lea.hbm %s23435_s18, 2048 }
 0x1dd   : > { %p20967_p13 = scmp.ne.s32.totalorder %s23435_s18, %s20966_s13  ;;  %p20973_p3 = scmp.lt.u32.totalorder %s20966_s13, %s23435_s18 }
 0x1df   : > { %p20969_p0 = pnand %p20967_p13, %p21512_p8 }
 0x1e1   : > { %p20970_p1 = pneg %p20969_p0 }
 0x1e3   : > { %p20975_p2 = pnand %p20973_p3, %p20970_p1 }
 0x1e5   : > { %20978 = shalt.err (!%p20975_p2)
}
 0x1e6   : > { %s20979_s0 = scalar_lea.vmem %s866_s27, 2048  ;;  %p20987_p4 = scmp.lt.s32.totalorder %s866_s27, %s866_s27 }
 0x1e7   : > { %p20980_p5 = scmp.ne.s32.totalorder %s866_s27, %s20979_s0  ;;  %p20988_p10 = scmp.lt.s32.totalorder %s20979_s0, %s20979_s0 }
 0x1e9   : > { %p20982_p7 = pnand %p20980_p5, %p21512_p8  ;;  %p20989_p11 = por %p20988_p10, %p20987_p4 }
 0x1eb   : > { %p20983_p9 = pneg %p20982_p7 }
 0x1ed   : > { %p20990_p12 = pnand %p20989_p11, %p20983_p9 }
 0x1ef   : > { %20993 = shalt.err (!%p20990_p12)
}
 0x1f0   : > { %s23436_s5 = smov 8   ;;  %s23437_s1 = smov 128  }
 0x1f1   : > { %18315 = dma.hbm_to_vmem [thread:$0]  (!%p21496_p6), %s23435_s18, 2048, %s866_s27, [#allocation32], %s23437_s1, %s23437_s1, %s23436_s5  }
 0x1f2   : > { %s23438_s20 = sld [smem:[#allocation79_spill]] }
 0x1f8   : > { %s20994_s21 = scalar_lea.hbm %s23438_s20, 128 }
 0x1f9   : > { %p20995_p13 = scmp.ne.s32.totalorder %s23438_s20, %s20994_s21  ;;  %p21001_p3 = scmp.lt.u32.totalorder %s20994_s21, %s23438_s20 }
 0x1fb   : > { %p20997_p0 = pnand %p20995_p13, %p21512_p8 }
 0x1fd   : > { %p20998_p1 = pneg %p20997_p0 }
 0x1ff   : > { %p21003_p2 = pnand %p21001_p3, %p20998_p1 }
 0x201   : > { %21006 = shalt.err (!%p21003_p2)
}
 0x202   : > { %s21007_s8 = scalar_lea.vmem %s893_s19, 128  ;;  %p21015_p4 = scmp.lt.s32.totalorder %s893_s19, %s893_s19 }
 0x203   : > { %p21008_p5 = scmp.ne.s32.totalorder %s893_s19, %s21007_s8  ;;  %p21016_p10 = scmp.lt.s32.totalorder %s21007_s8, %s21007_s8 }
 0x205   : > { %p21010_p7 = pnand %p21008_p5, %p21512_p8  ;;  %p21017_p11 = por %p21016_p10, %p21015_p4 }
 0x207   : > { %p21011_p9 = pneg %p21010_p7 }
 0x209   : > { %p21018_p12 = pnand %p21017_p11, %p21011_p9 }
 0x20b   : > { %21021 = shalt.err (!%p21018_p12)
}
 0x20c   : > { %18321 = dma.hbm_to_vmem [thread:$0]  (!%p21496_p6), %s23438_s20, 128, %s893_s19, [#allocation35]  }
 0x20d   : > { %s21275_s0 = smov [#allocation39]   ;;  %s21276_s1 = smov [#allocation42]  }
 0x20e   : > { %s914_s5 = sshll.u32 %s21275_s0, 4  ;;  %s942_s28 = sshll.u32 %s21276_s1, 4  ;;  %s915_s5 = int_to_ptr.vmem [resolvable:$true] %s914_s5  ;;  %s943_s28 = int_to_ptr.vmem [resolvable:$true] %s942_s28 }
 0x20f   : > { %s21022_s11 = scalar_lea.hbm %s23348_s22, 16 }
 0x210   : > { %p21023_p13 = scmp.ne.s32.totalorder %s23348_s22, %s21022_s11  ;;  %p21029_p3 = scmp.lt.u32.totalorder %s21022_s11, %s23348_s22 }
 0x212   : > { %p21025_p0 = pnand %p21023_p13, %p21512_p8 }
 0x214   : > { %p21026_p1 = pneg %p21025_p0 }
 0x216   : > { %p21031_p2 = pnand %p21029_p3, %p21026_p1 }
 0x218   : > { %21034 = shalt.err (!%p21031_p2)
}
 0x219   : > { %s21035_s19 = scalar_lea.vmem %s915_s5, 16  ;;  %s21042_s9 = scalar_lea.vmem %s915_s5, 32 }
 0x21a   : > { %p21036_p5 = scmp.ne.s32.totalorder %s915_s5, %s21035_s19  ;;  %p21043_p4 = scmp.lt.s32.totalorder %s915_s5, %s915_s5 }
 0x21b   : > { %p21044_p10 = scmp.lt.s32.totalorder %s21042_s9, %s21035_s19 }
 0x21c   : > { %p21038_p7 = pnand %p21036_p5, %p21512_p8 }
 0x21d   : > { %p21045_p11 = por %p21044_p10, %p21043_p4 }
 0x21e   : > { %p21039_p9 = pneg %p21038_p7 }
 0x220   : > { %p21046_p12 = pnand %p21045_p11, %p21039_p9 }
 0x222   : > { %21049 = shalt.err (!%p21046_p12)
}
 0x223   : > { %18327 = dma.hbm_to_vmem [thread:$0]  (!%p21496_p6), %s23348_s22, 16, %s915_s5, [#allocation38]  }
 0x224   : > { %s21050_s1 = scalar_lea.hbm %s23351_s26, 16 }
 0x225   : > { %p21051_p13 = scmp.ne.s32.totalorder %s23351_s26, %s21050_s1  ;;  %p21057_p3 = scmp.lt.u32.totalorder %s21050_s1, %s23351_s26 }
 0x227   : > { %p21053_p0 = pnand %p21051_p13, %p21512_p8 }
 0x229   : > { %p21054_p1 = pneg %p21053_p0 }
 0x22b   : > { %p21059_p2 = pnand %p21057_p3, %p21054_p1 }
 0x22d   : > { %21062 = shalt.err (!%p21059_p2)
}
 0x22e   : > { %s21063_s23 = scalar_lea.vmem %s943_s28, 16  ;;  %s21070_s5 = scalar_lea.vmem %s943_s28, 32 }
 0x22f   : > { %p21064_p5 = scmp.ne.s32.totalorder %s943_s28, %s21063_s23  ;;  %p21071_p4 = scmp.lt.s32.totalorder %s943_s28, %s943_s28 }
 0x230   : > { %p21072_p10 = scmp.lt.s32.totalorder %s21070_s5, %s21063_s23 }
 0x231   : > { %p21066_p7 = pnand %p21064_p5, %p21512_p8 }
 0x232   : > { %p21073_p11 = por %p21072_p10, %p21071_p4 }
 0x233   : > { %p21067_p9 = pneg %p21066_p7 }
 0x235   : > { %p21074_p12 = pnand %p21073_p11, %p21067_p9 }
 0x237   : > { %21077 = shalt.err (!%p21074_p12)
}
 0x238   : > { %s23439_s2 = sld [smem:[#allocation57_spill]]  ;;  %s23440_s19 = sld [smem:[#allocation58_spill]] }
 0x239   : > { %18333 = dma.hbm_to_vmem [thread:$0]  (!%p21496_p6), %s23351_s26, 16, %s943_s28, [#allocation41]  }
 0x23a   : > { %s16076_s9 = sadd.s32 4294967294, %s21248_s6   ;;  %s21883_s12 = sadd.s32 1, %s21248_s6  }
 0x23b   : > { %s120_s8 = sadd.s32 1, %s21244_s3  ;;  %s117_s27 = ssub.s32 %s21248_s6, %s21883_s12 }
 0x23c   : > { %p127_p8 = scmp.ne.s32.totalorder %s21244_s3, %s21240_s24  ;;  %p118_p13 = scmp.eq.s32.totalorder %s117_s27, 0 }
 0x23d   : > { %p128_p0 = scmp.eq.s32.totalorder %s21248_s6, 0  ;;  %p672_p9 = scmp.eq.s32.totalorder %s16076_s9, 1 }
 0x23e   : > { %p133_p1 = scmp.ne.s32.totalorder %s21240_s24, %s23439_s2  ;;  %p666_p3 = scmp.eq.s32.totalorder %s23440_s19, 1 }
 0x23f   : > { %s21895_s17 = scalar_select %p118_p13, %s21244_s3, %s120_s8  }
 0x240   : > { %p129_p2 = por %p128_p0, %p127_p8  ;;  %p23441_p5 = scmp.eq.s32.totalorder %s23440_s19, 0 }
 0x241   : > { %p21903_p6 = por %p666_p3, %p127_p8  ;;  %p18364_p4 = scmp.lt.s32.totalorder %s21248_s6, 2 }
 0x242   : > { %p21899_p7 = por %p23441_p5, %p133_p1  ;;  %s21909_s1 = sand.u32 1, %s21244_s3  }
 0x243   : > { %s23443_s0 = scalar_select %p21903_p6, 1, 0 }
 0x244   : > { %s23442_s28 = scalar_select %p21899_p7, 1, 0 }
 0x245   : > { %p21911_p10 = por %p672_p9, %p133_p1  ;;  %s16098_s14 = sshll.u32 %s21248_s6, 4 }
 0x246   : > { %s23445_s23 = sld [smem:[#allocation62_spill]]  ;;  %s971_s13 = scalar_lea.vmem [#allocation10], %s21909_s1 }
 0x247   : > { %s23444_s10 = scalar_select %p21911_p10, 1, 0 }
 0x248   : > { %s978_s16 = sshll.u32 %s971_s13, 4  ;;  %p21924_p11 = pnand %p18364_p4, %p129_p2  ;;  %s21922_s16 = int_to_ptr.vmem [resolvable:$true] %s978_s16 }
 0x249   : > { %s23447_s27 = sld [smem:[#allocation63_spill]]  ;;  %s969_s21 = scalar_lea.sflag [#allocation11], %s21909_s1 }
 0x24a   : > { %p21080_p8 = pneg %p21924_p11 }
 0x24c   : > { %s21919_s5 = scalar_lea.hbm %s23445_s23, %s16098_s14  ;;  %s21083_s15 = scalar_lea.hbm %s23445_s23, 32 }
 0x24d   : > { %s21078_s4 = scalar_lea.hbm %s21919_s5, 16  ;;  %p21084_p1 = scmp.lt.u32.totalorder %s21919_s5, %s23445_s23 }
 0x24e   : > { %p21079_p12 = scmp.ne.s32.totalorder %s21919_s5, %s21078_s4  ;;  %p21085_p3 = scmp.lt.u32.totalorder %s21083_s15, %s21078_s4 }
 0x24f   : > { %s21932_s11 = scalar_lea.hbm %s23447_s27, %s16098_s14  ;;  %p21087_p5 = scmp.lt.u32.totalorder %s21078_s4, %s21919_s5 }
 0x250   : > { %p21081_p13 = pnand %p21080_p8, %p21079_p12  ;;  %p21086_p2 = por %p21085_p3, %p21084_p1 }
 0x252   : > { %p21082_p0 = pneg %p21081_p13  ;;  %p21088_p9 = por %p21087_p5, %p21086_p2 }
 0x254   : > { %p21089_p4 = pnand %p21088_p9, %p21082_p0 }
 0x256   : > { %21092 = shalt.err (!%p21089_p4)
}
 0x257   : > { %s21093_s14 = scalar_lea.vmem %s21922_s16, 16  ;;  %s21277_s7 = smov [#allocation10]  }
 0x258   : > { %p21094_p12 = scmp.ne.s32.totalorder %s21922_s16, %s21093_s14  ;;  %s21098_s9 = sshll.u32 %s21277_s7, 4  ;;  %s21099_s9 = int_to_ptr.vmem [resolvable:$false] %s21098_s9 }
 0x259   : > { %s21100_s18 = scalar_lea.vmem %s21099_s9, 32  ;;  %p21101_p6 = scmp.lt.s32.totalorder %s21922_s16, %s21099_s9 }
 0x25a   : > { %p21096_p13 = pnand %p21094_p12, %p21080_p8  ;;  %p21102_p1 = scmp.lt.s32.totalorder %s21100_s18, %s21093_s14 }
 0x25c   : > { %p21097_p10 = pneg %p21096_p13  ;;  %p21103_p3 = por %p21102_p1, %p21101_p6 }
 0x25e   : > { %p21104_p2 = pnand %p21103_p3, %p21097_p10 }
 0x260   : > { %21107 = shalt.err (!%p21104_p2)
}
 0x261   : > { %18337 = dma.hbm_to_vmem [thread:$0]  (!%p21924_p11), %s21919_s5, 16, %s21922_s16, %s969_s21  }
 0x262   : > { %s988_s15 = scalar_lea.vmem [#allocation13], %s21909_s1  ;;  %s23448_s19 = sand.u32 1, %s21248_s6  }
 0x263   : > { %s995_s4 = sshll.u32 %s988_s15, 4  ;;  %s986_s8 = scalar_lea.sflag [#allocation14], %s23448_s19  ;;  %s996_s4 = int_to_ptr.vmem [resolvable:$true] %s995_s4 }
 0x264   : > { %s21108_s13 = scalar_lea.hbm %s21932_s11, 16  ;;  %s21113_s9 = scalar_lea.hbm %s23447_s27, 32 }
 0x265   : > { %p21109_p6 = scmp.ne.s32.totalorder %s21932_s11, %s21108_s13  ;;  %p21114_p5 = scmp.lt.u32.totalorder %s21932_s11, %s23447_s27 }
 0x266   : > { %p21115_p9 = scmp.lt.u32.totalorder %s21113_s9, %s21108_s13  ;;  %p21117_p12 = scmp.lt.u32.totalorder %s21108_s13, %s21932_s11 }
 0x267   : > { %p21111_p10 = pnand %p21109_p6, %p21080_p8 }
 0x268   : > { %p21116_p4 = por %p21115_p9, %p21114_p5 }
 0x269   : > { %p21112_p0 = pneg %p21111_p10 }
 0x26a   : > { %p21118_p13 = por %p21117_p12, %p21116_p4 }
 0x26c   : > { %p21119_p1 = pnand %p21118_p13, %p21112_p0 }
 0x26e   : > { %21122 = shalt.err (!%p21119_p1)
}
 0x26f   : > { %s21123_s1 = scalar_lea.vmem %s996_s4, 16  ;;  %s21278_s5 = smov [#allocation13]  }
 0x270   : > { %p21124_p3 = scmp.ne.s32.totalorder %s996_s4, %s21123_s1  ;;  %s21128_s16 = sshll.u32 %s21278_s5, 4  ;;  %s21129_s16 = int_to_ptr.vmem [resolvable:$false] %s21128_s16 }
 0x271   : > { %s21130_s21 = scalar_lea.vmem %s21129_s16, 32  ;;  %p21131_p10 = scmp.lt.s32.totalorder %s996_s4, %s21129_s16 }
 0x272   : > { %p21126_p2 = pnand %p21124_p3, %p21080_p8  ;;  %p21132_p7 = scmp.lt.s32.totalorder %s21130_s21, %s21123_s1 }
 0x274   : > { %p21127_p6 = pneg %p21126_p2  ;;  %p21133_p5 = por %p21132_p7, %p21131_p10 }
 0x276   : > { %p21134_p9 = pnand %p21133_p5, %p21127_p6 }
 0x278   : > { %21137 = shalt.err (!%p21134_p9)
}
 0x279   : > { %18340 = dma.hbm_to_vmem [thread:$0]  (!%p21924_p11), %s21932_s11, 16, %s996_s4, %s986_s8  }
 0x27a   : > { %s23449_s20 = sld [smem:[#allocation59_spill]] }
 0x280   : > { %p23450_p0 = scmp.ne.s32.totalorder %s23449_s20, 0 }
 0x281   : > { %s21985_s15 = sand.u32 (!%p23450_p0), 1, %s21240_s24   ;;  %p23451_p8 = scmp.ne.s32.totalorder (!%p23450_p0), %s23442_s28, 0 }
 0x282   : > { %1004 = sbr.rel (%p23450_p0) target bundleno = 4361 (0x1109), region = 128  ;;  %s1007_s19 = scalar_lea.sflag (!%p23450_p0), [#allocation11], %s21985_s15 }
 0x283   : > { %s1009_s13 = scalar_lea.vmem (!%p23450_p0), [#allocation10], %s21985_s15 }
 0x289   : > { %21183 = dma.done.wait (%p23451_p8), %s1007_s19, 16  }
 0x28a   : > { %21185 = vsyncadd (%p23451_p8), %s1007_s19, 4294967280  ;;  %s23452_s14 = sld [smem:[#allocation58_spill]]  ;;  %s1017_s4 = scalar_lea.vmem [#allocation13], %s21985_s15 }
 0x290   : > { %s1014_s2 = sand.u32 1, %s23452_s14  }
 0x291   : > { %s1015_s11 = scalar_lea.sflag [#allocation14], %s1014_s2 }
 0x292   : > { %21187 = dma.done.wait (%p23451_p8), %s1015_s11, 16  }
 0x293   : > { %21189 = vsyncadd (%p23451_p8), %s1015_s11, 4294967280  ;;  %p23453_p7 = scmp.eq.s32.totalorder %s23452_s14, 0 }
 0x295   : > { %21191 = dma.done.wait (%p23453_p7), [#allocation14], 13440   ;;  %p23454_p11 = pmov %p23453_p7 }
 0x296   : > { %p23455_p4 = pmov %p23453_p7 }
 0x297   : > { %21193 = vsyncadd (%p23454_p11), [#allocation14], 4294953856 }
 0x298   : > { %21195 = dma.done.wait (%p23455_p4), [#allocation17], 112112   ;;  %p23456_p12 = pmov %p23455_p4 }
 0x299   : > { %p23457_p13 = pmov %p23455_p4 }
 0x29a   : > { %21197 = vsyncadd (%p23456_p12), [#allocation17], 4294855184 }
 0x29b   : > { %21199 = dma.done.wait (%p23457_p13), [#allocation20], 51312   ;;  %p23458_p1 = pmov %p23455_p4 }
 0x29d   : > { %21201 = vsyncadd (%p23458_p1), [#allocation20], 4294915984  ;;  %p23459_p3 = pmov %p23458_p1 }
 0x29e   : > { %p23460_p2 = pmov %p23458_p1 }
 0x29f   : > { %21203 = dma.done.wait (%p23459_p3), [#allocation23], 4160  }
 0x2a0   : > { %21205 = vsyncadd (%p23460_p2), [#allocation23], 4294963136  ;;  %p23461_p6 = pmov %p23458_p1 }
 0x2a1   : > { %p23462_p10 = pmov %p23458_p1 }
 0x2a2   : > { %21207 = dma.done.wait (%p23461_p6), [#allocation26], 2064  }
 0x2a3   : > { %21209 = vsyncadd (%p23462_p10), [#allocation26], 4294965232  ;;  %p23463_p5 = pmov %p23458_p1 }
 0x2a4   : > { %p23464_p9 = pmov %p23458_p1 }
 0x2a5   : > { %21211 = dma.done.wait (%p23463_p5), [#allocation29], 32  }
 0x2a6   : > { %21213 = vsyncadd (%p23464_p9), [#allocation29], 4294967264  ;;  %p23465_p0 = pmov %p23458_p1 }
 0x2a8   : > { %21215 = dma.done.wait (%p23465_p0), [#allocation32], 2064   ;;  %p23466_p8 = pmov %p23465_p0 }
 0x2a9   : > { %p23467_p7 = pmov %p23465_p0 }
 0x2aa   : > { %21217 = vsyncadd (%p23466_p8), [#allocation32], 4294965232 }
 0x2ab   : > { %21219 = dma.done.wait (%p23467_p7), [#allocation35], 2176   ;;  %p23468_p11 = pmov %p23465_p0 }
 0x2ac   : > { %p23469_p4 = pmov %p23465_p0 }
 0x2ad   : > { %21221 = vsyncadd (%p23468_p11), [#allocation35], 4294965120 }
 0x2ae   : > { %21223 = dma.done.wait (%p23469_p4), [#allocation38], 32   ;;  %p23470_p12 = pmov %p23465_p0 }
 0x2af   : > { %p23471_p13 = pmov %p23465_p0 }
 0x2b0   : > { %21225 = vsyncadd (%p23470_p12), [#allocation38], 4294967264 }
 0x2b1   : > { %21227 = dma.done.wait (%p23471_p13), [#allocation41], 32   ;;  %p23472_p1 = pmov %p23465_p0 }
 0x2b2   : > { %p1180_p3 = scmp.lt.s32.totalorder %s23452_s14, 1  ;;  %v21279_v2 = vmov 0   ;;  %v18473_v3 = vld [vmem:[#allocation15 + $0xac] ss:$28 sps:$4 sm:$0xff]   ;;  %v18475_v4 = vld [vmem:[#allocation15 + $0xc0] ss:$28 sps:$4 sm:$0xff]  }
 0x2b3   : > { %21229 = vsyncadd (%p23472_p1), [#allocation41], 4294967264  ;;  %1414 = vmatprep.mubr.bf16.mxu0 %v21279_v2  ;;  %18472 = vset.pattern.permute.xlu0 %v21279_v2  ;;  %v18476_v5 = vld [vmem:[#allocation15 + $0xa8] ss:$28 sps:$4 sm:$0xff]   ;;  %s23473_s18 = sld [smem:[#allocation60_spill]]  ;;  %vm1360_vm0 = vcmask 1045504  }
 0x2b4   : > { %s22043_s28 = scalar_select %p1180_p3, %s23452_s14, 1  ;;  %1382 = vmatprep.subr.bf16.mxu0 %v18473_v3  ;;  %17898 = vmatprep.subr.bf16.mxu1 %v18475_v4  ;;  %v18477_v6 = vld [vmem:[#allocation15 + $0xe4] ss:$28 sps:$4 sm:$0xff]   ;;  %v18479_v7 = vld [vmem:[#allocation15 + $0xf8] ss:$28 sps:$4 sm:$0xff]   ;;  %vm1353_vm1 = vcmask 359424  }
 0x2b5   : > { %1383 = vmatpush1.bf16.msra.mxu0 %v18476_v5  ;;  %17899 = vmatpush3.bf16.msra.mxu1 %v18475_v4  ;;  %v18480_v8 = vld [vmem:[#allocation15 + $0xe0] ss:$28 sps:$4 sm:$0xff]   ;;  %v18483_v12 = vld [vmem:[#allocation15 + $0x130] ss:$28 sps:$4 sm:$0x3f]   ;;  %s21280_s5 = smov 108  }
 0x2b6   : > { %s17640_s8 = sshll.u32 %s22043_s28, 5  ;;  %1384 = vmatprep.subr.bf16.mxu0 %v18477_v6  ;;  %v18481_v9 = vld [vmem:[#allocation15 + $0x11c] ss:$28 sps:$4 sm:$0x3f]   ;;  %17900 = vmatprep.subr.bf16.mxu1 %v18479_v7  ;;  %v1380_v17 = vsel %vm1360_vm0, %v18483_v12, 0  ;;  %vm3137_vm2 = vcmask 261120  }
 0x2b7   : > { %v18484_v13 = vld [vmem:[#allocation15 + $0x118] ss:$28 sps:$4 sm:$0x3f]   ;;  %v18487_v18 = vld [vmem:[#allocation15 + $0xc] ss:$28 sps:$4 sm:$0xff]   ;;  %s21281_s16 = smov 8  }
 0x2b8   : > { %v1362_v16 = vsel %vm1360_vm0, %v18484_v13, 0  ;;  %v18490_v20 = vld [vmem:[#allocation15 + $0xb4] ss:$28 sps:$4 sm:$0xff]   ;;  %v18485_v21 = vld [vmem:[#allocation15 + $0x8] ss:$28 sps:$4 sm:$0xff]   ;;  %s21282_s21 = smov 96  }
 0x2b9   : > { %s22049_s1 = scalar_lea.vmem %s23473_s18, %s17640_s8  ;;  %1385 = vmatpush1.bf16.msra.mxu0 %v18480_v8  ;;  %17901 = vmatpush3.bf16.msra.mxu1 %v18479_v7  ;;  %v18488_v22 = vld [vmem:[#allocation15 + $0xb0] ss:$28 sps:$4 sm:$0xff]   ;;  %v18493_v23 = vld [vmem:[#allocation15 + $0x44] ss:$28 sps:$4 sm:$0xff]   ;;  %v18502_v34 = vld [vmem:[#allocation15 + $0x18] ss:$28 sps:$4 sm:$0xff]  }
 0x2ba   : > { %v1222_v10 = vld [vmem:[%s22049_s1 + $0x1] sm:$0xff]  ;;  %v1223_v11 = vld [vmem:[%s22049_s1 + $0x9] sm:$0xff]  ;;  %v1224_v15 = vld [vmem:[%s22049_s1 + $0x11] sm:$0xff]  ;;  %16144 = vmatprep.subr.msk.bf16.mxu0 %vm1360_vm0, %v18481_v9  ;;  %18189 = vmatprep.subr.msk.bf16.mxu1 %vm1360_vm0, %v18483_v12  ;;  %s21283_s20 = smov 116   ;;  %s21284_s19 = smov 36   ;;  %vm3516_vm3 = vcmask 883712  }
 0x2bb   : > { %v22053_v14 = vpack.c.bf16 %v1223_v11, %v1222_v10  ;;  %v22062_v19 = vpack.c.bf16 %v1224_v15, %v1224_v15  ;;  %v18491_v24 = vld [vmem:[#allocation15 + $0x40] ss:$28 sps:$4 sm:$0xff]   ;;  %v18494_v25 = vld [vmem:[#allocation15 + $0xe8] ss:$28 sps:$4 sm:$0xff]   ;;  %v1194_v33 = vld [vmem:[%s22049_s1 + $0x8] sm:$0xff]  ;;  %s21285_s2 = smov 56  }
 0x2bc   : > { %v18496_v26 = vld [vmem:[#allocation15 + $0xec] ss:$28 sps:$4 sm:$0xff]   ;;  %v18497_v27 = vld [vmem:[#allocation15 + $0x7c] ss:$28 sps:$4 sm:$0x3f]   ;;  %s21286_s11 = smov 76  }
 0x2bd   : > { %17904 = vmatprep.mubr.msk.bf16.mxu1 %vm1353_vm1, %v22053_v14  ;;  %1387 = vmatpush1.bf16.msra.mxu0 %v1362_v16  ;;  %v18499_v28 = vld [vmem:[#allocation15 + $0x78] ss:$28 sps:$4 sm:$0x3f]   ;;  %v18500_v29 = vld [vmem:[#allocation15 + $0x124] ss:$28 sps:$4 sm:$0x3f]  }
 0x2be   : > { %17903 = vmatpush3.bf16.msra.mxu1 %v1380_v17  ;;  %1433 = vmatprep.subr.bf16.mxu0 %v18490_v20  ;;  %v18503_v30 = vld [vmem:[#allocation15 + $0x120] ss:$28 sps:$4 sm:$0x3f]   ;;  %v1697_v31 = vsel %vm1360_vm0, %v18499_v28, 0  ;;  %v1193_v32 = vld [vmem:[%s22049_s1] sm:$0xff]  ;;  %v1913_v58 = vld [vmem:[%s22049_s1 + $0xa] sm:$0xff] }
 0x2bf   : > { %1762 = vmatprep.subr.bf16.mxu1 %v18487_v18  ;;  %v1368_v35 = vsel %vm1360_vm0, %v18503_v30, 0  ;;  %v18507_v36 = vld [vmem:[#allocation15 + $0xbc] ss:$28 sps:$4 sm:$0xff]   ;;  %v22078_v37 = vpack.c.bf16 %v1194_v33, %v1193_v32  ;;  %v18504_v38 = vld [vmem:[#allocation15 + $0x50] ss:$28 sps:$4 sm:$0xff]   ;;  %vm3171_vm4 = vcmask 162816  }
 0x2c0   : > { %16145 = vmatmul.mubr.msk.bf16.vlgmr.msra.gmra.mrb[0].mxu0 %vm1353_vm1, %v22053_v14  ;;  %v18505_v39 = vld [vmem:[#allocation15 + $0xb8] ss:$28 sps:$4 sm:$0xff]   ;;  %v18508_v41 = vld [vmem:[#allocation15 + $0x88] ss:$28 sps:$4 sm:$0x3f]   ;;  %v1912_v57 = vld [vmem:[%s22049_s1 + $0x2] sm:$0xff] }
 0x2c1   : > { %17905 = vmatmul.mubr.msk.bf16.vlgmr.msra.gmra.mrb[0].mxu1 %vm1353_vm1, %v22062_v19  ;;  %1434 = vmatpush1.bf16.msra.mxu0 %v18488_v22  ;;  %v1195_v40 = vld [vmem:[%s22049_s1 + $0x10] sm:$0xff]  ;;  %v18511_v42 = vld [vmem:[#allocation15 + $0xf4] ss:$28 sps:$4 sm:$0xff]   ;;  %v1709_v45 = vsel %vm1360_vm0, %v18508_v41, 0  ;;  %v18527_v60 = vld [vmem:[#allocation15 + $0x168] ss:$28 sps:$4 sm:$0xff]   ;;  %v22111_v1 = vpack.c.bf16 %v1913_v58, %v1912_v57 }
 0x2c2   : > { %1763 = vmatpush1.bf16.msra.mxu1 %v18485_v21  ;;  %1424 = vmatprep.mubr.bf16.mxu0 %v21279_v2  ;;  %v22087_v43 = vpack.c.bf16 %v1195_v40, %v1195_v40  ;;  %v18509_v44 = vld [vmem:[#allocation15 + $0xf0] ss:$28 sps:$4 sm:$0xff]   ;;  %v18514_v46 = vld [vmem:[#allocation15 + $0x15c] ss:$28 sps:$4 sm:$0xff]   ;;  %v18523_v50 = vld [vmem:[#allocation15 + $0x4] ss:$28 sps:$4 sm:$0xff]  }
 0x2c3   : > { %1764 = vmatprep.subr.bf16.mxu1 %v18493_v23  ;;  %1435 = vmatprep.subr.bf16.mxu0 %v18496_v26  ;;  %v18517_v47 = vld [vmem:[#allocation15 + $0x128] ss:$28 sps:$4 sm:$0x3f]   ;;  %v18512_v51 = vld [vmem:[#allocation15 + $0x158] ss:$28 sps:$4 sm:$0xff]   ;;  %v1914_v6 = vld [vmem:[%s22049_s1 + $0x12] sm:$0xff] }
 0x2c4   : > { %1794 = vmatprep.mubr.bf16.mxu1 %v21279_v2  ;;  %v18515_v48 = vld [vmem:[#allocation15 + $0x12c] ss:$28 sps:$4 sm:$0x3f]   ;;  %v1374_v49 = vsel %vm1360_vm0, %v18517_v47, 0  ;;  %v18520_v52 = vld [vmem:[#allocation15 + $0x194] ss:$28 sps:$4 sm:$0xff]   ;;  %v22122_v8 = vpack.c.bf16 %v1914_v6, %v1914_v6 }
 0x2c5   : > { %1436 = vmatpush1.bf16.msra.mxu0 %v18494_v25  ;;  %v18518_v53 = vld [vmem:[#allocation15 + $0x190] ss:$28 sps:$4 sm:$0xff]   ;;  %v18521_v54 = vld [vmem:[#allocation15] ss:$28 sps:$4 sm:$0xff]   ;;  %v18528_v61 = vld [vmem:[#allocation15 + $0x38] ss:$28 sps:$4 sm:$0xff]  }
 0x2c6   : > { %1765 = vmatpush1.bf16.msra.mxu1 %v18491_v24  ;;  %16147 = vmatprep.subr.msk.bf16.mxu0 %vm1360_vm0, %v18500_v29  ;;  %v18524_v55 = vld [vmem:[#allocation15 + $0x1cc] ss:$28 sps:$4 sm:$0x3f]   ;;  %v18530_v59 = vld [vmem:[#allocation15 + $0x3c] ss:$28 sps:$4 sm:$0xff]   ;;  %s21287_s8 = smov 4  }
 0x2c7   : > { %16179 = vmatprep.subr.msk.bf16.mxu1 %vm1360_vm0, %v18497_v27  ;;  %v18526_v56 = vld [vmem:[#allocation15 + $0x1c8] ss:$28 sps:$4 sm:$0x3f]   ;;  %v18531_v62 = vld [vmem:[#allocation15 + $0x74] ss:$28 sps:$4 sm:$0x3f]  }
 0x2c8   : > { %16146 = vmatmul.mubr.msk.bf16.gmra.mrb[4].mxu0 %vm1353_vm1, %v22062_v19  ;;  %v2056_v63 = vsel %vm1360_vm0, %v18526_v56, 0  ;;  %v18533_v0 = vld [vmem:[#allocation15 + $0x70] ss:$28 sps:$4 sm:$0x3f]   ;;  %v18534_v4 = vld [vmem:[#allocation15 + $0x1a0] ss:$28 sps:$4 sm:$0xff]  }
 0x2c9   : > { %1438 = vmatpush1.bf16.msra.mxu0 %v1368_v35  ;;  %1465 = vmatprep.mubr.bf16.mxu0 %v21279_v2  ;;  %v1691_v3 = vsel %vm1360_vm0, %v18533_v0, 0  ;;  %v18538_v5 = vld [vmem:[#allocation15 + $0x14] ss:$28 sps:$4 sm:$0xff]   ;;  %v18541_v11 = vld [vmem:[#allocation15 + $0x204] ss:$28 sps:$4 sm:$0xff]   ;;  %s21288_s7 = smov 88  }
 0x2ca   : > { %1767 = vmatpush1.bf16.msra.mxu1 %v1697_v31  ;;  %1484 = vmatprep.subr.bf16.mxu0 %v18507_v36  ;;  %v18535_v7 = vld [vmem:[#allocation15 + $0x1d8] ss:$28 sps:$4 sm:$0x3f]   ;;  %v18536_v9 = vld [vmem:[#allocation15 + $0x10] ss:$28 sps:$4 sm:$0xff]   ;;  %v2294_v33 = vld [vmem:[%s22049_s1 + $0x13] sm:$0xff] }
 0x2cb   : > { %17908 = vmatprep.subr.bf16.mxu1 %v18502_v34  ;;  %v2068_v10 = vsel %vm1360_vm0, %v18535_v7, 0  ;;  %v18544_v12 = vld [vmem:[#allocation15 + $0x4c] ss:$28 sps:$4 sm:$0xff]   ;;  %v18550_v15 = vld [vmem:[#allocation15 + $0x80] ss:$28 sps:$4 sm:$0x3f]  }
 0x2cc   : > { %v18542_v13 = vld [vmem:[#allocation15 + $0x48] ss:$28 sps:$4 sm:$0xff]   ;;  %v18539_v16 = vld [vmem:[#allocation15 + $0x200] ss:$28 sps:$4 sm:$0xff]   ;;  %v1703_v18 = vsel %vm1360_vm0, %v18550_v15, 0  ;;  %v2292_v23 = vld [vmem:[%s22049_s1 + $0x3] sm:$0xff] }
 0x2cd   : > { %16180 = vmatmul.mubr.msk.bf16.vlgmr.msra.gmra.mrb[4].mxu1 %vm1353_vm1, %v22078_v37  ;;  %v18547_v17 = vld [vmem:[#allocation15 + $0x23c] ss:$28 sps:$4 sm:$0xff]   ;;  %v18551_v21 = vld [vmem:[#allocation15 + $0x274] ss:$28 sps:$4 sm:$0x3f]   ;;  %s21289_s9 = smov 68  }
 0x2ce   : > { %17909 = vmatpush3.bf16.msra.mxu1 %v18502_v34  ;;  %1804 = vmatprep.mubr.bf16.mxu1 %v21279_v2  ;;  %v18545_v20 = vld [vmem:[#allocation15 + $0x238] ss:$28 sps:$4 sm:$0xff]   ;;  %v18553_v22 = vld [vmem:[#allocation15 + $0x270] ss:$28 sps:$4 sm:$0x3f]   ;;  %s21290_s18 = smov 28  }
 0x2cf   : > { %17910 = vmatprep.subr.bf16.mxu1 %v18504_v38  ;;  %v2293_v24 = vld [vmem:[%s22049_s1 + $0xb] sm:$0xff]  ;;  %v18555_v25 = vld [vmem:[#allocation15 + $0x150] ss:$28 sps:$4 sm:$0xff]   ;;  %v2436_v26 = vsel %vm1360_vm0, %v18553_v22, 0  ;;  %v18558_v30 = vld [vmem:[#allocation15 + $0x188] ss:$28 sps:$4 sm:$0xff]  }
 0x2d0   : > { %16148 = vmatmul.mubr.msk.bf16.vlgmr.msra.gmra.mrb[8].mxu0 %vm1353_vm1, %v22053_v14  ;;  %v18554_v27 = vld [vmem:[#allocation15 + $0x210] ss:$28 sps:$4 sm:$0xff]   ;;  %v22147_v29 = vpack.c.bf16 %v2293_v24, %v2292_v23  ;;  %v18561_v31 = vld [vmem:[#allocation15 + $0x248] ss:$28 sps:$4 sm:$0xff]   ;;  %v18585_v57 = vld [vmem:[#allocation15 + $0x1f8] ss:$28 sps:$4 sm:$0xff]  }
 0x2d1   : > { %1485 = vmatpush1.bf16.msra.mxu0 %v18505_v39  ;;  %1475 = vmatprep.mubr.bf16.mxu0 %v21279_v2  ;;  %v18560_v28 = vld [vmem:[#allocation15 + $0x18c] ss:$28 sps:$4 sm:$0xff]   ;;  %v18564_v32 = vld [vmem:[#allocation15 + $0x1c0] ss:$28 sps:$4 sm:$0x3f]   ;;  %vm3406_vm5 = vcmask 64512  }
 0x2d2   : > { %17911 = vmatpush3.bf16.msra.mxu1 %v18504_v38  ;;  %1486 = vmatprep.subr.bf16.mxu0 %v18511_v42  ;;  %v18562_v34 = vld [vmem:[#allocation15 + $0x1c4] ss:$28 sps:$4 sm:$0x3f]   ;;  %v22158_v38 = vpack.c.bf16 %v2294_v33, %v2294_v33  ;;  %v18568_v39 = vld [vmem:[#allocation15 + $0x2ac] ss:$28 sps:$4 sm:$0xff]   ;;  %vm3418_vm6 = vcmask 97280  }
 0x2d3   : > { %18190 = vmatprep.subr.msk.bf16.mxu1 %vm1360_vm0, %v18508_v41  ;;  %v18565_v35 = vld [vmem:[#allocation15 + $0x280] ss:$28 sps:$4 sm:$0x3f]   ;;  %v18583_v47 = vld [vmem:[#allocation15 + $0x1d0] ss:$28 sps:$4 sm:$0x3f]  }
 0x2d4   : > { %v18571_v36 = vld [vmem:[#allocation15 + $0x164] ss:$28 sps:$4 sm:$0xff]   ;;  %v2448_v40 = vsel %vm1360_vm0, %v18565_v35, 0  ;;  %v18577_v42 = vld [vmem:[#allocation15 + $0x19c] ss:$28 sps:$4 sm:$0xff]   ;;  %vm3454_vm7 = vcmask 261216  }
 0x2d5   : > { %16181 = vmatmul.mubr.msk.bf16.gmra.mrb[8].mxu1 %vm1353_vm1, %v22087_v43  ;;  %1487 = vmatpush1.bf16.msra.mxu0 %v18509_v44  ;;  %v18569_v41 = vld [vmem:[#allocation15 + $0x160] ss:$28 sps:$4 sm:$0xff]   ;;  %v18575_v44 = vld [vmem:[#allocation15 + $0x198] ss:$28 sps:$4 sm:$0xff]   ;;  %v18619_v22 = vld [vmem:[#allocation15 + $0x2ec] ss:$28 sps:$4 sm:$0xff]  }
 0x2d6   : > { %17913 = vmatpush3.bf16.msra.mxu1 %v1709_v45  ;;  %17914 = vmatprep.mubr.msk.bf16.mxu1 %vm1353_vm1, %v22078_v37  ;;  %v18574_v45 = vld [vmem:[#allocation15 + $0x2e4] ss:$28 sps:$4 sm:$0xff]   ;;  %v18593_v0 = vld [vmem:[#allocation15 + $0x26c] ss:$28 sps:$4 sm:$0x3f]   ;;  %vm3488_vm8 = vcmask 425216  }
 0x2d7   : > { %2121 = vmatprep.subr.bf16.mxu1 %v18514_v46  ;;  %16150 = vmatprep.subr.msk.bf16.mxu0 %vm1360_vm0, %v18515_v48  ;;  %v18581_v46 = vld [vmem:[#allocation15 + $0x1d4] ss:$28 sps:$4 sm:$0x3f]   ;;  %v18572_v48 = vld [vmem:[#allocation15 + $0x2e0] ss:$28 sps:$4 sm:$0xff]   ;;  %vm3538_vm9 = vcmask 589216  }
 0x2d8   : > { %16149 = vmatmul.mubr.msk.bf16.gmra.mrb[12].mxu0 %vm1353_vm1, %v22062_v19  ;;  %v18610_v15 = vld [vmem:[#allocation15 + $0x2dc] ss:$28 sps:$4 sm:$0xff]   ;;  %v18617_v23 = vld [vmem:[#allocation15 + $0x2e8] ss:$28 sps:$4 sm:$0xff]   ;;  %vm3572_vm10 = vcmask 753216   ;;  %vm3606_vm11 = vcmask 917216  }
 0x2d9   : > { %1489 = vmatpush1.bf16.msra.mxu0 %v1374_v49  ;;  %1516 = vmatprep.mubr.bf16.mxu0 %v21279_v2  ;;  %v18578_v49 = vld [vmem:[#allocation15 + $0x31c] ss:$28 sps:$4 sm:$0x3f]   ;;  %v18620_v24 = vld [vmem:[#allocation15 + $0x324] ss:$28 sps:$4 sm:$0x3f]  }
 0x2da   : > { %1711 = vmatprep.subr.bf16.mxu0 %v18523_v50  ;;  %v18580_v50 = vld [vmem:[#allocation15 + $0x318] ss:$28 sps:$4 sm:$0x3f]   ;;  %vm3657_vm12 = vcmask 31744   ;;  %vm3920_vm13 = vcmask 130048   ;;  %vm3205_vm14 = vcmask 326816  }
 0x2db   : > { %v2816_v56 = vsel %vm1360_vm0, %v18580_v50, 0  ;;  %vm3239_vm15 = vcmask 490816   ;;  %p23481_p6 = scmp.ne.s32.totalorder %s23443_s0, 0 }
 0x2dd   : > { %17915 = vmatmul.mubr.msk.bf16.vlgmr.msra.gmra.mrb[12].mxu1 %vm1353_vm1, %v22087_v43 }
 0x2de   : > { %2122 = vmatpush1.bf16.msra.mxu1 %v18512_v51  ;;  %2153 = vmatprep.mubr.bf16.mxu1 %v21279_v2  ;;  %v18587_v51 = vld [vmem:[#allocation15 + $0x1fc] ss:$28 sps:$4 sm:$0xff]  }
 0x2df   : > { %2123 = vmatprep.subr.bf16.mxu1 %v18520_v52  ;;  %v2062_v52 = vsel %vm1360_vm0, %v18583_v47, 0 }
 0x2e0   : > { %16151 = vmatmul.mubr.msk.bf16.vlgmr.msra.gmra.mrb[16].mxu0 %vm1353_vm1, %v22053_v14  ;;  %v18548_v14 = vld [vmem:[#allocation15 + $0x84] ss:$28 sps:$4 sm:$0x3f]  }
 0x2e1   : > { %1712 = vmatpush1.bf16.msra.mxu0 %v18521_v54  ;;  %1526 = vmatprep.mubr.bf16.mxu0 %v21279_v2  ;;  %v2673_v54 = vld [vmem:[%s22049_s1 + $0xc] sm:$0xff] }
 0x2e2   : > { %2124 = vmatpush1.bf16.msra.mxu1 %v18518_v53  ;;  %1713 = vmatprep.subr.bf16.mxu0 %v18530_v59  ;;  %v2672_v53 = vld [vmem:[%s22049_s1 + $0x4] sm:$0xff] }
 0x2e3   : > { %16211 = vmatprep.subr.msk.bf16.mxu1 %vm1360_vm0, %v18524_v55  ;;  %v18584_v55 = vld [vmem:[#allocation15 + $0x2b8] ss:$28 sps:$4 sm:$0xff]   ;;  %v22182_v58 = vpack.c.bf16 %v2673_v54, %v2672_v53  ;;  %v18588_v59 = vld [vmem:[#allocation15 + $0x2f0] ss:$28 sps:$4 sm:$0xff]  }
 0x2e5   : > { %1714 = vmatpush1.bf16.msra.mxu0 %v18528_v61  ;;  %v2674_v61 = vld [vmem:[%s22049_s1 + $0x14] sm:$0xff]  ;;  %s21291_s1 = smov 48  }
 0x2e6   : > { %2126 = vmatpush1.bf16.msra.mxu1 %v2056_v63  ;;  %16176 = vmatprep.subr.msk.bf16.mxu0 %vm1360_vm0, %v18531_v62  ;;  %v18589_v62 = vld [vmem:[#allocation15 + $0x230] ss:$28 sps:$4 sm:$0xff]   ;;  %v18592_v63 = vld [vmem:[#allocation15 + $0x328] ss:$28 sps:$4 sm:$0x3f]  }
 0x2e7   : > { %17918 = vmatprep.subr.bf16.mxu1 %v18527_v60 }
 0x2e8   : > { %16152 = vmatmul.mubr.msk.bf16.gmra.mrb[20].mxu0 %vm1353_vm1, %v22062_v19  ;;  %v18557_v19 = vld [vmem:[#allocation15 + $0x154] ss:$28 sps:$4 sm:$0xff]  }
 0x2e9   : > { %16212 = vmatmul.mubr.msk.bf16.vlgmr.msra.gmra.mrb[4].mxu1 %vm1353_vm1, %v22111_v1  ;;  %1716 = vmatpush1.bf16.msra.mxu0 %v1691_v3  ;;  %v18595_v3 = vld [vmem:[#allocation15 + $0x268] ss:$28 sps:$4 sm:$0x3f]  }
 0x2ea   : > { %17919 = vmatpush3.bf16.msra.mxu1 %v18527_v60  ;;  %2163 = vmatprep.mubr.bf16.mxu1 %v21279_v2  ;;  %v18591_v60 = vld [vmem:[#allocation15 + $0x234] ss:$28 sps:$4 sm:$0xff]   ;;  %v2430_v6 = vsel %vm1360_vm0, %v18595_v3, 0 }
 0x2eb   : > { %17920 = vmatprep.subr.bf16.mxu1 %v18534_v4  ;;  %1743 = vmatprep.mubr.bf16.mxu0 %v21279_v2 }
 0x2ec   : > { %1813 = vmatprep.subr.bf16.mxu0 %v18538_v5  ;;  %v18598_v5 = vld [vmem:[#allocation15 + $0x20c] ss:$28 sps:$4 sm:$0xff]  }
 0x2ee   : > { %17921 = vmatpush3.bf16.msra.mxu1 %v18534_v4  ;;  %v22191_v4 = vpack.c.bf16 %v2674_v61, %v2674_v61 }
 0x2ef   : > { %18191 = vmatprep.subr.msk.bf16.mxu1 %vm1360_vm0, %v18535_v7  ;;  %v18596_v7 = vld [vmem:[#allocation15 + $0x208] ss:$28 sps:$4 sm:$0xff]  }
 0x2f0   : > { %16177 = vmatmul.mubr.msk.bf16.vlgmr.msra.gmra.mrb[0].mxu0 %vm1353_vm1, %v22078_v37 }
 0x2f1   : > { %16213 = vmatmul.mubr.msk.bf16.gmra.mrb[16].mxu1 %vm1353_vm1, %v22122_v8  ;;  %1814 = vmatpush1.bf16.msra.mxu0 %v18536_v9  ;;  %v18601_v9 = vld [vmem:[#allocation15 + $0x244] ss:$28 sps:$4 sm:$0xff]  }
 0x2f2   : > { %17923 = vmatpush3.bf16.msra.mxu1 %v2068_v10  ;;  %17924 = vmatprep.mubr.msk.bf16.mxu1 %vm1353_vm1, %v22111_v1  ;;  %v18604_v10 = vld [vmem:[#allocation15 + $0x278] ss:$28 sps:$4 sm:$0x3f]  }
 0x2f3   : > { %2501 = vmatprep.subr.bf16.mxu1 %v18541_v11  ;;  %1753 = vmatprep.mubr.bf16.mxu0 %v21279_v2  ;;  %v18599_v11 = vld [vmem:[#allocation15 + $0x240] ss:$28 sps:$4 sm:$0xff]  }
 0x2f4   : > { %1815 = vmatprep.subr.bf16.mxu0 %v18544_v12  ;;  %v18602_v12 = vld [vmem:[#allocation15 + $0x27c] ss:$28 sps:$4 sm:$0x3f]  }
 0x2f5   : > { %1816 = vmatpush1.bf16.msra.mxu0 %v18542_v13  ;;  %v18607_v13 = vld [vmem:[#allocation15 + $0x2a4] ss:$28 sps:$4 sm:$0xff]  }
 0x2f6   : > { %16182 = vmatprep.subr.msk.bf16.mxu0 %vm1360_vm0, %v18548_v14  ;;  %v18605_v14 = vld [vmem:[#allocation15 + $0x2a0] ss:$28 sps:$4 sm:$0xff]  }
 0x2f8   : > { %16178 = vmatmul.mubr.msk.bf16.gmra.mrb[24].mxu0 %vm1353_vm1, %v22087_v43 }
 0x2f9   : > { %17925 = vmatmul.mubr.msk.bf16.vlgmr.msra.gmra.mrb[20].mxu1 %vm1353_vm1, %v22122_v8  ;;  %1818 = vmatpush1.bf16.msra.mxu0 %v1703_v18  ;;  %v18613_v18 = vld [vmem:[#allocation15 + $0x310] ss:$28 sps:$4 sm:$0x3f]  }
 0x2fa   : > { %2502 = vmatpush1.bf16.msra.mxu1 %v18539_v16  ;;  %1845 = vmatprep.mubr.bf16.mxu0 %v21279_v2  ;;  %v18608_v16 = vld [vmem:[#allocation15 + $0x2d8] ss:$28 sps:$4 sm:$0xff]  }
 0x2fb   : > { %2503 = vmatprep.subr.bf16.mxu1 %v18547_v17  ;;  %2533 = vmatprep.mubr.bf16.mxu1 %v21279_v2  ;;  %v18611_v17 = vld [vmem:[#allocation15 + $0x314] ss:$28 sps:$4 sm:$0x3f]  }
 0x2fc   : > { %2070 = vmatprep.subr.bf16.mxu0 %v18557_v19  ;;  %v18616_v19 = vld [vmem:[#allocation15 + $0x2b4] ss:$28 sps:$4 sm:$0xff]  }
 0x2fe   : > { %2504 = vmatpush1.bf16.msra.mxu1 %v18545_v20  ;;  %v2810_v20 = vsel %vm1360_vm0, %v18613_v18, 0 }
 0x2ff   : > { %16243 = vmatprep.subr.msk.bf16.mxu1 %vm1360_vm0, %v18551_v21  ;;  %v18614_v21 = vld [vmem:[#allocation15 + $0x2b0] ss:$28 sps:$4 sm:$0xff]  }
 0x300   : > { %16183 = vmatmul.mubr.msk.bf16.vlgmr.msra.gmra.mrb[16].mxu0 %vm1353_vm1, %v22078_v37  ;;  %v2050_v37 = vsel %vm1360_vm0, %v18564_v32, 0 }
 0x301   : > { %2071 = vmatpush1.bf16.msra.mxu0 %v18555_v25  ;;  %1855 = vmatprep.mubr.bf16.mxu0 %v21279_v2  ;;  %v18622_v25 = vld [vmem:[#allocation15 + $0x320] ss:$28 sps:$4 sm:$0x3f]  }
 0x302   : > { %2506 = vmatpush1.bf16.msra.mxu1 %v2436_v26  ;;  %2072 = vmatprep.subr.bf16.mxu0 %v18560_v28  ;;  %v2822_v26 = vsel %vm1360_vm0, %v18622_v25, 0 }
 0x303   : > { %17928 = vmatprep.subr.bf16.mxu1 %v18554_v27 }
 0x305   : > { %16244 = vmatmul.mubr.msk.bf16.vlgmr.msra.gmra.mrb[4].mxu1 %vm1353_vm1, %v22147_v29  ;;  %2073 = vmatpush1.bf16.msra.mxu0 %v18558_v30 }
 0x306   : > { %17929 = vmatpush3.bf16.msra.mxu1 %v18554_v27  ;;  %2543 = vmatprep.mubr.bf16.mxu1 %v21279_v2 }
 0x307   : > { %17930 = vmatprep.subr.bf16.mxu1 %v18561_v31  ;;  %16208 = vmatprep.subr.msk.bf16.mxu0 %vm1360_vm0, %v18562_v34 }
 0x308   : > { %16184 = vmatmul.mubr.msk.bf16.gmra.mrb[28].mxu0 %vm1353_vm1, %v22087_v43  ;;  %v18566_v43 = vld [vmem:[#allocation15 + $0x2a8] ss:$28 sps:$4 sm:$0xff]  }
 0x309   : > { %2075 = vmatpush1.bf16.msra.mxu0 %v2050_v37  ;;  %2102 = vmatprep.mubr.bf16.mxu0 %v21279_v2 }
 0x30a   : > { %17931 = vmatpush3.bf16.msra.mxu1 %v18561_v31  ;;  %2172 = vmatprep.subr.bf16.mxu0 %v18571_v36 }
 0x30b   : > { %18192 = vmatprep.subr.msk.bf16.mxu1 %vm1360_vm0, %v18565_v35 }
 0x30d   : > { %16245 = vmatmul.mubr.msk.bf16.gmra.mrb[24].mxu1 %vm1353_vm1, %v22158_v38 }
 0x30e   : > { %17933 = vmatpush3.bf16.msra.mxu1 %v2448_v40  ;;  %17934 = vmatprep.mubr.msk.bf16.mxu1 %vm1353_vm1, %v22147_v29 }
 0x30f   : > { %2881 = vmatprep.subr.bf16.mxu1 %v18568_v39 }
 0x310   : > { %16209 = vmatmul.mubr.msk.bf16.vlgmr.msra.gmra.mrb[0].mxu0 %vm1353_vm1, %v22111_v1 }
 0x311   : > { %2173 = vmatpush1.bf16.msra.mxu0 %v18569_v41  ;;  %2112 = vmatprep.mubr.bf16.mxu0 %v21279_v2 }
 0x312   : > { %2174 = vmatprep.subr.bf16.mxu0 %v18577_v42 }
 0x315   : > { %17935 = vmatmul.mubr.msk.bf16.vlgmr.msra.gmra.mrb[28].mxu1 %vm1353_vm1, %v22158_v38  ;;  %2175 = vmatpush1.bf16.msra.mxu0 %v18575_v44 }
 0x316   : > { %2882 = vmatpush1.bf16.msra.mxu1 %v18566_v43  ;;  %16214 = vmatprep.subr.msk.bf16.mxu0 %vm1360_vm0, %v18581_v46 }
 0x317   : > { %2883 = vmatprep.subr.bf16.mxu1 %v18574_v45  ;;  %2913 = vmatprep.mubr.bf16.mxu1 %v21279_v2 }
 0x318   : > { %16210 = vmatmul.mubr.msk.bf16.gmra.mrb[32].mxu0 %vm1353_vm1, %v22122_v8 }
 0x319   : > { %2177 = vmatpush1.bf16.msra.mxu0 %v2062_v52  ;;  %2204 = vmatprep.mubr.bf16.mxu0 %v21279_v2 }
 0x31a   : > { %2884 = vmatpush1.bf16.msra.mxu1 %v18572_v48  ;;  %2450 = vmatprep.subr.bf16.mxu0 %v18587_v51 }
 0x31b   : > { %16275 = vmatprep.subr.msk.bf16.mxu1 %vm1360_vm0, %v18578_v49 }
 0x31e   : > { %2886 = vmatpush1.bf16.msra.mxu1 %v2816_v56 }
 0x31f   : > { %17938 = vmatprep.subr.bf16.mxu1 %v18584_v55 }
 0x320   : > { %16215 = vmatmul.mubr.msk.bf16.vlgmr.msra.gmra.mrb[16].mxu0 %vm1353_vm1, %v22111_v1  ;;  %v2828_v1 = vsel %vm1360_vm0, %v18592_v63, 0 }
 0x321   : > { %16276 = vmatmul.mubr.msk.bf16.vlgmr.msra.gmra.mrb[4].mxu1 %vm1353_vm1, %v22182_v58  ;;  %2451 = vmatpush1.bf16.msra.mxu0 %v18585_v57 }
 0x322   : > { %17939 = vmatpush3.bf16.msra.mxu1 %v18584_v55  ;;  %2923 = vmatprep.mubr.bf16.mxu1 %v21279_v2 }
 0x323   : > { %17940 = vmatprep.subr.bf16.mxu1 %v18588_v59  ;;  %2214 = vmatprep.mubr.bf16.mxu0 %v21279_v2 }
 0x324   : > { %2452 = vmatprep.subr.bf16.mxu0 %v18591_v60 }
 0x325   : > { %2453 = vmatpush1.bf16.msra.mxu0 %v18589_v62 }
 0x326   : > { %17941 = vmatpush3.bf16.msra.mxu1 %v18588_v59  ;;  %16240 = vmatprep.subr.msk.bf16.mxu0 %vm1360_vm0, %v18593_v0 }
 0x327   : > { %18193 = vmatprep.subr.msk.bf16.mxu1 %vm1360_vm0, %v18592_v63 }
 0x328   : > { %16216 = vmatmul.mubr.msk.bf16.gmra.mrb[36].mxu0 %vm1353_vm1, %v22122_v8  ;;  %v2442_v8 = vsel %vm1360_vm0, %v18604_v10, 0 }
 0x329   : > { %16277 = vmatmul.mubr.msk.bf16.gmra.mrb[32].mxu1 %vm1353_vm1, %v22191_v4  ;;  %2455 = vmatpush1.bf16.msra.mxu0 %v2430_v6 }
 0x32a   : > { %17943 = vmatpush3.bf16.msra.mxu1 %v2828_v1  ;;  %17944 = vmatprep.mubr.msk.bf16.mxu1 %vm1353_vm1, %v22182_v58 }
 0x32b   : > { %2482 = vmatprep.mubr.bf16.mxu0 %v21279_v2  ;;  %2552 = vmatprep.subr.bf16.mxu0 %v18598_v5 }
 0x330   : > { %16241 = vmatmul.mubr.msk.bf16.vlgmr.msra.gmra.mrb[0].mxu0 %vm1353_vm1, %v22147_v29 }
 0x331   : > { %17945 = vmatmul.mubr.msk.bf16.vlgmr.msra.gmra.mrb[36].mxu1 %vm1353_vm1, %v22191_v4  ;;  %2553 = vmatpush1.bf16.msra.mxu0 %v18596_v7 }
 0x332   : > { %2492 = vmatprep.mubr.bf16.mxu0 %v21279_v2  ;;  %2554 = vmatprep.subr.bf16.mxu0 %v18601_v9 }
 0x335   : > { %2555 = vmatpush1.bf16.msra.mxu0 %v18599_v11 }
 0x336   : > { %16246 = vmatprep.subr.msk.bf16.mxu0 %vm1360_vm0, %v18602_v12 }
 0x338   : > { %16242 = vmatmul.mubr.msk.bf16.gmra.mrb[40].mxu0 %vm1353_vm1, %v22158_v38 }
 0x339   : > { %2557 = vmatpush1.bf16.msra.mxu0 %v2442_v8  ;;  %2584 = vmatprep.mubr.bf16.mxu0 %v21279_v2 }
 0x33a   : > { %2830 = vmatprep.subr.bf16.mxu0 %v18607_v13 }
 0x340   : > { %16247 = vmatmul.mubr.msk.bf16.vlgmr.msra.gmra.mrb[16].mxu0 %vm1353_vm1, %v22147_v29 }
 0x341   : > { %2831 = vmatpush1.bf16.msra.mxu0 %v18605_v14  ;;  %2594 = vmatprep.mubr.bf16.mxu0 %v21279_v2 }
 0x342   : > { %2832 = vmatprep.subr.bf16.mxu0 %v18610_v15 }
 0x345   : > { %2833 = vmatpush1.bf16.msra.mxu0 %v18608_v16 }
 0x346   : > { %16272 = vmatprep.subr.msk.bf16.mxu0 %vm1360_vm0, %v18611_v17 }
 0x348   : > { %16248 = vmatmul.mubr.msk.bf16.gmra.mrb[44].mxu0 %vm1353_vm1, %v22158_v38 }
 0x349   : > { %2835 = vmatpush1.bf16.msra.mxu0 %v2810_v20  ;;  %2862 = vmatprep.mubr.bf16.mxu0 %v21279_v2 }
 0x34a   : > { %2932 = vmatprep.subr.bf16.mxu0 %v18616_v19 }
 0x350   : > { %16273 = vmatmul.mubr.msk.bf16.vlgmr.msra.gmra.mrb[0].mxu0 %vm1353_vm1, %v22182_v58 }
 0x351   : > { %2933 = vmatpush1.bf16.msra.mxu0 %v18614_v21  ;;  %2872 = vmatprep.mubr.bf16.mxu0 %v21279_v2 }
 0x352   : > { %2934 = vmatprep.subr.bf16.mxu0 %v18619_v22 }
 0x355   : > { %2935 = vmatpush1.bf16.msra.mxu0 %v18617_v23 }
 0x356   : > { %16278 = vmatprep.subr.msk.bf16.mxu0 %vm1360_vm0, %v18620_v24  ;;  %vm3285_vm0 = vcmask 556032  }
 0x358   : > { %16274 = vmatmul.mubr.msk.bf16.gmra.mrb[48].mxu0 %vm1353_vm1, %v22191_v4 }
 0x359   : > { %2937 = vmatpush1.bf16.msra.mxu0 %v2822_v26  ;;  %2964 = vmatprep.mubr.bf16.mxu0 %v21279_v2 }
 0x360   : > { %16279 = vmatmul.mubr.msk.bf16.vlgmr.msra.gmra.mrb[16].mxu0 %vm1353_vm1, %v22182_v58 }
 0x361   : > { %2974 = vmatprep.mubr.bf16.mxu0 %v21279_v2 }
 0x368   : > { %16280 = vmatmul.mubr.msk.bf16.gmra.mrb[52].mxu0 %vm1353_vm1, %v22191_v4 }
 0x394   : > { %v17906_v27 = vpop.f32.mrb[0].mxu1 }
 0x395   : > { %v1569_v28 = vpop.f32.mrb[1].mxu1 }
 0x396   : > { %v17907_v29 = vpop.f32.mrb[2].mxu1 }
 0x397   : > { %v1572_v30 = vpop.f32.mrb[3].mxu1 }
 0x39b   : > { %v1426_v31 = vpop.f32.mrb[4].mxu0 }
 0x39c   : > { %v1428_v32 = vpop.f32.mrb[5].mxu0 }
 0x39d   : > { %v1430_v33 = vpop.f32.mrb[6].mxu0 }
 0x39e   : > { %v1431_v34 = vpop.f32.mrb[7].mxu0 }
 0x3a3   : > { %v22235_v35 = vpop.f32.mrb[8].mxu0 }
 0x3a4   : > { %v22237_v36 = vpop.f32.mrb[9].mxu0 }
 0x3a5   : > { %v22239_v37 = vpop.f32.mrb[10].mxu0 }
 0x3a6   : > { %v22241_v38 = vpop.f32.mrb[11].mxu0 }
 0x3a8   : > { %v1806_v39 = vpop.f32.mrb[8].mxu1 }
 0x3a9   : > { %v1808_v40 = vpop.f32.mrb[9].mxu1 }
 0x3aa   : > { %v1810_v41 = vpop.f32.mrb[10].mxu1 }
 0x3ab   : > { %v1811_v42 = vpop.f32.mrb[11].mxu1  ;;  %v1477_v43 = vpop.f32.mrb[12].mxu0 }
 0x3ac   : > { %v1807_v44 = vadd.f32 %v1806_v39, %v1477_v43  ;;  %v1479_v45 = vpop.f32.mrb[13].mxu0 }
 0x3ad   : > { %v1809_v46 = vadd.f32 %v1808_v40, %v1479_v45  ;;  %v1481_v47 = vpop.f32.mrb[14].mxu0 }
 0x3ae   : > { %v1482_v48 = vpop.f32.mrb[15].mxu0 }
 0x3b0   : > { %v17916_v49 = vpop.f32.mrb[12].mxu1 }
 0x3b1   : > { %v1907_v50 = vadd.f32 %v17916_v49, %v17906_v27  ;;  %v1898_v51 = vpop.f32.mrb[13].mxu1 }
 0x3b2   : > { %v1899_v52 = vadd.f32 %v1898_v51, %v1569_v28  ;;  %v17917_v53 = vpop.f32.mrb[14].mxu1  ;;  %v3054_v28 = vlaneseq }
 0x3b3   : > { %v1901_v54 = vpop.f32.mrb[15].mxu1 }
 0x3b4   : > { %v1902_v55 = vadd.f32 %v1901_v54, %v1572_v30  ;;  %v22248_v39 = vshrl.u32 %v3054_v28, 7 }
 0x3b6   : > { %v22259_v48 = vsub.s32 2, %v22248_v39  ;;  %v22262_v49 = vsub.s32 3, %v22248_v39 }
 0x3bb   : > { %v1528_v56 = vpop.f32.mrb[20].mxu0 }
 0x3bc   : > { %v1530_v57 = vpop.f32.mrb[21].mxu0 }
 0x3bd   : > { %v1532_v58 = vpop.f32.mrb[22].mxu0 }
 0x3be   : > { %v1533_v59 = vpop.f32.mrb[23].mxu0 }
 0x3c4   : > { %v2165_v60 = vpop.f32.mrb[16].mxu1 }
 0x3c5   : > { %v2287_v61 = vadd.f32 %v2165_v60, %v1807_v44  ;;  %v2167_v62 = vpop.f32.mrb[17].mxu1 }
 0x3c6   : > { %v2288_v63 = vadd.f32 %v2167_v62, %v1809_v46  ;;  %v2169_v0 = vpop.f32.mrb[18].mxu1  ;;  %v22256_v46 = vld [vmem:[#allocation16] sm:$0x7f] }
 0x3c7   : > { %v2170_v3 = vpop.f32.mrb[19].mxu1 }
 0x3cb   : > { %v1755_v5 = vpop.f32.mrb[24].mxu0 }
 0x3cc   : > { %v17926_v4 = vpop.f32.mrb[20].mxu1  ;;  %v1756_v6 = vadd.f32 %v1755_v5, %v1426_v31  ;;  %v1757_v9 = vpop.f32.mrb[25].mxu0 }
 0x3cd   : > { %v2291_v1 = vadd.f32 %v17926_v4, %v1907_v50  ;;  %v2257_v7 = vpop.f32.mrb[21].mxu1  ;;  %v1758_v11 = vadd.f32 %v1757_v9, %v1428_v32  ;;  %v1759_v8 = vpop.f32.mrb[26].mxu0  ;;  %v3065_v50 = vrot.slane %v22256_v46, %v22259_v48 }
 0x3ce   : > { %v2277_v10 = vadd.f32 %v2257_v7, %v1899_v52  ;;  %v17927_v12 = vpop.f32.mrb[22].mxu1  ;;  %v1760_v14 = vpop.f32.mrb[27].mxu0  ;;  %v3069_v52 = vrot.slane %v22256_v46, %v22262_v49 }
 0x3cf   : > { %v2260_v13 = vpop.f32.mrb[23].mxu1  ;;  %v3080_v12 = vsub.s32 6, %v22248_v39 }
 0x3d0   : > { %v2284_v15 = vadd.f32 %v2260_v13, %v1902_v55 }
 0x3db   : > { %v1857_v16 = vpop.f32.mrb[28].mxu0 }
 0x3dc   : > { %v1858_v17 = vadd.f32 %v1857_v16, %v1528_v56  ;;  %v1859_v18 = vpop.f32.mrb[29].mxu0 }
 0x3dd   : > { %v1860_v19 = vadd.f32 %v1859_v18, %v1530_v57  ;;  %v1861_v20 = vpop.f32.mrb[30].mxu0 }
 0x3de   : > { %v1862_v21 = vpop.f32.mrb[31].mxu0 }
 0x3e0   : > { %v2545_v22 = vpop.f32.mrb[24].mxu1 }
 0x3e1   : > { %v2667_v23 = vadd.f32 %v2545_v22, %v2287_v61  ;;  %v2547_v24 = vpop.f32.mrb[25].mxu1 }
 0x3e2   : > { %v2668_v25 = vadd.f32 %v2547_v24, %v2288_v63  ;;  %v2549_v26 = vpop.f32.mrb[26].mxu1 }
 0x3e3   : > { %v2550_v27 = vpop.f32.mrb[27].mxu1 }
 0x3e8   : > { %v17936_v29 = vpop.f32.mrb[28].mxu1 }
 0x3e9   : > { %v22243_v30 = vadd.f32 %v17936_v29, %v2291_v1  ;;  %v2637_v31 = vpop.f32.mrb[29].mxu1 }
 0x3ea   : > { %v22245_v32 = vadd.f32 %v2637_v31, %v2277_v10  ;;  %v17937_v33 = vpop.f32.mrb[30].mxu1 }
 0x3eb   : > { %v2640_v34 = vpop.f32.mrb[31].mxu1  ;;  %v2114_v41 = vpop.f32.mrb[32].mxu0 }
 0x3ec   : > { %v22250_v40 = vadd.f32 %v2640_v34, %v2284_v15  ;;  %v22252_v42 = vadd.f32 %v2114_v41, %v1756_v6  ;;  %v2116_v43 = vpop.f32.mrb[33].mxu0 }
 0x3ed   : > { %v22254_v44 = vadd.f32 %v2116_v43, %v1758_v11  ;;  %v2118_v45 = vpop.f32.mrb[34].mxu0 }
 0x3ee   : > { %v2119_v47 = vpop.f32.mrb[35].mxu0 }
 0x3f4   : > { %v2915_v51 = vpop.f32.mrb[4].mxu1 }
 0x3f5   : > { %v18141_v53 = vadd.f32 %v2915_v51, %v22235_v35  ;;  %v2917_v54 = vpop.f32.mrb[5].mxu1 }
 0x3f6   : > { %v18142_v55 = vadd.f32 %v2917_v54, %v22237_v36  ;;  %v2919_v56 = vpop.f32.mrb[6].mxu1 }
 0x3f7   : > { %v3091_v57 = vadd.f32 %v18141_v53, %v3065_v50  ;;  %v18143_v58 = vadd.f32 %v2919_v56, %v22239_v37  ;;  %v2921_v59 = vpop.f32.mrb[7].mxu1  ;;  %v22313_v53 = vsub.s32 1, %v22248_v39 }
 0x3f8   : > { %v3092_v60 = vadd.f32 %v18142_v55, %v3069_v52  ;;  %v18144_v61 = vadd.f32 %v2921_v59, %v22241_v38 }
 0x3f9   : > { %v3112_v62 = vmax.f32 %v3091_v57, 0.0  ;;  %v3098_v63 = vadd.f32 %v18143_v58, %v3065_v50  ;;  %v3061_v56 = vrot.slane %v22256_v46, %v22313_v53 }
 0x3fa   : > { %v3113_v0 = vmax.f32 %v3092_v60, 0.0  ;;  %v3099_v3 = vadd.f32 %v18144_v61, %v3069_v52 }
 0x3fb   : > { %3133 = vst [vmem:[#allocation2 + $0x10] sm:$0xff] %v3112_v62  ;;  %v3119_v4 = vmax.f32 %v3098_v63, 0.0  ;;  %3430 = vrot.lane.b32.xlu1 %v3112_v62, %s21280_s5  ;;  %3373 = vrot.lane.b32.xlu0 %v3112_v62, %s21280_s5  ;;  %v2216_v5 = vpop.f32.mrb[36].mxu0 }
 0x3fc   : > { %3134 = vst [vmem:[#allocation2 + $0x18] sm:$0xff] %v3113_v0  ;;  %v3120_v35 = vmax.f32 %v3099_v3, 0.0  ;;  %v2925_v36 = vpop.f32.mrb[32].mxu1  ;;  %v2289_v6 = vadd.f32 %v2216_v5, %v1858_v17  ;;  %v2218_v38 = vpop.f32.mrb[37].mxu0  ;;  %v3081_v17 = vrot.slane %v22256_v46, %v3080_v12 }
 0x3fd   : > { %3141 = vst [vmem:[#allocation2 + $0x48] sm:$0xff] %v3119_v4  ;;  %v3047_v37 = vadd.f32 %v2925_v36, %v2667_v23  ;;  %v2927_v1 = vpop.f32.mrb[33].mxu1  ;;  %v2290_v9 = vadd.f32 %v2218_v38, %v1860_v19  ;;  %v2220_v10 = vpop.f32.mrb[38].mxu0 }
 0x3fe   : > { %3142 = vst [vmem:[#allocation2 + $0x50] sm:$0xff] %v3120_v35  ;;  %v3048_v7 = vadd.f32 %v2927_v1, %v2668_v25  ;;  %v2929_v11 = vpop.f32.mrb[34].mxu1  ;;  %v2221_v13 = vpop.f32.mrb[39].mxu0 }
 0x3ff   : > { %v3105_v8 = vadd.f32 %v3065_v50, %v3047_v37  ;;  %v2930_v14 = vpop.f32.mrb[35].mxu1  ;;  %3464 = vrot.lane.b32.xlu1 %v3112_v62, %s21280_s5  ;;  %3504 = vrot.lane.b32.xlu0 %v3112_v62, %s21280_s5  ;;  %v22308_v50 = vsub.s32 0, %v22248_v39 }
 0x400   : > { %v3106_v15 = vadd.f32 %v3069_v52, %v3048_v7 }
 0x401   : > { %v3126_v16 = vmax.f32 %v3105_v8, 0.0  ;;  %v3057_v55 = vrot.slane %v22256_v46, %v22308_v50  ;;  %v3076_v8 = vsub.s32 5, %v22248_v39 }
 0x402   : > { %v22277_v18 = vmax.f32 %v3106_v15, 0.0 }
 0x403   : > { %3148 = vst [vmem:[#allocation2 + $0x80] sm:$0xff] %v3126_v16  ;;  %3622 = vrot.lane.b32.xlu0 %v3113_v0, %s21280_s5  ;;  %3506 = vrot.lane.b32.xlu1 %v3113_v0, %s21280_s5 }
 0x404   : > { %3149 = vst [vmem:[#allocation2 + $0x88] sm:$0xff] %v22277_v18  ;;  %v17946_v19 = vpop.f32.mrb[36].mxu1 }
 0x405   : > { %v3051_v20 = vadd.f32 %v17946_v19, %v22243_v30  ;;  %v3017_v21 = vpop.f32.mrb[37].mxu1  ;;  %v3077_v19 = vrot.slane %v22256_v46, %v3076_v8 }
 0x406   : > { %v3037_v22 = vadd.f32 %v3017_v21, %v22245_v32  ;;  %v17947_v23 = vpop.f32.mrb[38].mxu1 }
 0x407   : > { %v3109_v24 = vadd.f32 %v3081_v17, %v3051_v20  ;;  %v3020_v25 = vpop.f32.mrb[39].mxu1  ;;  %3582 = vrot.lane.b32.xlu0 %v3113_v0, %s21280_s5  ;;  %3548 = vrot.lane.b32.xlu1 %v3113_v0, %s21280_s5 }
 0x408   : > { %v3095_v26 = vadd.f32 %v3081_v17, %v3037_v22  ;;  %v3044_v27 = vadd.f32 %v3020_v25, %v22250_v40 }
 0x409   : > { %v3130_v29 = vmax.f32 %v3109_v24, 0.0 }
 0x40a   : > { %v3116_v31 = vmax.f32 %v3095_v26, 0.0  ;;  %v3102_v33 = vadd.f32 %v3081_v17, %v3044_v27 }
 0x40b   : > { %3152 = vst.msk [vmem:[#allocation2 + $0xa0] sm:$0xff] %vm3137_vm2, %v3130_v29  ;;  %3432 = vrot.lane.b32.xlu0 %v3119_v4, %s21280_s5  ;;  %3375 = vrot.lane.b32.xlu1 %v3119_v4, %s21280_s5  ;;  %v2494_v32 = vpop.f32.mrb[40].mxu0 }
 0x40c   : > { %3138 = vst.msk [vmem:[#allocation2 + $0x30] sm:$0xff] %vm3137_vm2, %v3116_v31  ;;  %v3123_v30 = vmax.f32 %v3102_v33, 0.0  ;;  %v2665_v34 = vadd.f32 %v2494_v32, %v22252_v42  ;;  %v2496_v41 = vpop.f32.mrb[41].mxu0 }
 0x40d   : > { %v2666_v40 = vadd.f32 %v2496_v41, %v22254_v44  ;;  %v2498_v43 = vpop.f32.mrb[42].mxu0 }
 0x40e   : > { %3145 = vst.msk [vmem:[#allocation2 + $0x68] sm:$0xff] %vm3137_vm2, %v3123_v30  ;;  %v2499_v45 = vpop.f32.mrb[43].mxu0 }
 0x40f   : > { %3466 = vrot.lane.b32.xlu0 %v3119_v4, %s21280_s5  ;;  %3626 = vrot.lane.b32.xlu1 %v3120_v35, %s21280_s5 }
 0x412   : > { %v3872_v36 = vld [vmem:[#allocation2 + $0xa0] sm:$0xff] }
 0x413   : > { %3508 = vrot.lane.b32.xlu0 %v3119_v4, %s21280_s5  ;;  %3510 = vrot.lane.b32.xlu1 %v3120_v35, %s21280_s5 }
 0x417   : > { %3550 = vrot.lane.b32.xlu0 %v3120_v35, %s21280_s5  ;;  %3584 = vrot.lane.b32.xlu1 %v3120_v35, %s21280_s5  ;;  %v3870_v35 = vld [vmem:[#allocation2 + $0x68] sm:$0xff] }
 0x41b   : > { %3434 = vrot.lane.b32.xlu1 %v3126_v16, %s21280_s5  ;;  %3377 = vrot.lane.b32.xlu0 %v3126_v16, %s21280_s5  ;;  %v2596_v42 = vpop.f32.mrb[44].mxu0 }
 0x41c   : > { %v22305_v44 = vadd.f32 %v2596_v42, %v2289_v6  ;;  %v2598_v47 = vpop.f32.mrb[45].mxu0  ;;  %v3868_v6 = vld [vmem:[#allocation2 + $0x30] sm:$0xff] }
 0x41d   : > { %v22310_v51 = vadd.f32 %v2598_v47, %v2290_v9  ;;  %v2600_v52 = vpop.f32.mrb[46].mxu0  ;;  %v3072_v9 = vsub.s32 4, %v22248_v39  ;;  %v19875_v39 = vld [vmem:[#allocation21 + $0x324] ss:$16 sps:$4 sm:$0xff]  }
 0x41e   : > { %v2601_v54 = vpop.f32.mrb[47].mxu0 }
 0x41f   : > { %3468 = vrot.lane.b32.xlu1 %v3126_v16, %s21280_s5  ;;  %3512 = vrot.lane.b32.xlu0 %v3126_v16, %s21280_s5 }
 0x423   : > { %3514 = vrot.lane.b32.xlu1 %v22277_v18, %s21280_s5  ;;  %3630 = vrot.lane.b32.xlu0 %v22277_v18, %s21280_s5  ;;  %v2864_v57 = vpop.f32.mrb[0].mxu0 }
 0x424   : > { %v3089_v58 = vadd.f32 %v3057_v55, %v2864_v57  ;;  %v2866_v59 = vpop.f32.mrb[1].mxu0 }
 0x425   : > { %v3090_v60 = vadd.f32 %v3061_v56, %v2866_v59  ;;  %v2868_v61 = vpop.f32.mrb[2].mxu0 }
 0x426   : > { %v3110_v62 = vmax.f32 %v3089_v58, 0.0  ;;  %v3096_v63 = vadd.f32 %v3057_v55, %v2868_v61  ;;  %v2870_v0 = vpop.f32.mrb[3].mxu0  ;;  %v20525_v61 = vld [vmem:[#allocation2 + $0x10] sm:$0xff] }
 0x427   : > { %3552 = vrot.lane.b32.xlu1 %v22277_v18, %s21280_s5  ;;  %3586 = vrot.lane.b32.xlu0 %v22277_v18, %s21280_s5  ;;  %v22329_v3 = vmax.f32 %v3090_v60, 0.0  ;;  %v3097_v4 = vadd.f32 %v3061_v56, %v2870_v0  ;;  %v3073_v18 = vrot.slane %v22256_v46, %v3072_v9 }
 0x428   : > { %3131 = vst [vmem:[#allocation2] sm:$0xff] %v3110_v62  ;;  %v3117_v5 = vmax.f32 %v3096_v63, 0.0 }
 0x429   : > { %3132 = vst [vmem:[#allocation2 + $0x8] sm:$0xff] %v22329_v3  ;;  %v22332_v37 = vmax.f32 %v3097_v4, 0.0 }
 0x42a   : > { %3139 = vst [vmem:[#allocation2 + $0x38] sm:$0xff] %v3117_v5 }
 0x42b   : > { %3878 = vrot.lane.b32.xlu1 %v3870_v35, %s21280_s5  ;;  %3880 = vrot.lane.b32.xlu0 %v3872_v36, %s21280_s5  ;;  %3140 = vst [vmem:[#allocation2 + $0x40] sm:$0xff] %v22332_v37  ;;  %v2874_v1 = vpop.f32.mrb[48].mxu0 }
 0x42c   : > { %v3045_v38 = vadd.f32 %v2874_v1, %v2665_v34  ;;  %v2876_v7 = vpop.f32.mrb[49].mxu0 }
 0x42d   : > { %v3046_v10 = vadd.f32 %v2876_v7, %v2666_v40  ;;  %v2878_v11 = vpop.f32.mrb[50].mxu0 }
 0x42e   : > { %v3103_v13 = vadd.f32 %v3057_v55, %v3045_v38  ;;  %v2879_v14 = vpop.f32.mrb[51].mxu0  ;;  %v20527_v11 = vld [vmem:[#allocation2 + $0x48] sm:$0xff] }
 0x42f   : > { %3876 = vrot.lane.b32.xlu0 %v3868_v6, %s21280_s5  ;;  %3215 = vrot.lane.b32.xlu1 %v3110_v62, %s21280_s5  ;;  %v3104_v15 = vadd.f32 %v3061_v56, %v3046_v10 }
 0x430   : > { %v3124_v16 = vmax.f32 %v3103_v13, 0.0 }
 0x431   : > { %v22344_v17 = vmax.f32 %v3104_v15, 0.0 }
 0x432   : > { %3146 = vst [vmem:[#allocation2 + $0x70] sm:$0xff] %v3124_v16 }
 0x433   : > { %3181 = vrot.lane.b32.xlu0 %v3110_v62, %s21280_s5  ;;  %3159 = vrot.lane.b32.xlu1 %v3110_v62, %s21280_s5  ;;  %3147 = vst [vmem:[#allocation2 + $0x78] sm:$0xff] %v22344_v17  ;;  %v2966_v20 = vpop.f32.mrb[16].mxu0 }
 0x434   : > { %v3093_v21 = vadd.f32 %v3073_v18, %v2966_v20  ;;  %v2968_v22 = vpop.f32.mrb[17].mxu0 }
 0x435   : > { %v3094_v23 = vadd.f32 %v3077_v19, %v2968_v22  ;;  %v2970_v24 = vpop.f32.mrb[18].mxu0  ;;  %v22432_v22 = vld [vmem:[#allocation2 + $0x50] sm:$0xff] }
 0x436   : > { %v3114_v25 = vmax.f32 %v3093_v21, 0.0  ;;  %v3100_v26 = vadd.f32 %v3073_v18, %v2970_v24  ;;  %v2972_v27 = vpop.f32.mrb[19].mxu0 }
 0x437   : > { %3336 = vrot.lane.b32.xlu1 %v22329_v3, %s21280_s5  ;;  %3252 = vrot.lane.b32.xlu0 %v22329_v3, %s21280_s5  ;;  %v22356_v46 = vmax.f32 %v3094_v23, 0.0  ;;  %v3101_v29 = vadd.f32 %v3077_v19, %v2972_v27 }
 0x438   : > { %3135 = vst [vmem:[#allocation2 + $0x20] sm:$0xff] %v3114_v25  ;;  %v3121_v31 = vmax.f32 %v3100_v26, 0.0 }
 0x439   : > { %3136 = vst [vmem:[#allocation2 + $0x28] sm:$0xff] %v22356_v46  ;;  %v22359_v33 = vmax.f32 %v3101_v29, 0.0 }
 0x43a   : > { %3143 = vst [vmem:[#allocation2 + $0x58] sm:$0xff] %v3121_v31 }
 0x43b   : > { %3302 = vrot.lane.b32.xlu0 %v22329_v3, %s21280_s5  ;;  %3183 = vrot.lane.b32.xlu1 %v3117_v5, %s21280_s5  ;;  %3144 = vst [vmem:[#allocation2 + $0x60] sm:$0xff] %v22359_v33  ;;  %v2976_v30 = vpop.f32.mrb[52].mxu0 }
 0x43c   : > { %v3049_v32 = vadd.f32 %v2976_v30, %v22305_v44  ;;  %v2978_v34 = vpop.f32.mrb[53].mxu0 }
 0x43d   : > { %v3050_v41 = vadd.f32 %v2978_v34, %v22310_v51  ;;  %v2980_v40 = vpop.f32.mrb[54].mxu0  ;;  %v20529_v34 = vld [vmem:[#allocation2 + $0x80] sm:$0xff] }
 0x43e   : > { %v3107_v43 = vadd.f32 %v3073_v18, %v3049_v32  ;;  %v2981_v45 = vpop.f32.mrb[55].mxu0 }
 0x43f   : > { %3217 = vrot.lane.b32.xlu0 %v3117_v5, %s21280_s5  ;;  %3254 = vrot.lane.b32.xlu1 %v22332_v37, %s21280_s5  ;;  %v3108_v42 = vadd.f32 %v3077_v19, %v3050_v41 }
 0x440   : > { %v3128_v47 = vmax.f32 %v3107_v43, 0.0 }
 0x441   : > { %v3129_v52 = vmax.f32 %v3108_v42, 0.0 }
 0x442   : > { %3150 = vst [vmem:[#allocation2 + $0x90] sm:$0xff] %v3128_v47 }
 0x443   : > { %3161 = vrot.lane.b32.xlu0 %v3117_v5, %s21280_s5  ;;  %3304 = vrot.lane.b32.xlu1 %v22332_v37, %s21280_s5  ;;  %3151 = vst [vmem:[#allocation2 + $0x98] sm:$0xff] %v3129_v52 }
 0x447   : > { %3338 = vrot.lane.b32.xlu0 %v22332_v37, %s21280_s5  ;;  %3219 = vrot.lane.b32.xlu1 %v3124_v16, %s21280_s5 }
 0x44b   : > { %3185 = vrot.lane.b32.xlu0 %v3124_v16, %s21280_s5  ;;  %3163 = vrot.lane.b32.xlu1 %v3124_v16, %s21280_s5 }
 0x44f   : > { %3256 = vrot.lane.b32.xlu0 %v22344_v17, %s21280_s5  ;;  %3340 = vrot.lane.b32.xlu1 %v22344_v17, %s21280_s5 }
 0x453   : > { %3306 = vrot.lane.b32.xlu0 %v22344_v17, %s21280_s5  ;;  %3669 = vrot.lane.b32.xlu1 %v3114_v25, %s21280_s5 }
 0x457   : > { %3624 = vrot.lane.b32.xlu0 %v3114_v25, %s21280_s5  ;;  %3771 = vrot.lane.b32.xlu1 %v22356_v46, %s21280_s5 }
 0x45b   : > { %3703 = vrot.lane.b32.xlu0 %v3114_v25, %s21280_s5  ;;  %3839 = vrot.lane.b32.xlu1 %v22356_v46, %s21280_s5 }
 0x45f   : > { %3737 = vrot.lane.b32.xlu0 %v3114_v25, %s21280_s5  ;;  %3628 = vrot.lane.b32.xlu1 %v3121_v31, %s21280_s5 }
 0x463   : > { %3805 = vrot.lane.b32.xlu0 %v22356_v46, %s21280_s5  ;;  %3705 = vrot.lane.b32.xlu1 %v3121_v31, %s21280_s5 }
 0x467   : > { %3671 = vrot.lane.b32.xlu0 %v3121_v31, %s21280_s5  ;;  %3739 = vrot.lane.b32.xlu1 %v3121_v31, %s21280_s5 }
 0x46b   : > { %3773 = vrot.lane.b32.xlu0 %v22359_v33, %s21280_s5  ;;  %3807 = vrot.lane.b32.xlu1 %v22359_v33, %s21280_s5 }
 0x46d   : > { %v3431_v44 = vpop.permute.xlu1 %3430  ;;  %v3374_v51 = vpop.permute.xlu0 %3373 }
 0x46e   : > { %v3382_v60 = vmax.f32 %v22329_v3, %v3374_v51  ;;  %v3383_v62 = vmax.f32 %v20525_v61, %v3374_v51  ;;  %v3439_v4 = vmax.f32 %v20525_v61, %v3431_v44  ;;  %v22420_v3 = vld [vmem:[#allocation2 + $0x18] sm:$0xff]  ;;  %v22450_v44 = vld [vmem:[#allocation2 + $0x88] sm:$0xff] }
 0x46f   : > { %3841 = vrot.lane.b32.xlu0 %v22359_v33, %s21280_s5  ;;  %3632 = vrot.lane.b32.xlu1 %v3128_v47, %s21280_s5 }
 0x471   : > { %v3465_v54 = vpop.permute.xlu1 %3464  ;;  %v3505_v55 = vpop.permute.xlu0 %3504 }
 0x472   : > { %v3473_v35 = vmax.f32 %v20525_v61, %v3465_v54 }
 0x473   : > { %3707 = vrot.lane.b32.xlu0 %v3128_v47, %s21280_s5  ;;  %3673 = vrot.lane.b32.xlu1 %v3128_v47, %s21280_s5 }
 0x475   : > { %v22407_v56 = vpop.permute.xlu0 %3622  ;;  %v3507_v57 = vpop.permute.xlu1 %3506 }
 0x476   : > { %v3517_v21 = vsel %vm3516_vm3, %v3505_v55, %v3507_v57 }
 0x477   : > { %3741 = vrot.lane.b32.xlu0 %v3128_v47, %s21280_s5  ;;  %3775 = vrot.lane.b32.xlu1 %v3129_v52, %s21280_s5 }
 0x479   : > { %v3583_v58 = vpop.permute.xlu0 %3582  ;;  %v3549_v59 = vpop.permute.xlu1 %3548 }
 0x47a   : > { %v3591_v1 = vmax.f32 %v22420_v3, %v3583_v58  ;;  %v3557_v6 = vmax.f32 %v22420_v3, %v3549_v59  ;;  %v20531_v59 = vld [vmem:[#allocation2 + $0x30] sm:$0xff] }
 0x47b   : > { %3809 = vrot.lane.b32.xlu0 %v3129_v52, %s21280_s5  ;;  %3843 = vrot.lane.b32.xlu1 %v3129_v52, %s21280_s5 }
 0x47d   : > { %v3433_v63 = vpop.permute.xlu0 %3432  ;;  %v3376_v0 = vpop.permute.xlu1 %3375 }
 0x47e   : > { %v3384_v10 = vmax.f32 %v22332_v37, %v3376_v0  ;;  %v3385_v13 = vmax.f32 %v20527_v11, %v3376_v0  ;;  %v3440_v16 = vmax.f32 %v20527_v11, %v3433_v63  ;;  %v3523_v37 = vmax.f32 %v20525_v61, %v3517_v21  ;;  %v20532_v63 = vld [vmem:[#allocation2] sm:$0xff]  ;;  %v20535_v21 = vld [vmem:[#allocation2 + $0x38] sm:$0xff] }
 0x47f   : > { %3394 = vrot.lane.b32.xlu0 %v3382_v60, %s21281_s16  ;;  %3396 = vrot.lane.b32.xlu1 %v3383_v62, %s21281_s16 }
 0x481   : > { %v3467_v36 = vpop.permute.xlu0 %3466  ;;  %v22416_v5 = vpop.permute.xlu1 %3626 }
 0x482   : > { %v3474_v18 = vmax.f32 %v20527_v11, %v3467_v36 }
 0x483   : > { %3479 = vrot.lane.b32.xlu0 %v3473_v35, %s21282_s21  ;;  %3445 = vrot.lane.b32.xlu1 %v3439_v4, %s21283_s20  ;;  %v20533_v4 = vld [vmem:[#allocation2 + $0x68] sm:$0xff] }
 0x485   : > { %v3509_v38 = vpop.permute.xlu0 %3508  ;;  %v3511_v7 = vpop.permute.xlu1 %3510 }
 0x486   : > { %v3518_v26 = vsel %vm3516_vm3, %v3509_v38, %v3511_v7 }
 0x487   : > { %3597 = vrot.lane.b32.xlu0 %v3591_v1, %s21284_s19  ;;  %3563 = vrot.lane.b32.xlu1 %v3557_v6, %s21285_s2  ;;  %v3524_v27 = vmax.f32 %v20527_v11, %v3518_v26 }
 0x489   : > { %v3551_v14 = vpop.permute.xlu0 %3550  ;;  %v3585_v15 = vpop.permute.xlu1 %3584 }
 0x48a   : > { %v3592_v23 = vmax.f32 %v22432_v22, %v3585_v15  ;;  %v3558_v29 = vmax.f32 %v22432_v22, %v3551_v14  ;;  %v20534_v14 = vld [vmem:[#allocation2 + $0x8] sm:$0xff] }
 0x48b   : > { %3398 = vrot.lane.b32.xlu0 %v3384_v10, %s21281_s16  ;;  %3400 = vrot.lane.b32.xlu1 %v3385_v13, %s21281_s16 }
 0x48d   : > { %v3435_v19 = vpop.permute.xlu1 %3434  ;;  %v3378_v20 = vpop.permute.xlu0 %3377 }
 0x48e   : > { %v3386_v32 = vmax.f32 %v22344_v17, %v3378_v20  ;;  %v3387_v41 = vmax.f32 %v20529_v34, %v3378_v20  ;;  %v3441_v45 = vmax.f32 %v20529_v34, %v3435_v19 }
 0x48f   : > { %3447 = vrot.lane.b32.xlu0 %v3440_v16, %s21283_s20  ;;  %3481 = vrot.lane.b32.xlu1 %v3474_v18, %s21282_s21 }
 0x491   : > { %v3469_v24 = vpop.permute.xlu1 %3468  ;;  %v3513_v25 = vpop.permute.xlu0 %3512 }
 0x492   : > { %v3475_v42 = vmax.f32 %v20529_v34, %v3469_v24 }
 0x493   : > { %3529 = vrot.lane.b32.xlu0 %v3523_v37, %s21286_s11  ;;  %3599 = vrot.lane.b32.xlu1 %v3592_v23, %s21284_s19 }
 0x495   : > { %v3515_v31 = vpop.permute.xlu1 %3514  ;;  %v22439_v30 = vpop.permute.xlu0 %3630 }
 0x496   : > { %v3519_v57 = vsel %vm3516_vm3, %v3513_v25, %v3515_v31 }
 0x497   : > { %3565 = vrot.lane.b32.xlu0 %v3558_v29, %s21285_s2  ;;  %3531 = vrot.lane.b32.xlu1 %v3524_v27, %s21286_s11  ;;  %v3525_v58 = vmax.f32 %v20529_v34, %v3519_v57  ;;  %v20536_v29 = vld [vmem:[#allocation2 + $0x40] sm:$0xff] }
 0x499   : > { %v3553_v40 = vpop.permute.xlu1 %3552  ;;  %v3587_v43 = vpop.permute.xlu0 %3586 }
 0x49a   : > { %v3559_v17 = vmax.f32 %v22450_v44, %v3553_v40  ;;  %v3593_v51 = vmax.f32 %v22450_v44, %v3587_v43 }
 0x49b   : > { %3402 = vrot.lane.b32.xlu0 %v3386_v32, %s21281_s16  ;;  %3404 = vrot.lane.b32.xlu1 %v3387_v41, %s21281_s16  ;;  %v20537_v41 = vld [vmem:[#allocation2 + $0x70] sm:$0xff]  ;;  %s21293_s16 = smov 104  }
 0x49d   : > { %v3879_v47 = vpop.permute.xlu1 %3878  ;;  %v22446_v52 = vpop.permute.xlu0 %3880 }
 0x49e   : > { %v3888_v35 = vmax.f32 %v20533_v4, %v3879_v47  ;;  %v3887_v38 = vmax.f32 %v22359_v33, %v3879_v47 }
 0x49f   : > { %3483 = vrot.lane.b32.xlu0 %v3475_v42, %s21282_s21  ;;  %3449 = vrot.lane.b32.xlu1 %v3441_v45, %s21283_s20  ;;  %s21294_s21 = smov 84   ;;  %s21295_s20 = smov 16  }
 0x4a1   : > { %v3877_v54 = vpop.permute.xlu0 %3876  ;;  %v3216_v55 = vpop.permute.xlu1 %3215 }
 0x4a2   : > { %v3886_v60 = vmax.f32 %v20531_v59, %v3877_v54  ;;  %v3885_v36 = vmax.f32 %v22356_v46, %v3877_v54  ;;  %v3224_v7 = vmax.f32 %v20532_v63, %v3216_v55 }
 0x4a3   : > { %3601 = vrot.lane.b32.xlu0 %v3593_v51, %s21284_s19  ;;  %3567 = vrot.lane.b32.xlu1 %v3559_v17, %s21285_s2  ;;  %s21296_s19 = smov 64  }
 0x4a5   : > { %v3182_v61 = vpop.permute.xlu0 %3181  ;;  %v3160_v62 = vpop.permute.xlu1 %3159 }
 0x4a6   : > { %v3168_v0 = vmax.f32 %v20532_v63, %v3160_v62  ;;  %v3190_v13 = vmax.f32 %v20532_v63, %v3182_v61  ;;  %v18623_v62 = vld [vmem:[#allocation18 + $0x578] ss:$28 sps:$4 sm:$0xff]  }
 0x4a7   : > { %3533 = vrot.lane.b32.xlu0 %v3525_v58, %s21286_s11  ;;  %3899 = vrot.lane.b32.xlu1 %v3886_v60, %s21287_s8  ;;  %v20538_v58 = vld [vmem:[#allocation2 + $0x78] sm:$0xff]  ;;  %s21297_s11 = smov 44  }
 0x4a8   : > { %3172 = vst.msk [vmem:[#allocation3] sm:$0xff] %vm3171_vm4, %v3168_v0 }
 0x4a9   : > { %v3337_v1 = vpop.permute.xlu1 %3336  ;;  %v3253_v6 = vpop.permute.xlu0 %3252 }
 0x4aa   : > { %v3262_v15 = vmax.f32 %v20534_v14, %v3253_v6  ;;  %v3345_v18 = vmax.f32 %v20534_v14, %v3337_v1  ;;  %v3261_v33 = vmax.f32 %v20532_v63, %v3253_v6  ;;  %v18625_v63 = vld [vmem:[#allocation18 + $0x57c] ss:$28 sps:$4 sm:$0xff]   ;;  %v18628_v1 = vld [vmem:[#allocation18 + $0x5b4] ss:$28 sps:$4 sm:$0xff]  }
 0x4ab   : > { %3897 = vrot.lane.b32.xlu0 %v3885_v36, %s21287_s8  ;;  %3903 = vrot.lane.b32.xlu1 %v3888_v35, %s21287_s8  ;;  %v18626_v6 = vld [vmem:[#allocation18 + $0x5b0] ss:$28 sps:$4 sm:$0xff]  }
 0x4ac   : > { %5379 = vmatprep.subr.bf16.mxu1 %v18625_v63 }
 0x4ad   : > { %v3303_v10 = vpop.permute.xlu0 %3302  ;;  %v3184_v11 = vpop.permute.xlu1 %3183  ;;  %5380 = vmatpush1.bf16.msra.mxu1 %v18623_v62 }
 0x4ae   : > { %v3311_v23 = vmax.f32 %v20534_v14, %v3303_v10  ;;  %v3191_v24 = vmax.f32 %v20535_v21, %v3184_v11  ;;  %5381 = vmatprep.subr.bf16.mxu1 %v18628_v1  ;;  %v20543_v1 = vld [vmem:[#allocation2 + $0x90] sm:$0xff] }
 0x4af   : > { %3901 = vrot.lane.b32.xlu0 %v3887_v38, %s21287_s8  ;;  %3230 = vrot.lane.b32.xlu1 %v3224_v7, %s21288_s7  ;;  %v20539_v7 = vld [vmem:[#allocation2 + $0x20] sm:$0xff] }
 0x4b1   : > { %v3218_v46 = vpop.permute.xlu0 %3217  ;;  %v3255_v16 = vpop.permute.xlu1 %3254  ;;  %5382 = vmatpush1.bf16.msra.mxu1 %v18626_v6 }
 0x4b2   : > { %v3225_v27 = vmax.f32 %v20535_v21, %v3218_v46  ;;  %v3264_v31 = vmax.f32 %v20536_v29, %v3255_v16  ;;  %v3263_v43 = vmax.f32 %v20535_v21, %v3255_v16 }
 0x4b3   : > { %3196 = vrot.lane.b32.xlu0 %v3190_v13, %s21280_s5  ;;  %3275 = vrot.lane.b32.xlu1 %v3262_v15, %s21289_s9 }
 0x4b5   : > { %v3162_v19 = vpop.permute.xlu0 %3161  ;;  %v3305_v20 = vpop.permute.xlu1 %3304 }
 0x4b6   : > { %v3169_v37 = vmax.f32 %v20535_v21, %v3162_v19  ;;  %v3312_v45 = vmax.f32 %v20536_v29, %v3305_v20  ;;  %v18629_v19 = vld [vmem:[#allocation18 + $0x5e8] ss:$28 sps:$4 sm:$0xff]  }
 0x4b7   : > { %3273 = vrot.lane.b32.xlu0 %v3261_v33, %s21289_s9  ;;  %3351 = vrot.lane.b32.xlu1 %v3345_v18, %s21290_s18  ;;  %v18631_v33 = vld [vmem:[#allocation18 + $0x5ec] ss:$28 sps:$4 sm:$0xff]  }
 0x4b8   : > { %3173 = vst.msk [vmem:[#allocation3 + $0x20] sm:$0xff] %vm3171_vm4, %v3169_v37  ;;  %5383 = vmatprep.subr.bf16.mxu1 %v18631_v33  ;;  %v20540_v21 = vld [vmem:[#allocation2 + $0x28] sm:$0xff] }
 0x4b9   : > { %v3339_v25 = vpop.permute.xlu0 %3338  ;;  %v3220_v26 = vpop.permute.xlu1 %3219  ;;  %5384 = vmatpush1.bf16.msra.mxu1 %v18629_v19 }
 0x4ba   : > { %v3346_v17 = vmax.f32 %v20536_v29, %v3339_v25  ;;  %v3226_v51 = vmax.f32 %v20537_v41, %v3220_v26  ;;  %v18634_v25 = vld [vmem:[#allocation18 + $0x624] ss:$28 sps:$4 sm:$0xff]  }
 0x4bb   : > { %3317 = vrot.lane.b32.xlu0 %v3311_v23, %s21291_s1  ;;  %3198 = vrot.lane.b32.xlu1 %v3191_v24, %s21280_s5 }
 0x4bc   : > { %5385 = vmatprep.subr.bf16.mxu1 %v18634_v25  ;;  %v20544_v25 = vld [vmem:[#allocation2 + $0x98] sm:$0xff] }
 0x4bd   : > { %v3186_v32 = vpop.permute.xlu0 %3185  ;;  %v3164_v34 = vpop.permute.xlu1 %3163 }
 0x4be   : > { %v3170_v40 = vmax.f32 %v20537_v41, %v3164_v34  ;;  %v3192_v57 = vmax.f32 %v20537_v41, %v3186_v32  ;;  %v18635_v32 = vld [vmem:[#allocation18 + $0x658] ss:$28 sps:$4 sm:$0xff]  }
 0x4bf   : > { %3232 = vrot.lane.b32.xlu0 %v3225_v27, %s21288_s7  ;;  %3279 = vrot.lane.b32.xlu1 %v3264_v31, %s21289_s9  ;;  %v20541_v34 = vld [vmem:[#allocation2 + $0x58] sm:$0xff] }
 0x4c0   : > { %3174 = vst.msk [vmem:[#allocation3 + $0x40] sm:$0xff] %vm3171_vm4, %v3170_v40  ;;  %vm3326_vm4 = vcmask 818816  }
 0x4c1   : > { %v3257_v42 = vpop.permute.xlu0 %3256  ;;  %v3341_v47 = vpop.permute.xlu1 %3340 }
 0x4c2   : > { %v3266_v59 = vmax.f32 %v20538_v58, %v3257_v42  ;;  %v3265_v0 = vmax.f32 %v20537_v41, %v3257_v42  ;;  %v3347_v4 = vmax.f32 %v20538_v58, %v3341_v47  ;;  %v18638_v47 = vld [vmem:[#allocation18 + $0x690] ss:$28 sps:$4 sm:$0xff]  }
 0x4c3   : > { %3277 = vrot.lane.b32.xlu0 %v3263_v43, %s21289_s9  ;;  %3319 = vrot.lane.b32.xlu1 %v3312_v45, %s21291_s1 }
 0x4c5   : > { %v3307_v54 = vpop.permute.xlu0 %3306  ;;  %v3670_v55 = vpop.permute.xlu1 %3669 }
 0x4c6   : > { %v3313_v38 = vmax.f32 %v20538_v58, %v3307_v54  ;;  %v3678_v10 = vmax.f32 %v20539_v7, %v3670_v55  ;;  %v18643_v58 = vld [vmem:[#allocation18 + $0x6cc] ss:$28 sps:$4 sm:$0xff]  }
 0x4c7   : > { %3353 = vrot.lane.b32.xlu0 %v3346_v17, %s21290_s18  ;;  %3234 = vrot.lane.b32.xlu1 %v3226_v51, %s21288_s7  ;;  %s21298_s7 = smov 24   ;;  %v18640_v17 = vld [vmem:[#allocation18 + $0x694] ss:$28 sps:$4 sm:$0xff]  }
 0x4c9   : > { %v3625_v60 = vpop.permute.xlu0 %3624  ;;  %v3772_v61 = vpop.permute.xlu1 %3771 }
 0x4ca   : > { %v3634_v18 = vsel %vm3516_vm3, %v22407_v56, %v3625_v60  ;;  %v3780_v37 = vmax.f32 %v20540_v21, %v3772_v61  ;;  %v18632_v56 = vld [vmem:[#allocation18 + $0x620] ss:$28 sps:$4 sm:$0xff]  }
 0x4cb   : > { %3200 = vrot.lane.b32.xlu0 %v3192_v57, %s21280_s5  ;;  %3283 = vrot.lane.b32.xlu1 %v3266_v59, %s21289_s9  ;;  %s21292_s5 = smov 124   ;;  %v3640_v20 = vmax.f32 %v22420_v3, %v3634_v18  ;;  %v18637_v3 = vld [vmem:[#allocation18 + $0x65c] ss:$28 sps:$4 sm:$0xff]  }
 0x4cc   : > { %5386 = vmatpush1.bf16.msra.mxu1 %v18632_v56  ;;  %v20542_v59 = vld [vmem:[#allocation2 + $0x60] sm:$0xff] }
 0x4cd   : > { %v3704_v35 = vpop.permute.xlu0 %3703  ;;  %v3840_v36 = vpop.permute.xlu1 %3839  ;;  %5387 = vmatprep.subr.bf16.mxu1 %v18637_v3  ;;  %v18665_v3 = vld [vmem:[#allocation18 + $0x9a0] ss:$28 sps:$4 sm:$0xff]  }
 0x4ce   : > { %v3712_v14 = vmax.f32 %v20539_v7, %v3704_v35  ;;  %v3848_v26 = vmax.f32 %v20540_v21, %v3840_v36  ;;  %v18647_v35 = vld [vmem:[#allocation18 + $0x8f8] ss:$28 sps:$4 sm:$0xff]  }
 0x4cf   : > { %3281 = vrot.lane.b32.xlu0 %v3265_v0, %s21289_s9  ;;  %3355 = vrot.lane.b32.xlu1 %v3347_v4, %s21290_s18  ;;  %v18649_v0 = vld [vmem:[#allocation18 + $0x8fc] ss:$28 sps:$4 sm:$0xff]   ;;  %s21300_s9 = smov 106  }
 0x4d0   : > { %5388 = vmatpush1.bf16.msra.mxu1 %v18635_v32  ;;  %v18644_v4 = vld [vmem:[#allocation18 + $0x700] ss:$28 sps:$4 sm:$0xff]   ;;  %5420 = vmatprep.subr.bf16.mxu0 %v18649_v0  ;;  %v18685_v0 = vld [vmem:[#allocation18 + $0xa4c] ss:$28 sps:$4 sm:$0xff]  }
 0x4d1   : > { %v3738_v11 = vpop.permute.xlu0 %3737  ;;  %v3629_v13 = vpop.permute.xlu1 %3628  ;;  %5389 = vmatprep.subr.bf16.mxu1 %v18640_v17  ;;  %5421 = vmatpush1.bf16.msra.mxu0 %v18647_v35  ;;  %v20545_v17 = vld [vmem:[#allocation2 + $0xa0] sm:$0xff] }
 0x4d2   : > { %v3746_v15 = vmax.f32 %v20539_v7, %v3738_v11  ;;  %v3635_v42 = vsel %vm3516_vm3, %v22416_v5, %v3629_v13  ;;  %v18641_v5 = vld [vmem:[#allocation18 + $0x6c8] ss:$28 sps:$4 sm:$0xff]   ;;  %v18655_v11 = vld [vmem:[#allocation18 + $0x934] ss:$28 sps:$4 sm:$0xff]  }
 0x4d3   : > { %3321 = vrot.lane.b32.xlu0 %v3313_v38, %s21291_s1  ;;  %3684 = vrot.lane.b32.xlu1 %v3678_v10, %s21292_s5  ;;  %v3641_v51 = vmax.f32 %v22432_v22, %v3635_v42  ;;  %v18646_v22 = vld [vmem:[#allocation18 + $0x704] ss:$28 sps:$4 sm:$0xff]   ;;  %v18652_v10 = vld [vmem:[#allocation18 + $0x73c] ss:$28 sps:$4 sm:$0xff]   ;;  %s16122_s1 = sshll.u32 %s22043_s28, 1 }
 0x4d4   : > { %5390 = vmatpush1.bf16.msra.mxu1 %v18638_v47  ;;  %v18650_v13 = vld [vmem:[#allocation18 + $0x738] ss:$28 sps:$4 sm:$0xff]   ;;  %5422 = vmatprep.subr.bf16.mxu0 %v18655_v11  ;;  %v3889_v47 = vmax.f32 %v20544_v25, %v22446_v52  ;;  %v18691_v35 = vld [vmem:[#allocation18 + $0xa84] ss:$28 sps:$4 sm:$0xff]  }
 0x4d5   : > { %v3806_v46 = vpop.permute.xlu0 %3805  ;;  %v3706_v16 = vpop.permute.xlu1 %3705  ;;  %5391 = vmatprep.subr.bf16.mxu1 %v18643_v58  ;;  %v18671_v42 = vld [vmem:[#allocation18 + $0x9d8] ss:$28 sps:$4 sm:$0xff]   ;;  %v18692_v11 = vld [vmem:[#allocation18 + $0x8c0] ss:$28 sps:$4 sm:$0xff]  }
 0x4d6   : > { %v3814_v27 = vmax.f32 %v20540_v21, %v3806_v46  ;;  %v3713_v41 = vmax.f32 %v20541_v34, %v3706_v16  ;;  %v18658_v46 = vld [vmem:[#allocation18 + $0x774] ss:$28 sps:$4 sm:$0xff]   ;;  %v18659_v16 = vld [vmem:[#allocation18 + $0x968] ss:$28 sps:$4 sm:$0xff]   ;;  %v18676_v58 = vld [vmem:[#allocation18 + $0x81c] ss:$28 sps:$4 sm:$0xff]  }
 0x4d7   : > { %3718 = vrot.lane.b32.xlu0 %v3712_v14, %s21293_s16  ;;  %3752 = vrot.lane.b32.xlu1 %v3746_v15, %s21294_s21  ;;  %v18653_v14 = vld [vmem:[#allocation18 + $0x930] ss:$28 sps:$4 sm:$0xff]  }
 0x4d8   : > { %5392 = vmatpush1.bf16.msra.mxu1 %v18641_v5  ;;  %v18656_v15 = vld [vmem:[#allocation18 + $0x770] ss:$28 sps:$4 sm:$0xff]   ;;  %5423 = vmatpush1.bf16.msra.mxu0 %v18653_v14 }
 0x4d9   : > { %v3672_v23 = vpop.permute.xlu0 %3671  ;;  %v3740_v24 = vpop.permute.xlu1 %3739  ;;  %5393 = vmatprep.subr.bf16.mxu1 %v18646_v22  ;;  %v18661_v21 = vld [vmem:[#allocation18 + $0x96c] ss:$28 sps:$4 sm:$0xff]   ;;  %v18679_v5 = vld [vmem:[#allocation18 + $0xa14] ss:$28 sps:$4 sm:$0xff]  }
 0x4da   : > { %v3679_v40 = vmax.f32 %v20541_v34, %v3672_v23  ;;  %v3747_v54 = vmax.f32 %v20541_v34, %v3740_v24  ;;  %5424 = vmatprep.subr.bf16.mxu0 %v18661_v21  ;;  %v18683_v22 = vld [vmem:[#allocation18 + $0xa48] ss:$28 sps:$4 sm:$0xff]  }
 0x4db   : > { %3646 = vrot.lane.b32.xlu0 %v3640_v20, %s21295_s20  ;;  %3786 = vrot.lane.b32.xlu1 %v3780_v37, %s21296_s19 }
 0x4dc   : > { %5394 = vmatpush1.bf16.msra.mxu1 %v18644_v4  ;;  %5425 = vmatpush1.bf16.msra.mxu0 %v18659_v16  ;;  %v18688_v4 = vld [vmem:[#allocation18 + $0x88c] ss:$28 sps:$4 sm:$0xff]  }
 0x4dd   : > { %v3774_v29 = vpop.permute.xlu0 %3773  ;;  %v3808_v31 = vpop.permute.xlu1 %3807  ;;  %5395 = vmatprep.subr.bf16.mxu1 %v18652_v10 }
 0x4de   : > { %v3781_v60 = vmax.f32 %v20542_v59, %v3774_v29  ;;  %v3815_v61 = vmax.f32 %v20542_v59, %v3808_v31  ;;  %v18667_v29 = vld [vmem:[#allocation18 + $0x9a4] ss:$28 sps:$4 sm:$0xff]  }
 0x4df   : > { %3820 = vrot.lane.b32.xlu0 %v3814_v27, %s21297_s11  ;;  %3854 = vrot.lane.b32.xlu1 %v3848_v26, %s21298_s7  ;;  %v18662_v31 = vld [vmem:[#allocation18 + $0x7a8] ss:$28 sps:$4 sm:$0xff]  }
 0x4e0   : > { %5396 = vmatpush1.bf16.msra.mxu1 %v18650_v13  ;;  %5426 = vmatprep.subr.bf16.mxu0 %v18667_v29  ;;  %v18695_v13 = vld [vmem:[#allocation18 + $0xab8] ss:$28 sps:$4 sm:$0xff]  }
 0x4e1   : > { %v3842_v43 = vpop.permute.xlu0 %3841  ;;  %v3633_v45 = vpop.permute.xlu1 %3632  ;;  %5397 = vmatprep.subr.bf16.mxu1 %v18658_v46  ;;  %5427 = vmatpush1.bf16.msra.mxu0 %v18665_v3 }
 0x4e2   : > { %v3849_v36 = vmax.f32 %v20542_v59, %v3842_v43  ;;  %v3636_v37 = vsel %vm3516_vm3, %v22439_v30, %v3633_v45  ;;  %v18664_v30 = vld [vmem:[#allocation18 + $0x7ac] ss:$28 sps:$4 sm:$0xff]   ;;  %v18673_v43 = vld [vmem:[#allocation18 + $0x9dc] ss:$28 sps:$4 sm:$0xff]   ;;  %vm3292_vm3 = vcmask 654816  }
 0x4e3   : > { %3686 = vrot.lane.b32.xlu0 %v3679_v40, %s21292_s5  ;;  %3720 = vrot.lane.b32.xlu1 %v3713_v41, %s21293_s16  ;;  %v3642_v24 = vmax.f32 %v22450_v44, %v3636_v37  ;;  %v18670_v40 = vld [vmem:[#allocation18 + $0x7e4] ss:$28 sps:$4 sm:$0xff]   ;;  %v18674_v59 = vld [vmem:[#allocation18 + $0x818] ss:$28 sps:$4 sm:$0xff]  }
 0x4e4   : > { %5398 = vmatpush1.bf16.msra.mxu1 %v18656_v15  ;;  %v18668_v45 = vld [vmem:[#allocation18 + $0x7e0] ss:$28 sps:$4 sm:$0xff]   ;;  %5428 = vmatprep.subr.bf16.mxu0 %v18673_v43 }
 0x4e5   : > { %v3708_v55 = vpop.permute.xlu0 %3707  ;;  %v3674_v57 = vpop.permute.xlu1 %3673  ;;  %5399 = vmatprep.subr.bf16.mxu1 %v18664_v30  ;;  %5429 = vmatpush1.bf16.msra.mxu0 %v18671_v42 }
 0x4e6   : > { %v3680_v6 = vmax.f32 %v20543_v1, %v3674_v57  ;;  %v3714_v18 = vmax.f32 %v20543_v1, %v3708_v55  ;;  %5430 = vmatprep.subr.bf16.mxu0 %v18679_v5 }
 0x4e7   : > { %3648 = vrot.lane.b32.xlu1 %v3641_v51, %s21295_s20  ;;  %3754 = vrot.lane.b32.xlu0 %v3747_v54, %s21294_s21  ;;  %v3890_v51 = vmax.f32 %v20545_v17, %v22446_v52  ;;  %v18682_v52 = vld [vmem:[#allocation18 + $0x854] ss:$28 sps:$4 sm:$0xff]  }
 0x4e8   : > { %5400 = vmatpush1.bf16.msra.mxu1 %v18662_v31 }
 0x4e9   : > { %v3742_v62 = vpop.permute.xlu0 %3741  ;;  %v3776_v63 = vpop.permute.xlu1 %3775  ;;  %5401 = vmatprep.subr.bf16.mxu1 %v18670_v40 }
 0x4ea   : > { %v3748_v33 = vmax.f32 %v20543_v1, %v3742_v62  ;;  %v3782_v56 = vmax.f32 %v20544_v25, %v3776_v63  ;;  %v18680_v63 = vld [vmem:[#allocation18 + $0x850] ss:$28 sps:$4 sm:$0xff]   ;;  %v18689_v1 = vld [vmem:[#allocation18 + $0xa80] ss:$28 sps:$4 sm:$0xff]  }
 0x4eb   : > { %3788 = vrot.lane.b32.xlu0 %v3781_v60, %s21296_s19  ;;  %3822 = vrot.lane.b32.xlu1 %v3815_v61, %s21297_s11  ;;  %v18677_v60 = vld [vmem:[#allocation18 + $0xa10] ss:$28 sps:$4 sm:$0xff]  }
 0x4ec   : > { %5402 = vmatpush1.bf16.msra.mxu1 %v18668_v45  ;;  %5431 = vmatpush1.bf16.msra.mxu0 %v18677_v60 }
 0x4ed   : > { %v3810_v38 = vpop.permute.xlu0 %3809  ;;  %v3844_v7 = vpop.permute.xlu1 %3843  ;;  %5403 = vmatprep.subr.bf16.mxu1 %v18676_v58  ;;  %5432 = vmatprep.subr.bf16.mxu0 %v18685_v0 }
 0x4ee   : > { %v3816_v44 = vmax.f32 %v20544_v25, %v3810_v38  ;;  %v3850_v32 = vmax.f32 %v20544_v25, %v3844_v7  ;;  %v18697_v38 = vld [vmem:[#allocation18 + $0xabc] ss:$28 sps:$4 sm:$0xff]  }
 0x4ef   : > { %3856 = vrot.lane.b32.xlu0 %v3849_v36, %s21298_s7  ;;  %3688 = vrot.lane.b32.xlu1 %v3680_v6, %s21292_s5  ;;  %v18686_v36 = vld [vmem:[#allocation18 + $0x888] ss:$28 sps:$4 sm:$0xff]  }
 0x4f0   : > { %5404 = vmatpush1.bf16.msra.mxu1 %v18674_v59  ;;  %v18694_v6 = vld [vmem:[#allocation18 + $0x8c4] ss:$28 sps:$4 sm:$0xff]   ;;  %5433 = vmatpush1.bf16.msra.mxu0 %v18683_v22 }
 0x4f1   : > { %v22506_v19 = vpop.permute.xlu0 %3394  ;;  %v3397_v20 = vpop.permute.xlu1 %3396  ;;  %5405 = vmatprep.subr.bf16.mxu1 %v18682_v52  ;;  %5434 = vmatprep.subr.bf16.mxu0 %v18691_v35 }
 0x4f2   : > { %v3407_v23 = vsel %vm3406_vm5, %v22506_v19, %v3397_v20  ;;  %v18703_v20 = vld [vmem:[#allocation18 + $0x904] ss:$28 sps:$4 sm:$0xff]  }
 0x4f3   : > { %3419 = vst.msk [vmem:[#allocation3 + $0x8] sm:$0xff] %vm3418_vm6, %v3407_v23  ;;  %3722 = vrot.lane.b32.xlu0 %v3714_v18, %s21293_s16  ;;  %3756 = vrot.lane.b32.xlu1 %v3748_v33, %s21294_s21  ;;  %v18700_v18 = vld [vmem:[#allocation18 + $0x584] ss:$28 sps:$4 sm:$0xff]   ;;  %s23480_s16 = sld [smem:[#allocation83_spill]] }
 0x4f4   : > { %5406 = vmatpush1.bf16.msra.mxu1 %v18680_v63  ;;  %5435 = vmatpush1.bf16.msra.mxu0 %v18689_v1 }
 0x4f5   : > { %v3480_v26 = vpop.permute.xlu0 %3479  ;;  %v3446_v27 = vpop.permute.xlu1 %3445  ;;  %5407 = vmatprep.subr.bf16.mxu1 %v18688_v4  ;;  %5436 = vmatprep.subr.bf16.mxu0 %v18697_v38 }
 0x4f6   : > { %3455 = vst.msk [vmem:[#allocation3 + $0x8] sm:$0xff] %vm3454_vm7, %v3446_v27 }
 0x4f7   : > { %3650 = vrot.lane.b32.xlu0 %v3642_v24, %s21295_s20  ;;  %3790 = vrot.lane.b32.xlu1 %v3782_v56, %s21296_s19  ;;  %3489 = vst.msk [vmem:[#allocation3 + $0x8] sm:$0xff] %vm3488_vm8, %v3480_v26 }
 0x4f8   : > { %5408 = vmatpush1.bf16.msra.mxu1 %v18686_v36  ;;  %5437 = vmatpush1.bf16.msra.mxu0 %v18695_v13 }
 0x4f9   : > { %v3598_v34 = vpop.permute.xlu0 %3597  ;;  %v3564_v41 = vpop.permute.xlu1 %3563  ;;  %5409 = vmatprep.subr.bf16.mxu1 %v18694_v6  ;;  %5461 = vmatprep.subr.bf16.mxu0 %v18700_v18 }
 0x4fb   : > { %3824 = vrot.lane.b32.xlu0 %v3816_v44, %s21297_s11  ;;  %3858 = vrot.lane.b32.xlu1 %v3850_v32, %s21298_s7  ;;  %s23477_s7 = sld [smem:[#allocation74_spill]] }
 0x4fc   : > { %5410 = vmatpush1.bf16.msra.mxu1 %v18692_v11 }
 0x4fd   : > { %v22524_v54 = vpop.permute.xlu0 %3398  ;;  %v3401_v55 = vpop.permute.xlu1 %3400  ;;  %5502 = vmatprep.subr.bf16.mxu1 %v18703_v20 }
 0x4fe   : > { %v3408_v57 = vsel %vm3406_vm5, %v22524_v54, %v3401_v55 }
 0x4ff   : > { %3421 = vst.msk [vmem:[#allocation3 + $0x28] sm:$0xff] %vm3418_vm6, %v3408_v57  ;;  %3905 = vrot.lane.b32.xlu0 %v3889_v47, %s21287_s8  ;;  %3907 = vrot.lane.b32.xlu1 %v3890_v51, %s21287_s8  ;;  %s21299_s8 = smov 78  }
 0x501   : > { %v3448_v61 = vpop.permute.xlu0 %3447  ;;  %v3482_v62 = vpop.permute.xlu1 %3481 }
 0x502   : > { %3456 = vst.msk [vmem:[#allocation3 + $0x28] sm:$0xff] %vm3454_vm7, %v3448_v61 }
 0x503   : > { %3490 = vst.msk [vmem:[#allocation3 + $0x28] sm:$0xff] %vm3488_vm8, %v3482_v62 }
 0x505   : > { %v3530_v7 = vpop.permute.xlu0 %3529  ;;  %v3600_v10 = vpop.permute.xlu1 %3599 }
 0x506   : > { %3539 = vst.msk [vmem:[#allocation3 + $0x8] sm:$0xff] %vm3538_vm9, %v3530_v7  ;;  %v19956_v7 = vld [vmem:[#allocation21 + $0x34c] ss:$16 sps:$4 sm:$0xff]  }
 0x507   : > { %3573 = vst.msk [vmem:[#allocation3 + $0x8] sm:$0xff] %vm3572_vm10, %v3564_v41 }
 0x508   : > { %3607 = vst.msk [vmem:[#allocation3 + $0x8] sm:$0xff] %vm3606_vm11, %v3598_v34 }
 0x509   : > { %v3566_v14 = vpop.permute.xlu0 %3565  ;;  %v3532_v15 = vpop.permute.xlu1 %3531 }
 0x50a   : > { %3540 = vst.msk [vmem:[#allocation3 + $0x28] sm:$0xff] %vm3538_vm9, %v3532_v15 }
 0x50b   : > { %3574 = vst.msk [vmem:[#allocation3 + $0x28] sm:$0xff] %vm3572_vm10, %v3566_v14 }
 0x50c   : > { %3608 = vst.msk [vmem:[#allocation3 + $0x28] sm:$0xff] %vm3606_vm11, %v3600_v10 }
 0x50d   : > { %v22539_v46 = vpop.permute.xlu0 %3402  ;;  %v3405_v16 = vpop.permute.xlu1 %3404 }
 0x50e   : > { %v3409_v33 = vsel %vm3406_vm5, %v22539_v46, %v3405_v16 }
 0x50f   : > { %3423 = vst.msk [vmem:[#allocation3 + $0x48] sm:$0xff] %vm3418_vm6, %v3409_v33  ;;  %vm3360_vm6 = vcmask 982816  }
 0x511   : > { %v3484_v21 = vpop.permute.xlu0 %3483  ;;  %v3450_v37 = vpop.permute.xlu1 %3449 }
 0x512   : > { %3457 = vst.msk [vmem:[#allocation3 + $0x48] sm:$0xff] %vm3454_vm7, %v3450_v37  ;;  %vm3416_vm7 = vcmask 1048512  }
 0x513   : > { %3491 = vst.msk [vmem:[#allocation3 + $0x48] sm:$0xff] %vm3488_vm8, %v3484_v21  ;;  %vm3655_vm8 = vcmask 1048448  }
 0x515   : > { %v3602_v23 = vpop.permute.xlu0 %3601  ;;  %v3568_v24 = vpop.permute.xlu1 %3567 }
 0x519   : > { %v3534_v25 = vpop.permute.xlu0 %3533  ;;  %v3900_v56 = vpop.permute.xlu1 %3899 }
 0x51a   : > { %3541 = vst.msk [vmem:[#allocation3 + $0x48] sm:$0xff] %vm3538_vm9, %v3534_v25  ;;  %vm3693_vm9 = vcmask 195616  }
 0x51b   : > { %3575 = vst.msk [vmem:[#allocation3 + $0x48] sm:$0xff] %vm3572_vm10, %v3568_v24  ;;  %vm3727_vm10 = vcmask 359616  }
 0x51c   : > { %3609 = vst.msk [vmem:[#allocation3 + $0x48] sm:$0xff] %vm3606_vm11, %v3602_v23  ;;  %vm3761_vm11 = vcmask 523616  }
 0x51d   : > { %v22549_v26 = vpop.permute.xlu0 %3897  ;;  %v3904_v27 = vpop.permute.xlu1 %3903 }
 0x51e   : > { %v3909_v30 = vsel %vm3657_vm12, %v22549_v26, %v3900_v56 }
 0x51f   : > { %3921 = vst.msk [vmem:[#allocation3 + $0x18] sm:$0xff] %vm3920_vm13, %v3909_v30 }
 0x521   : > { %v22554_v29 = vpop.permute.xlu0 %3901  ;;  %v3231_v31 = vpop.permute.xlu1 %3230 }
 0x522   : > { %v3910_v3 = vsel %vm3657_vm12, %v22554_v29, %v3904_v27 }
 0x523   : > { %3923 = vst.msk [vmem:[#allocation3 + $0x38] sm:$0xff] %vm3920_vm13, %v3910_v3 }
 0x525   : > { %v3197_v44 = vpop.permute.xlu0 %3196  ;;  %v3276_v32 = vpop.permute.xlu1 %3275 }
 0x526   : > { %3206 = vst.msk [vmem:[#allocation3] sm:$0xff] %vm3205_vm14, %v3197_v44 }
 0x527   : > { %3240 = vst.msk [vmem:[#allocation3] sm:$0xff] %vm3239_vm15, %v3231_v31 }
 0x529   : > { %v3274_v34 = vpop.permute.xlu0 %3273  ;;  %v3352_v41 = vpop.permute.xlu1 %3351 }
 0x52a   : > { %v3286_v40 = vsel %vm3285_vm0, %v3274_v34, %v3276_v32 }
 0x52b   : > { %3293 = vst.msk [vmem:[#allocation3] sm:$0xff] %vm3292_vm3, %v3286_v40 }
 0x52d   : > { %v3318_v43 = vpop.permute.xlu0 %3317  ;;  %v3199_v45 = vpop.permute.xlu1 %3198 }
 0x52e   : > { %3327 = vst.msk [vmem:[#allocation3] sm:$0xff] %vm3326_vm4, %v3318_v43 }
 0x52f   : > { %3207 = vst.msk [vmem:[#allocation3 + $0x20] sm:$0xff] %vm3205_vm14, %v3199_v45 }
 0x530   : > { %3361 = vst.msk [vmem:[#allocation3] sm:$0xff] %vm3360_vm6, %v3352_v41 }
 0x531   : > { %3417 = vst.msk [vmem:[#allocation3] sm:$0xff] %vm3416_vm7, %v22506_v19  ;;  %v3233_v42 = vpop.permute.xlu0 %3232  ;;  %v3280_v47 = vpop.permute.xlu1 %3279 }
 0x532   : > { %3241 = vst.msk [vmem:[#allocation3 + $0x20] sm:$0xff] %vm3239_vm15, %v3233_v42 }
 0x535   : > { %v3278_v17 = vpop.permute.xlu0 %3277  ;;  %v3320_v51 = vpop.permute.xlu1 %3319 }
 0x536   : > { %v3287_v55 = vsel %vm3285_vm0, %v3278_v17, %v3280_v47 }
 0x537   : > { %3294 = vst.msk [vmem:[#allocation3 + $0x20] sm:$0xff] %vm3292_vm3, %v3287_v55 }
 0x538   : > { %3328 = vst.msk [vmem:[#allocation3 + $0x20] sm:$0xff] %vm3326_vm4, %v3320_v51 }
 0x539   : > { %v3354_v57 = vpop.permute.xlu0 %3353  ;;  %v3235_v58 = vpop.permute.xlu1 %3234 }
 0x53a   : > { %3362 = vst.msk [vmem:[#allocation3 + $0x20] sm:$0xff] %vm3360_vm6, %v3354_v57 }
 0x53b   : > { %3420 = vst.msk [vmem:[#allocation3 + $0x20] sm:$0xff] %vm3416_vm7, %v22524_v54 }
 0x53d   : > { %v3201_v19 = vpop.permute.xlu0 %3200  ;;  %v3284_v5 = vpop.permute.xlu1 %3283 }
 0x53e   : > { %3208 = vst.msk [vmem:[#allocation3 + $0x40] sm:$0xff] %vm3205_vm14, %v3201_v19  ;;  %vm3795_vm14 = vcmask 687616  }
 0x53f   : > { %3242 = vst.msk [vmem:[#allocation3 + $0x40] sm:$0xff] %vm3239_vm15, %v3235_v58  ;;  %vm3829_vm15 = vcmask 851616  }
 0x541   : > { %v3282_v59 = vpop.permute.xlu0 %3281  ;;  %v3356_v60 = vpop.permute.xlu1 %3355 }
 0x542   : > { %v3288_v52 = vsel %vm3285_vm0, %v3282_v59, %v3284_v5  ;;  %vm3863_vm0 = vcmask 1015616  }
 0x543   : > { %3295 = vst.msk [vmem:[#allocation3 + $0x40] sm:$0xff] %vm3292_vm3, %v3288_v52  ;;  %vm3918_vm3 = vcmask 1048544  }
 0x545   : > { %v3322_v61 = vpop.permute.xlu0 %3321  ;;  %v3685_v62 = vpop.permute.xlu1 %3684 }
 0x546   : > { %3329 = vst.msk [vmem:[#allocation3 + $0x40] sm:$0xff] %vm3326_vm4, %v3322_v61  ;;  %vm22596_vm4 = vcmp.lt.s32.totalorder %v3054_v28, 400 }
 0x547   : > { %3363 = vst.msk [vmem:[#allocation3 + $0x40] sm:$0xff] %vm3360_vm6, %v3356_v60  ;;  %vm11421_vm6 = vcmask 818576  }
 0x548   : > { %3422 = vst.msk [vmem:[#allocation3 + $0x40] sm:$0xff] %vm3416_vm7, %v22539_v46  ;;  %vm11438_vm7 = vcmask 1048352  }
 0x549   : > { %v3719_v54 = vpop.permute.xlu0 %3718  ;;  %v3753_v63 = vpop.permute.xlu1 %3752 }
 0x54d   : > { %v3647_v22 = vpop.permute.xlu0 %3646  ;;  %v3787_v0 = vpop.permute.xlu1 %3786 }
 0x54e   : > { %3656 = vst.msk [vmem:[#allocation3 + $0x8] sm:$0xff] %vm3655_vm8, %v3647_v22 }
 0x54f   : > { %3658 = vst.msk [vmem:[#allocation3 + $0x10] sm:$0xff] %vm3657_vm12, %v3647_v22 }
 0x550   : > { %3694 = vst.msk [vmem:[#allocation3 + $0x10] sm:$0xff] %vm3693_vm9, %v3685_v62 }
 0x551   : > { %3728 = vst.msk [vmem:[#allocation3 + $0x10] sm:$0xff] %vm3727_vm10, %v3719_v54  ;;  %v3821_v4 = vpop.permute.xlu0 %3820  ;;  %v3855_v35 = vpop.permute.xlu1 %3854 }
 0x552   : > { %3762 = vst.msk [vmem:[#allocation3 + $0x10] sm:$0xff] %vm3761_vm11, %v3753_v63 }
 0x553   : > { %3796 = vst.msk [vmem:[#allocation3 + $0x10] sm:$0xff] %vm3795_vm14, %v3787_v0 }
 0x554   : > { %3830 = vst.msk [vmem:[#allocation3 + $0x10] sm:$0xff] %vm3829_vm15, %v3821_v4 }
 0x555   : > { %3864 = vst.msk [vmem:[#allocation3 + $0x10] sm:$0xff] %vm3863_vm0, %v3855_v35  ;;  %v3687_v36 = vpop.permute.xlu0 %3686  ;;  %v3721_v1 = vpop.permute.xlu1 %3720 }
 0x556   : > { %3919 = vst.msk [vmem:[#allocation3 + $0x10] sm:$0xff] %vm3918_vm3, %v22549_v26 }
 0x559   : > { %v3755_v6 = vpop.permute.xlu0 %3754  ;;  %v3649_v38 = vpop.permute.xlu1 %3648 }
 0x55a   : > { %3659 = vst.msk [vmem:[#allocation3 + $0x28] sm:$0xff] %vm3655_vm8, %v3649_v38 }
 0x55b   : > { %3660 = vst.msk [vmem:[#allocation3 + $0x30] sm:$0xff] %vm3657_vm12, %v3649_v38 }
 0x55c   : > { %3695 = vst.msk [vmem:[#allocation3 + $0x30] sm:$0xff] %vm3693_vm9, %v3687_v36 }
 0x55d   : > { %v3926_v10 = vld [vmem:[#allocation3] ss:$8 sm:$0xf]  ;;  %v3928_v11 = vld [vmem:[#allocation3 + $0x1] ss:$8 sm:$0xf]  ;;  %v3789_v46 = vpop.permute.xlu0 %3788  ;;  %v3823_v16 = vpop.permute.xlu1 %3822 }
 0x55e   : > { %3729 = vst.msk [vmem:[#allocation3 + $0x30] sm:$0xff] %vm3727_vm10, %v3721_v1  ;;  %v3929_v13 = vmax.f32 %v3926_v10, %v3928_v11  ;;  %v3937_v14 = vld [vmem:[#allocation3 + $0x2] ss:$8 sm:$0xf] }
 0x55f   : > { %v3939_v15 = vld [vmem:[#allocation3 + $0x3] ss:$8 sm:$0xf]  ;;  %3763 = vst.msk [vmem:[#allocation3 + $0x30] sm:$0xff] %vm3761_vm11, %v3755_v6 }
 0x560   : > { %v3940_v18 = vmax.f32 %v3937_v14, %v3939_v15  ;;  %v3945_v33 = vld [vmem:[#allocation3 + $0x4] ss:$8 sm:$0xf]  ;;  %v3947_v20 = vld [vmem:[#allocation3 + $0x5] ss:$8 sm:$0xf] }
 0x561   : > { %3797 = vst.msk [vmem:[#allocation3 + $0x30] sm:$0xff] %vm3795_vm14, %v3789_v46  ;;  %v3948_v28 = vmax.f32 %v3945_v33, %v3947_v20  ;;  %v3953_v21 = vld [vmem:[#allocation3 + $0x6] ss:$8 sm:$0xf]  ;;  %v3857_v24 = vpop.permute.xlu0 %3856  ;;  %v3689_v25 = vpop.permute.xlu1 %3688 }
 0x562   : > { %v3955_v37 = vld [vmem:[#allocation3 + $0x7] ss:$8 sm:$0xf]  ;;  %3934 = vst.msk [vmem:[#allocation4] ss:$8 sm:$0xf] %vm22596_vm4, %v3929_v13 }
 0x563   : > { %3831 = vst.msk [vmem:[#allocation3 + $0x30] sm:$0xff] %vm3829_vm15, %v3823_v16  ;;  %v3956_v23 = vmax.f32 %v3953_v21, %v3955_v37 }
 0x564   : > { %3942 = vst.msk [vmem:[#allocation4 + $0x1] ss:$8 sm:$0xf] %vm22596_vm4, %v3940_v18  ;;  %3950 = vst.msk [vmem:[#allocation4 + $0x2] ss:$8 sm:$0xf] %vm22596_vm4, %v3948_v28 }
 0x565   : > { %3958 = vst.msk [vmem:[#allocation4 + $0x3] ss:$8 sm:$0xf] %vm22596_vm4, %v3956_v23  ;;  %v3723_v56 = vpop.permute.xlu0 %3722  ;;  %v3757_v26 = vpop.permute.xlu1 %3756 }
 0x566   : > { %3865 = vst.msk [vmem:[#allocation3 + $0x30] sm:$0xff] %vm3863_vm0, %v3857_v24 }
 0x567   : > { %3922 = vst.msk [vmem:[#allocation3 + $0x30] sm:$0xff] %vm3918_vm3, %v22554_v29 }
 0x569   : > { %v3651_v27 = vpop.permute.xlu0 %3650  ;;  %v3791_v30 = vpop.permute.xlu1 %3790 }
 0x56a   : > { %3661 = vst.msk [vmem:[#allocation3 + $0x48] sm:$0xff] %vm3655_vm8, %v3651_v27  ;;  %vm11440_vm8 = vcmask 179200  }
 0x56b   : > { %3662 = vst.msk [vmem:[#allocation3 + $0x50] sm:$0xff] %vm3657_vm12, %v3651_v27 }
 0x56c   : > { %3696 = vst.msk [vmem:[#allocation3 + $0x50] sm:$0xff] %vm3693_vm9, %v3689_v25  ;;  %vm11457_vm9 = vcmask 588976  }
 0x56d   : > { %3730 = vst.msk [vmem:[#allocation3 + $0x50] sm:$0xff] %vm3727_vm10, %v3723_v56  ;;  %v3825_v47 = vpop.permute.xlu0 %3824  ;;  %v3859_v17 = vpop.permute.xlu1 %3858  ;;  %vm11485_vm10 = vcmask 48128  }
 0x56e   : > { %v3961_v31 = vld [vmem:[#allocation3 + $0x20] ss:$8 sm:$0xf]  ;;  %v3963_v3 = vld [vmem:[#allocation3 + $0x21] ss:$8 sm:$0xf] }
 0x56f   : > { %v3964_v44 = vmax.f32 %v3961_v31, %v3963_v3  ;;  %v3969_v32 = vld [vmem:[#allocation3 + $0x22] ss:$8 sm:$0xf]  ;;  %v3971_v34 = vld [vmem:[#allocation3 + $0x23] ss:$8 sm:$0xf] }
 0x570   : > { %v3972_v41 = vmax.f32 %v3969_v32, %v3971_v34  ;;  %v3977_v40 = vld [vmem:[#allocation3 + $0x24] ss:$8 sm:$0xf]  ;;  %v3979_v43 = vld [vmem:[#allocation3 + $0x25] ss:$8 sm:$0xf] }
 0x571   : > { %v3980_v29 = vmax.f32 %v3977_v40, %v3979_v43  ;;  %v3985_v45 = vld [vmem:[#allocation3 + $0x26] ss:$8 sm:$0xf]  ;;  %v3987_v42 = vld [vmem:[#allocation3 + $0x27] ss:$8 sm:$0xf]  ;;  %v3906_v55 = vpop.permute.xlu0 %3905  ;;  %v3908_v57 = vpop.permute.xlu1 %3907 }
 0x572   : > { %3966 = vst.msk [vmem:[#allocation4 + $0x4] ss:$8 sm:$0xf] %vm22596_vm4, %v3964_v44  ;;  %v3988_v51 = vmax.f32 %v3985_v45, %v3987_v42  ;;  %3974 = vst.msk [vmem:[#allocation4 + $0x5] ss:$8 sm:$0xf] %vm22596_vm4, %v3972_v41  ;;  %v3911_v58 = vsel %vm3657_vm12, %v3906_v55, %v3908_v57 }
 0x573   : > { %3764 = vst.msk [vmem:[#allocation3 + $0x50] sm:$0xff] %vm3761_vm11, %v3757_v26  ;;  %v18698_v3 = vld [vmem:[#allocation18 + $0x580] ss:$28 sps:$4 sm:$0xff]   ;;  %v18704_v43 = vld [vmem:[#allocation18 + $0x5b8] ss:$28 sps:$4 sm:$0xff]   ;;  %vm11418_vm12 = vcmask 637952  }
 0x574   : > { %3798 = vst.msk [vmem:[#allocation3 + $0x50] sm:$0xff] %vm3795_vm14, %v3791_v30  ;;  %v18701_v44 = vld [vmem:[#allocation18 + $0x900] ss:$28 sps:$4 sm:$0xff]   ;;  %v18712_v45 = vld [vmem:[#allocation18 + $0x5f4] ss:$28 sps:$4 sm:$0xff]   ;;  %vm11506_vm11 = vcmask 687104  }
 0x575   : > { %3982 = vst.msk [vmem:[#allocation4 + $0x6] ss:$8 sm:$0xf] %vm22596_vm4, %v3980_v29  ;;  %3990 = vst.msk [vmem:[#allocation4 + $0x7] ss:$8 sm:$0xf] %vm22596_vm4, %v3988_v51 }
 0x576   : > { %3832 = vst.msk [vmem:[#allocation3 + $0x50] sm:$0xff] %vm3829_vm15, %v3825_v47  ;;  %v18706_v41 = vld [vmem:[#allocation18 + $0x5bc] ss:$28 sps:$4 sm:$0xff]   ;;  %v18715_v42 = vld [vmem:[#allocation18 + $0x974] ss:$28 sps:$4 sm:$0xff]   ;;  %vm11509_vm14 = vcmask 769376  }
 0x577   : > { %3866 = vst.msk [vmem:[#allocation3 + $0x50] sm:$0xff] %vm3863_vm0, %v3859_v17  ;;  %v18709_v40 = vld [vmem:[#allocation18 + $0x93c] ss:$28 sps:$4 sm:$0xff]   ;;  %v18710_v47 = vld [vmem:[#allocation18 + $0x5f0] ss:$28 sps:$4 sm:$0xff]   ;;  %vm11469_vm15 = vcmask 998976  }
 0x578   : > { %3924 = vst.msk [vmem:[#allocation3 + $0x50] sm:$0xff] %vm3918_vm3, %v3906_v55  ;;  %v18707_v29 = vld [vmem:[#allocation18 + $0x938] ss:$28 sps:$4 sm:$0xff]   ;;  %v18713_v17 = vld [vmem:[#allocation18 + $0x970] ss:$28 sps:$4 sm:$0xff]   ;;  %vm11489_vm0 = vcmask 1048528  }
 0x579   : > { %3925 = vst.msk [vmem:[#allocation3 + $0x58] sm:$0xff] %vm3920_vm13, %v3911_v58  ;;  %v18718_v51 = vld [vmem:[#allocation18 + $0x62c] ss:$28 sps:$4 sm:$0xff]   ;;  %vm11526_vm3 = vcmask 1048304  }
 0x57a   : > { %v18721_v55 = vld [vmem:[#allocation18 + $0x9ac] ss:$28 sps:$4 sm:$0xff]  }
 0x57b   : > { %v18716_v57 = vld [vmem:[#allocation18 + $0x628] ss:$28 sps:$4 sm:$0xff]  }
 0x57c   : > { %v4233_v35 = vld [vmem:[#allocation4 + $0x8] sm:$0xfe]  ;;  %v4235_v36 = vld [vmem:[#allocation4 + $0x18] sm:$0xfe]  ;;  %v4232_v1 = vld [vmem:[#allocation4] sm:$0xfe] }
 0x57d   : > { %v4234_v15 = vld [vmem:[#allocation4 + $0x10] sm:$0xfe]  ;;  %v18719_v58 = vld [vmem:[#allocation18 + $0x9a8] ss:$28 sps:$4 sm:$0xff]  }
 0x580   : > { %v3993_v19 = vld [vmem:[#allocation3 + $0x40] ss:$8 sm:$0xf]  ;;  %v3995_v5 = vld [vmem:[#allocation3 + $0x41] ss:$8 sm:$0xf] }
 0x581   : > { %v3996_v59 = vmax.f32 %v3993_v19, %v3995_v5  ;;  %v4001_v60 = vld [vmem:[#allocation3 + $0x42] ss:$8 sm:$0xf]  ;;  %v4003_v52 = vld [vmem:[#allocation3 + $0x43] ss:$8 sm:$0xf] }
 0x582   : > { %v4004_v61 = vmax.f32 %v4001_v60, %v4003_v52  ;;  %v4009_v62 = vld [vmem:[#allocation3 + $0x44] ss:$8 sm:$0xf]  ;;  %v4011_v54 = vld [vmem:[#allocation3 + $0x45] ss:$8 sm:$0xf] }
 0x583   : > { %3998 = vst.msk [vmem:[#allocation4 + $0x20] ss:$8 sm:$0xf] %vm22596_vm4, %v3996_v59  ;;  %v4012_v63 = vmax.f32 %v4009_v62, %v4011_v54  ;;  %v4017_v22 = vld [vmem:[#allocation3 + $0x46] ss:$8 sm:$0xf] }
 0x584   : > { %v4019_v0 = vld [vmem:[#allocation3 + $0x47] ss:$8 sm:$0xf]  ;;  %4006 = vst.msk [vmem:[#allocation4 + $0x21] ss:$8 sm:$0xf] %vm22596_vm4, %v4004_v61 }
 0x585   : > { %v4020_v4 = vmax.f32 %v4017_v22, %v4019_v0  ;;  %4014 = vst.msk [vmem:[#allocation4 + $0x22] ss:$8 sm:$0xf] %vm22596_vm4, %v4012_v63  ;;  %v18724_v19 = vld [vmem:[#allocation18 + $0x664] ss:$28 sps:$4 sm:$0xff]  }
 0x586   : > { %v18727_v5 = vld [vmem:[#allocation18 + $0x9e4] ss:$28 sps:$4 sm:$0xff]   ;;  %v18730_v52 = vld [vmem:[#allocation18 + $0x69c] ss:$28 sps:$4 sm:$0xff]   ;;  %v18736_v63 = vld [vmem:[#allocation18 + $0x6d4] ss:$28 sps:$4 sm:$0xff]  }
 0x587   : > { %4022 = vst.msk [vmem:[#allocation4 + $0x23] ss:$8 sm:$0xf] %vm22596_vm4, %v4020_v4  ;;  %v18722_v59 = vld [vmem:[#allocation18 + $0x660] ss:$28 sps:$4 sm:$0xff]  }
 0x588   : > { %v18725_v60 = vld [vmem:[#allocation18 + $0x9e0] ss:$28 sps:$4 sm:$0xff]   ;;  %v18728_v62 = vld [vmem:[#allocation18 + $0x698] ss:$28 sps:$4 sm:$0xff]   ;;  %v18734_v0 = vld [vmem:[#allocation18 + $0x6d0] ss:$28 sps:$4 sm:$0xff]  }
 0x589   : > { %v18733_v61 = vld [vmem:[#allocation18 + $0xa1c] ss:$28 sps:$4 sm:$0xff]   ;;  %v18739_v22 = vld [vmem:[#allocation18 + $0xa54] ss:$28 sps:$4 sm:$0xff]  }
 0x58a   : > { %v4237_v6 = vld [vmem:[#allocation4 + $0x28] sm:$0x1]  ;;  %v4239_v38 = vld [vmem:[#allocation4 + $0x38] sm:$0x1]  ;;  %v4236_v10 = vld [vmem:[#allocation4 + $0x20] sm:$0x1] }
 0x58b   : > { %v4241_v11 = vpack.c.bf16 %v4237_v6, %v4233_v35  ;;  %v4243_v13 = vpack.c.bf16 %v4239_v38, %v4235_v36  ;;  %v4240_v14 = vpack.c.bf16 %v4236_v10, %v4232_v1  ;;  %v4238_v46 = vld [vmem:[#allocation4 + $0x30] sm:$0x1]  ;;  %v18731_v54 = vld [vmem:[#allocation18 + $0xa18] ss:$28 sps:$4 sm:$0xff]   ;;  %v18742_v35 = vld [vmem:[#allocation18 + $0x70c] ss:$28 sps:$4 sm:$0xff]  }
 0x58c   : > { %v4242_v16 = vpack.c.bf16 %v4238_v46, %v4234_v15  ;;  %v18737_v4 = vld [vmem:[#allocation18 + $0xa50] ss:$28 sps:$4 sm:$0xff]   ;;  %v18740_v1 = vld [vmem:[#allocation18 + $0x708] ss:$28 sps:$4 sm:$0xff]   ;;  %v18752_v46 = vld [vmem:[#allocation18 + $0x778] ss:$28 sps:$4 sm:$0xff]  }
 0x58d   : > { %v4455_v18 = vshll.u32 %v4241_v11, 16  ;;  %v4469_v33 = vshll.u32 %v4243_v13, 16  ;;  %v4448_v20 = vshll.u32 %v4240_v14, 16  ;;  %v4453_v21 = vshrl.u32 %v4241_v11, 16  ;;  %v18745_v36 = vld [vmem:[#allocation18 + $0xa8c] ss:$28 sps:$4 sm:$0xff]  }
 0x58e   : > { %v4462_v28 = vshll.u32 %v4242_v16, 16  ;;  %v4467_v23 = vshrl.u32 %v4243_v13, 16  ;;  %v4446_v25 = vshrl.u32 %v4240_v14, 16  ;;  %v4460_v26 = vshrl.u32 %v4242_v16, 16  ;;  %v18743_v6 = vld [vmem:[#allocation18 + $0xa88] ss:$28 sps:$4 sm:$0xff]  }
 0x58f   : > { %v4457_v37 = vrot.slane %v4455_v18, 1  ;;  %v4471_v24 = vrot.slane %v4469_v33, 1  ;;  %v4450_v56 = vrot.slane %v4448_v20, 1  ;;  %v18748_v38 = vld [vmem:[#allocation18 + $0x744] ss:$28 sps:$4 sm:$0xff]  }
 0x590   : > { %v4464_v27 = vrot.slane %v4462_v28, 1  ;;  %v18751_v10 = vld [vmem:[#allocation18 + $0xac4] ss:$28 sps:$4 sm:$0xff]   ;;  %v18754_v14 = vld [vmem:[#allocation18 + $0x77c] ss:$28 sps:$4 sm:$0xff]  }
 0x591   : > { %v22643_v30 = vor.u32 %v4457_v37, %v4453_v21  ;;  %v22645_v31 = vor.u32 %v4471_v24, %v4467_v23  ;;  %v22647_v32 = vor.u32 %v4450_v56, %v4446_v25  ;;  %v18746_v11 = vld [vmem:[#allocation18 + $0x740] ss:$28 sps:$4 sm:$0xff]   ;;  %v18757_v15 = vld [vmem:[#allocation18 + $0x58c] ss:$28 sps:$4 sm:$0xff]   ;;  %v18760_v18 = vld [vmem:[#allocation18 + $0x7b4] ss:$28 sps:$4 sm:$0xff]  }
 0x592   : > { %v22649_v34 = vor.u32 %v4464_v27, %v4460_v26  ;;  %v18749_v13 = vld [vmem:[#allocation18 + $0xac0] ss:$28 sps:$4 sm:$0xff]   ;;  %v18755_v16 = vld [vmem:[#allocation18 + $0x588] ss:$28 sps:$4 sm:$0xff]   ;;  %v18758_v20 = vld [vmem:[#allocation18 + $0x7b0] ss:$28 sps:$4 sm:$0xff]  }
 0x593   : > { %5411 = vmatprep.mubr.bf16.mxu1 %v22643_v30  ;;  %16458 = vmatprep.mubr.msk.bf16.mxu0 %vm3920_vm13, %v22645_v31  ;;  %v18763_v33 = vld [vmem:[#allocation18 + $0x5c4] ss:$28 sps:$4 sm:$0xff]   ;;  %v18766_v21 = vld [vmem:[#allocation18 + $0x7ec] ss:$28 sps:$4 sm:$0xff]   ;;  %v18769_v37 = vld [vmem:[#allocation18 + $0x5fc] ss:$28 sps:$4 sm:$0xff]  }
 0x594   : > { %5412 = vmatmul.mubr.bf16.vlgmr.msra.gmra.mrb[40].mxu1 %v22647_v32  ;;  %5453 = vmatmul.mubr.bf16.vlgmr.msra.gmra.mrb[56].mxu0 %v22649_v34  ;;  %v18761_v28 = vld [vmem:[#allocation18 + $0x5c0] ss:$28 sps:$4 sm:$0xff]   ;;  %v18764_v23 = vld [vmem:[#allocation18 + $0x7e8] ss:$28 sps:$4 sm:$0xff]   ;;  %v18767_v24 = vld [vmem:[#allocation18 + $0x5f8] ss:$28 sps:$4 sm:$0xff]  }
 0x595   : > { %5462 = vmatpush1.bf16.msra.mxu0 %v18698_v3  ;;  %5503 = vmatpush1.bf16.msra.mxu1 %v18701_v44  ;;  %v18772_v25 = vld [vmem:[#allocation18 + $0x824] ss:$28 sps:$4 sm:$0xff]   ;;  %v18775_v56 = vld [vmem:[#allocation18 + $0x634] ss:$28 sps:$4 sm:$0xff]   ;;  %v18778_v3 = vld [vmem:[#allocation18 + $0x85c] ss:$28 sps:$4 sm:$0xff]  }
 0x596   : > { %5493 = vmatprep.mubr.bf16.mxu0 %v22643_v30  ;;  %16459 = vmatprep.mubr.msk.bf16.mxu1 %vm3920_vm13, %v22645_v31  ;;  %v18770_v26 = vld [vmem:[#allocation18 + $0x820] ss:$28 sps:$4 sm:$0xff]   ;;  %v18773_v27 = vld [vmem:[#allocation18 + $0x630] ss:$28 sps:$4 sm:$0xff]  }
 0x597   : > { %5463 = vmatprep.subr.bf16.mxu0 %v18706_v41  ;;  %5504 = vmatprep.subr.bf16.mxu1 %v18709_v40  ;;  %v18781_v44 = vld [vmem:[#allocation18 + $0x66c] ss:$28 sps:$4 sm:$0xff]   ;;  %v18776_v41 = vld [vmem:[#allocation18 + $0x858] ss:$28 sps:$4 sm:$0xff]  }
 0x598   : > { %v18779_v40 = vld [vmem:[#allocation18 + $0x668] ss:$28 sps:$4 sm:$0xff]  }
 0x599   : > { %5464 = vmatpush1.bf16.msra.mxu0 %v18704_v43  ;;  %5505 = vmatpush1.bf16.msra.mxu1 %v18707_v29  ;;  %v18784_v43 = vld [vmem:[#allocation18 + $0x894] ss:$28 sps:$4 sm:$0xff]   ;;  %v18787_v29 = vld [vmem:[#allocation18 + $0x6a4] ss:$28 sps:$4 sm:$0xff]  }
 0x59a   : > { %5465 = vmatprep.subr.bf16.mxu0 %v18712_v45  ;;  %5506 = vmatprep.subr.bf16.mxu1 %v18715_v42  ;;  %v18782_v45 = vld [vmem:[#allocation18 + $0x890] ss:$28 sps:$4 sm:$0xff]   ;;  %v18785_v42 = vld [vmem:[#allocation18 + $0x6a0] ss:$28 sps:$4 sm:$0xff]  }
 0x59d   : > { %5466 = vmatpush1.bf16.msra.mxu0 %v18710_v47  ;;  %5507 = vmatpush1.bf16.msra.mxu1 %v18713_v17  ;;  %v18790_v47 = vld [vmem:[#allocation18 + $0x8cc] ss:$28 sps:$4 sm:$0xff]   ;;  %v18793_v17 = vld [vmem:[#allocation18 + $0x6dc] ss:$28 sps:$4 sm:$0xff]  }
 0x59e   : > { %5467 = vmatprep.subr.bf16.mxu0 %v18718_v51  ;;  %5508 = vmatprep.subr.bf16.mxu1 %v18721_v55  ;;  %v18788_v51 = vld [vmem:[#allocation18 + $0x8c8] ss:$28 sps:$4 sm:$0xff]   ;;  %v18791_v55 = vld [vmem:[#allocation18 + $0x6d8] ss:$28 sps:$4 sm:$0xff]  }
 0x5a1   : > { %5468 = vmatpush1.bf16.msra.mxu0 %v18716_v57  ;;  %5509 = vmatpush1.bf16.msra.mxu1 %v18719_v58  ;;  %v18796_v57 = vld [vmem:[#allocation18 + $0x714] ss:$28 sps:$4 sm:$0xff]   ;;  %v18799_v58 = vld [vmem:[#allocation18 + $0x90c] ss:$28 sps:$4 sm:$0xff]  }
 0x5a2   : > { %5469 = vmatprep.subr.bf16.mxu0 %v18724_v19  ;;  %5510 = vmatprep.subr.bf16.mxu1 %v18727_v5  ;;  %v18794_v19 = vld [vmem:[#allocation18 + $0x710] ss:$28 sps:$4 sm:$0xff]   ;;  %v18797_v5 = vld [vmem:[#allocation18 + $0x908] ss:$28 sps:$4 sm:$0xff]  }
 0x5a5   : > { %5470 = vmatpush1.bf16.msra.mxu0 %v18722_v59  ;;  %5511 = vmatpush1.bf16.msra.mxu1 %v18725_v60  ;;  %v18802_v59 = vld [vmem:[#allocation18 + $0x74c] ss:$28 sps:$4 sm:$0xff]   ;;  %v18805_v60 = vld [vmem:[#allocation18 + $0x944] ss:$28 sps:$4 sm:$0xff]  }
 0x5a6   : > { %5471 = vmatprep.subr.bf16.mxu0 %v18730_v52  ;;  %5512 = vmatprep.subr.bf16.mxu1 %v18733_v61  ;;  %v18800_v52 = vld [vmem:[#allocation18 + $0x748] ss:$28 sps:$4 sm:$0xff]   ;;  %v18803_v61 = vld [vmem:[#allocation18 + $0x940] ss:$28 sps:$4 sm:$0xff]  }
 0x5a9   : > { %5472 = vmatpush1.bf16.msra.mxu0 %v18728_v62  ;;  %5513 = vmatpush1.bf16.msra.mxu1 %v18731_v54  ;;  %v18808_v62 = vld [vmem:[#allocation18 + $0x784] ss:$28 sps:$4 sm:$0xff]   ;;  %v18811_v54 = vld [vmem:[#allocation18 + $0x97c] ss:$28 sps:$4 sm:$0xff]  }
 0x5aa   : > { %5473 = vmatprep.subr.bf16.mxu0 %v18736_v63  ;;  %5514 = vmatprep.subr.bf16.mxu1 %v18739_v22  ;;  %v18806_v63 = vld [vmem:[#allocation18 + $0x780] ss:$28 sps:$4 sm:$0xff]   ;;  %v18809_v22 = vld [vmem:[#allocation18 + $0x978] ss:$28 sps:$4 sm:$0xff]  }
 0x5ad   : > { %5474 = vmatpush1.bf16.msra.mxu0 %v18734_v0  ;;  %5515 = vmatpush1.bf16.msra.mxu1 %v18737_v4  ;;  %v18814_v0 = vld [vmem:[#allocation18 + $0x7bc] ss:$28 sps:$4 sm:$0xff]   ;;  %v18817_v4 = vld [vmem:[#allocation18 + $0x9b4] ss:$28 sps:$4 sm:$0xff]  }
 0x5ae   : > { %5475 = vmatprep.subr.bf16.mxu0 %v18742_v35  ;;  %5516 = vmatprep.subr.bf16.mxu1 %v18745_v36  ;;  %v18812_v35 = vld [vmem:[#allocation18 + $0x7b8] ss:$28 sps:$4 sm:$0xff]   ;;  %v18815_v36 = vld [vmem:[#allocation18 + $0x9b0] ss:$28 sps:$4 sm:$0xff]  }
 0x5b1   : > { %5476 = vmatpush1.bf16.msra.mxu0 %v18740_v1  ;;  %5517 = vmatpush1.bf16.msra.mxu1 %v18743_v6  ;;  %v18820_v1 = vld [vmem:[#allocation18 + $0x7f4] ss:$28 sps:$4 sm:$0xff]   ;;  %v18823_v6 = vld [vmem:[#allocation18 + $0x9ec] ss:$28 sps:$4 sm:$0xff]  }
 0x5b2   : > { %5477 = vmatprep.subr.bf16.mxu0 %v18748_v38  ;;  %5518 = vmatprep.subr.bf16.mxu1 %v18751_v10  ;;  %v18818_v38 = vld [vmem:[#allocation18 + $0x7f0] ss:$28 sps:$4 sm:$0xff]   ;;  %v18821_v10 = vld [vmem:[#allocation18 + $0x9e8] ss:$28 sps:$4 sm:$0xff]  }
 0x5b5   : > { %5478 = vmatpush1.bf16.msra.mxu0 %v18746_v11  ;;  %5519 = vmatpush1.bf16.msra.mxu1 %v18749_v13  ;;  %v18826_v11 = vld [vmem:[#allocation18 + $0x82c] ss:$28 sps:$4 sm:$0xff]   ;;  %v18829_v13 = vld [vmem:[#allocation18 + $0xa24] ss:$28 sps:$4 sm:$0xff]  }
 0x5b6   : > { %5479 = vmatprep.subr.bf16.mxu0 %v18754_v14  ;;  %5543 = vmatprep.subr.bf16.mxu1 %v18757_v15  ;;  %v18824_v14 = vld [vmem:[#allocation18 + $0x828] ss:$28 sps:$4 sm:$0xff]   ;;  %v18827_v15 = vld [vmem:[#allocation18 + $0xa20] ss:$28 sps:$4 sm:$0xff]  }
 0x5b8   : > { %5535 = vmatmul.mubr.bf16.vlgmr.msra.gmra.mrb[44].mxu1 %v22649_v34 }
 0x5b9   : > { %5480 = vmatpush1.bf16.msra.mxu0 %v18752_v46  ;;  %5544 = vmatpush1.bf16.msra.mxu1 %v18755_v16  ;;  %v18832_v46 = vld [vmem:[#allocation18 + $0x864] ss:$28 sps:$4 sm:$0xff]   ;;  %v18835_v16 = vld [vmem:[#allocation18 + $0xa5c] ss:$28 sps:$4 sm:$0xff]  }
 0x5ba   : > { %5575 = vmatprep.mubr.bf16.mxu1 %v22643_v30  ;;  %5481 = vmatprep.subr.bf16.mxu0 %v18760_v18  ;;  %v18830_v18 = vld [vmem:[#allocation18 + $0x860] ss:$28 sps:$4 sm:$0xff]  }
 0x5bb   : > { %5545 = vmatprep.subr.bf16.mxu1 %v18763_v33  ;;  %v18833_v33 = vld [vmem:[#allocation18 + $0xa58] ss:$28 sps:$4 sm:$0xff]  }
 0x5bd   : > { %5482 = vmatpush1.bf16.msra.mxu0 %v18758_v20  ;;  %5546 = vmatpush1.bf16.msra.mxu1 %v18761_v28  ;;  %v18838_v20 = vld [vmem:[#allocation18 + $0x89c] ss:$28 sps:$4 sm:$0xff]   ;;  %v18841_v28 = vld [vmem:[#allocation18 + $0xa94] ss:$28 sps:$4 sm:$0xff]  }
 0x5be   : > { %5483 = vmatprep.subr.bf16.mxu0 %v18766_v21  ;;  %5547 = vmatprep.subr.bf16.mxu1 %v18769_v37  ;;  %v18836_v21 = vld [vmem:[#allocation18 + $0x898] ss:$28 sps:$4 sm:$0xff]   ;;  %v18839_v37 = vld [vmem:[#allocation18 + $0xa90] ss:$28 sps:$4 sm:$0xff]  }
 0x5c1   : > { %5484 = vmatpush1.bf16.msra.mxu0 %v18764_v23  ;;  %5548 = vmatpush1.bf16.msra.mxu1 %v18767_v24  ;;  %v18844_v23 = vld [vmem:[#allocation18 + $0x8d4] ss:$28 sps:$4 sm:$0xff]   ;;  %v18847_v24 = vld [vmem:[#allocation18 + $0xacc] ss:$28 sps:$4 sm:$0xff]  }
 0x5c2   : > { %5485 = vmatprep.subr.bf16.mxu0 %v18772_v25  ;;  %5549 = vmatprep.subr.bf16.mxu1 %v18775_v56  ;;  %v18842_v25 = vld [vmem:[#allocation18 + $0x8d0] ss:$28 sps:$4 sm:$0xff]   ;;  %v18845_v56 = vld [vmem:[#allocation18 + $0xac8] ss:$28 sps:$4 sm:$0xff]  }
 0x5c5   : > { %5486 = vmatpush1.bf16.msra.mxu0 %v18770_v26  ;;  %5550 = vmatpush1.bf16.msra.mxu1 %v18773_v27  ;;  %v18848_v26 = vld [vmem:[#allocation18 + $0x750] ss:$28 sps:$4 sm:$0xff]  }
 0x5c6   : > { %5487 = vmatprep.subr.bf16.mxu0 %v18778_v3  ;;  %5551 = vmatprep.subr.bf16.mxu1 %v18781_v44  ;;  %v18849_v27 = vld [vmem:[#allocation18 + $0x590] ss:$28 sps:$4 sm:$0xff]   ;;  %v18851_v44 = vld [vmem:[#allocation18 + $0x788] ss:$28 sps:$4 sm:$0xff]  }
 0x5c7   : > { %v18850_v3 = vld [vmem:[#allocation18 + $0x910] ss:$28 sps:$4 sm:$0xff]  }
 0x5c9   : > { %5488 = vmatpush1.bf16.msra.mxu0 %v18776_v41  ;;  %5552 = vmatpush1.bf16.msra.mxu1 %v18779_v40  ;;  %v18852_v41 = vld [vmem:[#allocation18 + $0x5c8] ss:$28 sps:$4 sm:$0xff]  }
 0x5ca   : > { %5489 = vmatprep.subr.bf16.mxu0 %v18784_v43  ;;  %5553 = vmatprep.subr.bf16.mxu1 %v18787_v29  ;;  %v18853_v40 = vld [vmem:[#allocation18 + $0x948] ss:$28 sps:$4 sm:$0xff]   ;;  %v18854_v43 = vld [vmem:[#allocation18 + $0x7c0] ss:$28 sps:$4 sm:$0xff]  }
 0x5cb   : > { %v18855_v29 = vld [vmem:[#allocation18 + $0x600] ss:$28 sps:$4 sm:$0xff]  }
 0x5cd   : > { %5490 = vmatpush1.bf16.msra.mxu0 %v18782_v45  ;;  %5554 = vmatpush1.bf16.msra.mxu1 %v18785_v42  ;;  %v18856_v45 = vld [vmem:[#allocation18 + $0x980] ss:$28 sps:$4 sm:$0xff]   ;;  %v18857_v42 = vld [vmem:[#allocation18 + $0x7f8] ss:$28 sps:$4 sm:$0xff]  }
 0x5ce   : > { %5491 = vmatprep.subr.bf16.mxu0 %v18790_v47  ;;  %5555 = vmatprep.subr.bf16.mxu1 %v18793_v17  ;;  %v18859_v47 = vld [vmem:[#allocation18 + $0x9b8] ss:$28 sps:$4 sm:$0xff]   ;;  %v18860_v17 = vld [vmem:[#allocation18 + $0x830] ss:$28 sps:$4 sm:$0xff]  }
 0x5d1   : > { %5492 = vmatpush1.bf16.msra.mxu0 %v18788_v51  ;;  %5556 = vmatpush1.bf16.msra.mxu1 %v18791_v55  ;;  %v18862_v51 = vld [vmem:[#allocation18 + $0x9f0] ss:$28 sps:$4 sm:$0xff]   ;;  %v18863_v55 = vld [vmem:[#allocation18 + $0x868] ss:$28 sps:$4 sm:$0xff]  }
 0x5d2   : > { %5557 = vmatprep.subr.bf16.mxu1 %v18796_v57  ;;  %5584 = vmatprep.subr.bf16.mxu0 %v18799_v58  ;;  %v18864_v57 = vld [vmem:[#allocation18 + $0x6a8] ss:$28 sps:$4 sm:$0xff]  }
 0x5d3   : > { %v18865_v58 = vld [vmem:[#allocation18 + $0xa28] ss:$28 sps:$4 sm:$0xff]  }
 0x5d4   : > { %5494 = vmatmul.mubr.bf16.vlgmr.msra.gmra.mrb[60].mxu0 %v22647_v32 }
 0x5d5   : > { %5558 = vmatpush1.bf16.msra.mxu1 %v18794_v19  ;;  %5585 = vmatpush1.bf16.msra.mxu0 %v18797_v5  ;;  %v18866_v19 = vld [vmem:[#allocation18 + $0x8a0] ss:$28 sps:$4 sm:$0xff]  }
 0x5d6   : > { %16460 = vmatprep.mubr.msk.bf16.mxu0 %vm3920_vm13, %v22645_v31  ;;  %5559 = vmatprep.subr.bf16.mxu1 %v18802_v59  ;;  %v18867_v5 = vld [vmem:[#allocation18 + $0x6e0] ss:$28 sps:$4 sm:$0xff]  }
 0x5d7   : > { %5586 = vmatprep.subr.bf16.mxu0 %v18805_v60  ;;  %v18868_v59 = vld [vmem:[#allocation18 + $0xa60] ss:$28 sps:$4 sm:$0xff]   ;;  %v18869_v60 = vld [vmem:[#allocation18 + $0x8d8] ss:$28 sps:$4 sm:$0xff]  }
 0x5d9   : > { %5560 = vmatpush1.bf16.msra.mxu1 %v18800_v52  ;;  %5587 = vmatpush1.bf16.msra.mxu0 %v18803_v61  ;;  %v18870_v52 = vld [vmem:[#allocation18 + $0x718] ss:$28 sps:$4 sm:$0xff]  }
 0x5da   : > { %5561 = vmatprep.subr.bf16.mxu1 %v18808_v62  ;;  %5588 = vmatprep.subr.bf16.mxu0 %v18811_v54  ;;  %v18871_v61 = vld [vmem:[#allocation18 + $0xa98] ss:$28 sps:$4 sm:$0xff]   ;;  %v18874_v62 = vld [vmem:[#allocation18 + $0x4] ss:$28 sps:$4 sm:$0xff]   ;;  %v4025_v54 = vld [vmem:[#allocation4 + $0x8] sm:$0xff] }
 0x5dd   : > { %5562 = vmatpush1.bf16.msra.mxu1 %v18806_v63  ;;  %5589 = vmatpush1.bf16.msra.mxu0 %v18809_v22  ;;  %v18872_v63 = vld [vmem:[#allocation18] ss:$28 sps:$4 sm:$0xff]   ;;  %v18875_v22 = vld [vmem:[#allocation18 + $0xad0] ss:$28 sps:$4 sm:$0xff]  }
 0x5de   : > { %5563 = vmatprep.subr.bf16.mxu1 %v18814_v0  ;;  %5590 = vmatprep.subr.bf16.mxu0 %v18817_v4  ;;  %v18878_v0 = vld [vmem:[#allocation18 + $0x3c] ss:$28 sps:$4 sm:$0xff]   ;;  %v22678_v4 = vpack.c.bf16 %v4025_v54, %v4025_v54 }
 0x5df   : > { %v18942_v54 = vld [vmem:[#allocation18 + $0x2a0] ss:$28 sps:$4 sm:$0xff]  }
 0x5e1   : > { %5564 = vmatpush1.bf16.msra.mxu1 %v18812_v35  ;;  %5591 = vmatpush1.bf16.msra.mxu0 %v18815_v36  ;;  %v18881_v35 = vld [vmem:[#allocation18 + $0x384] ss:$28 sps:$4 sm:$0xff]   ;;  %v18876_v36 = vld [vmem:[#allocation18 + $0x38] ss:$28 sps:$4 sm:$0xff]  }
 0x5e2   : > { %5565 = vmatprep.subr.bf16.mxu1 %v18820_v1  ;;  %5592 = vmatprep.subr.bf16.mxu0 %v18823_v6  ;;  %v4027_v1 = vld [vmem:[#allocation4 + $0x18] sm:$0xff] }
 0x5e3   : > { %v18879_v6 = vld [vmem:[#allocation18 + $0x380] ss:$28 sps:$4 sm:$0xff]  }
 0x5e5   : > { %5566 = vmatpush1.bf16.msra.mxu1 %v18818_v38  ;;  %5593 = vmatpush1.bf16.msra.mxu0 %v18821_v10  ;;  %v18884_v38 = vld [vmem:[#allocation18 + $0x74] ss:$28 sps:$4 sm:$0xff]   ;;  %v18887_v10 = vld [vmem:[#allocation18 + $0x3bc] ss:$28 sps:$4 sm:$0xff]  }
 0x5e6   : > { %5567 = vmatprep.subr.bf16.mxu1 %v18826_v11  ;;  %5594 = vmatprep.subr.bf16.mxu0 %v18829_v13  ;;  %v22682_v11 = vpack.c.bf16 %v4027_v1, %v4027_v1  ;;  %v18882_v13 = vld [vmem:[#allocation18 + $0x70] ss:$28 sps:$4 sm:$0xff]  }
 0x5e7   : > { %v18956_v1 = vld [vmem:[#allocation18 + $0x314] ss:$28 sps:$4 sm:$0xff]  }
 0x5e9   : > { %5568 = vmatpush1.bf16.msra.mxu1 %v18824_v14  ;;  %5595 = vmatpush1.bf16.msra.mxu0 %v18827_v15  ;;  %v18890_v14 = vld [vmem:[#allocation18 + $0xac] ss:$28 sps:$4 sm:$0xff]   ;;  %v18893_v15 = vld [vmem:[#allocation18 + $0x3f4] ss:$28 sps:$4 sm:$0xff]  }
 0x5ea   : > { %5569 = vmatprep.subr.bf16.mxu1 %v18832_v46  ;;  %5596 = vmatprep.subr.bf16.mxu0 %v18835_v16  ;;  %v18888_v46 = vld [vmem:[#allocation18 + $0xa8] ss:$28 sps:$4 sm:$0xff]   ;;  %v18891_v16 = vld [vmem:[#allocation18 + $0x3f0] ss:$28 sps:$4 sm:$0xff]  }
 0x5ed   : > { %5570 = vmatpush1.bf16.msra.mxu1 %v18830_v18  ;;  %5597 = vmatpush1.bf16.msra.mxu0 %v18833_v33  ;;  %v18896_v18 = vld [vmem:[#allocation18 + $0xe4] ss:$28 sps:$4 sm:$0xff]   ;;  %v18899_v33 = vld [vmem:[#allocation18 + $0x42c] ss:$28 sps:$4 sm:$0xff]  }
 0x5ee   : > { %5571 = vmatprep.subr.bf16.mxu1 %v18838_v20  ;;  %5598 = vmatprep.subr.bf16.mxu0 %v18841_v28  ;;  %v18897_v20 = vld [vmem:[#allocation18 + $0x428] ss:$28 sps:$4 sm:$0xff]   ;;  %v18902_v28 = vld [vmem:[#allocation18 + $0x11c] ss:$28 sps:$4 sm:$0xff]  }
 0x5f1   : > { %5572 = vmatpush1.bf16.msra.mxu1 %v18836_v21  ;;  %5599 = vmatpush1.bf16.msra.mxu0 %v18839_v37  ;;  %v18905_v21 = vld [vmem:[#allocation18 + $0x464] ss:$28 sps:$4 sm:$0xff]   ;;  %v18900_v37 = vld [vmem:[#allocation18 + $0x118] ss:$28 sps:$4 sm:$0xff]  }
 0x5f2   : > { %5573 = vmatprep.subr.bf16.mxu1 %v18844_v23  ;;  %5600 = vmatprep.subr.bf16.mxu0 %v18847_v24  ;;  %v18903_v23 = vld [vmem:[#allocation18 + $0x460] ss:$28 sps:$4 sm:$0xff]   ;;  %v18908_v24 = vld [vmem:[#allocation18 + $0x154] ss:$28 sps:$4 sm:$0xff]  }
 0x5f5   : > { %5574 = vmatpush1.bf16.msra.mxu1 %v18842_v25  ;;  %5601 = vmatpush1.bf16.msra.mxu0 %v18845_v56  ;;  %v18911_v25 = vld [vmem:[#allocation18 + $0x49c] ss:$28 sps:$4 sm:$0xff]   ;;  %v18906_v56 = vld [vmem:[#allocation18 + $0x150] ss:$28 sps:$4 sm:$0xff]  }
 0x5f6   : > { %17666 = vmatprep.subr.bf16.mxu0 %v18848_v26  ;;  %5665 = vmatprep.subr.bf16.mxu1 %v21279_v2  ;;  %v18909_v26 = vld [vmem:[#allocation18 + $0x498] ss:$28 sps:$4 sm:$0xff]  }
 0x5f8   : > { %5576 = vmatmul.mubr.bf16.vlgmr.msra.gmra.mrb[48].mxu1 %v22647_v32  ;;  %5617 = vmatmul.mubr.bf16.vlgmr.msra.gmra.mrb[64].mxu0 %v22649_v34 }
 0x5f9   : > { %17667 = vmatpush3.bf16.msra.mxu0 %v18849_v27  ;;  %5657 = vmatprep.mubr.bf16.mxu0 %v22643_v30  ;;  %v18858_v30 = vld [vmem:[#allocation18 + $0x638] ss:$28 sps:$4 sm:$0xff]   ;;  %v18914_v27 = vld [vmem:[#allocation18 + $0x18c] ss:$28 sps:$4 sm:$0xff]  }
 0x5fa   : > { %5666 = vmatpush1.bf16.msra.mxu1 %v18850_v3  ;;  %16461 = vmatprep.mubr.msk.bf16.mxu1 %vm3920_vm13, %v22645_v31  ;;  %v18861_v31 = vld [vmem:[#allocation18 + $0x670] ss:$28 sps:$4 sm:$0xff]  }
 0x5fb   : > { %17668 = vmatprep.subr.bf16.mxu0 %v18851_v44  ;;  %5667 = vmatprep.subr.bf16.mxu1 %v21279_v2  ;;  %v18917_v3 = vld [vmem:[#allocation18 + $0x4d4] ss:$28 sps:$4 sm:$0xff]   ;;  %v18912_v44 = vld [vmem:[#allocation18 + $0x188] ss:$28 sps:$4 sm:$0xff]  }
 0x5fd   : > { %17669 = vmatpush3.bf16.msra.mxu0 %v18852_v41  ;;  %v18915_v41 = vld [vmem:[#allocation18 + $0x4d0] ss:$28 sps:$4 sm:$0xff]  }
 0x5fe   : > { %5668 = vmatpush1.bf16.msra.mxu1 %v18853_v40  ;;  %17670 = vmatprep.subr.bf16.mxu0 %v18854_v43  ;;  %v18920_v40 = vld [vmem:[#allocation18 + $0x1c4] ss:$28 sps:$4 sm:$0xff]   ;;  %v18923_v43 = vld [vmem:[#allocation18 + $0x50c] ss:$28 sps:$4 sm:$0xff]  }
 0x5ff   : > { %5669 = vmatprep.subr.bf16.mxu1 %v21279_v2 }
 0x601   : > { %17671 = vmatpush3.bf16.msra.mxu0 %v18855_v29  ;;  %v18918_v29 = vld [vmem:[#allocation18 + $0x1c0] ss:$28 sps:$4 sm:$0xff]  }
 0x602   : > { %5670 = vmatpush1.bf16.msra.mxu1 %v18856_v45  ;;  %17672 = vmatprep.subr.bf16.mxu0 %v18857_v42  ;;  %v18921_v45 = vld [vmem:[#allocation18 + $0x508] ss:$28 sps:$4 sm:$0xff]   ;;  %v18926_v42 = vld [vmem:[#allocation18 + $0x1fc] ss:$28 sps:$4 sm:$0xff]  }
 0x603   : > { %5671 = vmatprep.subr.bf16.mxu1 %v21279_v2 }
 0x605   : > { %17673 = vmatpush3.bf16.msra.mxu0 %v18858_v30  ;;  %v18929_v30 = vld [vmem:[#allocation18 + $0x544] ss:$28 sps:$4 sm:$0xff]  }
 0x606   : > { %5672 = vmatpush1.bf16.msra.mxu1 %v18859_v47  ;;  %17674 = vmatprep.subr.bf16.mxu0 %v18860_v17  ;;  %v18924_v47 = vld [vmem:[#allocation18 + $0x1f8] ss:$28 sps:$4 sm:$0xff]   ;;  %v18927_v17 = vld [vmem:[#allocation18 + $0x540] ss:$28 sps:$4 sm:$0xff]  }
 0x607   : > { %5673 = vmatprep.subr.bf16.mxu1 %v21279_v2 }
 0x609   : > { %17675 = vmatpush3.bf16.msra.mxu0 %v18861_v31  ;;  %v18932_v31 = vld [vmem:[#allocation18 + $0x234] ss:$28 sps:$4 sm:$0xff]  }
 0x60a   : > { %5674 = vmatpush1.bf16.msra.mxu1 %v18862_v51  ;;  %17676 = vmatprep.subr.bf16.mxu0 %v18863_v55  ;;  %v18935_v51 = vld [vmem:[#allocation18 + $0xc] ss:$28 sps:$4 sm:$0xff]   ;;  %v4026_v55 = vld [vmem:[#allocation4 + $0x10] sm:$0xff] }
 0x60b   : > { %5675 = vmatprep.subr.bf16.mxu1 %v21279_v2 }
 0x60d   : > { %17677 = vmatpush3.bf16.msra.mxu0 %v18864_v57  ;;  %v18930_v57 = vld [vmem:[#allocation18 + $0x230] ss:$28 sps:$4 sm:$0xff]  }
 0x60e   : > { %5676 = vmatpush1.bf16.msra.mxu1 %v18865_v58  ;;  %17678 = vmatprep.subr.bf16.mxu0 %v18866_v19  ;;  %v18933_v58 = vld [vmem:[#allocation18 + $0x8] ss:$28 sps:$4 sm:$0xff]   ;;  %v22687_v19 = vpack.c.bf16 %v4026_v55, %v4026_v55 }
 0x60f   : > { %5677 = vmatprep.subr.bf16.mxu1 %v21279_v2 }
 0x611   : > { %17679 = vmatpush3.bf16.msra.mxu0 %v18867_v5  ;;  %v18938_v5 = vld [vmem:[#allocation18 + $0x26c] ss:$28 sps:$4 sm:$0xff]  }
 0x612   : > { %5678 = vmatpush1.bf16.msra.mxu1 %v18868_v59  ;;  %17680 = vmatprep.subr.bf16.mxu0 %v18869_v60  ;;  %v18941_v59 = vld [vmem:[#allocation18 + $0x44] ss:$28 sps:$4 sm:$0xff]  }
 0x613   : > { %5679 = vmatprep.subr.bf16.mxu1 %v21279_v2  ;;  %v18936_v60 = vld [vmem:[#allocation18 + $0x268] ss:$28 sps:$4 sm:$0xff]  }
 0x615   : > { %17681 = vmatpush3.bf16.msra.mxu0 %v18870_v52  ;;  %v18939_v52 = vld [vmem:[#allocation18 + $0x40] ss:$28 sps:$4 sm:$0xff]  }
 0x616   : > { %5680 = vmatpush1.bf16.msra.mxu1 %v18871_v61  ;;  %6608 = vmatprep.subr.bf16.mxu0 %v18874_v62  ;;  %v18944_v61 = vld [vmem:[#allocation18 + $0x2a4] ss:$28 sps:$4 sm:$0xff]   ;;  %v18947_v62 = vld [vmem:[#allocation18 + $0x7c] ss:$28 sps:$4 sm:$0xff]  }
 0x617   : > { %5681 = vmatprep.subr.bf16.mxu1 %v21279_v2 }
 0x618   : > { %5658 = vmatmul.mubr.bf16.vlgmr.msra.gmra.mrb[68].mxu0 %v22647_v32  ;;  %v18885_v32 = vld [vmem:[#allocation18 + $0x3b8] ss:$28 sps:$4 sm:$0xff]  }
 0x619   : > { %6609 = vmatpush1.bf16.msra.mxu0 %v18872_v63  ;;  %6640 = vmatprep.mubr.bf16.mxu0 %v22678_v4  ;;  %v18945_v63 = vld [vmem:[#allocation18 + $0x78] ss:$28 sps:$4 sm:$0xff]  }
 0x61a   : > { %5682 = vmatpush1.bf16.msra.mxu1 %v18875_v22  ;;  %6610 = vmatprep.subr.bf16.mxu0 %v18878_v0  ;;  %v18950_v22 = vld [vmem:[#allocation18 + $0x2dc] ss:$28 sps:$4 sm:$0xff]   ;;  %v18953_v0 = vld [vmem:[#allocation18 + $0xb4] ss:$28 sps:$4 sm:$0xff]  }
 0x61b   : > { %6649 = vmatprep.subr.bf16.mxu1 %v18881_v35  ;;  %v18948_v35 = vld [vmem:[#allocation18 + $0x2d8] ss:$28 sps:$4 sm:$0xff]  }
 0x61d   : > { %5698 = vmatmul.mubr.bf16.vlgmr.msra.gmra.mrb[52].mxu1 %v22649_v34  ;;  %6611 = vmatpush1.bf16.msra.mxu0 %v18876_v36  ;;  %v18894_v34 = vld [vmem:[#allocation18 + $0xe0] ss:$28 sps:$4 sm:$0xff]   ;;  %v18951_v36 = vld [vmem:[#allocation18 + $0xb0] ss:$28 sps:$4 sm:$0xff]  }
 0x61e   : > { %6650 = vmatpush1.bf16.msra.mxu1 %v18879_v6  ;;  %16637 = vmatprep.mubr.msk.bf16.mxu1 %vm3920_vm13, %v22682_v11  ;;  %v18959_v6 = vld [vmem:[#allocation18 + $0xec] ss:$28 sps:$4 sm:$0xff]  }
 0x61f   : > { %6612 = vmatprep.subr.bf16.mxu0 %v18884_v38  ;;  %6651 = vmatprep.subr.bf16.mxu1 %v18887_v10  ;;  %v18954_v38 = vld [vmem:[#allocation18 + $0x310] ss:$28 sps:$4 sm:$0xff]   ;;  %v18957_v10 = vld [vmem:[#allocation18 + $0xe8] ss:$28 sps:$4 sm:$0xff]  }
 0x621   : > { %6613 = vmatpush1.bf16.msra.mxu0 %v18882_v13  ;;  %v18962_v13 = vld [vmem:[#allocation18 + $0x34c] ss:$28 sps:$4 sm:$0xff]  }
 0x622   : > { %6652 = vmatpush1.bf16.msra.mxu1 %v18885_v32  ;;  %6614 = vmatprep.subr.bf16.mxu0 %v18890_v14  ;;  %v18965_v32 = vld [vmem:[#allocation18 + $0x124] ss:$28 sps:$4 sm:$0xff]  }
 0x623   : > { %6653 = vmatprep.subr.bf16.mxu1 %v18893_v15  ;;  %v18960_v14 = vld [vmem:[#allocation18 + $0x348] ss:$28 sps:$4 sm:$0xff]   ;;  %v18963_v15 = vld [vmem:[#allocation18 + $0x120] ss:$28 sps:$4 sm:$0xff]  }
 0x625   : > { %6615 = vmatpush1.bf16.msra.mxu0 %v18888_v46  ;;  %v18971_v46 = vld [vmem:[#allocation18 + $0x38c] ss:$28 sps:$4 sm:$0xff]  }
 0x626   : > { %6654 = vmatpush1.bf16.msra.mxu1 %v18891_v16  ;;  %6616 = vmatprep.subr.bf16.mxu0 %v18896_v18  ;;  %v4024_v16 = vld [vmem:[#allocation4] sm:$0xff]  ;;  %v18968_v18 = vld [vmem:[#allocation18 + $0x15c] ss:$28 sps:$4 sm:$0xff]  }
 0x627   : > { %6655 = vmatprep.subr.bf16.mxu1 %v18899_v33  ;;  %v18969_v33 = vld [vmem:[#allocation18 + $0x388] ss:$28 sps:$4 sm:$0xff]  }
 0x629   : > { %6617 = vmatpush1.bf16.msra.mxu0 %v18894_v34  ;;  %v22691_v34 = vpack.c.bf16 %v4024_v16, %v4024_v16  ;;  %v19028_v16 = vld [vmem:[#allocation18 + $0x4c] ss:$28 sps:$4 sm:$0xff]  }
 0x62a   : > { %6656 = vmatpush1.bf16.msra.mxu1 %v18897_v20  ;;  %6618 = vmatprep.subr.bf16.mxu0 %v18902_v28  ;;  %v18966_v20 = vld [vmem:[#allocation18 + $0x158] ss:$28 sps:$4 sm:$0xff]   ;;  %v18977_v28 = vld [vmem:[#allocation18 + $0x3c4] ss:$28 sps:$4 sm:$0xff]  }
 0x62b   : > { %6657 = vmatprep.subr.bf16.mxu1 %v18905_v21  ;;  %v18974_v21 = vld [vmem:[#allocation18 + $0x194] ss:$28 sps:$4 sm:$0xff]  }
 0x62d   : > { %6619 = vmatpush1.bf16.msra.mxu0 %v18900_v37  ;;  %v18975_v37 = vld [vmem:[#allocation18 + $0x3c0] ss:$28 sps:$4 sm:$0xff]  }
 0x62e   : > { %6658 = vmatpush1.bf16.msra.mxu1 %v18903_v23  ;;  %6620 = vmatprep.subr.bf16.mxu0 %v18908_v24  ;;  %v18972_v23 = vld [vmem:[#allocation18 + $0x190] ss:$28 sps:$4 sm:$0xff]   ;;  %v18983_v24 = vld [vmem:[#allocation18 + $0x3fc] ss:$28 sps:$4 sm:$0xff]  }
 0x62f   : > { %6659 = vmatprep.subr.bf16.mxu1 %v18911_v25  ;;  %v18980_v25 = vld [vmem:[#allocation18 + $0x1cc] ss:$28 sps:$4 sm:$0xff]  }
 0x631   : > { %6621 = vmatpush1.bf16.msra.mxu0 %v18906_v56  ;;  %v18981_v56 = vld [vmem:[#allocation18 + $0x3f8] ss:$28 sps:$4 sm:$0xff]  }
 0x632   : > { %6660 = vmatpush1.bf16.msra.mxu1 %v18909_v26  ;;  %6622 = vmatprep.subr.bf16.mxu0 %v18914_v27  ;;  %v18978_v26 = vld [vmem:[#allocation18 + $0x1c8] ss:$28 sps:$4 sm:$0xff]   ;;  %v18989_v27 = vld [vmem:[#allocation18 + $0x434] ss:$28 sps:$4 sm:$0xff]  }
 0x633   : > { %6661 = vmatprep.subr.bf16.mxu1 %v18917_v3  ;;  %v18986_v3 = vld [vmem:[#allocation18 + $0x204] ss:$28 sps:$4 sm:$0xff]  }
 0x635   : > { %6623 = vmatpush1.bf16.msra.mxu0 %v18912_v44  ;;  %v18987_v44 = vld [vmem:[#allocation18 + $0x430] ss:$28 sps:$4 sm:$0xff]  }
 0x636   : > { %6662 = vmatpush1.bf16.msra.mxu1 %v18915_v41  ;;  %6624 = vmatprep.subr.bf16.mxu0 %v18920_v40  ;;  %v18984_v41 = vld [vmem:[#allocation18 + $0x200] ss:$28 sps:$4 sm:$0xff]   ;;  %v18995_v40 = vld [vmem:[#allocation18 + $0x46c] ss:$28 sps:$4 sm:$0xff]  }
 0x637   : > { %6663 = vmatprep.subr.bf16.mxu1 %v18923_v43  ;;  %v18992_v43 = vld [vmem:[#allocation18 + $0x23c] ss:$28 sps:$4 sm:$0xff]  }
 0x639   : > { %6625 = vmatpush1.bf16.msra.mxu0 %v18918_v29  ;;  %v18993_v29 = vld [vmem:[#allocation18 + $0x468] ss:$28 sps:$4 sm:$0xff]  }
 0x63a   : > { %6664 = vmatpush1.bf16.msra.mxu1 %v18921_v45  ;;  %6626 = vmatprep.subr.bf16.mxu0 %v18926_v42  ;;  %v18990_v45 = vld [vmem:[#allocation18 + $0x238] ss:$28 sps:$4 sm:$0xff]   ;;  %v19001_v42 = vld [vmem:[#allocation18 + $0x4a4] ss:$28 sps:$4 sm:$0xff]  }
 0x63b   : > { %6665 = vmatprep.subr.bf16.mxu1 %v18929_v30 }
 0x63d   : > { %6627 = vmatpush1.bf16.msra.mxu0 %v18924_v47 }
 0x63e   : > { %6666 = vmatpush1.bf16.msra.mxu1 %v18927_v17  ;;  %6628 = vmatprep.subr.bf16.mxu0 %v18932_v31  ;;  %v18998_v17 = vld [vmem:[#allocation18 + $0x274] ss:$28 sps:$4 sm:$0xff]  }
 0x63f   : > { %6690 = vmatprep.subr.bf16.mxu1 %v18935_v51 }
 0x641   : > { %6682 = vmatmul.mubr.bf16.vlgmr.msra.gmra.mrb[56].mxu1 %v22687_v19  ;;  %6629 = vmatpush1.bf16.msra.mxu0 %v18930_v57 }
 0x642   : > { %6691 = vmatpush1.bf16.msra.mxu1 %v18933_v58  ;;  %6722 = vmatprep.mubr.bf16.mxu1 %v22678_v4 }
 0x643   : > { %6630 = vmatprep.subr.bf16.mxu0 %v18938_v5  ;;  %6692 = vmatprep.subr.bf16.mxu1 %v18941_v59  ;;  %v18999_v59 = vld [vmem:[#allocation18 + $0x4a0] ss:$28 sps:$4 sm:$0xff]  }
 0x645   : > { %6631 = vmatpush1.bf16.msra.mxu0 %v18936_v60 }
 0x646   : > { %6693 = vmatpush1.bf16.msra.mxu1 %v18939_v52  ;;  %6632 = vmatprep.subr.bf16.mxu0 %v18944_v61  ;;  %v18996_v61 = vld [vmem:[#allocation18 + $0x270] ss:$28 sps:$4 sm:$0xff]  }
 0x647   : > { %6694 = vmatprep.subr.bf16.mxu1 %v18947_v62  ;;  %v19007_v62 = vld [vmem:[#allocation18 + $0x4dc] ss:$28 sps:$4 sm:$0xff]  }
 0x649   : > { %6633 = vmatpush1.bf16.msra.mxu0 %v18942_v54  ;;  %v19004_v54 = vld [vmem:[#allocation18 + $0x2ac] ss:$28 sps:$4 sm:$0xff]  }
 0x64a   : > { %6695 = vmatpush1.bf16.msra.mxu1 %v18945_v63  ;;  %6634 = vmatprep.subr.bf16.mxu0 %v18950_v22  ;;  %v19005_v63 = vld [vmem:[#allocation18 + $0x4d8] ss:$28 sps:$4 sm:$0xff]   ;;  %v19002_v22 = vld [vmem:[#allocation18 + $0x2a8] ss:$28 sps:$4 sm:$0xff]  }
 0x64b   : > { %6696 = vmatprep.subr.bf16.mxu1 %v18953_v0  ;;  %v19013_v0 = vld [vmem:[#allocation18 + $0x514] ss:$28 sps:$4 sm:$0xff]  }
 0x64d   : > { %6635 = vmatpush1.bf16.msra.mxu0 %v18948_v35  ;;  %v19010_v35 = vld [vmem:[#allocation18 + $0x2e4] ss:$28 sps:$4 sm:$0xff]  }
 0x64e   : > { %6697 = vmatpush1.bf16.msra.mxu1 %v18951_v36  ;;  %6636 = vmatprep.subr.bf16.mxu0 %v18956_v1  ;;  %v19011_v36 = vld [vmem:[#allocation18 + $0x510] ss:$28 sps:$4 sm:$0xff]   ;;  %v19008_v1 = vld [vmem:[#allocation18 + $0x2e0] ss:$28 sps:$4 sm:$0xff]  }
 0x64f   : > { %6698 = vmatprep.subr.bf16.mxu1 %v18959_v6  ;;  %v19019_v6 = vld [vmem:[#allocation18 + $0x54c] ss:$28 sps:$4 sm:$0xff]  }
 0x651   : > { %6637 = vmatpush1.bf16.msra.mxu0 %v18954_v38  ;;  %v19016_v38 = vld [vmem:[#allocation18 + $0x31c] ss:$28 sps:$4 sm:$0xff]  }
 0x652   : > { %6699 = vmatpush1.bf16.msra.mxu1 %v18957_v10  ;;  %6638 = vmatprep.subr.bf16.mxu0 %v18962_v13  ;;  %v19017_v10 = vld [vmem:[#allocation18 + $0x548] ss:$28 sps:$4 sm:$0xff]   ;;  %v19014_v13 = vld [vmem:[#allocation18 + $0x318] ss:$28 sps:$4 sm:$0xff]  }
 0x653   : > { %6700 = vmatprep.subr.bf16.mxu1 %v18965_v32  ;;  %v19025_v32 = vld [vmem:[#allocation18 + $0x14] ss:$28 sps:$4 sm:$0xff]  }
 0x655   : > { %6639 = vmatpush1.bf16.msra.mxu0 %v18960_v14  ;;  %v19022_v14 = vld [vmem:[#allocation18 + $0x354] ss:$28 sps:$4 sm:$0xff]  }
 0x656   : > { %6701 = vmatpush1.bf16.msra.mxu1 %v18963_v15  ;;  %6731 = vmatprep.subr.bf16.mxu0 %v18971_v46  ;;  %v19023_v15 = vld [vmem:[#allocation18 + $0x10] ss:$28 sps:$4 sm:$0xff]  }
 0x657   : > { %6702 = vmatprep.subr.bf16.mxu1 %v18968_v18  ;;  %v19020_v46 = vld [vmem:[#allocation18 + $0x350] ss:$28 sps:$4 sm:$0xff]  }
 0x658   : > { %6641 = vmatmul.mubr.bf16.vlgmr.msra.gmra.mrb[72].mxu0 %v22691_v34  ;;  %v19031_v18 = vld [vmem:[#allocation18 + $0x394] ss:$28 sps:$4 sm:$0xff]  }
 0x659   : > { %6732 = vmatpush1.bf16.msra.mxu0 %v18969_v33  ;;  %16638 = vmatprep.mubr.msk.bf16.mxu0 %vm3920_vm13, %v22682_v11  ;;  %v19026_v33 = vld [vmem:[#allocation18 + $0x48] ss:$28 sps:$4 sm:$0xff]  }
 0x65a   : > { %6703 = vmatpush1.bf16.msra.mxu1 %v18966_v20  ;;  %6733 = vmatprep.subr.bf16.mxu0 %v18977_v28  ;;  %v19029_v20 = vld [vmem:[#allocation18 + $0x390] ss:$28 sps:$4 sm:$0xff]   ;;  %v19034_v28 = vld [vmem:[#allocation18 + $0x84] ss:$28 sps:$4 sm:$0xff]  }
 0x65b   : > { %6704 = vmatprep.subr.bf16.mxu1 %v18974_v21  ;;  %v19037_v21 = vld [vmem:[#allocation18 + $0x3cc] ss:$28 sps:$4 sm:$0xff]  }
 0x65d   : > { %6734 = vmatpush1.bf16.msra.mxu0 %v18975_v37  ;;  %v19032_v37 = vld [vmem:[#allocation18 + $0x80] ss:$28 sps:$4 sm:$0xff]  }
 0x65e   : > { %6705 = vmatpush1.bf16.msra.mxu1 %v18972_v23  ;;  %6735 = vmatprep.subr.bf16.mxu0 %v18983_v24  ;;  %v19035_v23 = vld [vmem:[#allocation18 + $0x3c8] ss:$28 sps:$4 sm:$0xff]   ;;  %v19040_v24 = vld [vmem:[#allocation18 + $0xbc] ss:$28 sps:$4 sm:$0xff]  }
 0x65f   : > { %6706 = vmatprep.subr.bf16.mxu1 %v18980_v25  ;;  %v19043_v25 = vld [vmem:[#allocation18 + $0x404] ss:$28 sps:$4 sm:$0xff]  }
 0x661   : > { %6736 = vmatpush1.bf16.msra.mxu0 %v18981_v56  ;;  %v19038_v56 = vld [vmem:[#allocation18 + $0xb8] ss:$28 sps:$4 sm:$0xff]  }
 0x662   : > { %6707 = vmatpush1.bf16.msra.mxu1 %v18978_v26  ;;  %6737 = vmatprep.subr.bf16.mxu0 %v18989_v27  ;;  %v19041_v26 = vld [vmem:[#allocation18 + $0x400] ss:$28 sps:$4 sm:$0xff]   ;;  %v19046_v27 = vld [vmem:[#allocation18 + $0xf4] ss:$28 sps:$4 sm:$0xff]  }
 0x663   : > { %6708 = vmatprep.subr.bf16.mxu1 %v18986_v3  ;;  %v19049_v3 = vld [vmem:[#allocation18 + $0x43c] ss:$28 sps:$4 sm:$0xff]  }
 0x665   : > { %6738 = vmatpush1.bf16.msra.mxu0 %v18987_v44  ;;  %v19044_v44 = vld [vmem:[#allocation18 + $0xf0] ss:$28 sps:$4 sm:$0xff]  }
 0x666   : > { %6709 = vmatpush1.bf16.msra.mxu1 %v18984_v41  ;;  %6739 = vmatprep.subr.bf16.mxu0 %v18995_v40  ;;  %v19047_v41 = vld [vmem:[#allocation18 + $0x438] ss:$28 sps:$4 sm:$0xff]   ;;  %v19052_v40 = vld [vmem:[#allocation18 + $0x12c] ss:$28 sps:$4 sm:$0xff]  }
 0x667   : > { %v5413_v30 = vpop.f32.mrb[40].mxu1  ;;  %v5454_v47 = vpop.f32.mrb[56].mxu0  ;;  %6710 = vmatprep.subr.bf16.mxu1 %v18992_v43 }
 0x668   : > { %v22696_v31 = vadd.f32 %v5454_v47, %v5413_v30  ;;  %v5415_v51 = vpop.f32.mrb[41].mxu1  ;;  %v5456_v55 = vpop.f32.mrb[57].mxu0  ;;  %v19050_v30 = vld [vmem:[#allocation18 + $0x128] ss:$28 sps:$4 sm:$0xff]  }
 0x669   : > { %v22698_v57 = vadd.f32 %v5456_v55, %v5415_v51  ;;  %6740 = vmatpush1.bf16.msra.mxu0 %v18993_v29  ;;  %v5417_v58 = vpop.f32.mrb[42].mxu1  ;;  %v5458_v5 = vpop.f32.mrb[58].mxu0  ;;  %v19055_v29 = vld [vmem:[#allocation18 + $0x474] ss:$28 sps:$4 sm:$0xff]   ;;  %v19058_v51 = vld [vmem:[#allocation18 + $0x164] ss:$28 sps:$4 sm:$0xff]  }
 0x66a   : > { %6711 = vmatpush1.bf16.msra.mxu1 %v18990_v45  ;;  %v5418_v60 = vpop.f32.mrb[43].mxu1  ;;  %v5459_v52 = vpop.f32.mrb[59].mxu0  ;;  %6741 = vmatprep.subr.bf16.mxu0 %v19001_v42  ;;  %v19061_v55 = vld [vmem:[#allocation18 + $0x4ac] ss:$28 sps:$4 sm:$0xff]   ;;  %v19056_v58 = vld [vmem:[#allocation18 + $0x160] ss:$28 sps:$4 sm:$0xff]  }
 0x66b   : > { %6712 = vmatprep.subr.bf16.mxu1 %v18998_v17  ;;  %v19053_v17 = vld [vmem:[#allocation18 + $0x470] ss:$28 sps:$4 sm:$0xff]   ;;  %v19059_v5 = vld [vmem:[#allocation18 + $0x4a8] ss:$28 sps:$4 sm:$0xff]   ;;  %v19062_v52 = vld [vmem:[#allocation18 + $0x198] ss:$28 sps:$4 sm:$0xff]  }
 0x66c   : > { %v19067_v60 = vld [vmem:[#allocation18 + $0x4e4] ss:$28 sps:$4 sm:$0xff]  }
 0x66d   : > { %6742 = vmatpush1.bf16.msra.mxu0 %v18999_v59  ;;  %v19064_v59 = vld [vmem:[#allocation18 + $0x19c] ss:$28 sps:$4 sm:$0xff]  }
 0x66e   : > { %6713 = vmatpush1.bf16.msra.mxu1 %v18996_v61  ;;  %6743 = vmatprep.subr.bf16.mxu0 %v19007_v62  ;;  %v19065_v61 = vld [vmem:[#allocation18 + $0x4e0] ss:$28 sps:$4 sm:$0xff]   ;;  %v19070_v62 = vld [vmem:[#allocation18 + $0x1d4] ss:$28 sps:$4 sm:$0xff]  }
 0x66f   : > { %6714 = vmatprep.subr.bf16.mxu1 %v19004_v54  ;;  %v19073_v54 = vld [vmem:[#allocation18 + $0x51c] ss:$28 sps:$4 sm:$0xff]  }
 0x671   : > { %6744 = vmatpush1.bf16.msra.mxu0 %v19005_v63  ;;  %v19068_v63 = vld [vmem:[#allocation18 + $0x1d0] ss:$28 sps:$4 sm:$0xff]  }
 0x672   : > { %6715 = vmatpush1.bf16.msra.mxu1 %v19002_v22  ;;  %6745 = vmatprep.subr.bf16.mxu0 %v19013_v0  ;;  %v19071_v22 = vld [vmem:[#allocation18 + $0x518] ss:$28 sps:$4 sm:$0xff]   ;;  %v19076_v0 = vld [vmem:[#allocation18 + $0x20c] ss:$28 sps:$4 sm:$0xff]  }
 0x673   : > { %6716 = vmatprep.subr.bf16.mxu1 %v19010_v35  ;;  %v19079_v35 = vld [vmem:[#allocation18 + $0x554] ss:$28 sps:$4 sm:$0xff]  }
 0x675   : > { %6746 = vmatpush1.bf16.msra.mxu0 %v19011_v36  ;;  %v19074_v36 = vld [vmem:[#allocation18 + $0x208] ss:$28 sps:$4 sm:$0xff]  }
 0x676   : > { %6717 = vmatpush1.bf16.msra.mxu1 %v19008_v1  ;;  %6747 = vmatprep.subr.bf16.mxu0 %v19019_v6  ;;  %v19077_v1 = vld [vmem:[#allocation18 + $0x550] ss:$28 sps:$4 sm:$0xff]   ;;  %v19082_v6 = vld [vmem:[#allocation18 + $0x244] ss:$28 sps:$4 sm:$0xff]  }
 0x677   : > { %6718 = vmatprep.subr.bf16.mxu1 %v19016_v38  ;;  %v19083_v38 = vld [vmem:[#allocation18 + $0x1d8] ss:$28 sps:$4 sm:$0xff]  }
 0x679   : > { %6748 = vmatpush1.bf16.msra.mxu0 %v19017_v10  ;;  %v19080_v10 = vld [vmem:[#allocation18 + $0x240] ss:$28 sps:$4 sm:$0xff]  }
 0x67a   : > { %6719 = vmatpush1.bf16.msra.mxu1 %v19014_v13  ;;  %6772 = vmatprep.subr.bf16.mxu0 %v19025_v32  ;;  %v19084_v13 = vld [vmem:[#allocation18 + $0x18] ss:$28 sps:$4 sm:$0xff]  }
 0x67b   : > { %6720 = vmatprep.subr.bf16.mxu1 %v19022_v14  ;;  %v19087_v32 = vld [vmem:[#allocation18 + $0x27c] ss:$28 sps:$4 sm:$0xff]   ;;  %v19088_v14 = vld [vmem:[#allocation18 + $0x210] ss:$28 sps:$4 sm:$0xff]  }
 0x67c   : > { %6764 = vmatmul.mubr.bf16.vlgmr.msra.gmra.mrb[76].mxu0 %v22687_v19 }
 0x67d   : > { %6773 = vmatpush1.bf16.msra.mxu0 %v19023_v15  ;;  %6804 = vmatprep.mubr.bf16.mxu0 %v22678_v4  ;;  %v19085_v15 = vld [vmem:[#allocation18 + $0x278] ss:$28 sps:$4 sm:$0xff]  }
 0x67e   : > { %6721 = vmatpush1.bf16.msra.mxu1 %v19020_v46  ;;  %6774 = vmatprep.subr.bf16.mxu0 %v19028_v16  ;;  %v19089_v46 = vld [vmem:[#allocation18 + $0x50] ss:$28 sps:$4 sm:$0xff]  }
 0x67f   : > { %6813 = vmatprep.subr.bf16.mxu1 %v19031_v18  ;;  %v19092_v16 = vld [vmem:[#allocation18 + $0x2b4] ss:$28 sps:$4 sm:$0xff]  }
 0x681   : > { %6723 = vmatmul.mubr.bf16.vlgmr.msra.gmra.mrb[60].mxu1 %v22691_v34  ;;  %6775 = vmatpush1.bf16.msra.mxu0 %v19026_v33  ;;  %v19093_v33 = vld [vmem:[#allocation18 + $0x248] ss:$28 sps:$4 sm:$0xff]  }
 0x682   : > { %6814 = vmatpush1.bf16.msra.mxu1 %v19029_v20  ;;  %16639 = vmatprep.mubr.msk.bf16.mxu1 %vm3920_vm13, %v22682_v11 }
 0x683   : > { %6776 = vmatprep.subr.bf16.mxu0 %v19034_v28  ;;  %6815 = vmatprep.subr.bf16.mxu1 %v19037_v21 }
 0x685   : > { %6777 = vmatpush1.bf16.msra.mxu0 %v19032_v37 }
 0x686   : > { %6816 = vmatpush1.bf16.msra.mxu1 %v19035_v23  ;;  %6778 = vmatprep.subr.bf16.mxu0 %v19040_v24  ;;  %v19090_v23 = vld [vmem:[#allocation18 + $0x2b0] ss:$28 sps:$4 sm:$0xff]  }
 0x687   : > { %6817 = vmatprep.subr.bf16.mxu1 %v19043_v25  ;;  %v19097_v25 = vld [vmem:[#allocation18 + $0x2ec] ss:$28 sps:$4 sm:$0xff]  }
 0x689   : > { %6779 = vmatpush1.bf16.msra.mxu0 %v19038_v56  ;;  %v19098_v56 = vld [vmem:[#allocation18 + $0x280] ss:$28 sps:$4 sm:$0xff]  }
 0x68a   : > { %6818 = vmatpush1.bf16.msra.mxu1 %v19041_v26  ;;  %6780 = vmatprep.subr.bf16.mxu0 %v19046_v27  ;;  %v19095_v26 = vld [vmem:[#allocation18 + $0x2e8] ss:$28 sps:$4 sm:$0xff]   ;;  %v19099_v27 = vld [vmem:[#allocation18 + $0xc0] ss:$28 sps:$4 sm:$0xff]  }
 0x68b   : > { %v22705_v43 = vpop.f32.mrb[44].mxu1  ;;  %6819 = vmatprep.subr.bf16.mxu1 %v19049_v3  ;;  %v19102_v3 = vld [vmem:[#allocation18 + $0x324] ss:$28 sps:$4 sm:$0xff]  }
 0x68c   : > { %v22707_v45 = vpop.f32.mrb[45].mxu1 }
 0x68d   : > { %v5540_v42 = vpop.f32.mrb[46].mxu1  ;;  %6781 = vmatpush1.bf16.msra.mxu0 %v19044_v44  ;;  %v19103_v44 = vld [vmem:[#allocation18 + $0x2b8] ss:$28 sps:$4 sm:$0xff]  }
 0x68e   : > { %6820 = vmatpush1.bf16.msra.mxu1 %v19047_v41  ;;  %v5541_v47 = vpop.f32.mrb[47].mxu1  ;;  %6782 = vmatprep.subr.bf16.mxu0 %v19052_v40  ;;  %v19100_v41 = vld [vmem:[#allocation18 + $0x320] ss:$28 sps:$4 sm:$0xff]   ;;  %v19104_v40 = vld [vmem:[#allocation18 + $0xf8] ss:$28 sps:$4 sm:$0xff]  }
 0x68f   : > { %6821 = vmatprep.subr.bf16.mxu1 %v19055_v29  ;;  %v19108_v29 = vld [vmem:[#allocation18 + $0x2f0] ss:$28 sps:$4 sm:$0xff]   ;;  %v19112_v47 = vld [vmem:[#allocation18 + $0x398] ss:$28 sps:$4 sm:$0xff]  }
 0x690   : > { %v19109_v42 = vld [vmem:[#allocation18 + $0x130] ss:$28 sps:$4 sm:$0xff]  }
 0x691   : > { %6783 = vmatpush1.bf16.msra.mxu0 %v19050_v30  ;;  %v19110_v30 = vld [vmem:[#allocation18 + $0x328] ss:$28 sps:$4 sm:$0xff]  }
 0x692   : > { %6822 = vmatpush1.bf16.msra.mxu1 %v19053_v17  ;;  %6784 = vmatprep.subr.bf16.mxu0 %v19058_v51  ;;  %v19111_v17 = vld [vmem:[#allocation18 + $0x168] ss:$28 sps:$4 sm:$0xff]   ;;  %v19113_v51 = vld [vmem:[#allocation18 + $0x360] ss:$28 sps:$4 sm:$0xff]  }
 0x693   : > { %6823 = vmatprep.subr.bf16.mxu1 %v19061_v55  ;;  %v19115_v55 = vld [vmem:[#allocation18 + $0x3d0] ss:$28 sps:$4 sm:$0xff]  }
 0x695   : > { %6785 = vmatpush1.bf16.msra.mxu0 %v19056_v58  ;;  %v6939_v58 = vld [vmem:[#allocation4 + $0x28] sm:$0x3] }
 0x696   : > { %6824 = vmatpush1.bf16.msra.mxu1 %v19059_v5  ;;  %6786 = vmatprep.subr.bf16.mxu0 %v19064_v59  ;;  %v19114_v5 = vld [vmem:[#allocation18 + $0x1a0] ss:$28 sps:$4 sm:$0xff]   ;;  %v19118_v59 = vld [vmem:[#allocation18 + $0xaf4] ss:$28 sps:$4 sm:$0xff]  }
 0x697   : > { %6825 = vmatprep.subr.bf16.mxu1 %v19067_v60  ;;  %v6935_v60 = vld [vmem:[#allocation4 + $0x8] sm:$0xfc] }
 0x699   : > { %6787 = vmatpush1.bf16.msra.mxu0 %v19062_v52  ;;  %v6943_v52 = vpack.c.bf16 %v6939_v58, %v6935_v60  ;;  %v19158_v58 = vld [vmem:[#allocation18 + $0xcec] ss:$28 sps:$4 sm:$0xff]   ;;  %v19167_v60 = vld [vmem:[#allocation18 + $0xf1c] ss:$28 sps:$4 sm:$0xff]  }
 0x69a   : > { %6826 = vmatpush1.bf16.msra.mxu1 %v19065_v61  ;;  %6788 = vmatprep.subr.bf16.mxu0 %v19070_v62  ;;  %v19119_v61 = vld [vmem:[#allocation18 + $0x408] ss:$28 sps:$4 sm:$0xff]   ;;  %v19116_v62 = vld [vmem:[#allocation18 + $0xaf0] ss:$28 sps:$4 sm:$0xff]  }
 0x69b   : > { %6827 = vmatprep.subr.bf16.mxu1 %v19073_v54  ;;  %v19122_v54 = vld [vmem:[#allocation18 + $0xb2c] ss:$28 sps:$4 sm:$0xff]  }
 0x69d   : > { %6789 = vmatpush1.bf16.msra.mxu0 %v19068_v63  ;;  %v22723_v63 = vrot.slane %v6943_v52, 1  ;;  %v19164_v52 = vld [vmem:[#allocation18 + $0xd24] ss:$28 sps:$4 sm:$0xff]  }
 0x69e   : > { %6828 = vmatpush1.bf16.msra.mxu1 %v19071_v22  ;;  %6790 = vmatprep.subr.bf16.mxu0 %v19076_v0  ;;  %v19120_v22 = vld [vmem:[#allocation18 + $0xb28] ss:$28 sps:$4 sm:$0xff]  }
 0x69f   : > { %6829 = vmatprep.subr.bf16.mxu1 %v19079_v35  ;;  %v19126_v0 = vld [vmem:[#allocation18 + $0xb64] ss:$28 sps:$4 sm:$0xff]   ;;  %v19127_v35 = vld [vmem:[#allocation18 + $0x478] ss:$28 sps:$4 sm:$0xff]  }
 0x6a1   : > { %6791 = vmatpush1.bf16.msra.mxu0 %v19074_v36  ;;  %v19124_v36 = vld [vmem:[#allocation18 + $0xb60] ss:$28 sps:$4 sm:$0xff]  }
 0x6a2   : > { %6830 = vmatpush1.bf16.msra.mxu1 %v19077_v1  ;;  %6792 = vmatprep.subr.bf16.mxu0 %v19082_v6 }
 0x6a3   : > { %17688 = vmatprep.subr.bf16.mxu1 %v19083_v38 }
 0x6a5   : > { %6846 = vmatmul.mubr.bf16.vlgmr.msra.gmra.mrb[64].mxu1 %v22687_v19  ;;  %6793 = vmatpush1.bf16.msra.mxu0 %v19080_v10 }
 0x6a6   : > { %17689 = vmatpush3.bf16.msra.mxu1 %v19084_v13  ;;  %6886 = vmatprep.mubr.bf16.mxu1 %v22678_v4  ;;  %v19094_v4 = vld [vmem:[#allocation18 + $0x88] ss:$28 sps:$4 sm:$0xff]  }
 0x6a7   : > { %v5495_v18 = vpop.f32.mrb[60].mxu0  ;;  %6794 = vmatprep.subr.bf16.mxu0 %v19087_v32  ;;  %17690 = vmatprep.subr.bf16.mxu1 %v19088_v14 }
 0x6a8   : > { %v22712_v20 = vadd.f32 %v22705_v43, %v5495_v18  ;;  %v5497_v28 = vpop.f32.mrb[61].mxu0  ;;  %v19107_v43 = vld [vmem:[#allocation18 + $0x35c] ss:$28 sps:$4 sm:$0xff]  }
 0x6a9   : > { %v22715_v21 = vadd.f32 %v22707_v45, %v5497_v28  ;;  %v5499_v37 = vpop.f32.mrb[62].mxu0  ;;  %6795 = vmatpush1.bf16.msra.mxu0 %v19085_v15  ;;  %v19105_v45 = vld [vmem:[#allocation18 + $0x358] ss:$28 sps:$4 sm:$0xff]  }
 0x6aa   : > { %17691 = vmatpush3.bf16.msra.mxu1 %v19089_v46  ;;  %v5500_v24 = vpop.f32.mrb[63].mxu0  ;;  %6796 = vmatprep.subr.bf16.mxu0 %v19092_v16  ;;  %v19131_v46 = vld [vmem:[#allocation18 + $0x4b0] ss:$28 sps:$4 sm:$0xff]   ;;  %v19135_v37 = vld [vmem:[#allocation18 + $0x4e8] ss:$28 sps:$4 sm:$0xff]  }
 0x6ab   : > { %17692 = vmatprep.subr.bf16.mxu1 %v19093_v33  ;;  %v19128_v33 = vld [vmem:[#allocation18 + $0xb98] ss:$28 sps:$4 sm:$0xff]   ;;  %v19138_v24 = vld [vmem:[#allocation18 + $0xc0c] ss:$28 sps:$4 sm:$0xff]  }
 0x6ac   : > { %v19134_v28 = vld [vmem:[#allocation18 + $0xbd4] ss:$28 sps:$4 sm:$0xff]  }
 0x6ad   : > { %6797 = vmatpush1.bf16.msra.mxu0 %v19090_v23  ;;  %v19132_v23 = vld [vmem:[#allocation18 + $0xbd0] ss:$28 sps:$4 sm:$0xff]  }
 0x6ae   : > { %17693 = vmatpush3.bf16.msra.mxu1 %v19094_v4  ;;  %6798 = vmatprep.subr.bf16.mxu0 %v19097_v25  ;;  %v19139_v4 = vld [vmem:[#allocation18 + $0x520] ss:$28 sps:$4 sm:$0xff]   ;;  %v19136_v25 = vld [vmem:[#allocation18 + $0xc08] ss:$28 sps:$4 sm:$0xff]  }
 0x6af   : > { %17694 = vmatprep.subr.bf16.mxu1 %v19098_v56  ;;  %v19142_v56 = vld [vmem:[#allocation18 + $0xc44] ss:$28 sps:$4 sm:$0xff]  }
 0x6b1   : > { %6799 = vmatpush1.bf16.msra.mxu0 %v19095_v26  ;;  %v6941_v26 = vld [vmem:[#allocation4 + $0x38] sm:$0x3] }
 0x6b2   : > { %17695 = vmatpush3.bf16.msra.mxu1 %v19099_v27  ;;  %6800 = vmatprep.subr.bf16.mxu0 %v19102_v3  ;;  %v19143_v27 = vld [vmem:[#allocation18 + $0x558] ss:$28 sps:$4 sm:$0xff]   ;;  %v19140_v3 = vld [vmem:[#allocation18 + $0xc40] ss:$28 sps:$4 sm:$0xff]  }
 0x6b3   : > { %17696 = vmatprep.subr.bf16.mxu1 %v19103_v44  ;;  %v19149_v44 = vld [vmem:[#allocation18 + $0xe74] ss:$28 sps:$4 sm:$0xff]  }
 0x6b5   : > { %6801 = vmatpush1.bf16.msra.mxu0 %v19100_v41  ;;  %v6937_v41 = vld [vmem:[#allocation4 + $0x18] sm:$0xfc] }
 0x6b6   : > { %17697 = vmatpush3.bf16.msra.mxu1 %v19104_v40  ;;  %6802 = vmatprep.subr.bf16.mxu0 %v19107_v43  ;;  %v19146_v40 = vld [vmem:[#allocation18 + $0xc7c] ss:$28 sps:$4 sm:$0xff]   ;;  %v6945_v43 = vpack.c.bf16 %v6941_v26, %v6937_v41  ;;  %v6938_v41 = vld [vmem:[#allocation4 + $0x20] sm:$0x3] }
 0x6b7   : > { %17698 = vmatprep.subr.bf16.mxu1 %v19108_v29  ;;  %v19147_v29 = vld [vmem:[#allocation18 + $0xe70] ss:$28 sps:$4 sm:$0xff]   ;;  %v19186_v26 = vld [vmem:[#allocation18 + $0xe00] ss:$28 sps:$4 sm:$0xff]  }
 0x6b9   : > { %6803 = vmatpush1.bf16.msra.mxu0 %v19105_v45  ;;  %v19144_v45 = vld [vmem:[#allocation18 + $0xc78] ss:$28 sps:$4 sm:$0xff]  }
 0x6ba   : > { %17699 = vmatpush3.bf16.msra.mxu1 %v19109_v42  ;;  %6894 = vmatprep.subr.bf16.mxu0 %v21279_v2  ;;  %v19155_v42 = vld [vmem:[#allocation18 + $0xeac] ss:$28 sps:$4 sm:$0xff]  }
 0x6bb   : > { %17700 = vmatprep.subr.bf16.mxu1 %v19110_v30  ;;  %v22737_v30 = vrot.slane %v6945_v43, 1  ;;  %v6936_v43 = vld [vmem:[#allocation4 + $0x10] sm:$0xfc] }
 0x6bc   : > { %6805 = vmatmul.mubr.bf16.vlgmr.msra.gmra.mrb[80].mxu0 %v22691_v34 }
 0x6bd   : > { %6895 = vmatpush1.bf16.msra.mxu0 %v19112_v47  ;;  %16640 = vmatprep.mubr.msk.bf16.mxu0 %vm3920_vm13, %v22682_v11  ;;  %v19123_v11 = vld [vmem:[#allocation18 + $0x440] ss:$28 sps:$4 sm:$0xff]   ;;  %v19152_v47 = vld [vmem:[#allocation18 + $0xcb4] ss:$28 sps:$4 sm:$0xff]  }
 0x6be   : > { %17701 = vmatpush3.bf16.msra.mxu1 %v19111_v17  ;;  %6896 = vmatprep.subr.bf16.mxu0 %v21279_v2  ;;  %v19153_v17 = vld [vmem:[#allocation18 + $0xea8] ss:$28 sps:$4 sm:$0xff]  }
 0x6bf   : > { %17702 = vmatprep.subr.bf16.mxu1 %v19113_v51  ;;  %v19150_v51 = vld [vmem:[#allocation18 + $0xcb0] ss:$28 sps:$4 sm:$0xff]  }
 0x6c1   : > { %6897 = vmatpush1.bf16.msra.mxu0 %v19115_v55  ;;  %v19161_v55 = vld [vmem:[#allocation18 + $0xee4] ss:$28 sps:$4 sm:$0xff]  }
 0x6c2   : > { %17703 = vmatpush3.bf16.msra.mxu1 %v19114_v5  ;;  %6898 = vmatprep.subr.bf16.mxu0 %v21279_v2  ;;  %v19159_v5 = vld [vmem:[#allocation18 + $0xee0] ss:$28 sps:$4 sm:$0xff]  }
 0x6c3   : > { %8061 = vmatprep.subr.bf16.mxu1 %v19118_v59  ;;  %v19156_v59 = vld [vmem:[#allocation18 + $0xce8] ss:$28 sps:$4 sm:$0xff]  }
 0x6c5   : > { %6887 = vmatmul.mubr.bf16.vlgmr.msra.gmra.mrb[68].mxu1 %v22691_v34  ;;  %6899 = vmatpush1.bf16.msra.mxu0 %v19119_v61  ;;  %v19130_v34 = vld [vmem:[#allocation18 + $0xb9c] ss:$28 sps:$4 sm:$0xff]  }
 0x6c6   : > { %8062 = vmatpush1.bf16.msra.mxu1 %v19116_v62  ;;  %8093 = vmatprep.mubr.bf16.mxu1 %v22723_v63  ;;  %v19162_v61 = vld [vmem:[#allocation18 + $0xd20] ss:$28 sps:$4 sm:$0xff]   ;;  %v19173_v62 = vld [vmem:[#allocation18 + $0xf54] ss:$28 sps:$4 sm:$0xff]  }
 0x6c7   : > { %6900 = vmatprep.subr.bf16.mxu0 %v21279_v2  ;;  %8063 = vmatprep.subr.bf16.mxu1 %v19122_v54 }
 0x6c9   : > { %6901 = vmatpush1.bf16.msra.mxu0 %v19123_v11  ;;  %v19170_v11 = vld [vmem:[#allocation18 + $0xd5c] ss:$28 sps:$4 sm:$0xff]  }
 0x6ca   : > { %8064 = vmatpush1.bf16.msra.mxu1 %v19120_v22  ;;  %6902 = vmatprep.subr.bf16.mxu0 %v21279_v2 }
 0x6cb   : > { %v5577_v1 = vpop.f32.mrb[48].mxu1  ;;  %v5618_v6 = vpop.f32.mrb[64].mxu0  ;;  %8065 = vmatprep.subr.bf16.mxu1 %v19126_v0 }
 0x6cc   : > { %v22729_v38 = vadd.f32 %v5618_v6, %v5577_v1  ;;  %v5579_v10 = vpop.f32.mrb[49].mxu1  ;;  %v5620_v13 = vpop.f32.mrb[65].mxu0  ;;  %v19168_v6 = vld [vmem:[#allocation18 + $0xd58] ss:$28 sps:$4 sm:$0xff]  }
 0x6cd   : > { %v22731_v32 = vadd.f32 %v5620_v13, %v5579_v10  ;;  %v5581_v14 = vpop.f32.mrb[50].mxu1  ;;  %v5622_v15 = vpop.f32.mrb[66].mxu0  ;;  %6903 = vmatpush1.bf16.msra.mxu0 %v19127_v35  ;;  %v19176_v10 = vld [vmem:[#allocation18 + $0xd94] ss:$28 sps:$4 sm:$0xff]  }
 0x6ce   : > { %8066 = vmatpush1.bf16.msra.mxu1 %v19124_v36  ;;  %v5582_v16 = vpop.f32.mrb[51].mxu1  ;;  %v5623_v18 = vpop.f32.mrb[67].mxu0  ;;  %6904 = vmatprep.subr.bf16.mxu0 %v21279_v2  ;;  %v19171_v36 = vld [vmem:[#allocation18 + $0xf50] ss:$28 sps:$4 sm:$0xff]  }
 0x6cf   : > { %8067 = vmatprep.subr.bf16.mxu1 %v19130_v34  ;;  %v19179_v34 = vld [vmem:[#allocation18 + $0xf8c] ss:$28 sps:$4 sm:$0xff]  }
 0x6d0   : > { %v19174_v18 = vld [vmem:[#allocation18 + $0xd90] ss:$28 sps:$4 sm:$0xff]  }
 0x6d1   : > { %6905 = vmatpush1.bf16.msra.mxu0 %v19131_v46  ;;  %v19177_v46 = vld [vmem:[#allocation18 + $0xf88] ss:$28 sps:$4 sm:$0xff]  }
 0x6d2   : > { %8068 = vmatpush1.bf16.msra.mxu1 %v19128_v33  ;;  %6906 = vmatprep.subr.bf16.mxu0 %v21279_v2  ;;  %v19185_v33 = vld [vmem:[#allocation18 + $0xfc4] ss:$28 sps:$4 sm:$0xff]  }
 0x6d3   : > { %8069 = vmatprep.subr.bf16.mxu1 %v19134_v28 }
 0x6d5   : > { %6907 = vmatpush1.bf16.msra.mxu0 %v19135_v37  ;;  %v19182_v37 = vld [vmem:[#allocation18 + $0xdcc] ss:$28 sps:$4 sm:$0xff]  }
 0x6d6   : > { %8070 = vmatpush1.bf16.msra.mxu1 %v19132_v23  ;;  %6908 = vmatprep.subr.bf16.mxu0 %v21279_v2  ;;  %v19183_v23 = vld [vmem:[#allocation18 + $0xfc0] ss:$28 sps:$4 sm:$0xff]  }
 0x6d7   : > { %8071 = vmatprep.subr.bf16.mxu1 %v19138_v24  ;;  %v19180_v24 = vld [vmem:[#allocation18 + $0xdc8] ss:$28 sps:$4 sm:$0xff]  }
 0x6d9   : > { %6909 = vmatpush1.bf16.msra.mxu0 %v19139_v4  ;;  %v19191_v4 = vld [vmem:[#allocation18 + $0xffc] ss:$28 sps:$4 sm:$0xff]  }
 0x6da   : > { %8072 = vmatpush1.bf16.msra.mxu1 %v19136_v25  ;;  %6910 = vmatprep.subr.bf16.mxu0 %v21279_v2  ;;  %v19188_v25 = vld [vmem:[#allocation18 + $0xe04] ss:$28 sps:$4 sm:$0xff]  }
 0x6db   : > { %8073 = vmatprep.subr.bf16.mxu1 %v19142_v56  ;;  %v19189_v56 = vld [vmem:[#allocation18 + $0xff8] ss:$28 sps:$4 sm:$0xff]  }
 0x6dd   : > { %6911 = vmatpush1.bf16.msra.mxu0 %v19143_v27  ;;  %v19197_v27 = vld [vmem:[#allocation18 + $0x1034] ss:$28 sps:$4 sm:$0xff]  }
 0x6de   : > { %8074 = vmatpush1.bf16.msra.mxu1 %v19140_v3  ;;  %8102 = vmatprep.subr.bf16.mxu0 %v19149_v44  ;;  %v19194_v3 = vld [vmem:[#allocation18 + $0xe3c] ss:$28 sps:$4 sm:$0xff]   ;;  %v6940_v44 = vld [vmem:[#allocation4 + $0x30] sm:$0x3] }
 0x6df   : > { %8075 = vmatprep.subr.bf16.mxu1 %v19146_v40  ;;  %v19195_v40 = vld [vmem:[#allocation18 + $0x1030] ss:$28 sps:$4 sm:$0xff]  }
 0x6e0   : > { %6927 = vmatmul.mubr.bf16.vlgmr.msra.gmra.mrb[84].mxu0 %v22687_v19  ;;  %v19165_v19 = vld [vmem:[#allocation18 + $0xf18] ss:$28 sps:$4 sm:$0xff]  }
 0x6e1   : > { %8103 = vmatpush1.bf16.msra.mxu0 %v19147_v29  ;;  %16816 = vmatprep.mubr.msk.bf16.mxu0 %vm3920_vm13, %v22737_v30  ;;  %v19192_v29 = vld [vmem:[#allocation18 + $0xe38] ss:$28 sps:$4 sm:$0xff]  }
 0x6e2   : > { %8076 = vmatpush1.bf16.msra.mxu1 %v19144_v45  ;;  %8104 = vmatprep.subr.bf16.mxu0 %v19155_v42  ;;  %v6934_v45 = vld [vmem:[#allocation4] sm:$0xfc]  ;;  %v6944_v42 = vpack.c.bf16 %v6940_v44, %v6936_v43  ;;  %v19243_v44 = vld [vmem:[#allocation18 + $0x1000] ss:$28 sps:$4 sm:$0xff]   ;;  %v19246_v43 = vld [vmem:[#allocation18 + $0xcb8] ss:$28 sps:$4 sm:$0xff]  }
 0x6e3   : > { %8077 = vmatprep.subr.bf16.mxu1 %v19152_v47  ;;  %v19200_v47 = vld [vmem:[#allocation18 + $0xafc] ss:$28 sps:$4 sm:$0xff]  }
 0x6e5   : > { %8105 = vmatpush1.bf16.msra.mxu0 %v19153_v17  ;;  %v6942_v17 = vpack.c.bf16 %v6938_v41, %v6934_v45  ;;  %v19248_v41 = vld [vmem:[#allocation18 + $0xcbc] ss:$28 sps:$4 sm:$0xff]   ;;  %v19254_v45 = vld [vmem:[#allocation18 + $0xcf4] ss:$28 sps:$4 sm:$0xff]  }
 0x6e6   : > { %8078 = vmatpush1.bf16.msra.mxu1 %v19150_v51  ;;  %8106 = vmatprep.subr.bf16.mxu0 %v19161_v55  ;;  %v19203_v51 = vld [vmem:[#allocation18 + $0xe7c] ss:$28 sps:$4 sm:$0xff]  }
 0x6e7   : > { %8079 = vmatprep.subr.bf16.mxu1 %v19158_v58  ;;  %v19198_v55 = vld [vmem:[#allocation18 + $0xaf8] ss:$28 sps:$4 sm:$0xff]   ;;  %v22744_v58 = vrot.slane %v6944_v42, 1  ;;  %v19257_v42 = vld [vmem:[#allocation18 + $0xb04] ss:$28 sps:$4 sm:$0xff]  }
 0x6e9   : > { %8107 = vmatpush1.bf16.msra.mxu0 %v19159_v5  ;;  %v19201_v5 = vld [vmem:[#allocation18 + $0xe78] ss:$28 sps:$4 sm:$0xff]  }
 0x6ea   : > { %8080 = vmatpush1.bf16.msra.mxu1 %v19156_v59  ;;  %8108 = vmatprep.subr.bf16.mxu0 %v19167_v60  ;;  %v22746_v59 = vrot.slane %v6942_v17, 1  ;;  %v19206_v60 = vld [vmem:[#allocation18 + $0xb34] ss:$28 sps:$4 sm:$0xff]   ;;  %v19255_v17 = vld [vmem:[#allocation18 + $0xb00] ss:$28 sps:$4 sm:$0xff]  }
 0x6eb   : > { %v17682_v54 = vpop.f32.mrb[68].mxu0  ;;  %8081 = vmatprep.subr.bf16.mxu1 %v19164_v52  ;;  %v19209_v52 = vld [vmem:[#allocation18 + $0xeb4] ss:$28 sps:$4 sm:$0xff]  }
 0x6ec   : > { %v17683_v22 = vpop.f32.mrb[69].mxu0 }
 0x6ed   : > { %v17684_v0 = vadd.f32 %v17683_v22, %v17682_v54  ;;  %v17685_v35 = vpop.f32.mrb[70].mxu0  ;;  %8109 = vmatpush1.bf16.msra.mxu0 %v19165_v19  ;;  %v19204_v19 = vld [vmem:[#allocation18 + $0xb30] ss:$28 sps:$4 sm:$0xff]   ;;  %v19213_v22 = vld [vmem:[#allocation18 + $0xee8] ss:$28 sps:$4 sm:$0xff]  }
 0x6ee   : > { %8082 = vmatpush1.bf16.msra.mxu1 %v19162_v61  ;;  %v17686_v1 = vpop.f32.mrb[71].mxu0  ;;  %8110 = vmatprep.subr.bf16.mxu0 %v19173_v62  ;;  %v19207_v61 = vld [vmem:[#allocation18 + $0xeb0] ss:$28 sps:$4 sm:$0xff]   ;;  %v19221_v35 = vld [vmem:[#allocation18 + $0xf24] ss:$28 sps:$4 sm:$0xff]  }
 0x6ef   : > { %8083 = vmatprep.subr.bf16.mxu1 %v19170_v11  ;;  %v19212_v62 = vld [vmem:[#allocation18 + $0xb6c] ss:$28 sps:$4 sm:$0xff]   ;;  %v19219_v1 = vld [vmem:[#allocation18 + $0xf20] ss:$28 sps:$4 sm:$0xff]  }
 0x6f0   : > { %v5699_v13 = vpop.f32.mrb[52].mxu1  ;;  %v19215_v54 = vld [vmem:[#allocation18 + $0xeec] ss:$28 sps:$4 sm:$0xff]  }
 0x6f1   : > { %v22742_v14 = vadd.f32 %v17684_v0, %v5699_v13  ;;  %v5701_v15 = vpop.f32.mrb[53].mxu1  ;;  %8111 = vmatpush1.bf16.msra.mxu0 %v19171_v36  ;;  %v19210_v11 = vld [vmem:[#allocation18 + $0xb68] ss:$28 sps:$4 sm:$0xff]   ;;  %v19216_v36 = vld [vmem:[#allocation18 + $0xba0] ss:$28 sps:$4 sm:$0xff]  }
 0x6f2   : > { %v5702_v16 = vpop.f32.mrb[54].mxu1  ;;  %8084 = vmatpush1.bf16.msra.mxu1 %v19168_v6  ;;  %8112 = vmatprep.subr.bf16.mxu0 %v19179_v34  ;;  %v19218_v0 = vld [vmem:[#allocation18 + $0xba4] ss:$28 sps:$4 sm:$0xff]   ;;  %v19224_v6 = vld [vmem:[#allocation18 + $0xbdc] ss:$28 sps:$4 sm:$0xff]  }
 0x6f3   : > { %v5703_v28 = vpop.f32.mrb[55].mxu1  ;;  %8085 = vmatprep.subr.bf16.mxu1 %v19176_v10  ;;  %v19227_v34 = vld [vmem:[#allocation18 + $0xf5c] ss:$28 sps:$4 sm:$0xff]   ;;  %v19230_v15 = vld [vmem:[#allocation18 + $0xc14] ss:$28 sps:$4 sm:$0xff]  }
 0x6f4   : > { %v19222_v10 = vld [vmem:[#allocation18 + $0xbd8] ss:$28 sps:$4 sm:$0xff]  }
 0x6f5   : > { %8113 = vmatpush1.bf16.msra.mxu0 %v19177_v46  ;;  %v19225_v13 = vld [vmem:[#allocation18 + $0xf58] ss:$28 sps:$4 sm:$0xff]  }
 0x6f6   : > { %8086 = vmatpush1.bf16.msra.mxu1 %v19174_v18  ;;  %8114 = vmatprep.subr.bf16.mxu0 %v19185_v33  ;;  %v19233_v46 = vld [vmem:[#allocation18 + $0xf94] ss:$28 sps:$4 sm:$0xff]  }
 0x6f7   : > { %8087 = vmatprep.subr.bf16.mxu1 %v19182_v37  ;;  %v19228_v33 = vld [vmem:[#allocation18 + $0xc10] ss:$28 sps:$4 sm:$0xff]  }
 0x6f8   : > { %v19231_v37 = vld [vmem:[#allocation18 + $0xf90] ss:$28 sps:$4 sm:$0xff]  }
 0x6f9   : > { %8115 = vmatpush1.bf16.msra.mxu0 %v19183_v23  ;;  %v19236_v23 = vld [vmem:[#allocation18 + $0xc4c] ss:$28 sps:$4 sm:$0xff]  }
 0x6fa   : > { %8088 = vmatpush1.bf16.msra.mxu1 %v19180_v24  ;;  %8116 = vmatprep.subr.bf16.mxu0 %v19191_v4  ;;  %v19239_v4 = vld [vmem:[#allocation18 + $0xfcc] ss:$28 sps:$4 sm:$0xff]  }
 0x6fb   : > { %8089 = vmatprep.subr.bf16.mxu1 %v19188_v25  ;;  %v19234_v25 = vld [vmem:[#allocation18 + $0xc48] ss:$28 sps:$4 sm:$0xff]  }
 0x6fd   : > { %8117 = vmatpush1.bf16.msra.mxu0 %v19189_v56  ;;  %v19237_v56 = vld [vmem:[#allocation18 + $0xfc8] ss:$28 sps:$4 sm:$0xff]  }
 0x6fe   : > { %8090 = vmatpush1.bf16.msra.mxu1 %v19186_v26  ;;  %8118 = vmatprep.subr.bf16.mxu0 %v19197_v27  ;;  %v19242_v26 = vld [vmem:[#allocation18 + $0xc84] ss:$28 sps:$4 sm:$0xff]  }
 0x6ff   : > { %8091 = vmatprep.subr.bf16.mxu1 %v19194_v3  ;;  %v19245_v27 = vld [vmem:[#allocation18 + $0x1004] ss:$28 sps:$4 sm:$0xff]  }
 0x700   : > { %v19240_v3 = vld [vmem:[#allocation18 + $0xc80] ss:$28 sps:$4 sm:$0xff]  }
 0x701   : > { %8119 = vmatpush1.bf16.msra.mxu0 %v19195_v40  ;;  %v19251_v40 = vld [vmem:[#allocation18 + $0x103c] ss:$28 sps:$4 sm:$0xff]  }
 0x702   : > { %8092 = vmatpush1.bf16.msra.mxu1 %v19192_v29  ;;  %8143 = vmatprep.subr.bf16.mxu0 %v19200_v47  ;;  %v19249_v29 = vld [vmem:[#allocation18 + $0x1038] ss:$28 sps:$4 sm:$0xff]   ;;  %v19252_v47 = vld [vmem:[#allocation18 + $0xcf0] ss:$28 sps:$4 sm:$0xff]  }
 0x703   : > { %8184 = vmatprep.subr.bf16.mxu1 %v19203_v51  ;;  %v19260_v51 = vld [vmem:[#allocation18 + $0xd2c] ss:$28 sps:$4 sm:$0xff]  }
 0x704   : > { %8135 = vmatmul.mubr.bf16.vlgmr.msra.gmra.mrb[88].mxu0 %v22744_v58 }
 0x705   : > { %8094 = vmatmul.mubr.bf16.vlgmr.msra.gmra.mrb[72].mxu1 %v22746_v59  ;;  %8144 = vmatpush1.bf16.msra.mxu0 %v19198_v55  ;;  %v19263_v55 = vld [vmem:[#allocation18 + $0xb3c] ss:$28 sps:$4 sm:$0xff]  }
 0x706   : > { %8175 = vmatprep.mubr.bf16.mxu0 %v22723_v63  ;;  %8185 = vmatpush1.bf16.msra.mxu1 %v19201_v5  ;;  %v19258_v5 = vld [vmem:[#allocation18 + $0xd28] ss:$28 sps:$4 sm:$0xff]  }
 0x707   : > { %16817 = vmatprep.mubr.msk.bf16.mxu1 %vm3920_vm13, %v22737_v30  ;;  %8145 = vmatprep.subr.bf16.mxu0 %v19206_v60  ;;  %v19261_v60 = vld [vmem:[#allocation18 + $0xb38] ss:$28 sps:$4 sm:$0xff]  }
 0x708   : > { %8186 = vmatprep.subr.bf16.mxu1 %v19209_v52  ;;  %v19266_v52 = vld [vmem:[#allocation18 + $0xd64] ss:$28 sps:$4 sm:$0xff]  }
 0x709   : > { %8146 = vmatpush1.bf16.msra.mxu0 %v19204_v19 }
 0x70a   : > { %8187 = vmatpush1.bf16.msra.mxu1 %v19207_v61  ;;  %8147 = vmatprep.subr.bf16.mxu0 %v19212_v62  ;;  %v19269_v61 = vld [vmem:[#allocation18 + $0xb74] ss:$28 sps:$4 sm:$0xff]  }
 0x70b   : > { %8188 = vmatprep.subr.bf16.mxu1 %v19215_v54 }
 0x70d   : > { %8148 = vmatpush1.bf16.msra.mxu0 %v19210_v11 }
 0x70e   : > { %8189 = vmatpush1.bf16.msra.mxu1 %v19213_v22  ;;  %8149 = vmatprep.subr.bf16.mxu0 %v19218_v0  ;;  %v19264_v0 = vld [vmem:[#allocation18 + $0xd60] ss:$28 sps:$4 sm:$0xff]  }
 0x70f   : > { %8190 = vmatprep.subr.bf16.mxu1 %v19221_v35 }
 0x711   : > { %8150 = vmatpush1.bf16.msra.mxu0 %v19216_v36 }
 0x712   : > { %8191 = vmatpush1.bf16.msra.mxu1 %v19219_v1  ;;  %8151 = vmatprep.subr.bf16.mxu0 %v19224_v6  ;;  %v19267_v1 = vld [vmem:[#allocation18 + $0xb70] ss:$28 sps:$4 sm:$0xff]   ;;  %v19272_v6 = vld [vmem:[#allocation18 + $0xd9c] ss:$28 sps:$4 sm:$0xff]  }
 0x713   : > { %8192 = vmatprep.subr.bf16.mxu1 %v19227_v34 }
 0x714   : > { %v6683_v16 = vpop.f32.mrb[56].mxu1 }
 0x715   : > { %v22753_v18 = vpop.f32.mrb[57].mxu1  ;;  %8152 = vmatpush1.bf16.msra.mxu0 %v19222_v10  ;;  %v19275_v10 = vld [vmem:[#allocation18 + $0xbac] ss:$28 sps:$4 sm:$0xff]  }
 0x716   : > { %v6687_v28 = vpop.f32.mrb[58].mxu1  ;;  %8193 = vmatpush1.bf16.msra.mxu1 %v19225_v13  ;;  %8153 = vmatprep.subr.bf16.mxu0 %v19230_v15  ;;  %v19278_v13 = vld [vmem:[#allocation18 + $0xdd4] ss:$28 sps:$4 sm:$0xff]   ;;  %v19281_v15 = vld [vmem:[#allocation18 + $0xbe4] ss:$28 sps:$4 sm:$0xff]  }
 0x717   : > { %v6688_v24 = vpop.f32.mrb[59].mxu1  ;;  %8194 = vmatprep.subr.bf16.mxu1 %v19233_v46  ;;  %v19276_v46 = vld [vmem:[#allocation18 + $0xdd0] ss:$28 sps:$4 sm:$0xff]   ;;  %v19287_v28 = vld [vmem:[#allocation18 + $0xc1c] ss:$28 sps:$4 sm:$0xff]  }
 0x718   : > { %v19293_v24 = vld [vmem:[#allocation18 + $0xc54] ss:$28 sps:$4 sm:$0xff]  }
 0x719   : > { %8154 = vmatpush1.bf16.msra.mxu0 %v19228_v33  ;;  %v19284_v33 = vld [vmem:[#allocation18 + $0xe0c] ss:$28 sps:$4 sm:$0xff]  }
 0x71a   : > { %8195 = vmatpush1.bf16.msra.mxu1 %v19231_v37  ;;  %8155 = vmatprep.subr.bf16.mxu0 %v19236_v23  ;;  %v19285_v37 = vld [vmem:[#allocation18 + $0xc18] ss:$28 sps:$4 sm:$0xff]   ;;  %v19290_v23 = vld [vmem:[#allocation18 + $0xe44] ss:$28 sps:$4 sm:$0xff]  }
 0x71b   : > { %8196 = vmatprep.subr.bf16.mxu1 %v19239_v4  ;;  %v19288_v4 = vld [vmem:[#allocation18 + $0xe40] ss:$28 sps:$4 sm:$0xff]  }
 0x71d   : > { %8156 = vmatpush1.bf16.msra.mxu0 %v19234_v25  ;;  %v19291_v25 = vld [vmem:[#allocation18 + $0xc50] ss:$28 sps:$4 sm:$0xff]  }
 0x71e   : > { %8197 = vmatpush1.bf16.msra.mxu1 %v19237_v56  ;;  %8157 = vmatprep.subr.bf16.mxu0 %v19242_v26  ;;  %v19299_v56 = vld [vmem:[#allocation18 + $0xe84] ss:$28 sps:$4 sm:$0xff]   ;;  %v19296_v26 = vld [vmem:[#allocation18 + $0xc8c] ss:$28 sps:$4 sm:$0xff]  }
 0x71f   : > { %8198 = vmatprep.subr.bf16.mxu1 %v19245_v27  ;;  %v19297_v27 = vld [vmem:[#allocation18 + $0xe80] ss:$28 sps:$4 sm:$0xff]  }
 0x721   : > { %8158 = vmatpush1.bf16.msra.mxu0 %v19240_v3  ;;  %v19294_v3 = vld [vmem:[#allocation18 + $0xc88] ss:$28 sps:$4 sm:$0xff]  }
 0x722   : > { %8199 = vmatpush1.bf16.msra.mxu1 %v19243_v44  ;;  %8159 = vmatprep.subr.bf16.mxu0 %v19248_v41  ;;  %v19305_v44 = vld [vmem:[#allocation18 + $0xebc] ss:$28 sps:$4 sm:$0xff]   ;;  %v19302_v41 = vld [vmem:[#allocation18 + $0xcc4] ss:$28 sps:$4 sm:$0xff]  }
 0x723   : > { %8200 = vmatprep.subr.bf16.mxu1 %v19251_v40  ;;  %v19303_v40 = vld [vmem:[#allocation18 + $0xeb8] ss:$28 sps:$4 sm:$0xff]  }
 0x725   : > { %8160 = vmatpush1.bf16.msra.mxu0 %v19246_v43  ;;  %v19300_v43 = vld [vmem:[#allocation18 + $0xcc0] ss:$28 sps:$4 sm:$0xff]  }
 0x726   : > { %8201 = vmatpush1.bf16.msra.mxu1 %v19249_v29  ;;  %8161 = vmatprep.subr.bf16.mxu0 %v19254_v45  ;;  %v19311_v29 = vld [vmem:[#allocation18 + $0xef4] ss:$28 sps:$4 sm:$0xff]   ;;  %v19308_v45 = vld [vmem:[#allocation18 + $0xcfc] ss:$28 sps:$4 sm:$0xff]  }
 0x727   : > { %8225 = vmatprep.subr.bf16.mxu1 %v19257_v42  ;;  %v19309_v42 = vld [vmem:[#allocation18 + $0xef0] ss:$28 sps:$4 sm:$0xff]  }
 0x729   : > { %8217 = vmatmul.mubr.bf16.vlgmr.msra.gmra.mrb[76].mxu1 %v22744_v58  ;;  %8162 = vmatpush1.bf16.msra.mxu0 %v19252_v47  ;;  %v19306_v47 = vld [vmem:[#allocation18 + $0xcf8] ss:$28 sps:$4 sm:$0xff]  }
 0x72a   : > { %8226 = vmatpush1.bf16.msra.mxu1 %v19255_v17  ;;  %8257 = vmatprep.mubr.bf16.mxu1 %v22723_v63  ;;  %v19317_v17 = vld [vmem:[#allocation18 + $0xf2c] ss:$28 sps:$4 sm:$0xff]  }
 0x72b   : > { %v6642_v19 = vpop.f32.mrb[72].mxu0  ;;  %8163 = vmatprep.subr.bf16.mxu0 %v19260_v51  ;;  %8227 = vmatprep.subr.bf16.mxu1 %v19263_v55  ;;  %v19314_v51 = vld [vmem:[#allocation18 + $0xd34] ss:$28 sps:$4 sm:$0xff]   ;;  %v19315_v55 = vld [vmem:[#allocation18 + $0xf28] ss:$28 sps:$4 sm:$0xff]  }
 0x72c   : > { %v6643_v62 = vadd.f32 %v6642_v19, %v22696_v31  ;;  %v6644_v54 = vpop.f32.mrb[73].mxu0  ;;  %v19270_v31 = vld [vmem:[#allocation18 + $0xd98] ss:$28 sps:$4 sm:$0xff]   ;;  %v19320_v19 = vld [vmem:[#allocation18 + $0xd6c] ss:$28 sps:$4 sm:$0xff]  }
 0x72d   : > { %v6645_v11 = vadd.f32 %v6644_v54, %v22698_v57  ;;  %v6646_v22 = vpop.f32.mrb[74].mxu0  ;;  %8164 = vmatpush1.bf16.msra.mxu0 %v19258_v5  ;;  %v19273_v57 = vld [vmem:[#allocation18 + $0xba8] ss:$28 sps:$4 sm:$0xff]   ;;  %v19312_v5 = vld [vmem:[#allocation18 + $0xd30] ss:$28 sps:$4 sm:$0xff]  }
 0x72e   : > { %v22759_v35 = vadd.f32 %v6683_v16, %v6643_v62  ;;  %8228 = vmatpush1.bf16.msra.mxu1 %v19261_v60  ;;  %v6647_v36 = vpop.f32.mrb[75].mxu0  ;;  %8165 = vmatprep.subr.bf16.mxu0 %v19266_v52  ;;  %v19279_v16 = vld [vmem:[#allocation18 + $0xbe0] ss:$28 sps:$4 sm:$0xff]   ;;  %v19318_v22 = vld [vmem:[#allocation18 + $0xd68] ss:$28 sps:$4 sm:$0xff]  }
 0x72f   : > { %v22762_v34 = vadd.f32 %v22753_v18, %v6645_v11  ;;  %8229 = vmatprep.subr.bf16.mxu1 %v19269_v61  ;;  %v19282_v18 = vld [vmem:[#allocation18 + $0xe08] ss:$28 sps:$4 sm:$0xff]   ;;  %v19321_v54 = vld [vmem:[#allocation18 + $0xf60] ss:$28 sps:$4 sm:$0xff]  }
 0x730   : > { %v19323_v60 = vld [vmem:[#allocation18 + $0xf64] ss:$28 sps:$4 sm:$0xff]  }
 0x731   : > { %8166 = vmatpush1.bf16.msra.mxu0 %v19264_v0  ;;  %v19329_v0 = vld [vmem:[#allocation18 + $0xf9c] ss:$28 sps:$4 sm:$0xff]   ;;  %v19326_v36 = vld [vmem:[#allocation18 + $0xda4] ss:$28 sps:$4 sm:$0xff]  }
 0x732   : > { %8230 = vmatpush1.bf16.msra.mxu1 %v19267_v1  ;;  %8167 = vmatprep.subr.bf16.mxu0 %v19272_v6 }
 0x733   : > { %8231 = vmatprep.subr.bf16.mxu1 %v19275_v10 }
 0x735   : > { %8168 = vmatpush1.bf16.msra.mxu0 %v19270_v31  ;;  %v19327_v31 = vld [vmem:[#allocation18 + $0xf98] ss:$28 sps:$4 sm:$0xff]  }
 0x736   : > { %8232 = vmatpush1.bf16.msra.mxu1 %v19273_v57  ;;  %8169 = vmatprep.subr.bf16.mxu0 %v19278_v13 }
 0x737   : > { %8233 = vmatprep.subr.bf16.mxu1 %v19281_v15  ;;  %v19324_v15 = vld [vmem:[#allocation18 + $0xda0] ss:$28 sps:$4 sm:$0xff]  }
 0x739   : > { %8170 = vmatpush1.bf16.msra.mxu0 %v19276_v46  ;;  %v19335_v46 = vld [vmem:[#allocation18 + $0xfd4] ss:$28 sps:$4 sm:$0xff]  }
 0x73a   : > { %8234 = vmatpush1.bf16.msra.mxu1 %v19279_v16  ;;  %8171 = vmatprep.subr.bf16.mxu0 %v19284_v33 }
 0x73b   : > { %8235 = vmatprep.subr.bf16.mxu1 %v19287_v28  ;;  %v19332_v28 = vld [vmem:[#allocation18 + $0xddc] ss:$28 sps:$4 sm:$0xff]  }
 0x73d   : > { %8172 = vmatpush1.bf16.msra.mxu0 %v19282_v18 }
 0x73e   : > { %8236 = vmatpush1.bf16.msra.mxu1 %v19285_v37  ;;  %8173 = vmatprep.subr.bf16.mxu0 %v19290_v23  ;;  %v19333_v37 = vld [vmem:[#allocation18 + $0xfd0] ss:$28 sps:$4 sm:$0xff]  }
 0x73f   : > { %8237 = vmatprep.subr.bf16.mxu1 %v19293_v24  ;;  %v19341_v23 = vld [vmem:[#allocation18 + $0x100c] ss:$28 sps:$4 sm:$0xff]  }
 0x740   : > { %v19339_v24 = vld [vmem:[#allocation18 + $0x1008] ss:$28 sps:$4 sm:$0xff]  }
 0x741   : > { %8174 = vmatpush1.bf16.msra.mxu0 %v19288_v4  ;;  %v19336_v4 = vld [vmem:[#allocation18 + $0xe10] ss:$28 sps:$4 sm:$0xff]  }
 0x742   : > { %8238 = vmatpush1.bf16.msra.mxu1 %v19291_v25  ;;  %8266 = vmatprep.subr.bf16.mxu0 %v19299_v56  ;;  %v19347_v25 = vld [vmem:[#allocation18 + $0x1044] ss:$28 sps:$4 sm:$0xff]   ;;  %v19344_v56 = vld [vmem:[#allocation18 + $0xe4c] ss:$28 sps:$4 sm:$0xff]  }
 0x743   : > { %8239 = vmatprep.subr.bf16.mxu1 %v19296_v26  ;;  %v19345_v26 = vld [vmem:[#allocation18 + $0x1040] ss:$28 sps:$4 sm:$0xff]  }
 0x744   : > { %8176 = vmatmul.mubr.bf16.vlgmr.msra.gmra.mrb[92].mxu0 %v22746_v59 }
 0x745   : > { %8267 = vmatpush1.bf16.msra.mxu0 %v19297_v27  ;;  %16818 = vmatprep.mubr.msk.bf16.mxu0 %vm3920_vm13, %v22737_v30  ;;  %v19342_v27 = vld [vmem:[#allocation18 + $0xe48] ss:$28 sps:$4 sm:$0xff]  }
 0x746   : > { %8240 = vmatpush1.bf16.msra.mxu1 %v19294_v3  ;;  %8268 = vmatprep.subr.bf16.mxu0 %v19305_v44  ;;  %v19348_v3 = vld [vmem:[#allocation18 + $0xcc8] ss:$28 sps:$4 sm:$0xff]  }
 0x747   : > { %8241 = vmatprep.subr.bf16.mxu1 %v19302_v41  ;;  %v19349_v44 = vld [vmem:[#allocation18 + $0xb08] ss:$28 sps:$4 sm:$0xff]  }
 0x748   : > { %v19350_v41 = vld [vmem:[#allocation18 + $0xe88] ss:$28 sps:$4 sm:$0xff]  }
 0x749   : > { %8269 = vmatpush1.bf16.msra.mxu0 %v19303_v40  ;;  %v19351_v40 = vld [vmem:[#allocation18 + $0xd00] ss:$28 sps:$4 sm:$0xff]  }
 0x74a   : > { %8242 = vmatpush1.bf16.msra.mxu1 %v19300_v43  ;;  %8270 = vmatprep.subr.bf16.mxu0 %v19311_v29  ;;  %v19352_v43 = vld [vmem:[#allocation18 + $0xb40] ss:$28 sps:$4 sm:$0xff]  }
 0x74b   : > { %8243 = vmatprep.subr.bf16.mxu1 %v19308_v45  ;;  %v19353_v29 = vld [vmem:[#allocation18 + $0xec0] ss:$28 sps:$4 sm:$0xff]   ;;  %v19354_v45 = vld [vmem:[#allocation18 + $0xd38] ss:$28 sps:$4 sm:$0xff]  }
 0x74d   : > { %8271 = vmatpush1.bf16.msra.mxu0 %v19309_v42  ;;  %v19355_v42 = vld [vmem:[#allocation18 + $0xb78] ss:$28 sps:$4 sm:$0xff]  }
 0x74e   : > { %8244 = vmatpush1.bf16.msra.mxu1 %v19306_v47  ;;  %8272 = vmatprep.subr.bf16.mxu0 %v19317_v17  ;;  %v19356_v47 = vld [vmem:[#allocation18 + $0xef8] ss:$28 sps:$4 sm:$0xff]   ;;  %v19357_v17 = vld [vmem:[#allocation18 + $0xd70] ss:$28 sps:$4 sm:$0xff]  }
 0x74f   : > { %v6765_v52 = vpop.f32.mrb[76].mxu0  ;;  %8245 = vmatprep.subr.bf16.mxu1 %v19314_v51  ;;  %v19358_v51 = vld [vmem:[#allocation18 + $0xbb0] ss:$28 sps:$4 sm:$0xff]  }
 0x750   : > { %v6767_v61 = vpop.f32.mrb[77].mxu0 }
 0x751   : > { %v6769_v62 = vpop.f32.mrb[78].mxu0  ;;  %8273 = vmatpush1.bf16.msra.mxu0 %v19315_v55  ;;  %v19360_v55 = vld [vmem:[#allocation18 + $0xda8] ss:$28 sps:$4 sm:$0xff]  }
 0x752   : > { %8246 = vmatpush1.bf16.msra.mxu1 %v19312_v5  ;;  %v6770_v11 = vpop.f32.mrb[79].mxu0  ;;  %8274 = vmatprep.subr.bf16.mxu0 %v19323_v60  ;;  %v19362_v5 = vld [vmem:[#allocation18 + $0xf68] ss:$28 sps:$4 sm:$0xff]   ;;  %v19363_v60 = vld [vmem:[#allocation18 + $0xde0] ss:$28 sps:$4 sm:$0xff]  }
 0x753   : > { %8247 = vmatprep.subr.bf16.mxu1 %v19320_v19  ;;  %v8399_v19 = vld [vmem:[#allocation4 + $0x28] sm:$0x7]  ;;  %v19364_v62 = vld [vmem:[#allocation18 + $0xc20] ss:$28 sps:$4 sm:$0xff]  }
 0x754   : > { %v6724_v1 = vpop.f32.mrb[60].mxu1 }
 0x755   : > { %v6725_v6 = vadd.f32 %v6724_v1, %v22712_v20  ;;  %v6726_v10 = vpop.f32.mrb[61].mxu1  ;;  %8275 = vmatpush1.bf16.msra.mxu0 %v19321_v54  ;;  %v19330_v20 = vld [vmem:[#allocation18 + $0xdd8] ss:$28 sps:$4 sm:$0xff]   ;;  %v8395_v54 = vld [vmem:[#allocation4 + $0x8] sm:$0xf8] }
 0x756   : > { %v6727_v57 = vadd.f32 %v6726_v10, %v22715_v21  ;;  %v6728_v13 = vpop.f32.mrb[62].mxu1  ;;  %8248 = vmatpush1.bf16.msra.mxu1 %v19318_v22  ;;  %8276 = vmatprep.subr.bf16.mxu0 %v19329_v0  ;;  %v19338_v21 = vld [vmem:[#allocation18 + $0xe14] ss:$28 sps:$4 sm:$0xff]   ;;  %v19365_v22 = vld [vmem:[#allocation18 + $0xfa0] ss:$28 sps:$4 sm:$0xff]   ;;  %v8403_v1 = vpack.c.bf16 %v8399_v19, %v8395_v54 }
 0x757   : > { %v22769_v16 = vadd.f32 %v6765_v52, %v6725_v6  ;;  %v6729_v33 = vpop.f32.mrb[63].mxu1  ;;  %8249 = vmatprep.subr.bf16.mxu1 %v19326_v36  ;;  %v19366_v0 = vld [vmem:[#allocation18 + $0xe18] ss:$28 sps:$4 sm:$0xff]  }
 0x758   : > { %v22771_v18 = vadd.f32 %v6767_v61, %v6727_v57  ;;  %v19367_v6 = vld [vmem:[#allocation18 + $0xc58] ss:$28 sps:$4 sm:$0xff]   ;;  %v19369_v57 = vld [vmem:[#allocation18 + $0xe50] ss:$28 sps:$4 sm:$0xff]   ;;  %v8616_v13 = vshrl.u32 %v8403_v1, 16 }
 0x759   : > { %8277 = vmatpush1.bf16.msra.mxu0 %v19327_v31  ;;  %v8401_v10 = vld [vmem:[#allocation4 + $0x38] sm:$0x7] }
 0x75a   : > { %8250 = vmatpush1.bf16.msra.mxu1 %v19324_v15  ;;  %8278 = vmatprep.subr.bf16.mxu0 %v19335_v46  ;;  %v19368_v31 = vld [vmem:[#allocation18 + $0xfd8] ss:$28 sps:$4 sm:$0xff]   ;;  %v8619_v15 = vshll.u32 %v8403_v1, 16  ;;  %v8397_v46 = vld [vmem:[#allocation4 + $0x18] sm:$0xf8] }
 0x75b   : > { %8251 = vmatprep.subr.bf16.mxu1 %v19332_v28  ;;  %v8405_v33 = vpack.c.bf16 %v8401_v10, %v8397_v46  ;;  %v19370_v28 = vld [vmem:[#allocation18 + $0xc90] ss:$28 sps:$4 sm:$0xff]   ;;  %v19391_v54 = vld [vmem:[#allocation18 + $0x1458] ss:$28 sps:$4 sm:$0xff]   ;;  %v19400_v10 = vld [vmem:[#allocation18 + $0x1180] ss:$28 sps:$4 sm:$0xff]  }
 0x75c   : > { %v19405_v1 = vld [vmem:[#allocation18 + $0x14cc] ss:$28 sps:$4 sm:$0xff]   ;;  %v19411_v46 = vld [vmem:[#allocation18 + $0x1504] ss:$28 sps:$4 sm:$0xff]  }
 0x75d   : > { %8279 = vmatpush1.bf16.msra.mxu0 %v19333_v37  ;;  %v19371_v37 = vld [vmem:[#allocation18 + $0x1010] ss:$28 sps:$4 sm:$0xff]  }
 0x75e   : > { %8252 = vmatpush1.bf16.msra.mxu1 %v19330_v20  ;;  %8280 = vmatprep.subr.bf16.mxu0 %v19341_v23  ;;  %v19374_v20 = vld [vmem:[#allocation18 + $0x106c] ss:$28 sps:$4 sm:$0xff]   ;;  %v8618_v23 = vrot.slane %v8616_v13, 1  ;;  %v19408_v13 = vld [vmem:[#allocation18 + $0x11bc] ss:$28 sps:$4 sm:$0xff]  }
 0x75f   : > { %8253 = vmatprep.subr.bf16.mxu1 %v19338_v21  ;;  %v8621_v21 = vrot.slane %v8619_v15, 2 }
 0x761   : > { %8281 = vmatpush1.bf16.msra.mxu0 %v19339_v24  ;;  %v8632_v24 = vshrl.u32 %v8405_v33, 16 }
 0x762   : > { %8254 = vmatpush1.bf16.msra.mxu1 %v19336_v4  ;;  %8282 = vmatprep.subr.bf16.mxu0 %v19347_v25  ;;  %v8635_v4 = vshll.u32 %v8405_v33, 16  ;;  %v19372_v25 = vld [vmem:[#allocation18 + $0x1068] ss:$28 sps:$4 sm:$0xff]  }
 0x763   : > { %8255 = vmatprep.subr.bf16.mxu1 %v19344_v56  ;;  %v19375_v56 = vld [vmem:[#allocation18 + $0x1048] ss:$28 sps:$4 sm:$0xff]  }
 0x765   : > { %8283 = vmatpush1.bf16.msra.mxu0 %v19345_v26  ;;  %v19378_v26 = vld [vmem:[#allocation18 + $0x10a4] ss:$28 sps:$4 sm:$0xff]  }
 0x766   : > { %8256 = vmatpush1.bf16.msra.mxu1 %v19342_v27  ;;  %17710 = vmatprep.subr.bf16.mxu0 %v19348_v3  ;;  %v22791_v27 = vor.u32 %v8621_v21, %v8618_v23  ;;  %v19381_v3 = vld [vmem:[#allocation18 + $0x13ec] ss:$28 sps:$4 sm:$0xff]   ;;  %v19417_v23 = vld [vmem:[#allocation18 + $0x153c] ss:$28 sps:$4 sm:$0xff]   ;;  %v8400_v21 = vld [vmem:[#allocation4 + $0x30] sm:$0x7] }
 0x767   : > { %8347 = vmatprep.subr.bf16.mxu1 %v21279_v2 }
 0x768   : > { %8299 = vmatmul.mubr.bf16.vlgmr.msra.gmra.mrb[96].mxu0 %v22744_v58 }
 0x769   : > { %8258 = vmatmul.mubr.bf16.vlgmr.msra.gmra.mrb[80].mxu1 %v22746_v59  ;;  %17711 = vmatpush3.bf16.msra.mxu0 %v19349_v44  ;;  %v8634_v44 = vrot.slane %v8632_v24, 1  ;;  %v19412_v24 = vld [vmem:[#allocation18 + $0x11f0] ss:$28 sps:$4 sm:$0xff]  }
 0x76a   : > { %8339 = vmatprep.mubr.bf16.mxu0 %v22723_v63  ;;  %8348 = vmatpush1.bf16.msra.mxu1 %v19350_v41  ;;  %v19359_v63 = vld [vmem:[#allocation18 + $0xf30] ss:$28 sps:$4 sm:$0xff]   ;;  %v8637_v41 = vrot.slane %v8635_v4, 2  ;;  %v19415_v4 = vld [vmem:[#allocation18 + $0x1538] ss:$28 sps:$4 sm:$0xff]  }
 0x76b   : > { %16819 = vmatprep.mubr.msk.bf16.mxu1 %vm3920_vm13, %v22737_v30  ;;  %17712 = vmatprep.subr.bf16.mxu0 %v19351_v40  ;;  %v19361_v30 = vld [vmem:[#allocation18 + $0xbe8] ss:$28 sps:$4 sm:$0xff]   ;;  %v19376_v40 = vld [vmem:[#allocation18 + $0x10a0] ss:$28 sps:$4 sm:$0xff]  }
 0x76c   : > { %8349 = vmatprep.subr.bf16.mxu1 %v21279_v2 }
 0x76d   : > { %17713 = vmatpush3.bf16.msra.mxu0 %v19352_v43  ;;  %v19379_v43 = vld [vmem:[#allocation18 + $0x13e8] ss:$28 sps:$4 sm:$0xff]  }
 0x76e   : > { %8350 = vmatpush1.bf16.msra.mxu1 %v19353_v29  ;;  %17714 = vmatprep.subr.bf16.mxu0 %v19354_v45  ;;  %v19384_v29 = vld [vmem:[#allocation18 + $0x10dc] ss:$28 sps:$4 sm:$0xff]   ;;  %v19387_v45 = vld [vmem:[#allocation18 + $0x1424] ss:$28 sps:$4 sm:$0xff]  }
 0x76f   : > { %8351 = vmatprep.subr.bf16.mxu1 %v21279_v2 }
 0x771   : > { %17715 = vmatpush3.bf16.msra.mxu0 %v19355_v42  ;;  %v22795_v42 = vor.u32 %v8637_v41, %v8634_v44  ;;  %v19421_v44 = vld [vmem:[#allocation18 + $0x1570] ss:$28 sps:$4 sm:$0xff]   ;;  %v19426_v41 = vld [vmem:[#allocation18 + $0x1264] ss:$28 sps:$4 sm:$0xff]  }
 0x772   : > { %8352 = vmatpush1.bf16.msra.mxu1 %v19356_v47  ;;  %17716 = vmatprep.subr.bf16.mxu0 %v19357_v17  ;;  %v19382_v47 = vld [vmem:[#allocation18 + $0x10d8] ss:$28 sps:$4 sm:$0xff]  }
 0x773   : > { %8353 = vmatprep.subr.bf16.mxu1 %v21279_v2  ;;  %v19390_v17 = vld [vmem:[#allocation18 + $0x1114] ss:$28 sps:$4 sm:$0xff]  }
 0x775   : > { %17717 = vmatpush3.bf16.msra.mxu0 %v19358_v51 }
 0x776   : > { %8354 = vmatpush1.bf16.msra.mxu1 %v19359_v63  ;;  %17718 = vmatprep.subr.bf16.mxu0 %v19360_v55  ;;  %v19393_v63 = vld [vmem:[#allocation18 + $0x145c] ss:$28 sps:$4 sm:$0xff]  }
 0x777   : > { %8355 = vmatprep.subr.bf16.mxu1 %v21279_v2 }
 0x778   : > { %v22783_v52 = vpop.f32.mrb[64].mxu1 }
 0x779   : > { %v22785_v61 = vpop.f32.mrb[65].mxu1  ;;  %17719 = vmatpush3.bf16.msra.mxu0 %v19361_v30 }
 0x77a   : > { %v6851_v11 = vpop.f32.mrb[66].mxu1  ;;  %8356 = vmatpush1.bf16.msra.mxu1 %v19362_v5  ;;  %17720 = vmatprep.subr.bf16.mxu0 %v19363_v60 }
 0x77b   : > { %v6852_v36 = vpop.f32.mrb[67].mxu1  ;;  %8357 = vmatprep.subr.bf16.mxu1 %v21279_v2  ;;  %v19396_v11 = vld [vmem:[#allocation18 + $0x114c] ss:$28 sps:$4 sm:$0xff]  }
 0x77c   : > { %v19402_v36 = vld [vmem:[#allocation18 + $0x1184] ss:$28 sps:$4 sm:$0xff]  }
 0x77d   : > { %17721 = vmatpush3.bf16.msra.mxu0 %v19364_v62 }
 0x77e   : > { %8358 = vmatpush1.bf16.msra.mxu1 %v19365_v22  ;;  %17722 = vmatprep.subr.bf16.mxu0 %v19366_v0  ;;  %v19399_v0 = vld [vmem:[#allocation18 + $0x1494] ss:$28 sps:$4 sm:$0xff]  }
 0x77f   : > { %8359 = vmatprep.subr.bf16.mxu1 %v21279_v2 }
 0x781   : > { %17723 = vmatpush3.bf16.msra.mxu0 %v19367_v6 }
 0x782   : > { %8360 = vmatpush1.bf16.msra.mxu1 %v19368_v31  ;;  %17724 = vmatprep.subr.bf16.mxu0 %v19369_v57 }
 0x783   : > { %8361 = vmatprep.subr.bf16.mxu1 %v21279_v2 }
 0x785   : > { %17725 = vmatpush3.bf16.msra.mxu0 %v19370_v28  ;;  %v19406_v28 = vld [vmem:[#allocation18 + $0x11b8] ss:$28 sps:$4 sm:$0xff]  }
 0x786   : > { %8362 = vmatpush1.bf16.msra.mxu1 %v19371_v37  ;;  %9545 = vmatprep.subr.bf16.mxu0 %v19374_v20  ;;  %v19409_v37 = vld [vmem:[#allocation18 + $0x1500] ss:$28 sps:$4 sm:$0xff]   ;;  %v19414_v20 = vld [vmem:[#allocation18 + $0x11f4] ss:$28 sps:$4 sm:$0xff]  }
 0x787   : > { %8363 = vmatprep.subr.bf16.mxu1 %v21279_v2 }
 0x788   : > { %8340 = vmatmul.mubr.bf16.vlgmr.msra.gmra.mrb[100].mxu0 %v22746_v59  ;;  %v19385_v59 = vld [vmem:[#allocation18 + $0x1420] ss:$28 sps:$4 sm:$0xff]  }
 0x789   : > { %9546 = vmatpush1.bf16.msra.mxu0 %v19372_v25  ;;  %9577 = vmatprep.mubr.bf16.mxu0 %v22791_v27  ;;  %v19420_v25 = vld [vmem:[#allocation18 + $0x122c] ss:$28 sps:$4 sm:$0xff]  }
 0x78a   : > { %8364 = vmatpush1.bf16.msra.mxu1 %v19375_v56  ;;  %9547 = vmatprep.subr.bf16.mxu0 %v19378_v26  ;;  %v8396_v56 = vld [vmem:[#allocation4 + $0x10] sm:$0xf8] }
 0x78b   : > { %9586 = vmatprep.subr.bf16.mxu1 %v19381_v3  ;;  %v19423_v26 = vld [vmem:[#allocation18 + $0x1574] ss:$28 sps:$4 sm:$0xff]   ;;  %v8404_v3 = vpack.c.bf16 %v8400_v21, %v8396_v56 }
 0x78c   : > { %v19462_v21 = vld [vmem:[#allocation18 + $0x13b4] ss:$28 sps:$4 sm:$0xff]  }
 0x78d   : > { %8380 = vmatmul.mubr.bf16.vlgmr.msra.gmra.mrb[84].mxu1 %v22744_v58  ;;  %9548 = vmatpush1.bf16.msra.mxu0 %v19376_v40  ;;  %v19388_v58 = vld [vmem:[#allocation18 + $0x1110] ss:$28 sps:$4 sm:$0xff]  }
 0x78e   : > { %9587 = vmatpush1.bf16.msra.mxu1 %v19379_v43  ;;  %16995 = vmatprep.mubr.msk.bf16.mxu1 %vm3920_vm13, %v22795_v42  ;;  %v19429_v40 = vld [vmem:[#allocation18 + $0x15ac] ss:$28 sps:$4 sm:$0xff]   ;;  %v8624_v43 = vshrl.u32 %v8404_v3, 16 }
 0x78f   : > { %v6806_v51 = vpop.f32.mrb[80].mxu0  ;;  %9549 = vmatprep.subr.bf16.mxu0 %v19384_v29  ;;  %9588 = vmatprep.subr.bf16.mxu1 %v19387_v45  ;;  %v8627_v29 = vshll.u32 %v8404_v3, 16  ;;  %v19424_v45 = vld [vmem:[#allocation18 + $0x1260] ss:$28 sps:$4 sm:$0xff]   ;;  %v19460_v56 = vld [vmem:[#allocation18 + $0x13b0] ss:$28 sps:$4 sm:$0xff]  }
 0x790   : > { %v6807_v55 = vadd.f32 %v6806_v51, %v22729_v38  ;;  %v6808_v30 = vpop.f32.mrb[81].mxu0  ;;  %v19394_v38 = vld [vmem:[#allocation18 + $0x1148] ss:$28 sps:$4 sm:$0xff]  }
 0x791   : > { %v6809_v5 = vadd.f32 %v6808_v30, %v22731_v32  ;;  %v6810_v60 = vpop.f32.mrb[82].mxu0  ;;  %9550 = vmatpush1.bf16.msra.mxu0 %v19382_v47  ;;  %v19397_v32 = vld [vmem:[#allocation18 + $0x1490] ss:$28 sps:$4 sm:$0xff]   ;;  %v19427_v47 = vld [vmem:[#allocation18 + $0x15a8] ss:$28 sps:$4 sm:$0xff]   ;;  %v8629_v51 = vrot.slane %v8627_v29, 2 }
 0x792   : > { %v22803_v19 = vadd.f32 %v22783_v52, %v6807_v55  ;;  %9589 = vmatpush1.bf16.msra.mxu1 %v19385_v59  ;;  %v6811_v62 = vpop.f32.mrb[83].mxu0  ;;  %9551 = vmatprep.subr.bf16.mxu0 %v19390_v17  ;;  %v19432_v59 = vld [vmem:[#allocation18 + $0x129c] ss:$28 sps:$4 sm:$0xff]   ;;  %v8626_v17 = vrot.slane %v8624_v43, 1  ;;  %v19433_v30 = vld [vmem:[#allocation18 + $0x1070] ss:$28 sps:$4 sm:$0xff]  }
 0x793   : > { %v22806_v22 = vadd.f32 %v22785_v61, %v6809_v5  ;;  %9590 = vmatprep.subr.bf16.mxu1 %v19393_v63  ;;  %v19403_v61 = vld [vmem:[#allocation18 + $0x14c8] ss:$28 sps:$4 sm:$0xff]   ;;  %v19435_v63 = vld [vmem:[#allocation18 + $0x1074] ss:$28 sps:$4 sm:$0xff]   ;;  %v19466_v29 = vld [vmem:[#allocation18 + $0x11c0] ss:$28 sps:$4 sm:$0xff]  }
 0x794   : > { %v19430_v55 = vld [vmem:[#allocation18 + $0x1298] ss:$28 sps:$4 sm:$0xff]   ;;  %v22809_v5 = vor.u32 %v8629_v51, %v8626_v17  ;;  %v19436_v62 = vld [vmem:[#allocation18 + $0x12d0] ss:$28 sps:$4 sm:$0xff]   ;;  %v19483_v51 = vld [vmem:[#allocation18 + $0x1464] ss:$28 sps:$4 sm:$0xff]  }
 0x795   : > { %9552 = vmatpush1.bf16.msra.mxu0 %v19388_v58  ;;  %v19438_v60 = vld [vmem:[#allocation18 + $0x12d4] ss:$28 sps:$4 sm:$0xff]   ;;  %v19441_v58 = vld [vmem:[#allocation18 + $0x10ac] ss:$28 sps:$4 sm:$0xff]  }
 0x796   : > { %9591 = vmatpush1.bf16.msra.mxu1 %v19391_v54  ;;  %9553 = vmatprep.subr.bf16.mxu0 %v19396_v11  ;;  %v19439_v54 = vld [vmem:[#allocation18 + $0x10a8] ss:$28 sps:$4 sm:$0xff]   ;;  %v19472_v17 = vld [vmem:[#allocation18 + $0x11f8] ss:$28 sps:$4 sm:$0xff]  }
 0x797   : > { %9592 = vmatprep.subr.bf16.mxu1 %v19399_v0  ;;  %v19444_v11 = vld [vmem:[#allocation18 + $0x130c] ss:$28 sps:$4 sm:$0xff]  }
 0x798   : > { %v17704_v52 = vpop.f32.mrb[68].mxu1 }
 0x799   : > { %v17705_v6 = vpop.f32.mrb[69].mxu1  ;;  %9554 = vmatpush1.bf16.msra.mxu0 %v19394_v38  ;;  %v19447_v38 = vld [vmem:[#allocation18 + $0x10e4] ss:$28 sps:$4 sm:$0xff]  }
 0x79a   : > { %v17706_v31 = vadd.f32 %v17705_v6, %v17704_v52  ;;  %v17707_v57 = vpop.f32.mrb[70].mxu1  ;;  %9593 = vmatpush1.bf16.msra.mxu1 %v19397_v32  ;;  %9555 = vmatprep.subr.bf16.mxu0 %v19402_v36  ;;  %v19442_v52 = vld [vmem:[#allocation18 + $0x1308] ss:$28 sps:$4 sm:$0xff]  }
 0x79b   : > { %v17708_v15 = vpop.f32.mrb[71].mxu1  ;;  %9594 = vmatprep.subr.bf16.mxu1 %v19405_v1  ;;  %v19453_v57 = vld [vmem:[#allocation18 + $0x111c] ss:$28 sps:$4 sm:$0xff]  }
 0x79c   : > { %v6889_v33 = vadd.f32 %v17706_v31, %v22742_v14  ;;  %v19418_v14 = vld [vmem:[#allocation18 + $0x1228] ss:$28 sps:$4 sm:$0xff]  }
 0x79d   : > { %9556 = vmatpush1.bf16.msra.mxu0 %v19400_v10  ;;  %v19445_v10 = vld [vmem:[#allocation18 + $0x10e0] ss:$28 sps:$4 sm:$0xff]   ;;  %v8394_v15 = vld [vmem:[#allocation4] sm:$0xf8] }
 0x79e   : > { %9595 = vmatpush1.bf16.msra.mxu1 %v19403_v61  ;;  %9557 = vmatprep.subr.bf16.mxu0 %v19408_v13  ;;  %v19450_v31 = vld [vmem:[#allocation18 + $0x1344] ss:$28 sps:$4 sm:$0xff]  }
 0x79f   : > { %9596 = vmatprep.subr.bf16.mxu1 %v19411_v46  ;;  %v8398_v61 = vld [vmem:[#allocation4 + $0x20] sm:$0x7]  ;;  %v19451_v46 = vld [vmem:[#allocation18 + $0x1118] ss:$28 sps:$4 sm:$0xff]  }
 0x7a0   : > { %v19448_v13 = vld [vmem:[#allocation18 + $0x1340] ss:$28 sps:$4 sm:$0xff]  }
 0x7a1   : > { %9558 = vmatpush1.bf16.msra.mxu0 %v19406_v28  ;;  %v8402_v28 = vpack.c.bf16 %v8398_v61, %v8394_v15  ;;  %v19499_v15 = vld [vmem:[#allocation18 + $0x1508] ss:$28 sps:$4 sm:$0xff]  }
 0x7a2   : > { %9597 = vmatpush1.bf16.msra.mxu1 %v19409_v37  ;;  %9559 = vmatprep.subr.bf16.mxu0 %v19414_v20  ;;  %v19459_v37 = vld [vmem:[#allocation18 + $0x1154] ss:$28 sps:$4 sm:$0xff]  }
 0x7a3   : > { %9598 = vmatprep.subr.bf16.mxu1 %v19417_v23  ;;  %v19454_v20 = vld [vmem:[#allocation18 + $0x1378] ss:$28 sps:$4 sm:$0xff]   ;;  %v19457_v23 = vld [vmem:[#allocation18 + $0x1150] ss:$28 sps:$4 sm:$0xff]  }
 0x7a5   : > { %9560 = vmatpush1.bf16.msra.mxu0 %v19412_v24  ;;  %v8608_v24 = vshrl.u32 %v8402_v28, 16 }
 0x7a6   : > { %9599 = vmatpush1.bf16.msra.mxu1 %v19415_v4  ;;  %9561 = vmatprep.subr.bf16.mxu0 %v19420_v25  ;;  %v8611_v4 = vshll.u32 %v8402_v28, 16  ;;  %v19465_v25 = vld [vmem:[#allocation18 + $0x118c] ss:$28 sps:$4 sm:$0xff]  }
 0x7a7   : > { %9600 = vmatprep.subr.bf16.mxu1 %v19423_v26  ;;  %v19463_v26 = vld [vmem:[#allocation18 + $0x1188] ss:$28 sps:$4 sm:$0xff]   ;;  %v8610_v3 = vrot.slane %v8608_v24, 1  ;;  %v19504_v24 = vld [vmem:[#allocation18 + $0x1314] ss:$28 sps:$4 sm:$0xff]  }
 0x7a9   : > { %9562 = vmatpush1.bf16.msra.mxu0 %v19418_v14  ;;  %v8613_v14 = vrot.slane %v8611_v4, 2 }
 0x7aa   : > { %9601 = vmatpush1.bf16.msra.mxu1 %v19421_v44  ;;  %9563 = vmatprep.subr.bf16.mxu0 %v19426_v41  ;;  %v19471_v44 = vld [vmem:[#allocation18 + $0x13f4] ss:$28 sps:$4 sm:$0xff]   ;;  %v19468_v41 = vld [vmem:[#allocation18 + $0x11c4] ss:$28 sps:$4 sm:$0xff]  }
 0x7ab   : > { %9602 = vmatprep.subr.bf16.mxu1 %v19429_v40  ;;  %v19469_v40 = vld [vmem:[#allocation18 + $0x13f0] ss:$28 sps:$4 sm:$0xff]   ;;  %v22815_v43 = vor.u32 %v8613_v14, %v8610_v3  ;;  %v19511_v14 = vld [vmem:[#allocation18 + $0x1578] ss:$28 sps:$4 sm:$0xff]  }
 0x7ac   : > { %v19510_v3 = vld [vmem:[#allocation18 + $0x134c] ss:$28 sps:$4 sm:$0xff]  }
 0x7ad   : > { %9564 = vmatpush1.bf16.msra.mxu0 %v19424_v45  ;;  %v19477_v45 = vld [vmem:[#allocation18 + $0x142c] ss:$28 sps:$4 sm:$0xff]  }
 0x7ae   : > { %9603 = vmatpush1.bf16.msra.mxu1 %v19427_v47  ;;  %9565 = vmatprep.subr.bf16.mxu0 %v19432_v59  ;;  %v19474_v47 = vld [vmem:[#allocation18 + $0x11fc] ss:$28 sps:$4 sm:$0xff]   ;;  %v19475_v59 = vld [vmem:[#allocation18 + $0x1428] ss:$28 sps:$4 sm:$0xff]  }
 0x7af   : > { %9627 = vmatprep.subr.bf16.mxu1 %v19435_v63  ;;  %v19480_v63 = vld [vmem:[#allocation18 + $0x1234] ss:$28 sps:$4 sm:$0xff]  }
 0x7b1   : > { %9619 = vmatmul.mubr.bf16.vlgmr.msra.gmra.mrb[88].mxu1 %v22809_v5  ;;  %9566 = vmatpush1.bf16.msra.mxu0 %v19430_v55  ;;  %v19481_v55 = vld [vmem:[#allocation18 + $0x1460] ss:$28 sps:$4 sm:$0xff]  }
 0x7b2   : > { %9628 = vmatpush1.bf16.msra.mxu1 %v19433_v30  ;;  %9659 = vmatprep.mubr.bf16.mxu1 %v22791_v27  ;;  %v19478_v30 = vld [vmem:[#allocation18 + $0x1230] ss:$28 sps:$4 sm:$0xff]  }
 0x7b3   : > { %v6928_v0 = vpop.f32.mrb[84].mxu0  ;;  %9567 = vmatprep.subr.bf16.mxu0 %v19438_v60  ;;  %9629 = vmatprep.subr.bf16.mxu1 %v19441_v58  ;;  %v19489_v60 = vld [vmem:[#allocation18 + $0x149c] ss:$28 sps:$4 sm:$0xff]   ;;  %v19486_v58 = vld [vmem:[#allocation18 + $0x126c] ss:$28 sps:$4 sm:$0xff]  }
 0x7b4   : > { %v22813_v32 = vadd.f32 %v6928_v0, %v6889_v33  ;;  %v6930_v36 = vpop.f32.mrb[85].mxu0  ;;  %v19456_v33 = vld [vmem:[#allocation18 + $0x137c] ss:$28 sps:$4 sm:$0xff]   ;;  %v19492_v0 = vld [vmem:[#allocation18 + $0x12a4] ss:$28 sps:$4 sm:$0xff]  }
 0x7b5   : > { %v6931_v1 = vpop.f32.mrb[86].mxu0  ;;  %9568 = vmatpush1.bf16.msra.mxu0 %v19436_v62  ;;  %v19487_v62 = vld [vmem:[#allocation18 + $0x1498] ss:$28 sps:$4 sm:$0xff]   ;;  %v19490_v36 = vld [vmem:[#allocation18 + $0x12a0] ss:$28 sps:$4 sm:$0xff]  }
 0x7b6   : > { %9630 = vmatpush1.bf16.msra.mxu1 %v19439_v54  ;;  %v6932_v6 = vpop.f32.mrb[87].mxu0  ;;  %9569 = vmatprep.subr.bf16.mxu0 %v19444_v11  ;;  %v19484_v54 = vld [vmem:[#allocation18 + $0x1268] ss:$28 sps:$4 sm:$0xff]   ;;  %v19495_v11 = vld [vmem:[#allocation18 + $0x14d4] ss:$28 sps:$4 sm:$0xff]  }
 0x7b7   : > { %9631 = vmatprep.subr.bf16.mxu1 %v19447_v38  ;;  %v19493_v38 = vld [vmem:[#allocation18 + $0x14d0] ss:$28 sps:$4 sm:$0xff]   ;;  %v19498_v6 = vld [vmem:[#allocation18 + $0x12dc] ss:$28 sps:$4 sm:$0xff]  }
 0x7b8   : > { %v19501_v1 = vld [vmem:[#allocation18 + $0x150c] ss:$28 sps:$4 sm:$0xff]  }
 0x7b9   : > { %9570 = vmatpush1.bf16.msra.mxu0 %v19442_v52 }
 0x7ba   : > { %9632 = vmatpush1.bf16.msra.mxu1 %v19445_v10  ;;  %9571 = vmatprep.subr.bf16.mxu0 %v19450_v31 }
 0x7bb   : > { %9633 = vmatprep.subr.bf16.mxu1 %v19453_v57 }
 0x7bd   : > { %9572 = vmatpush1.bf16.msra.mxu0 %v19448_v13 }
 0x7be   : > { %9634 = vmatpush1.bf16.msra.mxu1 %v19451_v46  ;;  %9573 = vmatprep.subr.bf16.mxu0 %v19456_v33 }
 0x7bf   : > { %9635 = vmatprep.subr.bf16.mxu1 %v19459_v37  ;;  %v19496_v37 = vld [vmem:[#allocation18 + $0x12d8] ss:$28 sps:$4 sm:$0xff]  }
 0x7c1   : > { %9574 = vmatpush1.bf16.msra.mxu0 %v19454_v20  ;;  %v19507_v20 = vld [vmem:[#allocation18 + $0x1544] ss:$28 sps:$4 sm:$0xff]  }
 0x7c2   : > { %9636 = vmatpush1.bf16.msra.mxu1 %v19457_v23  ;;  %9575 = vmatprep.subr.bf16.mxu0 %v19462_v21 }
 0x7c3   : > { %9637 = vmatprep.subr.bf16.mxu1 %v19465_v25  ;;  %v19505_v25 = vld [vmem:[#allocation18 + $0x1540] ss:$28 sps:$4 sm:$0xff]  }
 0x7c5   : > { %9576 = vmatpush1.bf16.msra.mxu0 %v19460_v56  ;;  %v19502_v56 = vld [vmem:[#allocation18 + $0x1310] ss:$28 sps:$4 sm:$0xff]  }
 0x7c6   : > { %9638 = vmatpush1.bf16.msra.mxu1 %v19463_v26  ;;  %9668 = vmatprep.subr.bf16.mxu0 %v19471_v44  ;;  %v19513_v26 = vld [vmem:[#allocation18 + $0x157c] ss:$28 sps:$4 sm:$0xff]   ;;  %v19508_v44 = vld [vmem:[#allocation18 + $0x1348] ss:$28 sps:$4 sm:$0xff]  }
 0x7c7   : > { %9639 = vmatprep.subr.bf16.mxu1 %v19468_v41  ;;  %v19516_v41 = vld [vmem:[#allocation18 + $0x1384] ss:$28 sps:$4 sm:$0xff]  }
 0x7c8   : > { %9578 = vmatmul.mubr.bf16.vlgmr.msra.gmra.mrb[104].mxu0 %v22815_v43 }
 0x7c9   : > { %9669 = vmatpush1.bf16.msra.mxu0 %v19469_v40  ;;  %16996 = vmatprep.mubr.msk.bf16.mxu0 %vm3920_vm13, %v22795_v42  ;;  %v19517_v40 = vld [vmem:[#allocation18 + $0x15b0] ss:$28 sps:$4 sm:$0xff]  }
 0x7ca   : > { %9640 = vmatpush1.bf16.msra.mxu1 %v19466_v29  ;;  %9670 = vmatprep.subr.bf16.mxu0 %v19477_v45  ;;  %v19525_v29 = vld [vmem:[#allocation18 + $0x107c] ss:$28 sps:$4 sm:$0xff]  }
 0x7cb   : > { %9641 = vmatprep.subr.bf16.mxu1 %v19474_v47  ;;  %v19522_v45 = vld [vmem:[#allocation18 + $0x13bc] ss:$28 sps:$4 sm:$0xff]  }
 0x7cc   : > { %v19523_v47 = vld [vmem:[#allocation18 + $0x1078] ss:$28 sps:$4 sm:$0xff]  }
 0x7cd   : > { %9671 = vmatpush1.bf16.msra.mxu0 %v19475_v59  ;;  %v19520_v59 = vld [vmem:[#allocation18 + $0x13b8] ss:$28 sps:$4 sm:$0xff]  }
 0x7ce   : > { %9642 = vmatpush1.bf16.msra.mxu1 %v19472_v17  ;;  %9672 = vmatprep.subr.bf16.mxu0 %v19483_v51  ;;  %v19528_v17 = vld [vmem:[#allocation18 + $0x10b4] ss:$28 sps:$4 sm:$0xff]   ;;  %v19531_v51 = vld [vmem:[#allocation18 + $0x13fc] ss:$28 sps:$4 sm:$0xff]  }
 0x7cf   : > { %9643 = vmatprep.subr.bf16.mxu1 %v19480_v63  ;;  %v19526_v63 = vld [vmem:[#allocation18 + $0x10b0] ss:$28 sps:$4 sm:$0xff]  }
 0x7d1   : > { %9673 = vmatpush1.bf16.msra.mxu0 %v19481_v55  ;;  %v19529_v55 = vld [vmem:[#allocation18 + $0x13f8] ss:$28 sps:$4 sm:$0xff]  }
 0x7d2   : > { %9644 = vmatpush1.bf16.msra.mxu1 %v19478_v30  ;;  %9674 = vmatprep.subr.bf16.mxu0 %v19489_v60  ;;  %v19534_v30 = vld [vmem:[#allocation18 + $0x10ec] ss:$28 sps:$4 sm:$0xff]   ;;  %v19537_v60 = vld [vmem:[#allocation18 + $0x1434] ss:$28 sps:$4 sm:$0xff]  }
 0x7d3   : > { %9645 = vmatprep.subr.bf16.mxu1 %v19486_v58  ;;  %v19532_v58 = vld [vmem:[#allocation18 + $0x10e8] ss:$28 sps:$4 sm:$0xff]  }
 0x7d5   : > { %9675 = vmatpush1.bf16.msra.mxu0 %v19487_v62  ;;  %v19535_v62 = vld [vmem:[#allocation18 + $0x1430] ss:$28 sps:$4 sm:$0xff]  }
 0x7d6   : > { %9646 = vmatpush1.bf16.msra.mxu1 %v19484_v54  ;;  %9676 = vmatprep.subr.bf16.mxu0 %v19495_v11  ;;  %v19540_v54 = vld [vmem:[#allocation18 + $0x1124] ss:$28 sps:$4 sm:$0xff]   ;;  %v19543_v11 = vld [vmem:[#allocation18 + $0x146c] ss:$28 sps:$4 sm:$0xff]  }
 0x7d7   : > { %v8136_v52 = vpop.f32.mrb[88].mxu0  ;;  %9647 = vmatprep.subr.bf16.mxu1 %v19492_v0  ;;  %v19538_v0 = vld [vmem:[#allocation18 + $0x1120] ss:$28 sps:$4 sm:$0xff]  }
 0x7d8   : > { %v8095_v10 = vpop.f32.mrb[72].mxu1  ;;  %v8138_v31 = vpop.f32.mrb[89].mxu0 }
 0x7d9   : > { %v8137_v57 = vadd.f32 %v8136_v52, %v8095_v10  ;;  %v8097_v61 = vpop.f32.mrb[73].mxu1  ;;  %v8140_v13 = vpop.f32.mrb[90].mxu0  ;;  %9677 = vmatpush1.bf16.msra.mxu0 %v19493_v38  ;;  %v19541_v38 = vld [vmem:[#allocation18 + $0x1468] ss:$28 sps:$4 sm:$0xff]   ;;  %v19544_v52 = vld [vmem:[#allocation18 + $0x1158] ss:$28 sps:$4 sm:$0xff]  }
 0x7da   : > { %v8139_v46 = vadd.f32 %v8138_v31, %v8097_v61  ;;  %v8099_v33 = vpop.f32.mrb[74].mxu1  ;;  %9648 = vmatpush1.bf16.msra.mxu1 %v19490_v36  ;;  %v8141_v28 = vpop.f32.mrb[91].mxu0  ;;  %9678 = vmatprep.subr.bf16.mxu0 %v19501_v1  ;;  %v19546_v36 = vld [vmem:[#allocation18 + $0x115c] ss:$28 sps:$4 sm:$0xff]   ;;  %v19549_v1 = vld [vmem:[#allocation18 + $0x14a4] ss:$28 sps:$4 sm:$0xff]  }
 0x7db   : > { %v22821_v23 = vadd.f32 %v8137_v57, %v22759_v35  ;;  %v8100_v21 = vpop.f32.mrb[75].mxu1  ;;  %9649 = vmatprep.subr.bf16.mxu1 %v19498_v6  ;;  %v19519_v35 = vld [vmem:[#allocation18 + $0x15b4] ss:$28 sps:$4 sm:$0xff]   ;;  %v19547_v6 = vld [vmem:[#allocation18 + $0x14a0] ss:$28 sps:$4 sm:$0xff]  }
 0x7dc   : > { %v22824_v4 = vadd.f32 %v8139_v46, %v22762_v34  ;;  %v19514_v34 = vld [vmem:[#allocation18 + $0x1380] ss:$28 sps:$4 sm:$0xff]   ;;  %v19552_v10 = vld [vmem:[#allocation18 + $0x1194] ss:$28 sps:$4 sm:$0xff]   ;;  %v19558_v33 = vld [vmem:[#allocation18 + $0x11cc] ss:$28 sps:$4 sm:$0xff]  }
 0x7dd   : > { %9679 = vmatpush1.bf16.msra.mxu0 %v19499_v15  ;;  %v19555_v31 = vld [vmem:[#allocation18 + $0x14dc] ss:$28 sps:$4 sm:$0xff]   ;;  %v19550_v13 = vld [vmem:[#allocation18 + $0x1190] ss:$28 sps:$4 sm:$0xff]  }
 0x7de   : > { %9650 = vmatpush1.bf16.msra.mxu1 %v19496_v37  ;;  %9680 = vmatprep.subr.bf16.mxu0 %v19507_v20  ;;  %v19553_v46 = vld [vmem:[#allocation18 + $0x14d8] ss:$28 sps:$4 sm:$0xff]   ;;  %v19556_v20 = vld [vmem:[#allocation18 + $0x11c8] ss:$28 sps:$4 sm:$0xff]   ;;  %v19559_v21 = vld [vmem:[#allocation18 + $0x1510] ss:$28 sps:$4 sm:$0xff]  }
 0x7df   : > { %9651 = vmatprep.subr.bf16.mxu1 %v19504_v24  ;;  %v19561_v37 = vld [vmem:[#allocation18 + $0x1514] ss:$28 sps:$4 sm:$0xff]   ;;  %v19564_v24 = vld [vmem:[#allocation18 + $0x1204] ss:$28 sps:$4 sm:$0xff]  }
 0x7e1   : > { %9681 = vmatpush1.bf16.msra.mxu0 %v19505_v25  ;;  %v19567_v25 = vld [vmem:[#allocation18 + $0x154c] ss:$28 sps:$4 sm:$0xff]  }
 0x7e2   : > { %9652 = vmatpush1.bf16.msra.mxu1 %v19502_v56  ;;  %9682 = vmatprep.subr.bf16.mxu0 %v19513_v26  ;;  %v19562_v56 = vld [vmem:[#allocation18 + $0x1200] ss:$28 sps:$4 sm:$0xff]   ;;  %v19565_v26 = vld [vmem:[#allocation18 + $0x1548] ss:$28 sps:$4 sm:$0xff]  }
 0x7e3   : > { %9653 = vmatprep.subr.bf16.mxu1 %v19510_v3  ;;  %v19570_v3 = vld [vmem:[#allocation18 + $0x123c] ss:$28 sps:$4 sm:$0xff]  }
 0x7e5   : > { %9683 = vmatpush1.bf16.msra.mxu0 %v19511_v14  ;;  %v19573_v14 = vld [vmem:[#allocation18 + $0x1584] ss:$28 sps:$4 sm:$0xff]  }
 0x7e6   : > { %9654 = vmatpush1.bf16.msra.mxu1 %v19508_v44  ;;  %9684 = vmatprep.subr.bf16.mxu0 %v19519_v35  ;;  %v19568_v44 = vld [vmem:[#allocation18 + $0x1238] ss:$28 sps:$4 sm:$0xff]   ;;  %v19571_v35 = vld [vmem:[#allocation18 + $0x1580] ss:$28 sps:$4 sm:$0xff]  }
 0x7e7   : > { %9655 = vmatprep.subr.bf16.mxu1 %v19516_v41  ;;  %v19576_v41 = vld [vmem:[#allocation18 + $0x1274] ss:$28 sps:$4 sm:$0xff]  }
 0x7e9   : > { %9685 = vmatpush1.bf16.msra.mxu0 %v19517_v40  ;;  %v19579_v40 = vld [vmem:[#allocation18 + $0x15bc] ss:$28 sps:$4 sm:$0xff]  }
 0x7ea   : > { %9656 = vmatpush1.bf16.msra.mxu1 %v19514_v34  ;;  %9709 = vmatprep.subr.bf16.mxu0 %v19525_v29  ;;  %v19574_v34 = vld [vmem:[#allocation18 + $0x1270] ss:$28 sps:$4 sm:$0xff]   ;;  %v19577_v29 = vld [vmem:[#allocation18 + $0x15b8] ss:$28 sps:$4 sm:$0xff]  }
 0x7eb   : > { %9657 = vmatprep.subr.bf16.mxu1 %v19522_v45  ;;  %v19582_v45 = vld [vmem:[#allocation18 + $0x12ac] ss:$28 sps:$4 sm:$0xff]  }
 0x7ec   : > { %9701 = vmatmul.mubr.bf16.vlgmr.msra.gmra.mrb[108].mxu0 %v22809_v5 }
 0x7ed   : > { %9710 = vmatpush1.bf16.msra.mxu0 %v19523_v47  ;;  %9741 = vmatprep.mubr.bf16.mxu0 %v22791_v27  ;;  %v19583_v47 = vld [vmem:[#allocation18 + $0x1240] ss:$28 sps:$4 sm:$0xff]  }
 0x7ee   : > { %9658 = vmatpush1.bf16.msra.mxu1 %v19520_v59  ;;  %9711 = vmatprep.subr.bf16.mxu0 %v19528_v17  ;;  %v19580_v59 = vld [vmem:[#allocation18 + $0x12a8] ss:$28 sps:$4 sm:$0xff]   ;;  %v19584_v17 = vld [vmem:[#allocation18 + $0x1080] ss:$28 sps:$4 sm:$0xff]  }
 0x7ef   : > { %9750 = vmatprep.subr.bf16.mxu1 %v19531_v51  ;;  %v19587_v51 = vld [vmem:[#allocation18 + $0x12e4] ss:$28 sps:$4 sm:$0xff]  }
 0x7f1   : > { %9660 = vmatmul.mubr.bf16.vlgmr.msra.gmra.mrb[92].mxu1 %v22815_v43  ;;  %9712 = vmatpush1.bf16.msra.mxu0 %v19526_v63  ;;  %v19588_v63 = vld [vmem:[#allocation18 + $0x1278] ss:$28 sps:$4 sm:$0xff]  }
 0x7f2   : > { %9751 = vmatpush1.bf16.msra.mxu1 %v19529_v55  ;;  %16997 = vmatprep.mubr.msk.bf16.mxu1 %vm3920_vm13, %v22795_v42  ;;  %v19585_v55 = vld [vmem:[#allocation18 + $0x12e0] ss:$28 sps:$4 sm:$0xff]  }
 0x7f3   : > { %9713 = vmatprep.subr.bf16.mxu0 %v19534_v30  ;;  %9752 = vmatprep.subr.bf16.mxu1 %v19537_v60  ;;  %v19589_v30 = vld [vmem:[#allocation18 + $0x10b8] ss:$28 sps:$4 sm:$0xff]  }
 0x7f4   : > { %v19592_v60 = vld [vmem:[#allocation18 + $0x131c] ss:$28 sps:$4 sm:$0xff]  }
 0x7f5   : > { %9714 = vmatpush1.bf16.msra.mxu0 %v19532_v58 }
 0x7f6   : > { %9753 = vmatpush1.bf16.msra.mxu1 %v19535_v62  ;;  %9715 = vmatprep.subr.bf16.mxu0 %v19540_v54  ;;  %v19593_v62 = vld [vmem:[#allocation18 + $0x12b0] ss:$28 sps:$4 sm:$0xff]  }
 0x7f7   : > { %9754 = vmatprep.subr.bf16.mxu1 %v19543_v11 }
 0x7f9   : > { %9716 = vmatpush1.bf16.msra.mxu0 %v19538_v0 }
 0x7fa   : > { %9755 = vmatpush1.bf16.msra.mxu1 %v19541_v38  ;;  %9717 = vmatprep.subr.bf16.mxu0 %v19546_v36  ;;  %v19590_v36 = vld [vmem:[#allocation18 + $0x1318] ss:$28 sps:$4 sm:$0xff]  }
 0x7fb   : > { %9756 = vmatprep.subr.bf16.mxu1 %v19549_v1 }
 0x7fc   : > { %v22831_v57 = vpop.f32.mrb[76].mxu1 }
 0x7fd   : > { %v22833_v61 = vpop.f32.mrb[77].mxu1  ;;  %9718 = vmatpush1.bf16.msra.mxu0 %v19544_v52 }
 0x7fe   : > { %v8222_v15 = vpop.f32.mrb[78].mxu1  ;;  %9757 = vmatpush1.bf16.msra.mxu1 %v19547_v6  ;;  %9719 = vmatprep.subr.bf16.mxu0 %v19552_v10  ;;  %v19597_v6 = vld [vmem:[#allocation18 + $0x1354] ss:$28 sps:$4 sm:$0xff]  }
 0x7ff   : > { %v8223_v28 = vpop.f32.mrb[79].mxu1  ;;  %9758 = vmatprep.subr.bf16.mxu1 %v19555_v31  ;;  %v19598_v31 = vld [vmem:[#allocation18 + $0x12e8] ss:$28 sps:$4 sm:$0xff]   ;;  %v19603_v15 = vld [vmem:[#allocation18 + $0x1320] ss:$28 sps:$4 sm:$0xff]  }
 0x800   : > { %v19608_v28 = vld [vmem:[#allocation18 + $0x1358] ss:$28 sps:$4 sm:$0xff]  }
 0x801   : > { %9720 = vmatpush1.bf16.msra.mxu0 %v19550_v13  ;;  %v19602_v13 = vld [vmem:[#allocation18 + $0x138c] ss:$28 sps:$4 sm:$0xff]  }
 0x802   : > { %9759 = vmatpush1.bf16.msra.mxu1 %v19553_v46  ;;  %9721 = vmatprep.subr.bf16.mxu0 %v19558_v33  ;;  %v19604_v46 = vld [vmem:[#allocation18 + $0x1160] ss:$28 sps:$4 sm:$0xff]  }
 0x803   : > { %9760 = vmatprep.subr.bf16.mxu1 %v19561_v37  ;;  %v19607_v33 = vld [vmem:[#allocation18 + $0x13c4] ss:$28 sps:$4 sm:$0xff]   ;;  %v19609_v37 = vld [vmem:[#allocation18 + $0x1198] ss:$28 sps:$4 sm:$0xff]  }
 0x805   : > { %9722 = vmatpush1.bf16.msra.mxu0 %v19556_v20  ;;  %v19610_v20 = vld [vmem:[#allocation18 + $0x1390] ss:$28 sps:$4 sm:$0xff]  }
 0x806   : > { %9761 = vmatpush1.bf16.msra.mxu1 %v19559_v21  ;;  %9723 = vmatprep.subr.bf16.mxu0 %v19564_v24  ;;  %v19612_v21 = vld [vmem:[#allocation18 + $0x1400] ss:$28 sps:$4 sm:$0xff]   ;;  %v19611_v24 = vld [vmem:[#allocation18 + $0x11d0] ss:$28 sps:$4 sm:$0xff]  }
 0x807   : > { %9762 = vmatprep.subr.bf16.mxu1 %v19567_v25  ;;  %v19613_v25 = vld [vmem:[#allocation18 + $0x13c8] ss:$28 sps:$4 sm:$0xff]  }
 0x809   : > { %9724 = vmatpush1.bf16.msra.mxu0 %v19562_v56  ;;  %v19615_v56 = vld [vmem:[#allocation18 + $0x1438] ss:$28 sps:$4 sm:$0xff]  }
 0x80a   : > { %9763 = vmatpush1.bf16.msra.mxu1 %v19565_v26  ;;  %9725 = vmatprep.subr.bf16.mxu0 %v19570_v3  ;;  %v9883_v26 = vld [vmem:[#allocation4 + $0x28] sm:$0xf] }
 0x80b   : > { %9764 = vmatprep.subr.bf16.mxu1 %v19573_v14  ;;  %v19614_v3 = vld [vmem:[#allocation18 + $0x1208] ss:$28 sps:$4 sm:$0xff]  }
 0x80c   : > { %v19618_v14 = vld [vmem:[#allocation18 + $0x15e4] ss:$28 sps:$4 sm:$0xff]  }
 0x80d   : > { %9726 = vmatpush1.bf16.msra.mxu0 %v19568_v44  ;;  %v9879_v44 = vld [vmem:[#allocation4 + $0x8] sm:$0xf0] }
 0x80e   : > { %9765 = vmatpush1.bf16.msra.mxu1 %v19571_v35  ;;  %9727 = vmatprep.subr.bf16.mxu0 %v19576_v41  ;;  %v9887_v35 = vpack.c.bf16 %v9883_v26, %v9879_v44  ;;  %v19619_v41 = vld [vmem:[#allocation18 + $0x1470] ss:$28 sps:$4 sm:$0xff]   ;;  %v19653_v26 = vld [vmem:[#allocation18 + $0x1998] ss:$28 sps:$4 sm:$0xff]  }
 0x80f   : > { %9766 = vmatprep.subr.bf16.mxu1 %v19579_v40  ;;  %v19616_v40 = vld [vmem:[#allocation18 + $0x15e0] ss:$28 sps:$4 sm:$0xff]  }
 0x810   : > { %v19658_v44 = vld [vmem:[#allocation18 + $0x17dc] ss:$28 sps:$4 sm:$0xff]  }
 0x811   : > { %9728 = vmatpush1.bf16.msra.mxu0 %v19574_v34  ;;  %v19622_v34 = vld [vmem:[#allocation18 + $0x161c] ss:$28 sps:$4 sm:$0xff]  }
 0x812   : > { %9767 = vmatpush1.bf16.msra.mxu1 %v19577_v29  ;;  %9729 = vmatprep.subr.bf16.mxu0 %v19582_v45  ;;  %v22851_v29 = vrot.slane %v9887_v35, 2  ;;  %v19620_v45 = vld [vmem:[#allocation18 + $0x1618] ss:$28 sps:$4 sm:$0xff]   ;;  %v19659_v35 = vld [vmem:[#allocation18 + $0x19d0] ss:$28 sps:$4 sm:$0xff]  }
 0x813   : > { %17732 = vmatprep.subr.bf16.mxu1 %v19583_v47  ;;  %v19626_v47 = vld [vmem:[#allocation18 + $0x1654] ss:$28 sps:$4 sm:$0xff]  }
 0x815   : > { %9783 = vmatmul.mubr.bf16.vlgmr.msra.gmra.mrb[96].mxu1 %v22809_v5  ;;  %9730 = vmatpush1.bf16.msra.mxu0 %v19580_v59  ;;  %v19627_v59 = vld [vmem:[#allocation18 + $0x14e0] ss:$28 sps:$4 sm:$0xff]  }
 0x816   : > { %17733 = vmatpush3.bf16.msra.mxu1 %v19584_v17  ;;  %9823 = vmatprep.mubr.bf16.mxu1 %v22791_v27  ;;  %v19594_v27 = vld [vmem:[#allocation18 + $0x10f0] ss:$28 sps:$4 sm:$0xff]  }
 0x817   : > { %v8177_v58 = vpop.f32.mrb[92].mxu0  ;;  %9731 = vmatprep.subr.bf16.mxu0 %v19587_v51  ;;  %17734 = vmatprep.subr.bf16.mxu1 %v19588_v63  ;;  %v19624_v17 = vld [vmem:[#allocation18 + $0x1650] ss:$28 sps:$4 sm:$0xff]  }
 0x818   : > { %v8219_v54 = vadd.f32 %v22831_v57, %v8177_v58  ;;  %v8179_v11 = vpop.f32.mrb[93].mxu0  ;;  %v19595_v57 = vld [vmem:[#allocation18 + $0x1350] ss:$28 sps:$4 sm:$0xff]  }
 0x819   : > { %v8221_v0 = vadd.f32 %v22833_v61, %v8179_v11  ;;  %v8181_v38 = vpop.f32.mrb[94].mxu0  ;;  %9732 = vmatpush1.bf16.msra.mxu0 %v19585_v55  ;;  %v19599_v61 = vld [vmem:[#allocation18 + $0x1128] ss:$28 sps:$4 sm:$0xff]  }
 0x81a   : > { %v22840_v1 = vadd.f32 %v8219_v54, %v22769_v16  ;;  %17735 = vmatpush3.bf16.msra.mxu1 %v19589_v30  ;;  %v8182_v52 = vpop.f32.mrb[95].mxu0  ;;  %9733 = vmatprep.subr.bf16.mxu0 %v19592_v60  ;;  %v19600_v16 = vld [vmem:[#allocation18 + $0x1388] ss:$28 sps:$4 sm:$0xff]  }
 0x81b   : > { %v22843_v10 = vadd.f32 %v8221_v0, %v22771_v18  ;;  %17736 = vmatprep.subr.bf16.mxu1 %v19593_v62  ;;  %v19605_v18 = vld [vmem:[#allocation18 + $0x13c0] ss:$28 sps:$4 sm:$0xff]   ;;  %v19630_v63 = vld [vmem:[#allocation18 + $0x168c] ss:$28 sps:$4 sm:$0xff]   ;;  %v19631_v62 = vld [vmem:[#allocation18 + $0x1518] ss:$28 sps:$4 sm:$0xff]  }
 0x81c   : > { %v19628_v38 = vld [vmem:[#allocation18 + $0x1688] ss:$28 sps:$4 sm:$0xff]  }
 0x81d   : > { %9734 = vmatpush1.bf16.msra.mxu0 %v19590_v36 }
 0x81e   : > { %17737 = vmatpush3.bf16.msra.mxu1 %v19594_v27  ;;  %9735 = vmatprep.subr.bf16.mxu0 %v19597_v6  ;;  %v19634_v27 = vld [vmem:[#allocation18 + $0x16c4] ss:$28 sps:$4 sm:$0xff]  }
 0x81f   : > { %17738 = vmatprep.subr.bf16.mxu1 %v19598_v31  ;;  %v19635_v31 = vld [vmem:[#allocation18 + $0x1550] ss:$28 sps:$4 sm:$0xff]  }
 0x821   : > { %9736 = vmatpush1.bf16.msra.mxu0 %v19595_v57  ;;  %v19632_v57 = vld [vmem:[#allocation18 + $0x16c0] ss:$28 sps:$4 sm:$0xff]  }
 0x822   : > { %17739 = vmatpush3.bf16.msra.mxu1 %v19599_v61  ;;  %9737 = vmatprep.subr.bf16.mxu0 %v19602_v13  ;;  %v19638_v61 = vld [vmem:[#allocation18 + $0x16fc] ss:$28 sps:$4 sm:$0xff]   ;;  %v19639_v13 = vld [vmem:[#allocation18 + $0x1588] ss:$28 sps:$4 sm:$0xff]  }
 0x823   : > { %17740 = vmatprep.subr.bf16.mxu1 %v19603_v15  ;;  %v19642_v15 = vld [vmem:[#allocation18 + $0x1734] ss:$28 sps:$4 sm:$0xff]  }
 0x825   : > { %9738 = vmatpush1.bf16.msra.mxu0 %v19600_v16  ;;  %v9885_v16 = vld [vmem:[#allocation4 + $0x38] sm:$0xf] }
 0x826   : > { %17741 = vmatpush3.bf16.msra.mxu1 %v19604_v46  ;;  %9739 = vmatprep.subr.bf16.mxu0 %v19607_v33  ;;  %v19640_v46 = vld [vmem:[#allocation18 + $0x1730] ss:$28 sps:$4 sm:$0xff]   ;;  %v19649_v33 = vld [vmem:[#allocation18 + $0x1964] ss:$28 sps:$4 sm:$0xff]  }
 0x827   : > { %17742 = vmatprep.subr.bf16.mxu1 %v19608_v28  ;;  %v9881_v28 = vld [vmem:[#allocation4 + $0x18] sm:$0xf0] }
 0x829   : > { %9740 = vmatpush1.bf16.msra.mxu0 %v19605_v18  ;;  %v19646_v18 = vld [vmem:[#allocation18 + $0x176c] ss:$28 sps:$4 sm:$0xff]  }
 0x82a   : > { %17743 = vmatpush3.bf16.msra.mxu1 %v19609_v37  ;;  %9831 = vmatprep.subr.bf16.mxu0 %v21279_v2  ;;  %v9889_v37 = vpack.c.bf16 %v9885_v16, %v9881_v28  ;;  %v19688_v16 = vld [vmem:[#allocation18 + $0x18f4] ss:$28 sps:$4 sm:$0xff]  }
 0x82b   : > { %17744 = vmatprep.subr.bf16.mxu1 %v19610_v20  ;;  %v19647_v20 = vld [vmem:[#allocation18 + $0x1960] ss:$28 sps:$4 sm:$0xff]   ;;  %v9884_v28 = vld [vmem:[#allocation4 + $0x30] sm:$0xf] }
 0x82c   : > { %9742 = vmatmul.mubr.bf16.vlgmr.msra.gmra.mrb[112].mxu0 %v22815_v43 }
 0x82d   : > { %9832 = vmatpush1.bf16.msra.mxu0 %v19612_v21  ;;  %16998 = vmatprep.mubr.msk.bf16.mxu0 %vm3920_vm13, %v22795_v42  ;;  %v19623_v42 = vld [vmem:[#allocation18 + $0x14a8] ss:$28 sps:$4 sm:$0xff]  }
 0x82e   : > { %17745 = vmatpush3.bf16.msra.mxu1 %v19611_v24  ;;  %9833 = vmatprep.subr.bf16.mxu0 %v21279_v2  ;;  %v19644_v21 = vld [vmem:[#allocation18 + $0x1768] ss:$28 sps:$4 sm:$0xff]   ;;  %v19655_v24 = vld [vmem:[#allocation18 + $0x199c] ss:$28 sps:$4 sm:$0xff]  }
 0x82f   : > { %17746 = vmatprep.subr.bf16.mxu1 %v19613_v25  ;;  %v22867_v25 = vrot.slane %v9889_v37, 2  ;;  %v19695_v37 = vld [vmem:[#allocation18 + $0x1b20] ss:$28 sps:$4 sm:$0xff]  }
 0x831   : > { %9834 = vmatpush1.bf16.msra.mxu0 %v19615_v56  ;;  %v19652_v56 = vld [vmem:[#allocation18 + $0x17a4] ss:$28 sps:$4 sm:$0xff]  }
 0x832   : > { %17747 = vmatpush3.bf16.msra.mxu1 %v19614_v3  ;;  %9835 = vmatprep.subr.bf16.mxu0 %v21279_v2  ;;  %v19650_v3 = vld [vmem:[#allocation18 + $0x17a0] ss:$28 sps:$4 sm:$0xff]  }
 0x833   : > { %11005 = vmatprep.subr.bf16.mxu1 %v19618_v14  ;;  %v19661_v14 = vld [vmem:[#allocation18 + $0x19d4] ss:$28 sps:$4 sm:$0xff]  }
 0x835   : > { %9824 = vmatmul.mubr.bf16.vlgmr.msra.gmra.mrb[100].mxu1 %v22815_v43  ;;  %9836 = vmatpush1.bf16.msra.mxu0 %v19619_v41  ;;  %v19656_v41 = vld [vmem:[#allocation18 + $0x17d8] ss:$28 sps:$4 sm:$0xff]  }
 0x836   : > { %11006 = vmatpush1.bf16.msra.mxu1 %v19616_v40  ;;  %11037 = vmatprep.mubr.bf16.mxu1 %v22851_v29  ;;  %v19667_v40 = vld [vmem:[#allocation18 + $0x1a0c] ss:$28 sps:$4 sm:$0xff]  }
 0x837   : > { %9837 = vmatprep.subr.bf16.mxu0 %v21279_v2  ;;  %11007 = vmatprep.subr.bf16.mxu1 %v19622_v34  ;;  %v19664_v34 = vld [vmem:[#allocation18 + $0x1814] ss:$28 sps:$4 sm:$0xff]  }
 0x839   : > { %9838 = vmatpush1.bf16.msra.mxu0 %v19623_v42  ;;  %v19662_v42 = vld [vmem:[#allocation18 + $0x1810] ss:$28 sps:$4 sm:$0xff]  }
 0x83a   : > { %11008 = vmatpush1.bf16.msra.mxu1 %v19620_v45  ;;  %9839 = vmatprep.subr.bf16.mxu0 %v21279_v2  ;;  %v19673_v45 = vld [vmem:[#allocation18 + $0x1a44] ss:$28 sps:$4 sm:$0xff]  }
 0x83b   : > { %v8300_v51 = vpop.f32.mrb[96].mxu0  ;;  %11009 = vmatprep.subr.bf16.mxu1 %v19626_v47 }
 0x83c   : > { %v8259_v43 = vpop.f32.mrb[80].mxu1  ;;  %v8302_v55 = vpop.f32.mrb[97].mxu0 }
 0x83d   : > { %v8301_v30 = vadd.f32 %v8300_v51, %v8259_v43  ;;  %v8261_v60 = vpop.f32.mrb[81].mxu1  ;;  %v8304_v58 = vpop.f32.mrb[98].mxu0  ;;  %9840 = vmatpush1.bf16.msra.mxu0 %v19627_v59  ;;  %v19670_v59 = vld [vmem:[#allocation18 + $0x184c] ss:$28 sps:$4 sm:$0xff]   ;;  %v19671_v43 = vld [vmem:[#allocation18 + $0x1a40] ss:$28 sps:$4 sm:$0xff]  }
 0x83e   : > { %v8303_v54 = vadd.f32 %v8302_v55, %v8261_v60  ;;  %v8263_v11 = vpop.f32.mrb[82].mxu1  ;;  %11010 = vmatpush1.bf16.msra.mxu1 %v19624_v17  ;;  %v8305_v0 = vpop.f32.mrb[99].mxu0  ;;  %9841 = vmatprep.subr.bf16.mxu0 %v21279_v2  ;;  %v19679_v60 = vld [vmem:[#allocation18 + $0x1a7c] ss:$28 sps:$4 sm:$0xff]   ;;  %v19676_v58 = vld [vmem:[#allocation18 + $0x1884] ss:$28 sps:$4 sm:$0xff]  }
 0x83f   : > { %v22859_v36 = vadd.f32 %v8301_v30, %v22803_v19  ;;  %v8264_v52 = vpop.f32.mrb[83].mxu1  ;;  %11011 = vmatprep.subr.bf16.mxu1 %v19630_v63  ;;  %v19636_v19 = vld [vmem:[#allocation18 + $0x16f8] ss:$28 sps:$4 sm:$0xff]   ;;  %v19668_v30 = vld [vmem:[#allocation18 + $0x1848] ss:$28 sps:$4 sm:$0xff]  }
 0x840   : > { %v22862_v6 = vadd.f32 %v8303_v54, %v22806_v22  ;;  %v19643_v22 = vld [vmem:[#allocation18 + $0x15c0] ss:$28 sps:$4 sm:$0xff]   ;;  %v19677_v0 = vld [vmem:[#allocation18 + $0x1a78] ss:$28 sps:$4 sm:$0xff]  }
 0x841   : > { %9842 = vmatpush1.bf16.msra.mxu0 %v19631_v62  ;;  %v19674_v52 = vld [vmem:[#allocation18 + $0x1880] ss:$28 sps:$4 sm:$0xff]  }
 0x842   : > { %11012 = vmatpush1.bf16.msra.mxu1 %v19628_v38  ;;  %9843 = vmatprep.subr.bf16.mxu0 %v21279_v2 }
 0x843   : > { %11013 = vmatprep.subr.bf16.mxu1 %v19634_v27  ;;  %v19685_v27 = vld [vmem:[#allocation18 + $0x1ab4] ss:$28 sps:$4 sm:$0xff]  }
 0x845   : > { %9844 = vmatpush1.bf16.msra.mxu0 %v19635_v31 }
 0x846   : > { %11014 = vmatpush1.bf16.msra.mxu1 %v19632_v57  ;;  %9845 = vmatprep.subr.bf16.mxu0 %v21279_v2 }
 0x847   : > { %11015 = vmatprep.subr.bf16.mxu1 %v19638_v61  ;;  %v19682_v61 = vld [vmem:[#allocation18 + $0x18bc] ss:$28 sps:$4 sm:$0xff]  }
 0x849   : > { %9846 = vmatpush1.bf16.msra.mxu0 %v19639_v13  ;;  %v19683_v13 = vld [vmem:[#allocation18 + $0x1ab0] ss:$28 sps:$4 sm:$0xff]  }
 0x84a   : > { %11016 = vmatpush1.bf16.msra.mxu1 %v19636_v19  ;;  %9847 = vmatprep.subr.bf16.mxu0 %v21279_v2  ;;  %v19680_v19 = vld [vmem:[#allocation18 + $0x18b8] ss:$28 sps:$4 sm:$0xff]  }
 0x84b   : > { %11017 = vmatprep.subr.bf16.mxu1 %v19642_v15  ;;  %v19691_v15 = vld [vmem:[#allocation18 + $0x1aec] ss:$28 sps:$4 sm:$0xff]  }
 0x84d   : > { %9848 = vmatpush1.bf16.msra.mxu0 %v19643_v22  ;;  %v19689_v22 = vld [vmem:[#allocation18 + $0x1ae8] ss:$28 sps:$4 sm:$0xff]  }
 0x84e   : > { %11018 = vmatpush1.bf16.msra.mxu1 %v19640_v46  ;;  %11046 = vmatprep.subr.bf16.mxu0 %v19649_v33  ;;  %v19686_v46 = vld [vmem:[#allocation18 + $0x18f0] ss:$28 sps:$4 sm:$0xff]   ;;  %v19697_v33 = vld [vmem:[#allocation18 + $0x1b24] ss:$28 sps:$4 sm:$0xff]  }
 0x84f   : > { %11019 = vmatprep.subr.bf16.mxu1 %v19646_v18  ;;  %v9882_v18 = vld [vmem:[#allocation4 + $0x20] sm:$0xf] }
 0x850   : > { %9864 = vmatmul.mubr.bf16.vlgmr.msra.gmra.mrb[116].mxu0 %v22809_v5  ;;  %v19665_v5 = vld [vmem:[#allocation18 + $0x1a08] ss:$28 sps:$4 sm:$0xff]  }
 0x851   : > { %11047 = vmatpush1.bf16.msra.mxu0 %v19647_v20  ;;  %17174 = vmatprep.mubr.msk.bf16.mxu0 %vm3920_vm13, %v22867_v25  ;;  %v9880_v20 = vld [vmem:[#allocation4 + $0x10] sm:$0xf0] }
 0x852   : > { %11020 = vmatpush1.bf16.msra.mxu1 %v19644_v21  ;;  %11048 = vmatprep.subr.bf16.mxu0 %v19655_v24  ;;  %v19692_v21 = vld [vmem:[#allocation18 + $0x1928] ss:$28 sps:$4 sm:$0xff]  }
 0x853   : > { %11021 = vmatprep.subr.bf16.mxu1 %v19652_v56  ;;  %v9878_v24 = vld [vmem:[#allocation4] sm:$0xf0]  ;;  %v9888_v56 = vpack.c.bf16 %v9884_v28, %v9880_v20  ;;  %v19743_v28 = vld [vmem:[#allocation18 + $0x1af0] ss:$28 sps:$4 sm:$0xff]  }
 0x854   : > { %v19746_v20 = vld [vmem:[#allocation18 + $0x17a8] ss:$28 sps:$4 sm:$0xff]  }
 0x855   : > { %11049 = vmatpush1.bf16.msra.mxu0 %v19653_v26  ;;  %v19700_v26 = vld [vmem:[#allocation18 + $0x15ec] ss:$28 sps:$4 sm:$0xff]  }
 0x856   : > { %11022 = vmatpush1.bf16.msra.mxu1 %v19650_v3  ;;  %11050 = vmatprep.subr.bf16.mxu0 %v19661_v14  ;;  %v9886_v3 = vpack.c.bf16 %v9882_v18, %v9878_v24  ;;  %v19703_v14 = vld [vmem:[#allocation18 + $0x196c] ss:$28 sps:$4 sm:$0xff]   ;;  %v19754_v24 = vld [vmem:[#allocation18 + $0x17e4] ss:$28 sps:$4 sm:$0xff]  }
 0x857   : > { %11023 = vmatprep.subr.bf16.mxu1 %v19658_v44  ;;  %v19698_v44 = vld [vmem:[#allocation18 + $0x15e8] ss:$28 sps:$4 sm:$0xff]  }
 0x858   : > { %v19748_v18 = vld [vmem:[#allocation18 + $0x17ac] ss:$28 sps:$4 sm:$0xff]  }
 0x859   : > { %11051 = vmatpush1.bf16.msra.mxu0 %v19659_v35  ;;  %v22875_v35 = vrot.slane %v9888_v56, 2  ;;  %v19757_v56 = vld [vmem:[#allocation18 + $0x15f4] ss:$28 sps:$4 sm:$0xff]  }
 0x85a   : > { %11024 = vmatpush1.bf16.msra.mxu1 %v19656_v41  ;;  %11052 = vmatprep.subr.bf16.mxu0 %v19667_v40  ;;  %v19701_v41 = vld [vmem:[#allocation18 + $0x1968] ss:$28 sps:$4 sm:$0xff]   ;;  %v22877_v40 = vrot.slane %v9886_v3, 2  ;;  %v19755_v3 = vld [vmem:[#allocation18 + $0x15f0] ss:$28 sps:$4 sm:$0xff]  }
 0x85b   : > { %v17726_v47 = vpop.f32.mrb[100].mxu0  ;;  %11025 = vmatprep.subr.bf16.mxu1 %v19664_v34  ;;  %v19706_v34 = vld [vmem:[#allocation18 + $0x1624] ss:$28 sps:$4 sm:$0xff]  }
 0x85c   : > { %v17727_v17 = vpop.f32.mrb[101].mxu0 }
 0x85d   : > { %v17728_v51 = vadd.f32 %v17727_v17, %v17726_v47  ;;  %v17729_v63 = vpop.f32.mrb[102].mxu0  ;;  %11053 = vmatpush1.bf16.msra.mxu0 %v19665_v5  ;;  %v19709_v5 = vld [vmem:[#allocation18 + $0x19a4] ss:$28 sps:$4 sm:$0xff]   ;;  %v19712_v47 = vld [vmem:[#allocation18 + $0x165c] ss:$28 sps:$4 sm:$0xff]  }
 0x85e   : > { %11026 = vmatpush1.bf16.msra.mxu1 %v19662_v42  ;;  %v17730_v55 = vpop.f32.mrb[103].mxu0  ;;  %11054 = vmatprep.subr.bf16.mxu0 %v19673_v45  ;;  %v19704_v42 = vld [vmem:[#allocation18 + $0x1620] ss:$28 sps:$4 sm:$0xff]   ;;  %v19710_v17 = vld [vmem:[#allocation18 + $0x1658] ss:$28 sps:$4 sm:$0xff]  }
 0x85f   : > { %11027 = vmatprep.subr.bf16.mxu1 %v19670_v59  ;;  %v19707_v45 = vld [vmem:[#allocation18 + $0x19a0] ss:$28 sps:$4 sm:$0xff]   ;;  %v19718_v63 = vld [vmem:[#allocation18 + $0x1694] ss:$28 sps:$4 sm:$0xff]  }
 0x860   : > { %v8381_v62 = vpop.f32.mrb[84].mxu1  ;;  %v19715_v59 = vld [vmem:[#allocation18 + $0x19dc] ss:$28 sps:$4 sm:$0xff]   ;;  %v19716_v55 = vld [vmem:[#allocation18 + $0x1690] ss:$28 sps:$4 sm:$0xff]  }
 0x861   : > { %v8382_v54 = vadd.f32 %v17728_v51, %v8381_v62  ;;  %v8383_v11 = vpop.f32.mrb[85].mxu1  ;;  %11055 = vmatpush1.bf16.msra.mxu0 %v19671_v43  ;;  %v19713_v51 = vld [vmem:[#allocation18 + $0x19d8] ss:$28 sps:$4 sm:$0xff]   ;;  %v19722_v62 = vld [vmem:[#allocation18 + $0x16c8] ss:$28 sps:$4 sm:$0xff]  }
 0x862   : > { %v8384_v38 = vpop.f32.mrb[86].mxu1  ;;  %11028 = vmatpush1.bf16.msra.mxu1 %v19668_v30  ;;  %11056 = vmatprep.subr.bf16.mxu0 %v19679_v60  ;;  %v19721_v43 = vld [vmem:[#allocation18 + $0x1a14] ss:$28 sps:$4 sm:$0xff]   ;;  %v19724_v60 = vld [vmem:[#allocation18 + $0x16cc] ss:$28 sps:$4 sm:$0xff]  }
 0x863   : > { %v22873_v31 = vadd.f32 %v8382_v54, %v22813_v32  ;;  %v8385_v57 = vpop.f32.mrb[87].mxu1  ;;  %11029 = vmatprep.subr.bf16.mxu1 %v19676_v58  ;;  %v19694_v32 = vld [vmem:[#allocation18 + $0x192c] ss:$28 sps:$4 sm:$0xff]   ;;  %v19730_v11 = vld [vmem:[#allocation18 + $0x1704] ss:$28 sps:$4 sm:$0xff]  }
 0x864   : > { %v19719_v30 = vld [vmem:[#allocation18 + $0x1a10] ss:$28 sps:$4 sm:$0xff]   ;;  %v19725_v54 = vld [vmem:[#allocation18 + $0x1a48] ss:$28 sps:$4 sm:$0xff]  }
 0x865   : > { %11057 = vmatpush1.bf16.msra.mxu0 %v19677_v0  ;;  %v19727_v58 = vld [vmem:[#allocation18 + $0x1a4c] ss:$28 sps:$4 sm:$0xff]   ;;  %v19733_v0 = vld [vmem:[#allocation18 + $0x1a84] ss:$28 sps:$4 sm:$0xff]  }
 0x866   : > { %11030 = vmatpush1.bf16.msra.mxu1 %v19674_v52  ;;  %11058 = vmatprep.subr.bf16.mxu0 %v19685_v27  ;;  %v19728_v27 = vld [vmem:[#allocation18 + $0x1700] ss:$28 sps:$4 sm:$0xff]  }
 0x867   : > { %11031 = vmatprep.subr.bf16.mxu1 %v19682_v61  ;;  %v19731_v61 = vld [vmem:[#allocation18 + $0x1a80] ss:$28 sps:$4 sm:$0xff]  }
 0x869   : > { %11059 = vmatpush1.bf16.msra.mxu0 %v19683_v13  ;;  %v19736_v13 = vld [vmem:[#allocation18 + $0x173c] ss:$28 sps:$4 sm:$0xff]  }
 0x86a   : > { %11032 = vmatpush1.bf16.msra.mxu1 %v19680_v19  ;;  %11060 = vmatprep.subr.bf16.mxu0 %v19691_v15  ;;  %v19739_v15 = vld [vmem:[#allocation18 + $0x1abc] ss:$28 sps:$4 sm:$0xff]  }
 0x86b   : > { %11033 = vmatprep.subr.bf16.mxu1 %v19688_v16  ;;  %v19734_v16 = vld [vmem:[#allocation18 + $0x1738] ss:$28 sps:$4 sm:$0xff]  }
 0x86d   : > { %11061 = vmatpush1.bf16.msra.mxu0 %v19689_v22  ;;  %v19737_v22 = vld [vmem:[#allocation18 + $0x1ab8] ss:$28 sps:$4 sm:$0xff]  }
 0x86e   : > { %11034 = vmatpush1.bf16.msra.mxu1 %v19686_v46  ;;  %11062 = vmatprep.subr.bf16.mxu0 %v19697_v33  ;;  %v19742_v46 = vld [vmem:[#allocation18 + $0x1774] ss:$28 sps:$4 sm:$0xff]  }
 0x86f   : > { %11035 = vmatprep.subr.bf16.mxu1 %v19694_v32  ;;  %v19745_v33 = vld [vmem:[#allocation18 + $0x1af4] ss:$28 sps:$4 sm:$0xff]  }
 0x870   : > { %v19740_v32 = vld [vmem:[#allocation18 + $0x1770] ss:$28 sps:$4 sm:$0xff]  }
 0x871   : > { %11063 = vmatpush1.bf16.msra.mxu0 %v19695_v37  ;;  %v19751_v37 = vld [vmem:[#allocation18 + $0x1b2c] ss:$28 sps:$4 sm:$0xff]  }
 0x872   : > { %11036 = vmatpush1.bf16.msra.mxu1 %v19692_v21  ;;  %11087 = vmatprep.subr.bf16.mxu0 %v19700_v26  ;;  %v19749_v21 = vld [vmem:[#allocation18 + $0x1b28] ss:$28 sps:$4 sm:$0xff]   ;;  %v19752_v26 = vld [vmem:[#allocation18 + $0x17e0] ss:$28 sps:$4 sm:$0xff]  }
 0x873   : > { %11128 = vmatprep.subr.bf16.mxu1 %v19703_v14  ;;  %v19760_v14 = vld [vmem:[#allocation18 + $0x181c] ss:$28 sps:$4 sm:$0xff]  }
 0x874   : > { %11079 = vmatmul.mubr.bf16.vlgmr.msra.gmra.mrb[120].mxu0 %v22875_v35 }
 0x875   : > { %11038 = vmatmul.mubr.bf16.vlgmr.msra.gmra.mrb[104].mxu1 %v22877_v40  ;;  %11088 = vmatpush1.bf16.msra.mxu0 %v19698_v44  ;;  %v19763_v44 = vld [vmem:[#allocation18 + $0x162c] ss:$28 sps:$4 sm:$0xff]  }
 0x876   : > { %11119 = vmatprep.mubr.bf16.mxu0 %v22851_v29  ;;  %11129 = vmatpush1.bf16.msra.mxu1 %v19701_v41  ;;  %v19758_v41 = vld [vmem:[#allocation18 + $0x1818] ss:$28 sps:$4 sm:$0xff]  }
 0x877   : > { %17175 = vmatprep.mubr.msk.bf16.mxu1 %vm3920_vm13, %v22867_v25  ;;  %11089 = vmatprep.subr.bf16.mxu0 %v19706_v34  ;;  %v19761_v34 = vld [vmem:[#allocation18 + $0x1628] ss:$28 sps:$4 sm:$0xff]  }
 0x878   : > { %11130 = vmatprep.subr.bf16.mxu1 %v19709_v5  ;;  %v19766_v5 = vld [vmem:[#allocation18 + $0x1854] ss:$28 sps:$4 sm:$0xff]  }
 0x879   : > { %11090 = vmatpush1.bf16.msra.mxu0 %v19704_v42 }
 0x87a   : > { %11131 = vmatpush1.bf16.msra.mxu1 %v19707_v45  ;;  %11091 = vmatprep.subr.bf16.mxu0 %v19712_v47  ;;  %v19769_v45 = vld [vmem:[#allocation18 + $0x1664] ss:$28 sps:$4 sm:$0xff]  }
 0x87b   : > { %11132 = vmatprep.subr.bf16.mxu1 %v19715_v59 }
 0x87d   : > { %11092 = vmatpush1.bf16.msra.mxu0 %v19710_v17 }
 0x87e   : > { %11133 = vmatpush1.bf16.msra.mxu1 %v19713_v51  ;;  %11093 = vmatprep.subr.bf16.mxu0 %v19718_v63  ;;  %v19764_v63 = vld [vmem:[#allocation18 + $0x1850] ss:$28 sps:$4 sm:$0xff]  }
 0x87f   : > { %11134 = vmatprep.subr.bf16.mxu1 %v19721_v43 }
 0x881   : > { %11094 = vmatpush1.bf16.msra.mxu0 %v19716_v55 }
 0x882   : > { %11135 = vmatpush1.bf16.msra.mxu1 %v19719_v30  ;;  %11095 = vmatprep.subr.bf16.mxu0 %v19724_v60  ;;  %v19767_v30 = vld [vmem:[#allocation18 + $0x1660] ss:$28 sps:$4 sm:$0xff]   ;;  %v19772_v60 = vld [vmem:[#allocation18 + $0x188c] ss:$28 sps:$4 sm:$0xff]  }
 0x883   : > { %11136 = vmatprep.subr.bf16.mxu1 %v19727_v58 }
 0x884   : > { %v9620_v38 = vpop.f32.mrb[88].mxu1 }
 0x885   : > { %v9622_v52 = vpop.f32.mrb[89].mxu1  ;;  %11096 = vmatpush1.bf16.msra.mxu0 %v19722_v62  ;;  %v19775_v62 = vld [vmem:[#allocation18 + $0x169c] ss:$28 sps:$4 sm:$0xff]  }
 0x886   : > { %v9624_v57 = vpop.f32.mrb[90].mxu1  ;;  %11137 = vmatpush1.bf16.msra.mxu1 %v19725_v54  ;;  %11097 = vmatprep.subr.bf16.mxu0 %v19730_v11  ;;  %v19770_v54 = vld [vmem:[#allocation18 + $0x1888] ss:$28 sps:$4 sm:$0xff]   ;;  %v19773_v11 = vld [vmem:[#allocation18 + $0x1698] ss:$28 sps:$4 sm:$0xff]  }
 0x887   : > { %v9625_v19 = vpop.f32.mrb[91].mxu1  ;;  %11138 = vmatprep.subr.bf16.mxu1 %v19733_v0  ;;  %v19778_v0 = vld [vmem:[#allocation18 + $0x18c4] ss:$28 sps:$4 sm:$0xff]   ;;  %v19787_v57 = vld [vmem:[#allocation18 + $0x170c] ss:$28 sps:$4 sm:$0xff]  }
 0x888   : > { %v19793_v19 = vld [vmem:[#allocation18 + $0x1744] ss:$28 sps:$4 sm:$0xff]  }
 0x889   : > { %11098 = vmatpush1.bf16.msra.mxu0 %v19728_v27  ;;  %v19784_v27 = vld [vmem:[#allocation18 + $0x18fc] ss:$28 sps:$4 sm:$0xff]  }
 0x88a   : > { %11139 = vmatpush1.bf16.msra.mxu1 %v19731_v61  ;;  %11099 = vmatprep.subr.bf16.mxu0 %v19736_v13  ;;  %v19785_v61 = vld [vmem:[#allocation18 + $0x1708] ss:$28 sps:$4 sm:$0xff]   ;;  %v19790_v13 = vld [vmem:[#allocation18 + $0x1934] ss:$28 sps:$4 sm:$0xff]  }
 0x88b   : > { %11140 = vmatprep.subr.bf16.mxu1 %v19739_v15  ;;  %v19788_v15 = vld [vmem:[#allocation18 + $0x1930] ss:$28 sps:$4 sm:$0xff]  }
 0x88d   : > { %11100 = vmatpush1.bf16.msra.mxu0 %v19734_v16  ;;  %v19791_v16 = vld [vmem:[#allocation18 + $0x1740] ss:$28 sps:$4 sm:$0xff]  }
 0x88e   : > { %11141 = vmatpush1.bf16.msra.mxu1 %v19737_v22  ;;  %11101 = vmatprep.subr.bf16.mxu0 %v19742_v46  ;;  %v19799_v22 = vld [vmem:[#allocation18 + $0x1974] ss:$28 sps:$4 sm:$0xff]   ;;  %v19796_v46 = vld [vmem:[#allocation18 + $0x177c] ss:$28 sps:$4 sm:$0xff]  }
 0x88f   : > { %11142 = vmatprep.subr.bf16.mxu1 %v19745_v33  ;;  %v19797_v33 = vld [vmem:[#allocation18 + $0x1970] ss:$28 sps:$4 sm:$0xff]  }
 0x891   : > { %11102 = vmatpush1.bf16.msra.mxu0 %v19740_v32  ;;  %v19794_v32 = vld [vmem:[#allocation18 + $0x1778] ss:$28 sps:$4 sm:$0xff]  }
 0x892   : > { %11143 = vmatpush1.bf16.msra.mxu1 %v19743_v28  ;;  %11103 = vmatprep.subr.bf16.mxu0 %v19748_v18  ;;  %v19805_v28 = vld [vmem:[#allocation18 + $0x19ac] ss:$28 sps:$4 sm:$0xff]   ;;  %v19802_v18 = vld [vmem:[#allocation18 + $0x17b4] ss:$28 sps:$4 sm:$0xff]  }
 0x893   : > { %11144 = vmatprep.subr.bf16.mxu1 %v19751_v37  ;;  %v19803_v37 = vld [vmem:[#allocation18 + $0x19a8] ss:$28 sps:$4 sm:$0xff]  }
 0x895   : > { %11104 = vmatpush1.bf16.msra.mxu0 %v19746_v20  ;;  %v19800_v20 = vld [vmem:[#allocation18 + $0x17b0] ss:$28 sps:$4 sm:$0xff]  }
 0x896   : > { %11145 = vmatpush1.bf16.msra.mxu1 %v19749_v21  ;;  %11105 = vmatprep.subr.bf16.mxu0 %v19754_v24  ;;  %v19811_v21 = vld [vmem:[#allocation18 + $0x19e4] ss:$28 sps:$4 sm:$0xff]   ;;  %v19808_v24 = vld [vmem:[#allocation18 + $0x17ec] ss:$28 sps:$4 sm:$0xff]  }
 0x897   : > { %11169 = vmatprep.subr.bf16.mxu1 %v19757_v56  ;;  %v19809_v56 = vld [vmem:[#allocation18 + $0x19e0] ss:$28 sps:$4 sm:$0xff]  }
 0x899   : > { %11161 = vmatmul.mubr.bf16.vlgmr.msra.gmra.mrb[108].mxu1 %v22875_v35  ;;  %11106 = vmatpush1.bf16.msra.mxu0 %v19752_v26  ;;  %v19806_v26 = vld [vmem:[#allocation18 + $0x17e8] ss:$28 sps:$4 sm:$0xff]  }
 0x89a   : > { %11170 = vmatpush1.bf16.msra.mxu1 %v19755_v3  ;;  %11201 = vmatprep.mubr.bf16.mxu1 %v22851_v29  ;;  %v19817_v3 = vld [vmem:[#allocation18 + $0x1a1c] ss:$28 sps:$4 sm:$0xff]  }
 0x89b   : > { %v9579_v42 = vpop.f32.mrb[104].mxu0  ;;  %11107 = vmatprep.subr.bf16.mxu0 %v19760_v14  ;;  %11171 = vmatprep.subr.bf16.mxu1 %v19763_v44  ;;  %v19814_v14 = vld [vmem:[#allocation18 + $0x1824] ss:$28 sps:$4 sm:$0xff]   ;;  %v19815_v44 = vld [vmem:[#allocation18 + $0x1a18] ss:$28 sps:$4 sm:$0xff]  }
 0x89c   : > { %v9621_v47 = vadd.f32 %v9620_v38, %v9579_v42  ;;  %v9581_v59 = vpop.f32.mrb[105].mxu0  ;;  %v19781_v38 = vld [vmem:[#allocation18 + $0x16d4] ss:$28 sps:$4 sm:$0xff]   ;;  %v19820_v42 = vld [vmem:[#allocation18 + $0x185c] ss:$28 sps:$4 sm:$0xff]  }
 0x89d   : > { %v9623_v17 = vadd.f32 %v9622_v52, %v9581_v59  ;;  %v9583_v51 = vpop.f32.mrb[106].mxu0  ;;  %11108 = vmatpush1.bf16.msra.mxu0 %v19758_v41  ;;  %v19779_v52 = vld [vmem:[#allocation18 + $0x16d0] ss:$28 sps:$4 sm:$0xff]   ;;  %v19812_v41 = vld [vmem:[#allocation18 + $0x1820] ss:$28 sps:$4 sm:$0xff]  }
 0x89e   : > { %v22887_v43 = vadd.f32 %v9621_v47, %v22821_v23  ;;  %11172 = vmatpush1.bf16.msra.mxu1 %v19761_v34  ;;  %v9584_v55 = vpop.f32.mrb[107].mxu0  ;;  %11109 = vmatprep.subr.bf16.mxu0 %v19766_v5  ;;  %v19776_v23 = vld [vmem:[#allocation18 + $0x18c0] ss:$28 sps:$4 sm:$0xff]   ;;  %v19823_v34 = vld [vmem:[#allocation18 + $0x1a54] ss:$28 sps:$4 sm:$0xff]  }
 0x89f   : > { %v22890_v58 = vadd.f32 %v9623_v17, %v22824_v4  ;;  %11173 = vmatprep.subr.bf16.mxu1 %v19769_v45  ;;  %v19782_v4 = vld [vmem:[#allocation18 + $0x18f8] ss:$28 sps:$4 sm:$0xff]   ;;  %v19821_v59 = vld [vmem:[#allocation18 + $0x1a50] ss:$28 sps:$4 sm:$0xff]  }
 0x8a0   : > { %v19818_v51 = vld [vmem:[#allocation18 + $0x1858] ss:$28 sps:$4 sm:$0xff]  }
 0x8a1   : > { %11110 = vmatpush1.bf16.msra.mxu0 %v19764_v63  ;;  %v19829_v63 = vld [vmem:[#allocation18 + $0x1a8c] ss:$28 sps:$4 sm:$0xff]   ;;  %v19826_v55 = vld [vmem:[#allocation18 + $0x1894] ss:$28 sps:$4 sm:$0xff]  }
 0x8a2   : > { %11174 = vmatpush1.bf16.msra.mxu1 %v19767_v30  ;;  %11111 = vmatprep.subr.bf16.mxu0 %v19772_v60 }
 0x8a3   : > { %11175 = vmatprep.subr.bf16.mxu1 %v19775_v62 }
 0x8a5   : > { %11112 = vmatpush1.bf16.msra.mxu0 %v19770_v54  ;;  %v19827_v54 = vld [vmem:[#allocation18 + $0x1a88] ss:$28 sps:$4 sm:$0xff]  }
 0x8a6   : > { %11176 = vmatpush1.bf16.msra.mxu1 %v19773_v11  ;;  %11113 = vmatprep.subr.bf16.mxu0 %v19778_v0 }
 0x8a7   : > { %11177 = vmatprep.subr.bf16.mxu1 %v19781_v38  ;;  %v19824_v38 = vld [vmem:[#allocation18 + $0x1890] ss:$28 sps:$4 sm:$0xff]  }
 0x8a9   : > { %11114 = vmatpush1.bf16.msra.mxu0 %v19776_v23  ;;  %v19835_v23 = vld [vmem:[#allocation18 + $0x1ac4] ss:$28 sps:$4 sm:$0xff]  }
 0x8aa   : > { %11178 = vmatpush1.bf16.msra.mxu1 %v19779_v52  ;;  %11115 = vmatprep.subr.bf16.mxu0 %v19784_v27 }
 0x8ab   : > { %11179 = vmatprep.subr.bf16.mxu1 %v19787_v57  ;;  %v19832_v57 = vld [vmem:[#allocation18 + $0x18cc] ss:$28 sps:$4 sm:$0xff]  }
 0x8ad   : > { %11116 = vmatpush1.bf16.msra.mxu0 %v19782_v4 }
 0x8ae   : > { %11180 = vmatpush1.bf16.msra.mxu1 %v19785_v61  ;;  %11117 = vmatprep.subr.bf16.mxu0 %v19790_v13  ;;  %v19833_v61 = vld [vmem:[#allocation18 + $0x1ac0] ss:$28 sps:$4 sm:$0xff]   ;;  %v19830_v13 = vld [vmem:[#allocation18 + $0x18c8] ss:$28 sps:$4 sm:$0xff]  }
 0x8af   : > { %11181 = vmatprep.subr.bf16.mxu1 %v19793_v19  ;;  %v19841_v19 = vld [vmem:[#allocation18 + $0x1afc] ss:$28 sps:$4 sm:$0xff]  }
 0x8b1   : > { %11118 = vmatpush1.bf16.msra.mxu0 %v19788_v15  ;;  %v19838_v15 = vld [vmem:[#allocation18 + $0x1904] ss:$28 sps:$4 sm:$0xff]  }
 0x8b2   : > { %11182 = vmatpush1.bf16.msra.mxu1 %v19791_v16  ;;  %11210 = vmatprep.subr.bf16.mxu0 %v19799_v22  ;;  %v19839_v16 = vld [vmem:[#allocation18 + $0x1af8] ss:$28 sps:$4 sm:$0xff]   ;;  %v19836_v22 = vld [vmem:[#allocation18 + $0x1900] ss:$28 sps:$4 sm:$0xff]  }
 0x8b3   : > { %11183 = vmatprep.subr.bf16.mxu1 %v19796_v46  ;;  %v19844_v46 = vld [vmem:[#allocation18 + $0x193c] ss:$28 sps:$4 sm:$0xff]  }
 0x8b4   : > { %11120 = vmatmul.mubr.bf16.vlgmr.msra.gmra.mrb[124].mxu0 %v22877_v40 }
 0x8b5   : > { %11211 = vmatpush1.bf16.msra.mxu0 %v19797_v33  ;;  %17176 = vmatprep.mubr.msk.bf16.mxu0 %vm3920_vm13, %v22867_v25  ;;  %v19845_v33 = vld [vmem:[#allocation18 + $0x1b30] ss:$28 sps:$4 sm:$0xff]  }
 0x8b6   : > { %11184 = vmatpush1.bf16.msra.mxu1 %v19794_v32  ;;  %11212 = vmatprep.subr.bf16.mxu0 %v19805_v28  ;;  %v19848_v32 = vld [vmem:[#allocation18 + $0x17b8] ss:$28 sps:$4 sm:$0xff]  }
 0x8b7   : > { %11185 = vmatprep.subr.bf16.mxu1 %v19802_v18  ;;  %v19849_v28 = vld [vmem:[#allocation18 + $0x15f8] ss:$28 sps:$4 sm:$0xff]  }
 0x8b8   : > { %v19850_v18 = vld [vmem:[#allocation18 + $0x1978] ss:$28 sps:$4 sm:$0xff]  }
 0x8b9   : > { %11213 = vmatpush1.bf16.msra.mxu0 %v19803_v37  ;;  %v19851_v37 = vld [vmem:[#allocation18 + $0x17f0] ss:$28 sps:$4 sm:$0xff]  }
 0x8ba   : > { %11186 = vmatpush1.bf16.msra.mxu1 %v19800_v20  ;;  %11214 = vmatprep.subr.bf16.mxu0 %v19811_v21  ;;  %v19852_v20 = vld [vmem:[#allocation18 + $0x1630] ss:$28 sps:$4 sm:$0xff]  }
 0x8bb   : > { %11187 = vmatprep.subr.bf16.mxu1 %v19808_v24  ;;  %v19853_v21 = vld [vmem:[#allocation18 + $0x19b0] ss:$28 sps:$4 sm:$0xff]   ;;  %v19854_v24 = vld [vmem:[#allocation18 + $0x1828] ss:$28 sps:$4 sm:$0xff]  }
 0x8bd   : > { %11215 = vmatpush1.bf16.msra.mxu0 %v19809_v56  ;;  %v19855_v56 = vld [vmem:[#allocation18 + $0x1668] ss:$28 sps:$4 sm:$0xff]  }
 0x8be   : > { %11188 = vmatpush1.bf16.msra.mxu1 %v19806_v26  ;;  %11216 = vmatprep.subr.bf16.mxu0 %v19817_v3  ;;  %v19856_v26 = vld [vmem:[#allocation18 + $0x19e8] ss:$28 sps:$4 sm:$0xff]   ;;  %v19857_v3 = vld [vmem:[#allocation18 + $0x1860] ss:$28 sps:$4 sm:$0xff]  }
 0x8bf   : > { %v9702_v5 = vpop.f32.mrb[108].mxu0  ;;  %11189 = vmatprep.subr.bf16.mxu1 %v19814_v14  ;;  %v19858_v14 = vld [vmem:[#allocation18 + $0x16a0] ss:$28 sps:$4 sm:$0xff]  }
 0x8c0   : > { %v9704_v45 = vpop.f32.mrb[109].mxu0 }
 0x8c1   : > { %v9706_v47 = vpop.f32.mrb[110].mxu0  ;;  %11217 = vmatpush1.bf16.msra.mxu0 %v19815_v44  ;;  %v19860_v44 = vld [vmem:[#allocation18 + $0x1898] ss:$28 sps:$4 sm:$0xff]  }
 0x8c2   : > { %11190 = vmatpush1.bf16.msra.mxu1 %v19812_v41  ;;  %v9707_v17 = vpop.f32.mrb[111].mxu0  ;;  %11218 = vmatprep.subr.bf16.mxu0 %v19823_v34  ;;  %v19862_v41 = vld [vmem:[#allocation18 + $0x1a58] ss:$28 sps:$4 sm:$0xff]   ;;  %v19863_v34 = vld [vmem:[#allocation18 + $0x18d0] ss:$28 sps:$4 sm:$0xff]  }
 0x8c3   : > { %11191 = vmatprep.subr.bf16.mxu1 %v19820_v42  ;;  %v19866_v17 = vld [vmem:[#allocation18 + $0x1908] ss:$28 sps:$4 sm:$0xff]  }
 0x8c4   : > { %v9661_v30 = vpop.f32.mrb[92].mxu1 }
 0x8c5   : > { %v9703_v60 = vadd.f32 %v9702_v5, %v9661_v30  ;;  %v9663_v62 = vpop.f32.mrb[93].mxu1  ;;  %11219 = vmatpush1.bf16.msra.mxu0 %v19821_v59  ;;  %v19865_v59 = vld [vmem:[#allocation18 + $0x1a90] ss:$28 sps:$4 sm:$0xff]   ;;  %v19869_v30 = vld [vmem:[#allocation18 + $0x1940] ss:$28 sps:$4 sm:$0xff]  }
 0x8c6   : > { %v9705_v11 = vadd.f32 %v9704_v45, %v9663_v62  ;;  %v9665_v0 = vpop.f32.mrb[94].mxu1  ;;  %11192 = vmatpush1.bf16.msra.mxu1 %v19818_v51  ;;  %11220 = vmatprep.subr.bf16.mxu0 %v19829_v63  ;;  %v19864_v45 = vld [vmem:[#allocation18 + $0x1710] ss:$28 sps:$4 sm:$0xff]   ;;  %v19867_v63 = vld [vmem:[#allocation18 + $0x1748] ss:$28 sps:$4 sm:$0xff]  }
 0x8c7   : > { %v22896_v52 = vadd.f32 %v9703_v60, %v22840_v1  ;;  %v9666_v27 = vpop.f32.mrb[95].mxu1  ;;  %11193 = vmatprep.subr.bf16.mxu1 %v19826_v55  ;;  %v19847_v1 = vld [vmem:[#allocation18 + $0x1b34] ss:$28 sps:$4 sm:$0xff]   ;;  %v19868_v55 = vld [vmem:[#allocation18 + $0x1ac8] ss:$28 sps:$4 sm:$0xff]  }
 0x8c8   : > { %v22899_v4 = vadd.f32 %v9705_v11, %v22843_v10  ;;  %v19842_v10 = vld [vmem:[#allocation18 + $0x1938] ss:$28 sps:$4 sm:$0xff]   ;;  %v19870_v60 = vld [vmem:[#allocation18 + $0x1780] ss:$28 sps:$4 sm:$0xff]  }
 0x8c9   : > { %11221 = vmatpush1.bf16.msra.mxu0 %v19827_v54  ;;  %v19871_v62 = vld [vmem:[#allocation18 + $0x1b00] ss:$28 sps:$4 sm:$0xff]   ;;  %v19872_v54 = vld [vmem:[#allocation18 + $0x1b38] ss:$28 sps:$4 sm:$0xff]  }
 0x8ca   : > { %11194 = vmatpush1.bf16.msra.mxu1 %v19824_v38  ;;  %11222 = vmatprep.subr.bf16.mxu0 %v19835_v23 }
 0x8cb   : > { %11195 = vmatprep.subr.bf16.mxu1 %v19832_v57 }
 0x8cd   : > { %11223 = vmatpush1.bf16.msra.mxu0 %v19833_v61 }
 0x8ce   : > { %11196 = vmatpush1.bf16.msra.mxu1 %v19830_v13  ;;  %11224 = vmatprep.subr.bf16.mxu0 %v19841_v19 }
 0x8cf   : > { %11197 = vmatprep.subr.bf16.mxu1 %v19838_v15 }
 0x8d1   : > { %11225 = vmatpush1.bf16.msra.mxu0 %v19839_v16 }
 0x8d2   : > { %11198 = vmatpush1.bf16.msra.mxu1 %v19836_v22  ;;  %11226 = vmatprep.subr.bf16.mxu0 %v19847_v1 }
 0x8d3   : > { %11199 = vmatprep.subr.bf16.mxu1 %v19844_v46 }
 0x8d5   : > { %11227 = vmatpush1.bf16.msra.mxu0 %v19845_v33 }
 0x8d6   : > { %11200 = vmatpush1.bf16.msra.mxu1 %v19842_v10  ;;  %17754 = vmatprep.subr.bf16.mxu0 %v19848_v32  ;;  %v22926_v32 = vld [vmem:[#allocation19] sm:$0x7f] }
 0x8d7   : > { %11291 = vmatprep.subr.bf16.mxu1 %v21279_v2 }
 0x8d8   : > { %11243 = vmatmul.mubr.bf16.vlgmr.msra.gmra.mrb[128].mxu0 %v22875_v35 }
 0x8d9   : > { %11202 = vmatmul.mubr.bf16.vlgmr.msra.gmra.mrb[112].mxu1 %v22877_v40  ;;  %17755 = vmatpush3.bf16.msra.mxu0 %v19849_v28 }
 0x8da   : > { %11283 = vmatprep.mubr.bf16.mxu0 %v22851_v29  ;;  %11292 = vmatpush1.bf16.msra.mxu1 %v19850_v18  ;;  %v19859_v29 = vld [vmem:[#allocation18 + $0x1a20] ss:$28 sps:$4 sm:$0xff]  }
 0x8db   : > { %17177 = vmatprep.mubr.msk.bf16.mxu1 %vm3920_vm13, %v22867_v25  ;;  %17756 = vmatprep.subr.bf16.mxu0 %v19851_v37  ;;  %v19861_v25 = vld [vmem:[#allocation18 + $0x16d8] ss:$28 sps:$4 sm:$0xff]   ;;  %v11343_v37 = vrot.slane %v22926_v32, %v22308_v50 }
 0x8dc   : > { %11293 = vmatprep.subr.bf16.mxu1 %v21279_v2 }
 0x8dd   : > { %17757 = vmatpush3.bf16.msra.mxu0 %v19852_v20 }
 0x8de   : > { %11294 = vmatpush1.bf16.msra.mxu1 %v19853_v21  ;;  %17758 = vmatprep.subr.bf16.mxu0 %v19854_v24 }
 0x8df   : > { %11295 = vmatprep.subr.bf16.mxu1 %v21279_v2 }
 0x8e1   : > { %17759 = vmatpush3.bf16.msra.mxu0 %v19855_v56  ;;  %v11347_v56 = vrot.slane %v22926_v32, %v22313_v53 }
 0x8e2   : > { %11296 = vmatpush1.bf16.msra.mxu1 %v19856_v26  ;;  %17760 = vmatprep.subr.bf16.mxu0 %v19857_v3 }
 0x8e3   : > { %11297 = vmatprep.subr.bf16.mxu1 %v21279_v2 }
 0x8e5   : > { %17761 = vmatpush3.bf16.msra.mxu0 %v19858_v14 }
 0x8e6   : > { %11298 = vmatpush1.bf16.msra.mxu1 %v19859_v29  ;;  %17762 = vmatprep.subr.bf16.mxu0 %v19860_v44 }
 0x8e7   : > { %11299 = vmatprep.subr.bf16.mxu1 %v21279_v2 }
 0x8e8   : > { %v9784_v5 = vpop.f32.mrb[96].mxu1 }
 0x8e9   : > { %v9786_v42 = vpop.f32.mrb[97].mxu1  ;;  %17763 = vmatpush3.bf16.msra.mxu0 %v19861_v25 }
 0x8ea   : > { %v9788_v47 = vpop.f32.mrb[98].mxu1  ;;  %11300 = vmatpush1.bf16.msra.mxu1 %v19862_v41  ;;  %17764 = vmatprep.subr.bf16.mxu0 %v19863_v34 }
 0x8eb   : > { %v9789_v51 = vpop.f32.mrb[99].mxu1  ;;  %11301 = vmatprep.subr.bf16.mxu1 %v21279_v2 }
 0x8ed   : > { %17765 = vmatpush3.bf16.msra.mxu0 %v19864_v45 }
 0x8ee   : > { %11302 = vmatpush1.bf16.msra.mxu1 %v19865_v59  ;;  %17766 = vmatprep.subr.bf16.mxu0 %v19866_v17 }
 0x8ef   : > { %11303 = vmatprep.subr.bf16.mxu1 %v21279_v2 }
 0x8f1   : > { %17767 = vmatpush3.bf16.msra.mxu0 %v19867_v63  ;;  %v11355_v63 = vrot.slane %v22926_v32, %v22262_v49 }
 0x8f2   : > { %11304 = vmatpush1.bf16.msra.mxu1 %v19868_v55  ;;  %17768 = vmatprep.subr.bf16.mxu0 %v19869_v30 }
 0x8f3   : > { %11305 = vmatprep.subr.bf16.mxu1 %v21279_v2 }
 0x8f5   : > { %17769 = vmatpush3.bf16.msra.mxu0 %v19870_v60 }
 0x8f6   : > { %11306 = vmatpush1.bf16.msra.mxu1 %v19871_v62  ;;  %12310 = vmatprep.subr.bf16.mxu0 %v19875_v39  ;;  %v19926_v39 = vld [vmem:[#allocation21 + $0x4a4] ss:$16 sps:$4 sm:$0xff]  }
 0x8f7   : > { %11307 = vmatprep.subr.bf16.mxu1 %v21279_v2 }
 0x8f8   : > { %11284 = vmatmul.mubr.bf16.vlgmr.msra.gmra.mrb[132].mxu0 %v22877_v40 }
 0x8fa   : > { %11308 = vmatpush1.bf16.msra.mxu1 %v19872_v54 }
 0x8fd   : > { %11324 = vmatmul.mubr.bf16.vlgmr.msra.gmra.mrb[116].mxu1 %v22875_v35 }
 0x8ff   : > { %v9743_v11 = vpop.f32.mrb[112].mxu0 }
 0x900   : > { %v9785_v0 = vadd.f32 %v9784_v5, %v9743_v11  ;;  %v9745_v38 = vpop.f32.mrb[113].mxu0 }
 0x901   : > { %v9787_v23 = vadd.f32 %v9786_v42, %v9745_v38  ;;  %v9747_v27 = vpop.f32.mrb[114].mxu0 }
 0x902   : > { %v22918_v57 = vadd.f32 %v9785_v0, %v22859_v36  ;;  %v9748_v61 = vpop.f32.mrb[115].mxu0 }
 0x903   : > { %v22921_v13 = vadd.f32 %v9787_v23, %v22862_v6  ;;  %v11359_v61 = vrot.slane %v22926_v32, %v3072_v9 }
 0x908   : > { %v17748_v19 = vpop.f32.mrb[100].mxu1 }
 0x909   : > { %v17749_v15 = vpop.f32.mrb[101].mxu1 }
 0x90a   : > { %v17750_v2 = vadd.f32 %v17749_v15, %v17748_v19  ;;  %v17751_v16 = vpop.f32.mrb[102].mxu1 }
 0x90b   : > { %v17752_v40 = vpop.f32.mrb[103].mxu1  ;;  %v11363_v16 = vrot.slane %v22926_v32, %v3076_v8 }
 0x923   : > { %v9865_v22 = vpop.f32.mrb[116].mxu0 }
 0x924   : > { %v9866_v1 = vadd.f32 %v17750_v2, %v9865_v22  ;;  %v9867_v35 = vpop.f32.mrb[117].mxu0 }
 0x925   : > { %v9868_v46 = vpop.f32.mrb[118].mxu0 }
 0x926   : > { %v22924_v33 = vadd.f32 %v9866_v1, %v22873_v31  ;;  %v9869_v10 = vpop.f32.mrb[119].mxu0 }
 0x947   : > { %v11080_v36 = vpop.f32.mrb[120].mxu0 }
 0x948   : > { %v11039_v28 = vpop.f32.mrb[104].mxu1  ;;  %v11082_v18 = vpop.f32.mrb[121].mxu0 }
 0x949   : > { %v11081_v6 = vadd.f32 %v11080_v36, %v11039_v28  ;;  %v11041_v20 = vpop.f32.mrb[105].mxu1  ;;  %v11084_v21 = vpop.f32.mrb[122].mxu0 }
 0x94a   : > { %v11083_v24 = vadd.f32 %v11082_v18, %v11041_v20  ;;  %v11043_v26 = vpop.f32.mrb[106].mxu1  ;;  %v11085_v3 = vpop.f32.mrb[123].mxu0 }
 0x94b   : > { %v11331_v31 = vadd.f32 %v11081_v6, %v22887_v43  ;;  %v11044_v14 = vpop.f32.mrb[107].mxu1 }
 0x94c   : > { %v11332_v29 = vadd.f32 %v11083_v24, %v22890_v58  ;;  %v11351_v58 = vrot.slane %v22926_v32, %v22259_v48 }
 0x94d   : > { %v11375_v44 = vadd.f32 %v11343_v37, %v11331_v31 }
 0x94e   : > { %v11376_v25 = vadd.f32 %v11347_v56, %v11332_v29  ;;  %v11367_v56 = vrot.slane %v22926_v32, %v3080_v12  ;;  %v19876_v12 = vld [vmem:[#allocation21 + $0x340] ss:$16 sps:$4 sm:$0xff]  }
 0x94f   : > { %v22934_v41 = vmax.f32 %v11375_v44, 0.0 }
 0x950   : > { %v22936_v34 = vmax.f32 %v11376_v25, 0.0 }
 0x952   : > { %11427 = vrot.lane.b32.xlu0 %v22936_v34, %s21299_s8  ;;  %11407 = vrot.lane.b32.xlu1 %v22936_v34, %s21299_s8 }
 0x96c   : > { %v11162_v5 = vpop.f32.mrb[108].mxu1 }
 0x96d   : > { %v11164_v42 = vpop.f32.mrb[109].mxu1 }
 0x96e   : > { %v11166_v45 = vpop.f32.mrb[110].mxu1 }
 0x96f   : > { %v11167_v43 = vpop.f32.mrb[111].mxu1  ;;  %v19878_v45 = vld [vmem:[#allocation21 + $0x344] ss:$16 sps:$4 sm:$0xff]  }
 0x987   : > { %v11121_v47 = vpop.f32.mrb[124].mxu0 }
 0x988   : > { %v11163_v59 = vadd.f32 %v11162_v5, %v11121_v47  ;;  %v11123_v17 = vpop.f32.mrb[125].mxu0 }
 0x989   : > { %v11165_v51 = vadd.f32 %v11164_v42, %v11123_v17  ;;  %v11125_v55 = vpop.f32.mrb[126].mxu0  ;;  %v19873_v42 = vld [vmem:[#allocation21 + $0x320] ss:$16 sps:$4 sm:$0xff]  }
 0x98a   : > { %v11333_v30 = vadd.f32 %v11163_v59, %v22896_v52  ;;  %v11126_v60 = vpop.f32.mrb[127].mxu0  ;;  %12311 = vmatpush1.bf16.msra.mxu0 %v19873_v42  ;;  %v19881_v55 = vld [vmem:[#allocation21 + $0x364] ss:$16 sps:$4 sm:$0xff]  }
 0x98b   : > { %v11334_v62 = vadd.f32 %v11165_v51, %v22899_v4  ;;  %12312 = vmatprep.subr.bf16.mxu0 %v19878_v45  ;;  %v19884_v60 = vld [vmem:[#allocation21 + $0x384] ss:$16 sps:$4 sm:$0xff]  }
 0x98c   : > { %v11377_v54 = vadd.f32 %v11351_v58, %v11333_v30  ;;  %v19882_v30 = vld [vmem:[#allocation21 + $0x380] ss:$16 sps:$4 sm:$0xff]   ;;  %v19923_v42 = vld [vmem:[#allocation21 + $0x5a4] ss:$16 sps:$4 sm:$0xff]  }
 0x98d   : > { %v11378_v11 = vadd.f32 %v11355_v63, %v11334_v62  ;;  %v19879_v63 = vld [vmem:[#allocation21 + $0x360] ss:$16 sps:$4 sm:$0xff]   ;;  %v19887_v62 = vld [vmem:[#allocation21 + $0x3a4] ss:$16 sps:$4 sm:$0xff]  }
 0x98e   : > { %v22948_v0 = vmax.f32 %v11377_v54, 0.0  ;;  %12313 = vmatpush1.bf16.msra.mxu0 %v19876_v12  ;;  %v19929_v45 = vld [vmem:[#allocation21 + $0x5c4] ss:$16 sps:$4 sm:$0xff]   ;;  %v19924_v12 = vld [vmem:[#allocation21 + $0x4a0] ss:$16 sps:$4 sm:$0xff]  }
 0x98f   : > { %v22950_v38 = vmax.f32 %v11378_v11, 0.0  ;;  %12314 = vmatprep.subr.bf16.mxu0 %v19881_v55  ;;  %v19890_v11 = vld [vmem:[#allocation21 + $0x3c4] ss:$16 sps:$4 sm:$0xff]  }
 0x990   : > { %11446 = vrot.lane.b32.xlu0 %v22948_v0, %s21299_s8  ;;  %11429 = vrot.lane.b32.xlu1 %v22948_v0, %s21299_s8  ;;  %v19947_v55 = vld [vmem:[#allocation21 + $0x624] ss:$16 sps:$4 sm:$0xff]  }
 0x992   : > { %12315 = vmatpush1.bf16.msra.mxu0 %v19879_v63  ;;  %v19944_v63 = vld [vmem:[#allocation21 + $0x504] ss:$16 sps:$4 sm:$0xff]  }
 0x993   : > { %12316 = vmatprep.subr.bf16.mxu0 %v19884_v60  ;;  %v19945_v60 = vld [vmem:[#allocation21 + $0x620] ss:$16 sps:$4 sm:$0xff]  }
 0x994   : > { %11448 = vrot.lane.b32.xlu1 %v22950_v38, %s21299_s8 }
 0x996   : > { %12317 = vmatpush1.bf16.msra.mxu0 %v19882_v30  ;;  %v19942_v30 = vld [vmem:[#allocation21 + $0x500] ss:$16 sps:$4 sm:$0xff]  }
 0x997   : > { %12318 = vmatprep.subr.bf16.mxu0 %v19887_v62  ;;  %v19950_v62 = vld [vmem:[#allocation21 + $0x32c] ss:$16 sps:$4 sm:$0xff]  }
 0x998   : > { %11461 = vrot.lane.b32.xlu1 %v22950_v38, %s21299_s8 }
 0x9ab   : > { %v11244_v52 = vpop.f32.mrb[128].mxu0 }
 0x9ac   : > { %v11203_v4 = vpop.f32.mrb[112].mxu1  ;;  %v11246_v23 = vpop.f32.mrb[129].mxu0 }
 0x9ad   : > { %v11245_v27 = vadd.f32 %v11244_v52, %v11203_v4  ;;  %v11205_v19 = vpop.f32.mrb[113].mxu1  ;;  %v11248_v15 = vpop.f32.mrb[130].mxu0 }
 0x9ae   : > { %v11247_v2 = vadd.f32 %v11246_v23, %v11205_v19  ;;  %v11207_v40 = vpop.f32.mrb[114].mxu1  ;;  %v11249_v22 = vpop.f32.mrb[131].mxu0  ;;  %v19888_v23 = vld [vmem:[#allocation21 + $0x3c0] ss:$16 sps:$4 sm:$0xff]   ;;  %v19893_v15 = vld [vmem:[#allocation21 + $0x3e4] ss:$16 sps:$4 sm:$0xff]  }
 0x9af   : > { %v11335_v1 = vadd.f32 %v11245_v27, %v22918_v57  ;;  %v11208_v35 = vpop.f32.mrb[115].mxu1  ;;  %v19899_v27 = vld [vmem:[#allocation21 + $0x524] ss:$16 sps:$4 sm:$0xff]   ;;  %v19903_v40 = vld [vmem:[#allocation21 + $0x540] ss:$16 sps:$4 sm:$0xff]  }
 0x9b0   : > { %v11336_v46 = vadd.f32 %v11247_v2, %v22921_v13  ;;  %12351 = vmatprep.subr.bf16.mxu1 %v19899_v27  ;;  %v19911_v35 = vld [vmem:[#allocation21 + $0x564] ss:$16 sps:$4 sm:$0xff]  }
 0x9b1   : > { %v11379_v10 = vadd.f32 %v11359_v61, %v11335_v1  ;;  %v19905_v61 = vld [vmem:[#allocation21 + $0x544] ss:$16 sps:$4 sm:$0xff]   ;;  %v19891_v1 = vld [vmem:[#allocation21 + $0x3e0] ss:$16 sps:$4 sm:$0xff]  }
 0x9b2   : > { %v11380_v36 = vadd.f32 %v11363_v16, %v11336_v46  ;;  %v19896_v46 = vld [vmem:[#allocation21 + $0x404] ss:$16 sps:$4 sm:$0xff]  }
 0x9b3   : > { %v22968_v28 = vmax.f32 %v11379_v10, 0.0 }
 0x9b4   : > { %v22970_v18 = vmax.f32 %v11380_v36, 0.0 }
 0x9b5   : > { %11474 = vrot.lane.b32.xlu0 %v22968_v28, %s21299_s8 }
 0x9b9   : > { %11495 = vrot.lane.b32.xlu0 %v22970_v18, %s21299_s8 }
 0x9bd   : > { %11515 = vrot.lane.b32.xlu0 %v22970_v18, %s21299_s8 }
 0x9c1   : > { %11398 = vrot.lane.b32.xlu0 %v22934_v41, %s21299_s8 }
 0x9c4   : > { %v11408_v9 = vpop.permute.xlu1 %11407 }
 0x9c5   : > { %v11410_v8 = vmax.f32 %v22934_v41, %v11408_v9  ;;  %v11411_v5 = vmax.f32 %v22936_v34, %v11408_v9  ;;  %v19894_v9 = vld [vmem:[#allocation21 + $0x400] ss:$16 sps:$4 sm:$0xff]  }
 0x9c7   : > { %11414 = vrot.lane.b32.xlu0 %v11410_v8, %s21299_s8  ;;  %v19917_v8 = vld [vmem:[#allocation21 + $0x584] ss:$16 sps:$4 sm:$0xff]  }
 0x9cb   : > { %v17770_v57 = vpop.f32.mrb[132].mxu0 }
 0x9cc   : > { %v17771_v13 = vpop.f32.mrb[133].mxu0 }
 0x9cd   : > { %v17772_v6 = vadd.f32 %v17771_v13, %v17770_v57  ;;  %v17773_v37 = vpop.f32.mrb[134].mxu0  ;;  %v19902_v57 = vld [vmem:[#allocation21 + $0x424] ss:$16 sps:$4 sm:$0xff]  }
 0x9ce   : > { %v17774_v20 = vpop.f32.mrb[135].mxu0  ;;  %v19915_v37 = vld [vmem:[#allocation21 + $0x580] ss:$16 sps:$4 sm:$0xff]  }
 0x9cf   : > { %v19900_v20 = vld [vmem:[#allocation21 + $0x420] ss:$16 sps:$4 sm:$0xff]  }
 0x9d0   : > { %v11325_v21 = vpop.f32.mrb[116].mxu1 }
 0x9d1   : > { %v11326_v24 = vadd.f32 %v17772_v6, %v11325_v21  ;;  %v11327_v26 = vpop.f32.mrb[117].mxu1  ;;  %v19906_v21 = vld [vmem:[#allocation21 + $0x440] ss:$16 sps:$4 sm:$0xff]  }
 0x9d2   : > { %v11328_v3 = vpop.f32.mrb[118].mxu1 }
 0x9d3   : > { %v11337_v31 = vadd.f32 %v11326_v24, %v22924_v33  ;;  %v11329_v14 = vpop.f32.mrb[119].mxu1  ;;  %v11428_v33 = vpop.permute.xlu0 %11427  ;;  %v19914_v24 = vld [vmem:[#allocation21 + $0x464] ss:$16 sps:$4 sm:$0xff]  }
 0x9d5   : > { %v11381_v29 = vadd.f32 %v11367_v56, %v11337_v31  ;;  %v19912_v56 = vld [vmem:[#allocation21 + $0x460] ss:$16 sps:$4 sm:$0xff]  }
 0x9d7   : > { %v11388_v44 = vmax.f32 %v11381_v29, 0.0  ;;  %v19918_v29 = vld [vmem:[#allocation21 + $0x480] ss:$16 sps:$4 sm:$0xff]  }
 0x9d9   : > { %11395 = vst.msk [vmem:[#allocation5 + $0x30] sm:$0xff] %vm3137_vm2, %v11388_v44  ;;  %vm11402_vm2 = vcmask 408576   ;;  %v19920_v44 = vld [vmem:[#allocation21 + $0x484] ss:$16 sps:$4 sm:$0xff]  }
 0x9e0   : > { %v11512_v25 = vld [vmem:[#allocation5 + $0x30] sm:$0xff] }
 0x9e1   : > { %11517 = vrot.lane.b32.xlu1 %v11512_v25, %s21299_s8  ;;  %v19921_v25 = vld [vmem:[#allocation21 + $0x5a0] ss:$16 sps:$4 sm:$0xff]  }
 0x9e5   : > { %11416 = vrot.lane.b32.xlu1 %v11411_v5, %s21299_s8  ;;  %s23479_s8 = sld [smem:[#allocation84_spill]] }
 0xa02   : > { %v11430_v32 = vpop.permute.xlu1 %11429  ;;  %v11447_v59 = vpop.permute.xlu0 %11446 }
 0xa03   : > { %v11431_v43 = vsel %vm11418_vm12, %v11428_v33, %v11430_v32  ;;  %v19932_v33 = vld [vmem:[#allocation21 + $0x4c4] ss:$16 sps:$4 sm:$0xff]  }
 0xa04   : > { %v11433_v47 = vmax.f32 %v22936_v34, %v11431_v43  ;;  %v19885_v34 = vld [vmem:[#allocation21 + $0x3a0] ss:$16 sps:$4 sm:$0xff]   ;;  %v19935_v32 = vld [vmem:[#allocation21 + $0x5e4] ss:$16 sps:$4 sm:$0xff]  }
 0xa05   : > { %12319 = vmatpush1.bf16.msra.mxu0 %v19885_v34  ;;  %v19930_v43 = vld [vmem:[#allocation21 + $0x4c0] ss:$16 sps:$4 sm:$0xff]   ;;  %v19953_v34 = vld [vmem:[#allocation21 + $0x52c] ss:$16 sps:$4 sm:$0xff]  }
 0xa06   : > { %11435 = vrot.lane.b32.xlu1 %v11433_v47, %s21290_s18  ;;  %v11449_v58 = vpop.permute.xlu1 %11448  ;;  %s21301_s18 = smov 6   ;;  %12320 = vmatprep.subr.bf16.mxu0 %v19890_v11  ;;  %v19933_v47 = vld [vmem:[#allocation21 + $0x5e0] ss:$16 sps:$4 sm:$0xff]  }
 0xa07   : > { %v11450_v17 = vsel %vm11418_vm12, %v11447_v59, %v11449_v58  ;;  %v19938_v59 = vld [vmem:[#allocation21 + $0x4e4] ss:$16 sps:$4 sm:$0xff]  }
 0xa08   : > { %v11452_v51 = vmax.f32 %v22948_v0, %v11450_v17  ;;  %v19897_v0 = vld [vmem:[#allocation21 + $0x520] ss:$16 sps:$4 sm:$0xff]   ;;  %v19941_v58 = vld [vmem:[#allocation21 + $0x604] ss:$16 sps:$4 sm:$0xff]  }
 0xa09   : > { %12352 = vmatpush1.bf16.msra.mxu1 %v19897_v0  ;;  %12321 = vmatpush1.bf16.msra.mxu0 %v19888_v23  ;;  %v19936_v17 = vld [vmem:[#allocation21 + $0x4e0] ss:$16 sps:$4 sm:$0xff]  }
 0xa0a   : > { %11454 = vrot.lane.b32.xlu0 %v11452_v51, %s21300_s9  ;;  %v11462_v22 = vpop.permute.xlu1 %11461  ;;  %12353 = vmatprep.subr.bf16.mxu1 %v19905_v61  ;;  %v19939_v51 = vld [vmem:[#allocation21 + $0x600] ss:$16 sps:$4 sm:$0xff]   ;;  %s1191_s9 = scalar_lea.vmem %s23479_s8, %s22043_s28  ;;  %s15752_s28 = scalar_lea.sflag [#allocation12], %s21985_s15 }
 0xa0b   : > { %12322 = vmatprep.subr.bf16.mxu0 %v19893_v15  ;;  %v11464_v36 = vmax.f32 %v22950_v38, %v11462_v22 }
 0xa0d   : > { %12354 = vmatpush1.bf16.msra.mxu1 %v19903_v40  ;;  %12323 = vmatpush1.bf16.msra.mxu0 %v19891_v1 }
 0xa0e   : > { %12355 = vmatprep.subr.bf16.mxu1 %v19911_v35  ;;  %12324 = vmatprep.subr.bf16.mxu0 %v19896_v46 }
 0xa11   : > { %12325 = vmatpush1.bf16.msra.mxu0 %v19894_v9 }
 0xa12   : > { %12326 = vmatprep.subr.bf16.mxu0 %v19902_v57 }
 0xa15   : > { %12327 = vmatpush1.bf16.msra.mxu0 %v19900_v20 }
 0xa27   : > { %v11475_v54 = vpop.permute.xlu0 %11474 }
 0xa28   : > { %v11477_v52 = vmax.f32 %v22950_v38, %v11475_v54  ;;  %v11478_v4 = vmax.f32 %v22968_v28, %v11475_v54  ;;  %v19908_v38 = vld [vmem:[#allocation21 + $0x444] ss:$16 sps:$4 sm:$0xff]  }
 0xa29   : > { %12328 = vmatprep.subr.bf16.mxu0 %v19908_v38 }
 0xa2a   : > { %11483 = vrot.lane.b32.xlu1 %v11478_v4, %s21301_s18  ;;  %11481 = vrot.lane.b32.xlu0 %v11477_v52, %s21301_s18  ;;  %s23478_s18 = sld [smem:[#allocation82_spill]] }
 0xa2b   : > { %v11496_v19 = vpop.permute.xlu0 %11495  ;;  %12329 = vmatpush1.bf16.msra.mxu0 %v19906_v21 }
 0xa2c   : > { %v11498_v2 = vmax.f32 %v22968_v28, %v11496_v19  ;;  %v11499_v16 = vmax.f32 %v22970_v18, %v11496_v19  ;;  %v19909_v28 = vld [vmem:[#allocation21 + $0x560] ss:$16 sps:$4 sm:$0xff]   ;;  %12330 = vmatprep.subr.bf16.mxu0 %v19914_v24  ;;  %v19948_v24 = vld [vmem:[#allocation21 + $0x328] ss:$16 sps:$4 sm:$0xff]  }
 0xa2d   : > { %12356 = vmatpush1.bf16.msra.mxu1 %v19909_v28 }
 0xa2e   : > { %11502 = vrot.lane.b32.xlu1 %v11498_v2, %s21294_s21  ;;  %11504 = vrot.lane.b32.xlu0 %v11499_v16, %s21294_s21  ;;  %s23476_s21 = sld [smem:[#allocation61_spill]] }
 0xa2f   : > { %v11516_v10 = vpop.permute.xlu0 %11515  ;;  %12357 = vmatprep.subr.bf16.mxu1 %v19917_v8  ;;  %12331 = vmatpush1.bf16.msra.mxu0 %v19912_v56  ;;  %v19951_v56 = vld [vmem:[#allocation21 + $0x528] ss:$16 sps:$4 sm:$0xff]  }
 0xa30   : > { %12332 = vmatprep.subr.bf16.mxu0 %v19920_v44  ;;  %v19965_v44 = vld [vmem:[#allocation21 + $0x56c] ss:$16 sps:$4 sm:$0xff]  }
 0xa31   : > { %12358 = vmatpush1.bf16.msra.mxu1 %v19915_v37 }
 0xa32   : > { %11466 = vrot.lane.b32.xlu1 %v11464_v36, %s21285_s2  ;;  %s21302_s2 = smov 34   ;;  %12359 = vmatprep.subr.bf16.mxu1 %v19923_v42  ;;  %v19968_v42 = vld [vmem:[#allocation21 + $0x38c] ss:$16 sps:$4 sm:$0xff]  }
 0xa33   : > { %v11399_v13 = vpop.permute.xlu0 %11398  ;;  %12333 = vmatpush1.bf16.msra.mxu0 %v19918_v29  ;;  %v19962_v29 = vld [vmem:[#allocation21 + $0x36c] ss:$16 sps:$4 sm:$0xff]  }
 0xa34   : > { %v11401_v6 = vmax.f32 %v22934_v41, %v11399_v13  ;;  %12334 = vmatprep.subr.bf16.mxu0 %v19926_v39  ;;  %v19971_v39 = vld [vmem:[#allocation21 + $0x58c] ss:$16 sps:$4 sm:$0xff]   ;;  %s1188_s20 = scalar_lea.vmem %s23476_s21, %s16122_s1 }
 0xa35   : > { %12360 = vmatpush1.bf16.msra.mxu1 %v19921_v25  ;;  %v19960_v25 = vld [vmem:[#allocation21 + $0x368] ss:$16 sps:$4 sm:$0xff]  }
 0xa36   : > { %11403 = vst.msk [vmem:[#allocation6] sm:$0xff] %vm11402_vm2, %v11401_v6  ;;  %12361 = vmatprep.subr.bf16.mxu1 %v19929_v45  ;;  %v19966_v45 = vld [vmem:[#allocation21 + $0x388] ss:$16 sps:$4 sm:$0xff]   ;;  %vm15295_vm2 = vcmask 72704  }
 0xa37   : > { %12335 = vmatpush1.bf16.msra.mxu0 %v19924_v12  ;;  %v19969_v12 = vld [vmem:[#allocation21 + $0x588] ss:$16 sps:$4 sm:$0xff]  }
 0xa38   : > { %12336 = vmatprep.subr.bf16.mxu0 %v19932_v33  ;;  %v19977_v33 = vld [vmem:[#allocation21 + $0x5ac] ss:$16 sps:$4 sm:$0xff]  }
 0xa39   : > { %v11415_v31 = vpop.permute.xlu0 %11414 }
 0xa3b   : > { %12337 = vmatpush1.bf16.msra.mxu0 %v19930_v43  ;;  %v19975_v43 = vld [vmem:[#allocation21 + $0x5a8] ss:$16 sps:$4 sm:$0xff]  }
 0xa3c   : > { %12338 = vmatprep.subr.bf16.mxu0 %v19938_v59  ;;  %v19983_v59 = vld [vmem:[#allocation21 + $0x5cc] ss:$16 sps:$4 sm:$0xff]  }
 0xa3f   : > { %12339 = vmatpush1.bf16.msra.mxu0 %v19936_v17  ;;  %v19981_v17 = vld [vmem:[#allocation21 + $0x5c8] ss:$16 sps:$4 sm:$0xff]  }
 0xa40   : > { %12340 = vmatprep.subr.bf16.mxu0 %v19944_v63  ;;  %v19989_v63 = vld [vmem:[#allocation21 + $0x5ec] ss:$16 sps:$4 sm:$0xff]  }
 0xa43   : > { %12341 = vmatpush1.bf16.msra.mxu0 %v19942_v30  ;;  %v19987_v30 = vld [vmem:[#allocation21 + $0x5e8] ss:$16 sps:$4 sm:$0xff]  }
 0xa44   : > { %12433 = vmatprep.subr.bf16.mxu0 %v19953_v34  ;;  %v19995_v34 = vld [vmem:[#allocation21 + $0x60c] ss:$16 sps:$4 sm:$0xff]  }
 0xa53   : > { %v11518_v26 = vpop.permute.xlu1 %11517 }
 0xa54   : > { %v11519_v41 = vsel %vm11418_vm12, %v11516_v10, %v11518_v26 }
 0xa55   : > { %v11521_v3 = vmax.f32 %v22970_v18, %v11519_v41  ;;  %v19927_v18 = vld [vmem:[#allocation21 + $0x5c0] ss:$16 sps:$4 sm:$0xff]  }
 0xa56   : > { %12362 = vmatpush1.bf16.msra.mxu1 %v19927_v18  ;;  %v19974_v18 = vld [vmem:[#allocation21 + $0x3ac] ss:$16 sps:$4 sm:$0xff]  }
 0xa57   : > { %11523 = vrot.lane.b32.xlu0 %v11521_v3, %s21302_s2  ;;  %v11417_v14 = vpop.permute.xlu1 %11416  ;;  %12363 = vmatprep.subr.bf16.mxu1 %v19935_v32  ;;  %v19959_v3 = vld [vmem:[#allocation21 + $0x54c] ss:$16 sps:$4 sm:$0xff]   ;;  %v19972_v32 = vld [vmem:[#allocation21 + $0x3a8] ss:$16 sps:$4 sm:$0xff]  }
 0xa58   : > { %v11419_v5 = vsel %vm11418_vm12, %v11415_v31, %v11417_v14  ;;  %v19954_v31 = vld [vmem:[#allocation21 + $0x348] ss:$16 sps:$4 sm:$0xff]  }
 0xa59   : > { %11422 = vst.msk [vmem:[#allocation6] sm:$0xff] %vm11421_vm6, %v11419_v5  ;;  %v19957_v14 = vld [vmem:[#allocation21 + $0x548] ss:$16 sps:$4 sm:$0xff]   ;;  %vm15377_vm6 = vcmask 65536  }
 0xa5a   : > { %12364 = vmatpush1.bf16.msra.mxu1 %v19933_v47  ;;  %v19963_v5 = vld [vmem:[#allocation21 + $0x568] ss:$16 sps:$4 sm:$0xff]   ;;  %v19980_v47 = vld [vmem:[#allocation21 + $0x3cc] ss:$16 sps:$4 sm:$0xff]  }
 0xa5b   : > { %12365 = vmatprep.subr.bf16.mxu1 %v19941_v58  ;;  %v19978_v58 = vld [vmem:[#allocation21 + $0x3c8] ss:$16 sps:$4 sm:$0xff]  }
 0xa5e   : > { %12366 = vmatpush1.bf16.msra.mxu1 %v19939_v51  ;;  %v19986_v51 = vld [vmem:[#allocation21 + $0x3ec] ss:$16 sps:$4 sm:$0xff]  }
 0xa5f   : > { %12367 = vmatprep.subr.bf16.mxu1 %v19947_v55  ;;  %v19984_v55 = vld [vmem:[#allocation21 + $0x3e8] ss:$16 sps:$4 sm:$0xff]  }
 0xa62   : > { %12368 = vmatpush1.bf16.msra.mxu1 %v19945_v60  ;;  %v19992_v60 = vld [vmem:[#allocation21 + $0x40c] ss:$16 sps:$4 sm:$0xff]  }
 0xa63   : > { %12392 = vmatprep.subr.bf16.mxu1 %v19950_v62  ;;  %v19990_v62 = vld [vmem:[#allocation21 + $0x408] ss:$16 sps:$4 sm:$0xff]  }
 0xa78   : > { %v11436_v54 = vpop.permute.xlu1 %11435 }
 0xa79   : > { %11439 = vst.msk [vmem:[#allocation6] sm:$0xff] %vm11438_vm7, %v11436_v54  ;;  %vm15649_vm7 = vcmask 0  }
 0xa7a   : > { %11441 = vst.msk [vmem:[#allocation6 + $0x8] sm:$0xff] %vm11440_vm8, %v11436_v54  ;;  %v19993_v54 = vld [vmem:[#allocation21 + $0x608] ss:$16 sps:$4 sm:$0xff]  }
 0xa7c   : > { %v11455_v11 = vpop.permute.xlu0 %11454 }
 0xa7d   : > { %11458 = vst.msk [vmem:[#allocation6 + $0x8] sm:$0xff] %vm11457_vm9, %v11455_v11  ;;  %v19998_v11 = vld [vmem:[#allocation21 + $0x42c] ss:$16 sps:$4 sm:$0xff]  }
 0xa9c   : > { %v11482_v52 = vpop.permute.xlu0 %11481  ;;  %v11484_v4 = vpop.permute.xlu1 %11483 }
 0xa9d   : > { %v11486_v0 = vsel %vm11485_vm10, %v11482_v52, %v11484_v4  ;;  %v19996_v4 = vld [vmem:[#allocation21 + $0x428] ss:$16 sps:$4 sm:$0xff]  }
 0xa9e   : > { %11491 = vst.msk [vmem:[#allocation6 + $0x10] sm:$0xff] %vm1353_vm1, %v11486_v0  ;;  %v19999_v0 = vld [vmem:[#allocation21 + $0x628] ss:$16 sps:$4 sm:$0xff]   ;;  %vm21304_vm1 = vmmov 0  }
 0xaa0   : > { %v11505_v23 = vpop.permute.xlu0 %11504  ;;  %v11503_v27 = vpop.permute.xlu1 %11502 }
 0xaa1   : > { %v11507_v61 = vsel %vm11506_vm11, %v11503_v27, %v11505_v23  ;;  %v20004_v27 = vld [vmem:[#allocation21 + $0x44c] ss:$16 sps:$4 sm:$0xff]  }
 0xaa2   : > { %11510 = vst.msk [vmem:[#allocation6 + $0x10] sm:$0xff] %vm11509_vm14, %v11507_v61  ;;  %v20007_v61 = vld [vmem:[#allocation21 + $0x4] ss:$16 sps:$4 sm:$0xff]  }
 0xaa4   : > { %v11467_v19 = vpop.permute.xlu1 %11466 }
 0xaa5   : > { %11470 = vst.msk [vmem:[#allocation6 + $0x8] sm:$0xff] %vm11469_vm15, %v11467_v19 }
 0xaa6   : > { %11490 = vst.msk [vmem:[#allocation6 + $0x8] sm:$0xff] %vm11489_vm0, %v11482_v52  ;;  %v20001_v52 = vld [vmem:[#allocation21 + $0x62c] ss:$16 sps:$4 sm:$0xff]  }
 0xac9   : > { %v11524_v15 = vpop.permute.xlu0 %11523 }
 0xaca   : > { %11527 = vst.msk [vmem:[#allocation6 + $0x10] sm:$0xff] %vm11526_vm3, %v11524_v15 }
 0xacb   : > { %11528 = vst.msk [vmem:[#allocation6 + $0x18] sm:$0xff] %vm3920_vm13, %v11524_v15  ;;  %v20002_v15 = vld [vmem:[#allocation21 + $0x448] ss:$16 sps:$4 sm:$0xff]  }
 0xad2   : > { %v11529_v2 = vld [vmem:[#allocation6] ss:$8 sm:$0xf]  ;;  %v11531_v16 = vld [vmem:[#allocation6 + $0x1] ss:$8 sm:$0xf] }
 0xad3   : > { %v11532_v40 = vmax.f32 %v11529_v2, %v11531_v16  ;;  %v11535_v22 = vld [vmem:[#allocation6 + $0x2] ss:$8 sm:$0xf]  ;;  %v11537_v1 = vld [vmem:[#allocation6 + $0x3] ss:$8 sm:$0xf] }
 0xad4   : > { %v11538_v35 = vmax.f32 %v11535_v22, %v11537_v1  ;;  %v11542_v46 = vld [vmem:[#allocation6 + $0x4] ss:$8 sm:$0xf]  ;;  %v11544_v10 = vld [vmem:[#allocation6 + $0x5] ss:$8 sm:$0xf] }
 0xad5   : > { %11533 = vst.msk [vmem:[#allocation7] ss:$4 sm:$0xf] %vm22596_vm4, %v11532_v40  ;;  %v11545_v36 = vmax.f32 %v11542_v46, %v11544_v10  ;;  %v11549_v28 = vld [vmem:[#allocation6 + $0x6] ss:$8 sm:$0xf] }
 0xad6   : > { %v11551_v9 = vld [vmem:[#allocation6 + $0x7] ss:$8 sm:$0xf]  ;;  %11540 = vst.msk [vmem:[#allocation7 + $0x1] ss:$4 sm:$0xf] %vm22596_vm4, %v11538_v35 }
 0xad7   : > { %v11552_v8 = vmax.f32 %v11549_v28, %v11551_v9  ;;  %11547 = vst.msk [vmem:[#allocation7 + $0x2] ss:$4 sm:$0xf] %vm22596_vm4, %v11545_v36  ;;  %v20005_v2 = vld [vmem:[#allocation21] ss:$16 sps:$4 sm:$0xff]  }
 0xad8   : > { %v20010_v16 = vld [vmem:[#allocation21 + $0x46c] ss:$16 sps:$4 sm:$0xff]   ;;  %v20013_v40 = vld [vmem:[#allocation21 + $0x24] ss:$16 sps:$4 sm:$0xff]   ;;  %v20008_v1 = vld [vmem:[#allocation21 + $0x468] ss:$16 sps:$4 sm:$0xff]  }
 0xad9   : > { %11554 = vst.msk [vmem:[#allocation7 + $0x3] ss:$4 sm:$0xf] %vm22596_vm4, %v11552_v8  ;;  %v20011_v35 = vld [vmem:[#allocation21 + $0x20] ss:$16 sps:$4 sm:$0xff]   ;;  %vm21306_vm4 = vmmov 1  }
 0xada   : > { %v20016_v46 = vld [vmem:[#allocation21 + $0x48c] ss:$16 sps:$4 sm:$0xff]   ;;  %v20019_v10 = vld [vmem:[#allocation21 + $0x44] ss:$16 sps:$4 sm:$0xff]   ;;  %v20014_v36 = vld [vmem:[#allocation21 + $0x488] ss:$16 sps:$4 sm:$0xff]  }
 0xadb   : > { %v20017_v28 = vld [vmem:[#allocation21 + $0x40] ss:$16 sps:$4 sm:$0xff]   ;;  %v20022_v9 = vld [vmem:[#allocation21 + $0x4ac] ss:$16 sps:$4 sm:$0xff]   ;;  %v20025_v8 = vld [vmem:[#allocation21 + $0x64] ss:$16 sps:$4 sm:$0xff]  }
 0xadc   : > { %v23029_v23 = vld [vmem:[#allocation7] ss:$4 sm:$0xf] }
 0xadd   : > { %v11681_v57 = vld [vmem:[#allocation7 + $0x1] ss:$4 sm:$0xf]  ;;  %v11564_v19 = vrot.slane %v23029_v23, %v22313_v53 }
 0xade   : > { %v11690_v13 = vrot.slane %v11681_v57, %v22313_v53  ;;  %v11698_v6 = vrot.slane %v11681_v57, %v22262_v49  ;;  %v11686_v37 = vrot.slane %v11681_v57, %v22308_v50  ;;  %v11694_v20 = vrot.slane %v11681_v57, %v22259_v48  ;;  %v20020_v57 = vld [vmem:[#allocation21 + $0x4a8] ss:$16 sps:$4 sm:$0xff]  }
 0xadf   : > { %v23034_v22 = vpack.c.bf16 %v11564_v19, %v11564_v19  ;;  %v20091_v19 = vld [vmem:[#allocation21 + $0x2e4] ss:$16 sps:$4 sm:$0xff]  }
 0xae0   : > { %v11704_v38 = vpack.c.bf16 %v11690_v13, %v11690_v13  ;;  %v11706_v21 = vpack.c.bf16 %v11698_v6, %v11698_v6  ;;  %v23021_v26 = vpack.c.bf16 %v11686_v37, %v11686_v37  ;;  %v23023_v41 = vpack.c.bf16 %v11694_v20, %v11694_v20  ;;  %v20023_v13 = vld [vmem:[#allocation21 + $0x60] ss:$16 sps:$4 sm:$0xff]   ;;  %v20028_v6 = vld [vmem:[#allocation21 + $0x4cc] ss:$16 sps:$4 sm:$0xff]   ;;  %v20031_v37 = vld [vmem:[#allocation21 + $0x84] ss:$16 sps:$4 sm:$0xff]  }
 0xae1   : > { %v20026_v20 = vld [vmem:[#allocation21 + $0x4c8] ss:$16 sps:$4 sm:$0xff]  }
 0xae2   : > { %12342 = vmatprep.mubr.bf16.mxu0 %v11704_v38  ;;  %17278 = vmatprep.mubr.msk.bf16.mxu1 %vm3920_vm13, %v11706_v21 }
 0xae3   : > { %12343 = vmatmul.mubr.bf16.vlgmr.msra.gmra.mrb[136].mxu0 %v23021_v26  ;;  %12384 = vmatmul.mubr.bf16.vlgmr.msra.gmra.mrb[120].mxu1 %v23023_v41 }
 0xae4   : > { %12393 = vmatpush1.bf16.msra.mxu1 %v19948_v24  ;;  %12434 = vmatpush1.bf16.msra.mxu0 %v19951_v56  ;;  %v20037_v24 = vld [vmem:[#allocation21 + $0xa4] ss:$16 sps:$4 sm:$0xff]   ;;  %v20032_v56 = vld [vmem:[#allocation21 + $0x4e8] ss:$16 sps:$4 sm:$0xff]  }
 0xae5   : > { %12424 = vmatprep.mubr.bf16.mxu1 %v11704_v38  ;;  %17279 = vmatprep.mubr.msk.bf16.mxu0 %vm3920_vm13, %v11706_v21  ;;  %v20029_v38 = vld [vmem:[#allocation21 + $0x80] ss:$16 sps:$4 sm:$0xff]   ;;  %v20034_v21 = vld [vmem:[#allocation21 + $0x4ec] ss:$16 sps:$4 sm:$0xff]  }
 0xae6   : > { %12394 = vmatprep.subr.bf16.mxu1 %v19956_v7  ;;  %12435 = vmatprep.subr.bf16.mxu0 %v19959_v3  ;;  %v20040_v7 = vld [vmem:[#allocation21 + $0x50c] ss:$16 sps:$4 sm:$0xff]   ;;  %v20043_v3 = vld [vmem:[#allocation21 + $0xc4] ss:$16 sps:$4 sm:$0xff]  }
 0xae8   : > { %12395 = vmatpush1.bf16.msra.mxu1 %v19954_v31  ;;  %12436 = vmatpush1.bf16.msra.mxu0 %v19957_v14  ;;  %v20038_v31 = vld [vmem:[#allocation21 + $0x508] ss:$16 sps:$4 sm:$0xff]   ;;  %v20041_v14 = vld [vmem:[#allocation21 + $0xc0] ss:$16 sps:$4 sm:$0xff]  }
 0xae9   : > { %12396 = vmatprep.subr.bf16.mxu1 %v19962_v29  ;;  %12437 = vmatprep.subr.bf16.mxu0 %v19965_v44  ;;  %v20046_v29 = vld [vmem:[#allocation21 + $0xe4] ss:$16 sps:$4 sm:$0xff]  }
 0xaea   : > { %v20049_v44 = vld [vmem:[#allocation21 + $0x204] ss:$16 sps:$4 sm:$0xff]  }
 0xaec   : > { %12397 = vmatpush1.bf16.msra.mxu1 %v19960_v25  ;;  %12438 = vmatpush1.bf16.msra.mxu0 %v19963_v5  ;;  %v11572_v25 = vrot.slane %v23029_v23, %v22262_v49  ;;  %v20044_v5 = vld [vmem:[#allocation21 + $0xe0] ss:$16 sps:$4 sm:$0xff]  }
 0xaed   : > { %12398 = vmatprep.subr.bf16.mxu1 %v19968_v42  ;;  %12439 = vmatprep.subr.bf16.mxu0 %v19971_v39  ;;  %v20047_v42 = vld [vmem:[#allocation21 + $0x200] ss:$16 sps:$4 sm:$0xff]   ;;  %v20052_v39 = vld [vmem:[#allocation21 + $0x104] ss:$16 sps:$4 sm:$0xff]  }
 0xaf0   : > { %12399 = vmatpush1.bf16.msra.mxu1 %v19966_v45  ;;  %12440 = vmatpush1.bf16.msra.mxu0 %v19969_v12  ;;  %v20055_v45 = vld [vmem:[#allocation21 + $0x224] ss:$16 sps:$4 sm:$0xff]   ;;  %v23040_v12 = vpack.c.bf16 %v11572_v25, %v11572_v25  ;;  %v20130_v25 = vld [vmem:[#allocation21 + $0xac] ss:$16 sps:$4 sm:$0xff]  }
 0xaf1   : > { %12400 = vmatprep.subr.bf16.mxu1 %v19974_v18  ;;  %12441 = vmatprep.subr.bf16.mxu0 %v19977_v33  ;;  %v20050_v18 = vld [vmem:[#allocation21 + $0x100] ss:$16 sps:$4 sm:$0xff]  }
 0xaf2   : > { %v20053_v33 = vld [vmem:[#allocation21 + $0x220] ss:$16 sps:$4 sm:$0xff]  }
 0xaf4   : > { %12401 = vmatpush1.bf16.msra.mxu1 %v19972_v32  ;;  %12442 = vmatpush1.bf16.msra.mxu0 %v19975_v43  ;;  %v20058_v32 = vld [vmem:[#allocation21 + $0x124] ss:$16 sps:$4 sm:$0xff]  }
 0xaf5   : > { %12402 = vmatprep.subr.bf16.mxu1 %v19980_v47  ;;  %12443 = vmatprep.subr.bf16.mxu0 %v19983_v59  ;;  %v20061_v43 = vld [vmem:[#allocation21 + $0x244] ss:$16 sps:$4 sm:$0xff]   ;;  %v20056_v47 = vld [vmem:[#allocation21 + $0x120] ss:$16 sps:$4 sm:$0xff]  }
 0xaf6   : > { %v20059_v59 = vld [vmem:[#allocation21 + $0x240] ss:$16 sps:$4 sm:$0xff]  }
 0xaf8   : > { %12403 = vmatpush1.bf16.msra.mxu1 %v19978_v58  ;;  %12444 = vmatpush1.bf16.msra.mxu0 %v19981_v17  ;;  %v20067_v58 = vld [vmem:[#allocation21 + $0x264] ss:$16 sps:$4 sm:$0xff]   ;;  %v20062_v17 = vld [vmem:[#allocation21 + $0x140] ss:$16 sps:$4 sm:$0xff]  }
 0xaf9   : > { %12404 = vmatprep.subr.bf16.mxu1 %v19986_v51  ;;  %12445 = vmatprep.subr.bf16.mxu0 %v19989_v63  ;;  %v20065_v51 = vld [vmem:[#allocation21 + $0x260] ss:$16 sps:$4 sm:$0xff]   ;;  %v20070_v63 = vld [vmem:[#allocation21 + $0x164] ss:$16 sps:$4 sm:$0xff]  }
 0xafc   : > { %12405 = vmatpush1.bf16.msra.mxu1 %v19984_v55  ;;  %12446 = vmatpush1.bf16.msra.mxu0 %v19987_v30  ;;  %v20073_v55 = vld [vmem:[#allocation21 + $0x284] ss:$16 sps:$4 sm:$0xff]   ;;  %v20068_v30 = vld [vmem:[#allocation21 + $0x160] ss:$16 sps:$4 sm:$0xff]  }
 0xafd   : > { %12406 = vmatprep.subr.bf16.mxu1 %v19992_v60  ;;  %12447 = vmatprep.subr.bf16.mxu0 %v19995_v34  ;;  %v20071_v60 = vld [vmem:[#allocation21 + $0x280] ss:$16 sps:$4 sm:$0xff]   ;;  %v20076_v34 = vld [vmem:[#allocation21 + $0x184] ss:$16 sps:$4 sm:$0xff]  }
 0xb00   : > { %12407 = vmatpush1.bf16.msra.mxu1 %v19990_v62  ;;  %12448 = vmatpush1.bf16.msra.mxu0 %v19993_v54  ;;  %v20079_v62 = vld [vmem:[#allocation21 + $0x2a4] ss:$16 sps:$4 sm:$0xff]   ;;  %v20074_v54 = vld [vmem:[#allocation21 + $0x180] ss:$16 sps:$4 sm:$0xff]  }
 0xb01   : > { %12408 = vmatprep.subr.bf16.mxu1 %v19998_v11  ;;  %12449 = vmatprep.subr.bf16.mxu0 %v20001_v52  ;;  %v20077_v11 = vld [vmem:[#allocation21 + $0x2a0] ss:$16 sps:$4 sm:$0xff]   ;;  %v20082_v52 = vld [vmem:[#allocation21 + $0x1a4] ss:$16 sps:$4 sm:$0xff]  }
 0xb04   : > { %12409 = vmatpush1.bf16.msra.mxu1 %v19996_v4  ;;  %12450 = vmatpush1.bf16.msra.mxu0 %v19999_v0  ;;  %v20085_v4 = vld [vmem:[#allocation21 + $0x2c4] ss:$16 sps:$4 sm:$0xff]   ;;  %v20080_v0 = vld [vmem:[#allocation21 + $0x1a0] ss:$16 sps:$4 sm:$0xff]  }
 0xb05   : > { %12410 = vmatprep.subr.bf16.mxu1 %v20004_v27  ;;  %12977 = vmatprep.subr.bf16.mxu0 %v20007_v61  ;;  %v20083_v27 = vld [vmem:[#allocation21 + $0x2c0] ss:$16 sps:$4 sm:$0xff]   ;;  %v20088_v61 = vld [vmem:[#allocation21 + $0x1c4] ss:$16 sps:$4 sm:$0xff]  }
 0xb07   : > { %12466 = vmatmul.mubr.bf16.vlgmr.msra.gmra.mrb[140].mxu0 %v23023_v41  ;;  %v20035_v41 = vld [vmem:[#allocation21 + $0xa0] ss:$16 sps:$4 sm:$0xff]  }
 0xb08   : > { %12411 = vmatpush1.bf16.msra.mxu1 %v20002_v15  ;;  %12978 = vmatpush1.bf16.msra.mxu0 %v20005_v2  ;;  %v20086_v15 = vld [vmem:[#allocation21 + $0x1c0] ss:$16 sps:$4 sm:$0xff]  }
 0xb09   : > { %13009 = vmatprep.mubr.bf16.mxu0 %v23034_v22  ;;  %12412 = vmatprep.subr.bf16.mxu1 %v20010_v16  ;;  %v20089_v2 = vld [vmem:[#allocation21 + $0x2e0] ss:$16 sps:$4 sm:$0xff]   ;;  %v20094_v16 = vld [vmem:[#allocation21 + $0x1e4] ss:$16 sps:$4 sm:$0xff]  }
 0xb0a   : > { %12979 = vmatprep.subr.bf16.mxu0 %v20013_v40  ;;  %v20097_v40 = vld [vmem:[#allocation21 + $0x304] ss:$16 sps:$4 sm:$0xff]  }
 0xb0c   : > { %12413 = vmatpush1.bf16.msra.mxu1 %v20008_v1  ;;  %12980 = vmatpush1.bf16.msra.mxu0 %v20011_v35  ;;  %v20092_v1 = vld [vmem:[#allocation21 + $0x1e0] ss:$16 sps:$4 sm:$0xff]  }
 0xb0d   : > { %12414 = vmatprep.subr.bf16.mxu1 %v20016_v46  ;;  %12981 = vmatprep.subr.bf16.mxu0 %v20019_v10  ;;  %v20095_v35 = vld [vmem:[#allocation21 + $0x300] ss:$16 sps:$4 sm:$0xff]   ;;  %v11560_v46 = vrot.slane %v23029_v23, %v22308_v50  ;;  %v11568_v10 = vrot.slane %v23029_v23, %v22259_v48  ;;  %v20104_v23 = vld [vmem:[#allocation21 + $0x28] ss:$16 sps:$4 sm:$0xff]  }
 0xb10   : > { %12415 = vmatpush1.bf16.msra.mxu1 %v20014_v36  ;;  %12982 = vmatpush1.bf16.msra.mxu0 %v20017_v28  ;;  %v20100_v36 = vld [vmem:[#allocation21 + $0xc] ss:$16 sps:$4 sm:$0xff]  }
 0xb11   : > { %12416 = vmatprep.subr.bf16.mxu1 %v20022_v9  ;;  %12983 = vmatprep.subr.bf16.mxu0 %v20025_v8  ;;  %v20103_v28 = vld [vmem:[#allocation21 + $0x20c] ss:$16 sps:$4 sm:$0xff]   ;;  %v20098_v9 = vld [vmem:[#allocation21 + $0x8] ss:$16 sps:$4 sm:$0xff]   ;;  %v23048_v8 = vpack.c.bf16 %v11560_v46, %v11560_v46  ;;  %v20181_v46 = vld [vmem:[#allocation21 + $0x6c4] ss:$16 sps:$4 sm:$0xff]  }
 0xb14   : > { %12417 = vmatpush1.bf16.msra.mxu1 %v20020_v57  ;;  %12984 = vmatpush1.bf16.msra.mxu0 %v20023_v13  ;;  %v23050_v57 = vpack.c.bf16 %v11568_v10, %v11568_v10  ;;  %v20101_v13 = vld [vmem:[#allocation21 + $0x208] ss:$16 sps:$4 sm:$0xff]  }
 0xb15   : > { %12418 = vmatprep.subr.bf16.mxu1 %v20028_v6  ;;  %12985 = vmatprep.subr.bf16.mxu0 %v20031_v37  ;;  %v20106_v6 = vld [vmem:[#allocation21 + $0x2c] ss:$16 sps:$4 sm:$0xff]   ;;  %v20176_v10 = vld [vmem:[#allocation21 + $0x1a8] ss:$16 sps:$4 sm:$0xff]  }
 0xb16   : > { %v20109_v37 = vld [vmem:[#allocation21 + $0x22c] ss:$16 sps:$4 sm:$0xff]  }
 0xb18   : > { %12419 = vmatpush1.bf16.msra.mxu1 %v20026_v20  ;;  %12986 = vmatpush1.bf16.msra.mxu0 %v20029_v38  ;;  %v20107_v20 = vld [vmem:[#allocation21 + $0x228] ss:$16 sps:$4 sm:$0xff]   ;;  %v20112_v38 = vld [vmem:[#allocation21 + $0x4c] ss:$16 sps:$4 sm:$0xff]  }
 0xb19   : > { %12420 = vmatprep.subr.bf16.mxu1 %v20034_v21  ;;  %12987 = vmatprep.subr.bf16.mxu0 %v20037_v24  ;;  %v20115_v21 = vld [vmem:[#allocation21 + $0x24c] ss:$16 sps:$4 sm:$0xff]   ;;  %v20110_v24 = vld [vmem:[#allocation21 + $0x48] ss:$16 sps:$4 sm:$0xff]  }
 0xb1c   : > { %12421 = vmatpush1.bf16.msra.mxu1 %v20032_v56  ;;  %12988 = vmatpush1.bf16.msra.mxu0 %v20035_v41  ;;  %v20113_v56 = vld [vmem:[#allocation21 + $0x248] ss:$16 sps:$4 sm:$0xff]   ;;  %v20118_v41 = vld [vmem:[#allocation21 + $0x6c] ss:$16 sps:$4 sm:$0xff]  }
 0xb1d   : > { %12422 = vmatprep.subr.bf16.mxu1 %v20040_v7  ;;  %12989 = vmatprep.subr.bf16.mxu0 %v20043_v3  ;;  %v20121_v7 = vld [vmem:[#allocation21 + $0x26c] ss:$16 sps:$4 sm:$0xff]   ;;  %v20119_v3 = vld [vmem:[#allocation21 + $0x268] ss:$16 sps:$4 sm:$0xff]  }
 0xb20   : > { %12423 = vmatpush1.bf16.msra.mxu1 %v20038_v31  ;;  %12990 = vmatpush1.bf16.msra.mxu0 %v20041_v14  ;;  %v20124_v31 = vld [vmem:[#allocation21 + $0x8c] ss:$16 sps:$4 sm:$0xff]  }
 0xb21   : > { %12991 = vmatprep.subr.bf16.mxu0 %v20046_v29  ;;  %13018 = vmatprep.subr.bf16.mxu1 %v20049_v44  ;;  %v20127_v14 = vld [vmem:[#allocation21 + $0x28c] ss:$16 sps:$4 sm:$0xff]   ;;  %v20122_v29 = vld [vmem:[#allocation21 + $0x88] ss:$16 sps:$4 sm:$0xff]  }
 0xb22   : > { %v20125_v44 = vld [vmem:[#allocation21 + $0x288] ss:$16 sps:$4 sm:$0xff]  }
 0xb23   : > { %12425 = vmatmul.mubr.bf16.vlgmr.msra.gmra.mrb[124].mxu1 %v23021_v26  ;;  %v20064_v26 = vld [vmem:[#allocation21 + $0x144] ss:$16 sps:$4 sm:$0xff]  }
 0xb24   : > { %12992 = vmatpush1.bf16.msra.mxu0 %v20044_v5  ;;  %13019 = vmatpush1.bf16.msra.mxu1 %v20047_v42  ;;  %v20133_v5 = vld [vmem:[#allocation21 + $0x2ac] ss:$16 sps:$4 sm:$0xff]   ;;  %v20128_v42 = vld [vmem:[#allocation21 + $0xa8] ss:$16 sps:$4 sm:$0xff]  }
 0xb25   : > { %17380 = vmatprep.mubr.msk.bf16.mxu1 %vm3920_vm13, %v23040_v12  ;;  %12993 = vmatprep.subr.bf16.mxu0 %v20052_v39  ;;  %v20131_v39 = vld [vmem:[#allocation21 + $0x2a8] ss:$16 sps:$4 sm:$0xff]  }
 0xb26   : > { %13020 = vmatprep.subr.bf16.mxu1 %v20055_v45  ;;  %v20136_v45 = vld [vmem:[#allocation21 + $0xcc] ss:$16 sps:$4 sm:$0xff]  }
 0xb28   : > { %12994 = vmatpush1.bf16.msra.mxu0 %v20050_v18  ;;  %13021 = vmatpush1.bf16.msra.mxu1 %v20053_v33  ;;  %v20134_v18 = vld [vmem:[#allocation21 + $0xc8] ss:$16 sps:$4 sm:$0xff]  }
 0xb29   : > { %12995 = vmatprep.subr.bf16.mxu0 %v20058_v32  ;;  %13022 = vmatprep.subr.bf16.mxu1 %v20061_v43  ;;  %v20137_v33 = vld [vmem:[#allocation21 + $0x2c8] ss:$16 sps:$4 sm:$0xff]   ;;  %v20142_v32 = vld [vmem:[#allocation21 + $0xec] ss:$16 sps:$4 sm:$0xff]  }
 0xb2a   : > { %v20145_v43 = vld [vmem:[#allocation21 + $0x2ec] ss:$16 sps:$4 sm:$0xff]  }
 0xb2c   : > { %12996 = vmatpush1.bf16.msra.mxu0 %v20056_v47  ;;  %13023 = vmatpush1.bf16.msra.mxu1 %v20059_v59  ;;  %v20140_v47 = vld [vmem:[#allocation21 + $0xe8] ss:$16 sps:$4 sm:$0xff]  }
 0xb2d   : > { %12997 = vmatprep.subr.bf16.mxu0 %v20064_v26  ;;  %13024 = vmatprep.subr.bf16.mxu1 %v20067_v58  ;;  %v20143_v59 = vld [vmem:[#allocation21 + $0x2e8] ss:$16 sps:$4 sm:$0xff]   ;;  %v20148_v26 = vld [vmem:[#allocation21 + $0x10c] ss:$16 sps:$4 sm:$0xff]  }
 0xb2e   : > { %v20151_v58 = vld [vmem:[#allocation21 + $0x30c] ss:$16 sps:$4 sm:$0xff]  }
 0xb30   : > { %12998 = vmatpush1.bf16.msra.mxu0 %v20062_v17  ;;  %13025 = vmatpush1.bf16.msra.mxu1 %v20065_v51  ;;  %v20146_v17 = vld [vmem:[#allocation21 + $0x108] ss:$16 sps:$4 sm:$0xff]  }
 0xb31   : > { %12999 = vmatprep.subr.bf16.mxu0 %v20070_v63  ;;  %13026 = vmatprep.subr.bf16.mxu1 %v20073_v55  ;;  %v23057_v51 = vld [vmem:[#allocation7 + $0x2] ss:$4 sm:$0xf] }
 0xb32   : > { %v20149_v63 = vld [vmem:[#allocation21 + $0x308] ss:$16 sps:$4 sm:$0xff]   ;;  %v20154_v55 = vld [vmem:[#allocation21 + $0x12c] ss:$16 sps:$4 sm:$0xff]  }
 0xb34   : > { %13000 = vmatpush1.bf16.msra.mxu0 %v20068_v30  ;;  %13027 = vmatpush1.bf16.msra.mxu1 %v20071_v60  ;;  %v20157_v30 = vld [vmem:[#allocation21 + $0x644] ss:$16 sps:$4 sm:$0xff]   ;;  %v13150_v60 = vrot.slane %v23057_v51, %v22313_v53 }
 0xb35   : > { %13001 = vmatprep.subr.bf16.mxu0 %v20076_v34  ;;  %13028 = vmatprep.subr.bf16.mxu1 %v20079_v62  ;;  %v20152_v34 = vld [vmem:[#allocation21 + $0x128] ss:$16 sps:$4 sm:$0xff]   ;;  %v20155_v62 = vld [vmem:[#allocation21 + $0x640] ss:$16 sps:$4 sm:$0xff]  }
 0xb38   : > { %13002 = vmatpush1.bf16.msra.mxu0 %v20074_v54  ;;  %13029 = vmatpush1.bf16.msra.mxu1 %v20077_v11  ;;  %v20160_v54 = vld [vmem:[#allocation21 + $0x14c] ss:$16 sps:$4 sm:$0xff]   ;;  %v20163_v11 = vld [vmem:[#allocation21 + $0x664] ss:$16 sps:$4 sm:$0xff]  }
 0xb39   : > { %13003 = vmatprep.subr.bf16.mxu0 %v20082_v52  ;;  %13030 = vmatprep.subr.bf16.mxu1 %v20085_v4  ;;  %v23061_v52 = vpack.c.bf16 %v13150_v60, %v13150_v60  ;;  %v20158_v4 = vld [vmem:[#allocation21 + $0x148] ss:$16 sps:$4 sm:$0xff]   ;;  %v20238_v60 = vld [vmem:[#allocation21 + $0x804] ss:$16 sps:$4 sm:$0xff]  }
 0xb3c   : > { %13004 = vmatpush1.bf16.msra.mxu0 %v20080_v0  ;;  %13031 = vmatpush1.bf16.msra.mxu1 %v20083_v27  ;;  %v20161_v0 = vld [vmem:[#allocation21 + $0x660] ss:$16 sps:$4 sm:$0xff]   ;;  %v20166_v27 = vld [vmem:[#allocation21 + $0x16c] ss:$16 sps:$4 sm:$0xff]  }
 0xb3d   : > { %13005 = vmatprep.subr.bf16.mxu0 %v20088_v61  ;;  %13032 = vmatprep.subr.bf16.mxu1 %v20091_v19  ;;  %v20169_v61 = vld [vmem:[#allocation21 + $0x684] ss:$16 sps:$4 sm:$0xff]   ;;  %v20164_v19 = vld [vmem:[#allocation21 + $0x168] ss:$16 sps:$4 sm:$0xff]  }
 0xb40   : > { %13006 = vmatpush1.bf16.msra.mxu0 %v20086_v15  ;;  %13033 = vmatpush1.bf16.msra.mxu1 %v20089_v2  ;;  %v20167_v15 = vld [vmem:[#allocation21 + $0x680] ss:$16 sps:$4 sm:$0xff]   ;;  %v20172_v2 = vld [vmem:[#allocation21 + $0x18c] ss:$16 sps:$4 sm:$0xff]  }
 0xb41   : > { %13007 = vmatprep.subr.bf16.mxu0 %v20094_v16  ;;  %13034 = vmatprep.subr.bf16.mxu1 %v20097_v40  ;;  %v20175_v16 = vld [vmem:[#allocation21 + $0x6a4] ss:$16 sps:$4 sm:$0xff]   ;;  %v20170_v40 = vld [vmem:[#allocation21 + $0x188] ss:$16 sps:$4 sm:$0xff]  }
 0xb44   : > { %13008 = vmatpush1.bf16.msra.mxu0 %v20092_v1  ;;  %13035 = vmatpush1.bf16.msra.mxu1 %v20095_v35  ;;  %v20173_v1 = vld [vmem:[#allocation21 + $0x6a0] ss:$16 sps:$4 sm:$0xff]   ;;  %v20178_v35 = vld [vmem:[#allocation21 + $0x1ac] ss:$16 sps:$4 sm:$0xff]  }
 0xb45   : > { %13059 = vmatprep.subr.bf16.mxu1 %v20100_v36  ;;  %13100 = vmatprep.subr.bf16.mxu0 %v20103_v28  ;;  %v20179_v36 = vld [vmem:[#allocation21 + $0x6c0] ss:$16 sps:$4 sm:$0xff]   ;;  %v20184_v28 = vld [vmem:[#allocation21 + $0x1cc] ss:$16 sps:$4 sm:$0xff]  }
 0xb47   : > { %13010 = vmatmul.mubr.bf16.vlgmr.msra.gmra.mrb[144].mxu0 %v23048_v8  ;;  %13051 = vmatmul.mubr.bf16.vlgmr.msra.gmra.mrb[128].mxu1 %v23050_v57 }
 0xb48   : > { %13060 = vmatpush1.bf16.msra.mxu1 %v20098_v9  ;;  %13091 = vmatprep.mubr.bf16.mxu1 %v23034_v22  ;;  %v20116_v22 = vld [vmem:[#allocation21 + $0x68] ss:$16 sps:$4 sm:$0xff]   ;;  %v20187_v9 = vld [vmem:[#allocation21 + $0x6e4] ss:$16 sps:$4 sm:$0xff]  }
 0xb49   : > { %13101 = vmatpush1.bf16.msra.mxu0 %v20101_v13  ;;  %17381 = vmatprep.mubr.msk.bf16.mxu0 %vm3920_vm13, %v23040_v12  ;;  %v20139_v12 = vld [vmem:[#allocation21 + $0x2cc] ss:$16 sps:$4 sm:$0xff]   ;;  %v20185_v13 = vld [vmem:[#allocation21 + $0x6e0] ss:$16 sps:$4 sm:$0xff]  }
 0xb4a   : > { %13061 = vmatprep.subr.bf16.mxu1 %v20106_v6  ;;  %13102 = vmatprep.subr.bf16.mxu0 %v20109_v37  ;;  %v20190_v6 = vld [vmem:[#allocation21 + $0x1ec] ss:$16 sps:$4 sm:$0xff]   ;;  %v20193_v37 = vld [vmem:[#allocation21 + $0x704] ss:$16 sps:$4 sm:$0xff]  }
 0xb4c   : > { %13062 = vmatpush1.bf16.msra.mxu1 %v20104_v23  ;;  %v20188_v23 = vld [vmem:[#allocation21 + $0x1e8] ss:$16 sps:$4 sm:$0xff]  }
 0xb4d   : > { %13103 = vmatpush1.bf16.msra.mxu0 %v20107_v20  ;;  %13063 = vmatprep.subr.bf16.mxu1 %v20112_v38  ;;  %v20191_v20 = vld [vmem:[#allocation21 + $0x700] ss:$16 sps:$4 sm:$0xff]   ;;  %v20199_v38 = vld [vmem:[#allocation21 + $0x844] ss:$16 sps:$4 sm:$0xff]  }
 0xb4e   : > { %13104 = vmatprep.subr.bf16.mxu0 %v20115_v21  ;;  %v20196_v21 = vld [vmem:[#allocation21 + $0x724] ss:$16 sps:$4 sm:$0xff]  }
 0xb50   : > { %13064 = vmatpush1.bf16.msra.mxu1 %v20110_v24  ;;  %v13158_v24 = vrot.slane %v23057_v51, %v22262_v49 }
 0xb51   : > { %13105 = vmatpush1.bf16.msra.mxu0 %v20113_v56  ;;  %13065 = vmatprep.subr.bf16.mxu1 %v20118_v41  ;;  %v20197_v56 = vld [vmem:[#allocation21 + $0x840] ss:$16 sps:$4 sm:$0xff]  }
 0xb52   : > { %13106 = vmatprep.subr.bf16.mxu0 %v20121_v7  ;;  %v20194_v41 = vld [vmem:[#allocation21 + $0x720] ss:$16 sps:$4 sm:$0xff]   ;;  %v20205_v7 = vld [vmem:[#allocation21 + $0x864] ss:$16 sps:$4 sm:$0xff]  }
 0xb54   : > { %13066 = vmatpush1.bf16.msra.mxu1 %v20116_v22  ;;  %v23067_v22 = vpack.c.bf16 %v13158_v24, %v13158_v24 }
 0xb55   : > { %13107 = vmatpush1.bf16.msra.mxu0 %v20119_v3  ;;  %13067 = vmatprep.subr.bf16.mxu1 %v20124_v31  ;;  %v20202_v3 = vld [vmem:[#allocation21 + $0x744] ss:$16 sps:$4 sm:$0xff]   ;;  %v20203_v31 = vld [vmem:[#allocation21 + $0x860] ss:$16 sps:$4 sm:$0xff]  }
 0xb56   : > { %13108 = vmatprep.subr.bf16.mxu0 %v20127_v14  ;;  %v20200_v14 = vld [vmem:[#allocation21 + $0x740] ss:$16 sps:$4 sm:$0xff]  }
 0xb58   : > { %13068 = vmatpush1.bf16.msra.mxu1 %v20122_v29  ;;  %v20211_v29 = vld [vmem:[#allocation21 + $0x884] ss:$16 sps:$4 sm:$0xff]  }
 0xb59   : > { %13109 = vmatpush1.bf16.msra.mxu0 %v20125_v44  ;;  %13069 = vmatprep.subr.bf16.mxu1 %v20130_v25  ;;  %v20208_v44 = vld [vmem:[#allocation21 + $0x764] ss:$16 sps:$4 sm:$0xff]   ;;  %v20209_v25 = vld [vmem:[#allocation21 + $0x880] ss:$16 sps:$4 sm:$0xff]  }
 0xb5a   : > { %13110 = vmatprep.subr.bf16.mxu0 %v20133_v5  ;;  %v20206_v5 = vld [vmem:[#allocation21 + $0x760] ss:$16 sps:$4 sm:$0xff]  }
 0xb5c   : > { %13070 = vmatpush1.bf16.msra.mxu1 %v20128_v42  ;;  %v20217_v42 = vld [vmem:[#allocation21 + $0x8a4] ss:$16 sps:$4 sm:$0xff]  }
 0xb5d   : > { %13111 = vmatpush1.bf16.msra.mxu0 %v20131_v39  ;;  %13071 = vmatprep.subr.bf16.mxu1 %v20136_v45  ;;  %v20214_v39 = vld [vmem:[#allocation21 + $0x784] ss:$16 sps:$4 sm:$0xff]   ;;  %v20212_v45 = vld [vmem:[#allocation21 + $0x780] ss:$16 sps:$4 sm:$0xff]  }
 0xb5e   : > { %13112 = vmatprep.subr.bf16.mxu0 %v20139_v12  ;;  %v20223_v12 = vld [vmem:[#allocation21 + $0x8c4] ss:$16 sps:$4 sm:$0xff]  }
 0xb60   : > { %13072 = vmatpush1.bf16.msra.mxu1 %v20134_v18  ;;  %v20220_v18 = vld [vmem:[#allocation21 + $0x7a4] ss:$16 sps:$4 sm:$0xff]  }
 0xb61   : > { %13113 = vmatpush1.bf16.msra.mxu0 %v20137_v33  ;;  %13073 = vmatprep.subr.bf16.mxu1 %v20142_v32  ;;  %v20221_v33 = vld [vmem:[#allocation21 + $0x8c0] ss:$16 sps:$4 sm:$0xff]  }
 0xb62   : > { %13114 = vmatprep.subr.bf16.mxu0 %v20145_v43  ;;  %v20218_v32 = vld [vmem:[#allocation21 + $0x7a0] ss:$16 sps:$4 sm:$0xff]   ;;  %v20229_v43 = vld [vmem:[#allocation21 + $0x8e4] ss:$16 sps:$4 sm:$0xff]  }
 0xb64   : > { %13074 = vmatpush1.bf16.msra.mxu1 %v20140_v47  ;;  %v20226_v47 = vld [vmem:[#allocation21 + $0x7c4] ss:$16 sps:$4 sm:$0xff]  }
 0xb65   : > { %13115 = vmatpush1.bf16.msra.mxu0 %v20143_v59  ;;  %13075 = vmatprep.subr.bf16.mxu1 %v20148_v26  ;;  %v20227_v59 = vld [vmem:[#allocation21 + $0x8e0] ss:$16 sps:$4 sm:$0xff]  }
 0xb66   : > { %13116 = vmatprep.subr.bf16.mxu0 %v20151_v58  ;;  %v20224_v26 = vld [vmem:[#allocation21 + $0x7c0] ss:$16 sps:$4 sm:$0xff]   ;;  %v20235_v58 = vld [vmem:[#allocation21 + $0x904] ss:$16 sps:$4 sm:$0xff]  }
 0xb68   : > { %13076 = vmatpush1.bf16.msra.mxu1 %v20146_v17  ;;  %v20232_v17 = vld [vmem:[#allocation21 + $0x7e4] ss:$16 sps:$4 sm:$0xff]  }
 0xb69   : > { %13117 = vmatpush1.bf16.msra.mxu0 %v20149_v63  ;;  %13077 = vmatprep.subr.bf16.mxu1 %v20154_v55  ;;  %v20233_v63 = vld [vmem:[#allocation21 + $0x900] ss:$16 sps:$4 sm:$0xff]  }
 0xb6a   : > { %13770 = vmatprep.subr.bf16.mxu0 %v20157_v30  ;;  %v20230_v55 = vld [vmem:[#allocation21 + $0x7e0] ss:$16 sps:$4 sm:$0xff]   ;;  %v20241_v30 = vld [vmem:[#allocation21 + $0x924] ss:$16 sps:$4 sm:$0xff]  }
 0xb6c   : > { %13133 = vmatmul.mubr.bf16.vlgmr.msra.gmra.mrb[148].mxu0 %v23050_v57  ;;  %13078 = vmatpush1.bf16.msra.mxu1 %v20152_v34  ;;  %v20182_v57 = vld [vmem:[#allocation21 + $0x1c8] ss:$16 sps:$4 sm:$0xff]   ;;  %v20239_v34 = vld [vmem:[#allocation21 + $0x920] ss:$16 sps:$4 sm:$0xff]  }
 0xb6d   : > { %13771 = vmatpush1.bf16.msra.mxu0 %v20155_v62  ;;  %13802 = vmatprep.mubr.bf16.mxu0 %v23061_v52  ;;  %v20236_v62 = vld [vmem:[#allocation21 + $0x800] ss:$16 sps:$4 sm:$0xff]  }
 0xb6e   : > { %13079 = vmatprep.subr.bf16.mxu1 %v20160_v54  ;;  %13772 = vmatprep.subr.bf16.mxu0 %v20163_v11  ;;  %v20247_v54 = vld [vmem:[#allocation21 + $0x944] ss:$16 sps:$4 sm:$0xff]  }
 0xb6f   : > { %v20244_v11 = vld [vmem:[#allocation21 + $0x824] ss:$16 sps:$4 sm:$0xff]  }
 0xb70   : > { %13080 = vmatpush1.bf16.msra.mxu1 %v20158_v4  ;;  %v20245_v4 = vld [vmem:[#allocation21 + $0x940] ss:$16 sps:$4 sm:$0xff]  }
 0xb71   : > { %13773 = vmatpush1.bf16.msra.mxu0 %v20161_v0  ;;  %13081 = vmatprep.subr.bf16.mxu1 %v20166_v27  ;;  %v20242_v0 = vld [vmem:[#allocation21 + $0x820] ss:$16 sps:$4 sm:$0xff]   ;;  %v13154_v27 = vrot.slane %v23057_v51, %v22259_v48 }
 0xb72   : > { %13774 = vmatprep.subr.bf16.mxu0 %v20169_v61  ;;  %v20250_v61 = vld [vmem:[#allocation21 + $0x64c] ss:$16 sps:$4 sm:$0xff]  }
 0xb74   : > { %13082 = vmatpush1.bf16.msra.mxu1 %v20164_v19  ;;  %v13146_v19 = vrot.slane %v23057_v51, %v22308_v50  ;;  %v20257_v51 = vld [vmem:[#allocation21 + $0x868] ss:$16 sps:$4 sm:$0xff]  }
 0xb75   : > { %13775 = vmatpush1.bf16.msra.mxu0 %v20167_v15  ;;  %13083 = vmatprep.subr.bf16.mxu1 %v20172_v2  ;;  %v20253_v15 = vld [vmem:[#allocation21 + $0x84c] ss:$16 sps:$4 sm:$0xff]   ;;  %v20248_v2 = vld [vmem:[#allocation21 + $0x648] ss:$16 sps:$4 sm:$0xff]  }
 0xb76   : > { %13776 = vmatprep.subr.bf16.mxu0 %v20175_v16  ;;  %v23076_v16 = vpack.c.bf16 %v13154_v27, %v13154_v27  ;;  %v20311_v27 = vld [vmem:[#allocation21 + $0x980] ss:$16 sps:$4 sm:$0xff]  }
 0xb78   : > { %13084 = vmatpush1.bf16.msra.mxu1 %v20170_v40  ;;  %v20251_v40 = vld [vmem:[#allocation21 + $0x848] ss:$16 sps:$4 sm:$0xff]  }
 0xb79   : > { %13777 = vmatpush1.bf16.msra.mxu0 %v20173_v1  ;;  %13085 = vmatprep.subr.bf16.mxu1 %v20178_v35  ;;  %v23078_v1 = vpack.c.bf16 %v13146_v19, %v13146_v19  ;;  %v20256_v35 = vld [vmem:[#allocation21 + $0x66c] ss:$16 sps:$4 sm:$0xff]   ;;  %v20319_v19 = vld [vmem:[#allocation21 + $0x9a4] ss:$16 sps:$4 sm:$0xff]  }
 0xb7a   : > { %13778 = vmatprep.subr.bf16.mxu0 %v20181_v46  ;;  %v20259_v46 = vld [vmem:[#allocation21 + $0x86c] ss:$16 sps:$4 sm:$0xff]  }
 0xb7c   : > { %13086 = vmatpush1.bf16.msra.mxu1 %v20176_v10  ;;  %v20254_v10 = vld [vmem:[#allocation21 + $0x668] ss:$16 sps:$4 sm:$0xff]  }
 0xb7d   : > { %13779 = vmatpush1.bf16.msra.mxu0 %v20179_v36  ;;  %13087 = vmatprep.subr.bf16.mxu1 %v20184_v28  ;;  %v20262_v36 = vld [vmem:[#allocation21 + $0x68c] ss:$16 sps:$4 sm:$0xff]  }
 0xb7e   : > { %13780 = vmatprep.subr.bf16.mxu0 %v20187_v9  ;;  %v20265_v28 = vld [vmem:[#allocation21 + $0x88c] ss:$16 sps:$4 sm:$0xff]   ;;  %v20260_v9 = vld [vmem:[#allocation21 + $0x688] ss:$16 sps:$4 sm:$0xff]  }
 0xb80   : > { %13088 = vmatpush1.bf16.msra.mxu1 %v20182_v57  ;;  %v20263_v57 = vld [vmem:[#allocation21 + $0x888] ss:$16 sps:$4 sm:$0xff]  }
 0xb81   : > { %13781 = vmatpush1.bf16.msra.mxu0 %v20185_v13  ;;  %13089 = vmatprep.subr.bf16.mxu1 %v20190_v6  ;;  %v20268_v13 = vld [vmem:[#allocation21 + $0x6ac] ss:$16 sps:$4 sm:$0xff]  }
 0xb82   : > { %13782 = vmatprep.subr.bf16.mxu0 %v20193_v37  ;;  %v20271_v6 = vld [vmem:[#allocation21 + $0x8ac] ss:$16 sps:$4 sm:$0xff]   ;;  %v20266_v37 = vld [vmem:[#allocation21 + $0x6a8] ss:$16 sps:$4 sm:$0xff]  }
 0xb84   : > { %13090 = vmatpush1.bf16.msra.mxu1 %v20188_v23  ;;  %v20274_v23 = vld [vmem:[#allocation21 + $0x6cc] ss:$16 sps:$4 sm:$0xff]  }
 0xb85   : > { %13783 = vmatpush1.bf16.msra.mxu0 %v20191_v20  ;;  %13811 = vmatprep.subr.bf16.mxu1 %v20199_v38 }
 0xb86   : > { %13784 = vmatprep.subr.bf16.mxu0 %v20196_v21  ;;  %v20277_v21 = vld [vmem:[#allocation21 + $0x8cc] ss:$16 sps:$4 sm:$0xff]  }
 0xb87   : > { %13092 = vmatmul.mubr.bf16.vlgmr.msra.gmra.mrb[132].mxu1 %v23048_v8  ;;  %v20215_v8 = vld [vmem:[#allocation21 + $0x8a0] ss:$16 sps:$4 sm:$0xff]  }
 0xb88   : > { %13812 = vmatpush1.bf16.msra.mxu1 %v20197_v56  ;;  %17482 = vmatprep.mubr.msk.bf16.mxu1 %vm3920_vm13, %v23067_v22 }
 0xb89   : > { %13785 = vmatpush1.bf16.msra.mxu0 %v20194_v41  ;;  %13813 = vmatprep.subr.bf16.mxu1 %v20205_v7 }
 0xb8a   : > { %13786 = vmatprep.subr.bf16.mxu0 %v20202_v3 }
 0xb8c   : > { %13814 = vmatpush1.bf16.msra.mxu1 %v20203_v31  ;;  %v20272_v31 = vld [vmem:[#allocation21 + $0x6c8] ss:$16 sps:$4 sm:$0xff]  }
 0xb8d   : > { %13787 = vmatpush1.bf16.msra.mxu0 %v20200_v14  ;;  %13815 = vmatprep.subr.bf16.mxu1 %v20211_v29 }
 0xb8e   : > { %13788 = vmatprep.subr.bf16.mxu0 %v20208_v44  ;;  %v20275_v44 = vld [vmem:[#allocation21 + $0x8c8] ss:$16 sps:$4 sm:$0xff]  }
 0xb90   : > { %13816 = vmatpush1.bf16.msra.mxu1 %v20209_v25  ;;  %v20280_v25 = vld [vmem:[#allocation21 + $0x6ec] ss:$16 sps:$4 sm:$0xff]  }
 0xb91   : > { %13789 = vmatpush1.bf16.msra.mxu0 %v20206_v5  ;;  %13817 = vmatprep.subr.bf16.mxu1 %v20217_v42  ;;  %v20283_v5 = vld [vmem:[#allocation21 + $0x8ec] ss:$16 sps:$4 sm:$0xff]   ;;  %v20278_v42 = vld [vmem:[#allocation21 + $0x6e8] ss:$16 sps:$4 sm:$0xff]  }
 0xb92   : > { %13790 = vmatprep.subr.bf16.mxu0 %v20214_v39  ;;  %v20281_v39 = vld [vmem:[#allocation21 + $0x8e8] ss:$16 sps:$4 sm:$0xff]  }
 0xb94   : > { %13818 = vmatpush1.bf16.msra.mxu1 %v20215_v8  ;;  %v20286_v8 = vld [vmem:[#allocation21 + $0x70c] ss:$16 sps:$4 sm:$0xff]  }
 0xb95   : > { %13791 = vmatpush1.bf16.msra.mxu0 %v20212_v45  ;;  %13819 = vmatprep.subr.bf16.mxu1 %v20223_v12  ;;  %v20289_v45 = vld [vmem:[#allocation21 + $0x90c] ss:$16 sps:$4 sm:$0xff]   ;;  %v20284_v12 = vld [vmem:[#allocation21 + $0x708] ss:$16 sps:$4 sm:$0xff]  }
 0xb96   : > { %13792 = vmatprep.subr.bf16.mxu0 %v20220_v18  ;;  %v20287_v18 = vld [vmem:[#allocation21 + $0x908] ss:$16 sps:$4 sm:$0xff]  }
 0xb98   : > { %13820 = vmatpush1.bf16.msra.mxu1 %v20221_v33  ;;  %v20292_v33 = vld [vmem:[#allocation21 + $0x72c] ss:$16 sps:$4 sm:$0xff]  }
 0xb99   : > { %13793 = vmatpush1.bf16.msra.mxu0 %v20218_v32  ;;  %13821 = vmatprep.subr.bf16.mxu1 %v20229_v43  ;;  %v20295_v32 = vld [vmem:[#allocation21 + $0x92c] ss:$16 sps:$4 sm:$0xff]   ;;  %v20290_v43 = vld [vmem:[#allocation21 + $0x728] ss:$16 sps:$4 sm:$0xff]  }
 0xb9a   : > { %13794 = vmatprep.subr.bf16.mxu0 %v20226_v47  ;;  %v20293_v47 = vld [vmem:[#allocation21 + $0x928] ss:$16 sps:$4 sm:$0xff]  }
 0xb9c   : > { %13822 = vmatpush1.bf16.msra.mxu1 %v20227_v59  ;;  %v20298_v59 = vld [vmem:[#allocation21 + $0x74c] ss:$16 sps:$4 sm:$0xff]  }
 0xb9d   : > { %13795 = vmatpush1.bf16.msra.mxu0 %v20224_v26  ;;  %13823 = vmatprep.subr.bf16.mxu1 %v20235_v58  ;;  %v20301_v26 = vld [vmem:[#allocation21 + $0x94c] ss:$16 sps:$4 sm:$0xff]   ;;  %v20296_v58 = vld [vmem:[#allocation21 + $0x748] ss:$16 sps:$4 sm:$0xff]  }
 0xb9e   : > { %13796 = vmatprep.subr.bf16.mxu0 %v20232_v17  ;;  %v23089_v17 = vld [vmem:[#allocation7 + $0x3] ss:$4 sm:$0xf] }
 0xba0   : > { %13824 = vmatpush1.bf16.msra.mxu1 %v20233_v63  ;;  %v20299_v63 = vld [vmem:[#allocation21 + $0x948] ss:$16 sps:$4 sm:$0xff]  }
 0xba1   : > { %13797 = vmatpush1.bf16.msra.mxu0 %v20230_v55  ;;  %13825 = vmatprep.subr.bf16.mxu1 %v20241_v30  ;;  %v20304_v55 = vld [vmem:[#allocation21 + $0x76c] ss:$16 sps:$4 sm:$0xff]   ;;  %v20307_v30 = vld [vmem:[#allocation21 + $0x964] ss:$16 sps:$4 sm:$0xff]  }
 0xba2   : > { %13798 = vmatprep.subr.bf16.mxu0 %v20238_v60  ;;  %v13947_v60 = vrot.slane %v23089_v17, %v22313_v53 }
 0xba4   : > { %13826 = vmatpush1.bf16.msra.mxu1 %v20239_v34  ;;  %v20302_v34 = vld [vmem:[#allocation21 + $0x768] ss:$16 sps:$4 sm:$0xff]  }
 0xba5   : > { %13799 = vmatpush1.bf16.msra.mxu0 %v20236_v62  ;;  %13827 = vmatprep.subr.bf16.mxu1 %v20247_v54  ;;  %v20305_v62 = vld [vmem:[#allocation21 + $0x960] ss:$16 sps:$4 sm:$0xff]   ;;  %v20310_v54 = vld [vmem:[#allocation21 + $0x78c] ss:$16 sps:$4 sm:$0xff]  }
 0xba6   : > { %13800 = vmatprep.subr.bf16.mxu0 %v20244_v11  ;;  %v20313_v11 = vld [vmem:[#allocation21 + $0x984] ss:$16 sps:$4 sm:$0xff]  }
 0xba8   : > { %13828 = vmatpush1.bf16.msra.mxu1 %v20245_v4  ;;  %v23093_v4 = vpack.c.bf16 %v13947_v60, %v13947_v60  ;;  %v20371_v60 = vld [vmem:[#allocation21 + $0xbe0] ss:$16 sps:$4 sm:$0xff]  }
 0xba9   : > { %13801 = vmatpush1.bf16.msra.mxu0 %v20242_v0  ;;  %13852 = vmatprep.subr.bf16.mxu1 %v20250_v61  ;;  %v20308_v0 = vld [vmem:[#allocation21 + $0x788] ss:$16 sps:$4 sm:$0xff]   ;;  %v20316_v61 = vld [vmem:[#allocation21 + $0x7ac] ss:$16 sps:$4 sm:$0xff]  }
 0xbaa   : > { %13893 = vmatprep.subr.bf16.mxu0 %v20253_v15  ;;  %v20314_v15 = vld [vmem:[#allocation21 + $0x7a8] ss:$16 sps:$4 sm:$0xff]  }
 0xbab   : > { %13844 = vmatmul.mubr.bf16.vlgmr.msra.gmra.mrb[136].mxu1 %v23076_v16 }
 0xbac   : > { %13803 = vmatmul.mubr.bf16.vlgmr.msra.gmra.mrb[152].mxu0 %v23078_v1  ;;  %13853 = vmatpush1.bf16.msra.mxu1 %v20248_v2  ;;  %v20317_v2 = vld [vmem:[#allocation21 + $0x9a0] ss:$16 sps:$4 sm:$0xff]  }
 0xbad   : > { %13884 = vmatprep.mubr.bf16.mxu1 %v23061_v52  ;;  %13894 = vmatpush1.bf16.msra.mxu0 %v20251_v40  ;;  %v20269_v52 = vld [vmem:[#allocation21 + $0x8a8] ss:$16 sps:$4 sm:$0xff]   ;;  %v20322_v40 = vld [vmem:[#allocation21 + $0x7cc] ss:$16 sps:$4 sm:$0xff]  }
 0xbae   : > { %17483 = vmatprep.mubr.msk.bf16.mxu0 %vm3920_vm13, %v23067_v22  ;;  %13854 = vmatprep.subr.bf16.mxu1 %v20256_v35  ;;  %v20325_v35 = vld [vmem:[#allocation21 + $0x9c4] ss:$16 sps:$4 sm:$0xff]  }
 0xbaf   : > { %13895 = vmatprep.subr.bf16.mxu0 %v20259_v46  ;;  %v20323_v46 = vld [vmem:[#allocation21 + $0x9c0] ss:$16 sps:$4 sm:$0xff]  }
 0xbb0   : > { %13855 = vmatpush1.bf16.msra.mxu1 %v20254_v10  ;;  %v20328_v10 = vld [vmem:[#allocation21 + $0x7ec] ss:$16 sps:$4 sm:$0xff]  }
 0xbb1   : > { %13896 = vmatpush1.bf16.msra.mxu0 %v20257_v51  ;;  %13856 = vmatprep.subr.bf16.mxu1 %v20262_v36  ;;  %v20331_v36 = vld [vmem:[#allocation21 + $0x9e4] ss:$16 sps:$4 sm:$0xff]  }
 0xbb2   : > { %13897 = vmatprep.subr.bf16.mxu0 %v20265_v28 }
 0xbb4   : > { %13857 = vmatpush1.bf16.msra.mxu1 %v20260_v9 }
 0xbb5   : > { %13898 = vmatpush1.bf16.msra.mxu0 %v20263_v57  ;;  %13858 = vmatprep.subr.bf16.mxu1 %v20268_v13  ;;  %v20326_v57 = vld [vmem:[#allocation21 + $0x7e8] ss:$16 sps:$4 sm:$0xff]  }
 0xbb6   : > { %v12344_v20 = vpop.f32.mrb[136].mxu0  ;;  %v12385_v38 = vpop.f32.mrb[120].mxu1  ;;  %13899 = vmatprep.subr.bf16.mxu0 %v20271_v6  ;;  %v20329_v6 = vld [vmem:[#allocation21 + $0x9e0] ss:$16 sps:$4 sm:$0xff]  }
 0xbb7   : > { %v23085_v24 = vadd.f32 %v12385_v38, %v12344_v20  ;;  %v12346_v56 = vpop.f32.mrb[137].mxu0  ;;  %v12387_v41 = vpop.f32.mrb[121].mxu1  ;;  %v20335_v20 = vld [vmem:[#allocation21 + $0xa00] ss:$16 sps:$4 sm:$0xff]   ;;  %v20340_v38 = vld [vmem:[#allocation21 + $0x82c] ss:$16 sps:$4 sm:$0xff]  }
 0xbb8   : > { %v23087_v7 = vadd.f32 %v12387_v41, %v12346_v56  ;;  %13859 = vmatpush1.bf16.msra.mxu1 %v20266_v37  ;;  %v12348_v22 = vpop.f32.mrb[138].mxu0  ;;  %v12389_v3 = vpop.f32.mrb[122].mxu1  ;;  %v20334_v37 = vld [vmem:[#allocation21 + $0x80c] ss:$16 sps:$4 sm:$0xff]   ;;  %v20338_v56 = vld [vmem:[#allocation21 + $0x828] ss:$16 sps:$4 sm:$0xff]  }
 0xbb9   : > { %13900 = vmatpush1.bf16.msra.mxu0 %v20269_v52  ;;  %v12349_v14 = vpop.f32.mrb[139].mxu0  ;;  %v12390_v29 = vpop.f32.mrb[123].mxu1  ;;  %13860 = vmatprep.subr.bf16.mxu1 %v20274_v23  ;;  %v20337_v52 = vld [vmem:[#allocation21 + $0xa04] ss:$16 sps:$4 sm:$0xff]   ;;  %v20332_v23 = vld [vmem:[#allocation21 + $0x808] ss:$16 sps:$4 sm:$0xff]  }
 0xbba   : > { %13901 = vmatprep.subr.bf16.mxu0 %v20277_v21  ;;  %v20343_v21 = vld [vmem:[#allocation21 + $0xa24] ss:$16 sps:$4 sm:$0xff]   ;;  %v20341_v41 = vld [vmem:[#allocation21 + $0xa20] ss:$16 sps:$4 sm:$0xff]  }
 0xbbb   : > { %v20349_v22 = vld [vmem:[#allocation21 + $0xb64] ss:$16 sps:$4 sm:$0xff]   ;;  %v20347_v14 = vld [vmem:[#allocation21 + $0xb60] ss:$16 sps:$4 sm:$0xff]  }
 0xbbc   : > { %13861 = vmatpush1.bf16.msra.mxu1 %v20272_v31  ;;  %v20346_v3 = vld [vmem:[#allocation21 + $0xa44] ss:$16 sps:$4 sm:$0xff]   ;;  %v13955_v31 = vrot.slane %v23089_v17, %v22262_v49  ;;  %v20344_v29 = vld [vmem:[#allocation21 + $0xa40] ss:$16 sps:$4 sm:$0xff]  }
 0xbbd   : > { %13902 = vmatpush1.bf16.msra.mxu0 %v20275_v44  ;;  %13862 = vmatprep.subr.bf16.mxu1 %v20280_v25  ;;  %v20355_v44 = vld [vmem:[#allocation21 + $0xb84] ss:$16 sps:$4 sm:$0xff]  }
 0xbbe   : > { %13903 = vmatprep.subr.bf16.mxu0 %v20283_v5  ;;  %v23103_v25 = vpack.c.bf16 %v13955_v31, %v13955_v31  ;;  %v20352_v5 = vld [vmem:[#allocation21 + $0xa64] ss:$16 sps:$4 sm:$0xff]   ;;  %v20413_v31 = vld [vmem:[#allocation21 + $0xba8] ss:$16 sps:$4 sm:$0xff]  }
 0xbc0   : > { %13863 = vmatpush1.bf16.msra.mxu1 %v20278_v42  ;;  %v20353_v42 = vld [vmem:[#allocation21 + $0xb80] ss:$16 sps:$4 sm:$0xff]  }
 0xbc1   : > { %13904 = vmatpush1.bf16.msra.mxu0 %v20281_v39  ;;  %13864 = vmatprep.subr.bf16.mxu1 %v20286_v8  ;;  %v20350_v39 = vld [vmem:[#allocation21 + $0xa60] ss:$16 sps:$4 sm:$0xff]   ;;  %v20361_v8 = vld [vmem:[#allocation21 + $0xba4] ss:$16 sps:$4 sm:$0xff]  }
 0xbc2   : > { %13905 = vmatprep.subr.bf16.mxu0 %v20289_v45  ;;  %v20358_v45 = vld [vmem:[#allocation21 + $0xa84] ss:$16 sps:$4 sm:$0xff]  }
 0xbc4   : > { %13865 = vmatpush1.bf16.msra.mxu1 %v20284_v12  ;;  %v20359_v12 = vld [vmem:[#allocation21 + $0xba0] ss:$16 sps:$4 sm:$0xff]  }
 0xbc5   : > { %13906 = vmatpush1.bf16.msra.mxu0 %v20287_v18  ;;  %13866 = vmatprep.subr.bf16.mxu1 %v20292_v33  ;;  %v20356_v18 = vld [vmem:[#allocation21 + $0xa80] ss:$16 sps:$4 sm:$0xff]   ;;  %v20367_v33 = vld [vmem:[#allocation21 + $0xbc4] ss:$16 sps:$4 sm:$0xff]  }
 0xbc6   : > { %13907 = vmatprep.subr.bf16.mxu0 %v20295_v32  ;;  %v20364_v32 = vld [vmem:[#allocation21 + $0xaa4] ss:$16 sps:$4 sm:$0xff]  }
 0xbc8   : > { %13867 = vmatpush1.bf16.msra.mxu1 %v20290_v43  ;;  %v20362_v43 = vld [vmem:[#allocation21 + $0xaa0] ss:$16 sps:$4 sm:$0xff]  }
 0xbc9   : > { %13908 = vmatpush1.bf16.msra.mxu0 %v20293_v47  ;;  %13868 = vmatprep.subr.bf16.mxu1 %v20298_v59  ;;  %v20373_v47 = vld [vmem:[#allocation21 + $0xbe4] ss:$16 sps:$4 sm:$0xff]  }
 0xbca   : > { %13909 = vmatprep.subr.bf16.mxu0 %v20301_v26  ;;  %v20370_v26 = vld [vmem:[#allocation21 + $0xac4] ss:$16 sps:$4 sm:$0xff]  }
 0xbcc   : > { %13869 = vmatpush1.bf16.msra.mxu1 %v20296_v58 }
 0xbcd   : > { %13910 = vmatpush1.bf16.msra.mxu0 %v20299_v63  ;;  %13870 = vmatprep.subr.bf16.mxu1 %v20304_v55 }
 0xbce   : > { %14567 = vmatprep.subr.bf16.mxu0 %v20307_v30 }
 0xbd0   : > { %13926 = vmatmul.mubr.bf16.vlgmr.msra.gmra.mrb[156].mxu0 %v23076_v16  ;;  %13871 = vmatpush1.bf16.msra.mxu1 %v20302_v34  ;;  %v20320_v16 = vld [vmem:[#allocation21 + $0x7c8] ss:$16 sps:$4 sm:$0xff]  }
 0xbd1   : > { %14568 = vmatpush1.bf16.msra.mxu0 %v20305_v62  ;;  %14599 = vmatprep.mubr.bf16.mxu0 %v23093_v4  ;;  %v20368_v62 = vld [vmem:[#allocation21 + $0xac0] ss:$16 sps:$4 sm:$0xff]  }
 0xbd2   : > { %13872 = vmatprep.subr.bf16.mxu1 %v20310_v54  ;;  %14569 = vmatprep.subr.bf16.mxu0 %v20313_v11  ;;  %v20379_v54 = vld [vmem:[#allocation21 + $0xc04] ss:$16 sps:$4 sm:$0xff]  }
 0xbd3   : > { %v20376_v11 = vld [vmem:[#allocation21 + $0xae4] ss:$16 sps:$4 sm:$0xff]  }
 0xbd4   : > { %13873 = vmatpush1.bf16.msra.mxu1 %v20308_v0  ;;  %v20377_v0 = vld [vmem:[#allocation21 + $0xc00] ss:$16 sps:$4 sm:$0xff]  }
 0xbd5   : > { %14570 = vmatpush1.bf16.msra.mxu0 %v20311_v27  ;;  %13874 = vmatprep.subr.bf16.mxu1 %v20316_v61  ;;  %v20374_v27 = vld [vmem:[#allocation21 + $0xae0] ss:$16 sps:$4 sm:$0xff]   ;;  %v20385_v61 = vld [vmem:[#allocation21 + $0xc24] ss:$16 sps:$4 sm:$0xff]  }
 0xbd6   : > { %14571 = vmatprep.subr.bf16.mxu0 %v20319_v19  ;;  %v20382_v19 = vld [vmem:[#allocation21 + $0xb04] ss:$16 sps:$4 sm:$0xff]  }
 0xbd8   : > { %13875 = vmatpush1.bf16.msra.mxu1 %v20314_v15  ;;  %v20383_v15 = vld [vmem:[#allocation21 + $0xc20] ss:$16 sps:$4 sm:$0xff]  }
 0xbd9   : > { %14572 = vmatpush1.bf16.msra.mxu0 %v20317_v2  ;;  %13876 = vmatprep.subr.bf16.mxu1 %v20322_v40  ;;  %v20380_v2 = vld [vmem:[#allocation21 + $0xb00] ss:$16 sps:$4 sm:$0xff]   ;;  %v20391_v40 = vld [vmem:[#allocation21 + $0xc44] ss:$16 sps:$4 sm:$0xff]  }
 0xbda   : > { %v23097_v51 = vpop.f32.mrb[140].mxu0  ;;  %14573 = vmatprep.subr.bf16.mxu0 %v20325_v35  ;;  %v20388_v35 = vld [vmem:[#allocation21 + $0xb24] ss:$16 sps:$4 sm:$0xff]  }
 0xbdb   : > { %v23099_v28 = vpop.f32.mrb[141].mxu0 }
 0xbdc   : > { %v12471_v9 = vpop.f32.mrb[142].mxu0  ;;  %13877 = vmatpush1.bf16.msra.mxu1 %v20320_v16  ;;  %v20389_v16 = vld [vmem:[#allocation21 + $0xc40] ss:$16 sps:$4 sm:$0xff]  }
 0xbdd   : > { %14574 = vmatpush1.bf16.msra.mxu0 %v20323_v46  ;;  %v12472_v13 = vpop.f32.mrb[143].mxu0  ;;  %13878 = vmatprep.subr.bf16.mxu1 %v20328_v10  ;;  %v20386_v46 = vld [vmem:[#allocation21 + $0xb20] ss:$16 sps:$4 sm:$0xff]   ;;  %v20397_v10 = vld [vmem:[#allocation21 + $0xc64] ss:$16 sps:$4 sm:$0xff]   ;;  %v13951_v9 = vrot.slane %v23089_v17, %v22259_v48 }
 0xbde   : > { %14575 = vmatprep.subr.bf16.mxu0 %v20331_v36  ;;  %v20395_v36 = vld [vmem:[#allocation21 + $0xc60] ss:$16 sps:$4 sm:$0xff]   ;;  %v13943_v13 = vrot.slane %v23089_v17, %v22308_v50  ;;  %v20407_v17 = vld [vmem:[#allocation21 + $0xb88] ss:$16 sps:$4 sm:$0xff]  }
 0xbe0   : > { %13879 = vmatpush1.bf16.msra.mxu1 %v20326_v57  ;;  %v20400_v57 = vld [vmem:[#allocation21 + $0x96c] ss:$16 sps:$4 sm:$0xff]  }
 0xbe1   : > { %14576 = vmatpush1.bf16.msra.mxu0 %v20329_v6  ;;  %13880 = vmatprep.subr.bf16.mxu1 %v20334_v37  ;;  %v20403_v6 = vld [vmem:[#allocation21 + $0xb6c] ss:$16 sps:$4 sm:$0xff]   ;;  %v20398_v37 = vld [vmem:[#allocation21 + $0x968] ss:$16 sps:$4 sm:$0xff]  }
 0xbe2   : > { %14577 = vmatprep.subr.bf16.mxu0 %v20337_v52  ;;  %v23118_v52 = vpack.c.bf16 %v13951_v9, %v13951_v9  ;;  %v20463_v9 = vld [vmem:[#allocation21 + $0xaec] ss:$16 sps:$4 sm:$0xff]  }
 0xbe4   : > { %13881 = vmatpush1.bf16.msra.mxu1 %v20332_v23  ;;  %v20401_v23 = vld [vmem:[#allocation21 + $0xb68] ss:$16 sps:$4 sm:$0xff]  }
 0xbe5   : > { %14578 = vmatpush1.bf16.msra.mxu0 %v20335_v20  ;;  %13882 = vmatprep.subr.bf16.mxu1 %v20340_v38  ;;  %v23120_v20 = vpack.c.bf16 %v13943_v13, %v13943_v13  ;;  %v20406_v38 = vld [vmem:[#allocation21 + $0x98c] ss:$16 sps:$4 sm:$0xff]  }
 0xbe6   : > { %14579 = vmatprep.subr.bf16.mxu0 %v20343_v21  ;;  %v20409_v21 = vld [vmem:[#allocation21 + $0xb8c] ss:$16 sps:$4 sm:$0xff]  }
 0xbe7   : > { %v20466_v13 = vld [vmem:[#allocation21 + $0xb0c] ss:$16 sps:$4 sm:$0xff]  }
 0xbe8   : > { %13883 = vmatpush1.bf16.msra.mxu1 %v20338_v56  ;;  %v20404_v56 = vld [vmem:[#allocation21 + $0x988] ss:$16 sps:$4 sm:$0xff]  }
 0xbe9   : > { %14580 = vmatpush1.bf16.msra.mxu0 %v20341_v41  ;;  %14608 = vmatprep.subr.bf16.mxu1 %v20349_v22  ;;  %v20412_v41 = vld [vmem:[#allocation21 + $0x9ac] ss:$16 sps:$4 sm:$0xff]  }
 0xbea   : > { %14581 = vmatprep.subr.bf16.mxu0 %v20346_v3  ;;  %v20415_v22 = vld [vmem:[#allocation21 + $0xbac] ss:$16 sps:$4 sm:$0xff]   ;;  %v20410_v3 = vld [vmem:[#allocation21 + $0x9a8] ss:$16 sps:$4 sm:$0xff]  }
 0xbeb   : > { %13885 = vmatmul.mubr.bf16.vlgmr.msra.gmra.mrb[140].mxu1 %v23078_v1  ;;  %v20365_v1 = vld [vmem:[#allocation21 + $0xbc0] ss:$16 sps:$4 sm:$0xff]  }
 0xbec   : > { %14609 = vmatpush1.bf16.msra.mxu1 %v20347_v14  ;;  %17584 = vmatprep.mubr.msk.bf16.mxu1 %vm3920_vm13, %v23103_v25  ;;  %v20418_v14 = vld [vmem:[#allocation21 + $0x9cc] ss:$16 sps:$4 sm:$0xff]  }
 0xbed   : > { %14582 = vmatpush1.bf16.msra.mxu0 %v20344_v29  ;;  %14610 = vmatprep.subr.bf16.mxu1 %v20355_v44  ;;  %v20421_v29 = vld [vmem:[#allocation21 + $0xbcc] ss:$16 sps:$4 sm:$0xff]   ;;  %v20416_v44 = vld [vmem:[#allocation21 + $0x9c8] ss:$16 sps:$4 sm:$0xff]  }
 0xbee   : > { %14583 = vmatprep.subr.bf16.mxu0 %v20352_v5  ;;  %v20424_v5 = vld [vmem:[#allocation21 + $0x9ec] ss:$16 sps:$4 sm:$0xff]  }
 0xbf0   : > { %14611 = vmatpush1.bf16.msra.mxu1 %v20353_v42 }
 0xbf1   : > { %14584 = vmatpush1.bf16.msra.mxu0 %v20350_v39  ;;  %14612 = vmatprep.subr.bf16.mxu1 %v20361_v8 }
 0xbf2   : > { %14585 = vmatprep.subr.bf16.mxu0 %v20358_v45 }
 0xbf4   : > { %14613 = vmatpush1.bf16.msra.mxu1 %v20359_v12 }
 0xbf5   : > { %14586 = vmatpush1.bf16.msra.mxu0 %v20356_v18  ;;  %14614 = vmatprep.subr.bf16.mxu1 %v20367_v33 }
 0xbf6   : > { %v12426_v59 = vpop.f32.mrb[124].mxu1  ;;  %14587 = vmatprep.subr.bf16.mxu0 %v20364_v32 }
 0xbf7   : > { %v23109_v58 = vadd.f32 %v23097_v51, %v12426_v59  ;;  %v12428_v63 = vpop.f32.mrb[125].mxu1  ;;  %v20394_v51 = vld [vmem:[#allocation21 + $0xb44] ss:$16 sps:$4 sm:$0xff]  }
 0xbf8   : > { %v23112_v55 = vadd.f32 %v23099_v28, %v12428_v63  ;;  %v12430_v30 = vpop.f32.mrb[126].mxu1  ;;  %14615 = vmatpush1.bf16.msra.mxu1 %v20365_v1  ;;  %v20392_v28 = vld [vmem:[#allocation21 + $0xb40] ss:$16 sps:$4 sm:$0xff]   ;;  %v20422_v1 = vld [vmem:[#allocation21 + $0x9e8] ss:$16 sps:$4 sm:$0xff]  }
 0xbf9   : > { %14588 = vmatpush1.bf16.msra.mxu0 %v20362_v43  ;;  %v12431_v34 = vpop.f32.mrb[127].mxu1  ;;  %14616 = vmatprep.subr.bf16.mxu1 %v20373_v47  ;;  %v20430_v63 = vld [vmem:[#allocation21 + $0xa0c] ss:$16 sps:$4 sm:$0xff]  }
 0xbfa   : > { %14589 = vmatprep.subr.bf16.mxu0 %v20370_v26  ;;  %v20425_v26 = vld [vmem:[#allocation21 + $0xbe8] ss:$16 sps:$4 sm:$0xff]   ;;  %v20436_v34 = vld [vmem:[#allocation21 + $0xa2c] ss:$16 sps:$4 sm:$0xff]  }
 0xbfc   : > { %14617 = vmatpush1.bf16.msra.mxu1 %v20371_v60  ;;  %v20428_v60 = vld [vmem:[#allocation21 + $0xa08] ss:$16 sps:$4 sm:$0xff]  }
 0xbfd   : > { %14590 = vmatpush1.bf16.msra.mxu0 %v20368_v62  ;;  %14618 = vmatprep.subr.bf16.mxu1 %v20379_v54  ;;  %v20439_v62 = vld [vmem:[#allocation21 + $0xc2c] ss:$16 sps:$4 sm:$0xff]   ;;  %v20434_v54 = vld [vmem:[#allocation21 + $0xa28] ss:$16 sps:$4 sm:$0xff]  }
 0xbfe   : > { %14591 = vmatprep.subr.bf16.mxu0 %v20376_v11  ;;  %v20437_v11 = vld [vmem:[#allocation21 + $0xc28] ss:$16 sps:$4 sm:$0xff]  }
 0xc00   : > { %14619 = vmatpush1.bf16.msra.mxu1 %v20377_v0  ;;  %v20442_v0 = vld [vmem:[#allocation21 + $0xa4c] ss:$16 sps:$4 sm:$0xff]  }
 0xc01   : > { %14592 = vmatpush1.bf16.msra.mxu0 %v20374_v27  ;;  %14620 = vmatprep.subr.bf16.mxu1 %v20385_v61  ;;  %v20445_v27 = vld [vmem:[#allocation21 + $0xc4c] ss:$16 sps:$4 sm:$0xff]   ;;  %v20440_v61 = vld [vmem:[#allocation21 + $0xa48] ss:$16 sps:$4 sm:$0xff]  }
 0xc02   : > { %14593 = vmatprep.subr.bf16.mxu0 %v20382_v19  ;;  %v20443_v19 = vld [vmem:[#allocation21 + $0xc48] ss:$16 sps:$4 sm:$0xff]  }
 0xc04   : > { %14621 = vmatpush1.bf16.msra.mxu1 %v20383_v15  ;;  %v20448_v15 = vld [vmem:[#allocation21 + $0xa6c] ss:$16 sps:$4 sm:$0xff]  }
 0xc05   : > { %14594 = vmatpush1.bf16.msra.mxu0 %v20380_v2  ;;  %14622 = vmatprep.subr.bf16.mxu1 %v20391_v40  ;;  %v20451_v2 = vld [vmem:[#allocation21 + $0xc6c] ss:$16 sps:$4 sm:$0xff]   ;;  %v20446_v40 = vld [vmem:[#allocation21 + $0xa68] ss:$16 sps:$4 sm:$0xff]  }
 0xc06   : > { %14595 = vmatprep.subr.bf16.mxu0 %v20388_v35  ;;  %v20449_v35 = vld [vmem:[#allocation21 + $0xc68] ss:$16 sps:$4 sm:$0xff]  }
 0xc08   : > { %14623 = vmatpush1.bf16.msra.mxu1 %v20389_v16  ;;  %v20454_v16 = vld [vmem:[#allocation21 + $0xa8c] ss:$16 sps:$4 sm:$0xff]  }
 0xc09   : > { %14596 = vmatpush1.bf16.msra.mxu0 %v20386_v46  ;;  %14624 = vmatprep.subr.bf16.mxu1 %v20397_v10  ;;  %v20452_v46 = vld [vmem:[#allocation21 + $0xa88] ss:$16 sps:$4 sm:$0xff]   ;;  %v20457_v10 = vld [vmem:[#allocation21 + $0xaac] ss:$16 sps:$4 sm:$0xff]  }
 0xc0a   : > { %14597 = vmatprep.subr.bf16.mxu0 %v20394_v51  ;;  %v20455_v51 = vld [vmem:[#allocation21 + $0xaa8] ss:$16 sps:$4 sm:$0xff]  }
 0xc0c   : > { %14625 = vmatpush1.bf16.msra.mxu1 %v20395_v36  ;;  %v20460_v36 = vld [vmem:[#allocation21 + $0xacc] ss:$16 sps:$4 sm:$0xff]  }
 0xc0d   : > { %14598 = vmatpush1.bf16.msra.mxu0 %v20392_v28  ;;  %14649 = vmatprep.subr.bf16.mxu1 %v20400_v57  ;;  %v20458_v28 = vld [vmem:[#allocation21 + $0xac8] ss:$16 sps:$4 sm:$0xff]  }
 0xc0e   : > { %14690 = vmatprep.subr.bf16.mxu0 %v20403_v6  ;;  %v20461_v57 = vld [vmem:[#allocation21 + $0xae8] ss:$16 sps:$4 sm:$0xff]  }
 0xc0f   : > { %14641 = vmatmul.mubr.bf16.vlgmr.msra.gmra.mrb[144].mxu1 %v23118_v52 }
 0xc10   : > { %14600 = vmatmul.mubr.bf16.vlgmr.msra.gmra.mrb[160].mxu0 %v23120_v20  ;;  %14650 = vmatpush1.bf16.msra.mxu1 %v20398_v37 }
 0xc11   : > { %14681 = vmatprep.mubr.bf16.mxu1 %v23093_v4  ;;  %14691 = vmatpush1.bf16.msra.mxu0 %v20401_v23  ;;  %v20419_v4 = vld [vmem:[#allocation21 + $0xbc8] ss:$16 sps:$4 sm:$0xff]  }
 0xc12   : > { %17585 = vmatprep.mubr.msk.bf16.mxu0 %vm3920_vm13, %v23103_v25  ;;  %14651 = vmatprep.subr.bf16.mxu1 %v20406_v38  ;;  %v20427_v25 = vld [vmem:[#allocation21 + $0xbec] ss:$16 sps:$4 sm:$0xff]   ;;  %v20464_v23 = vld [vmem:[#allocation21 + $0xb08] ss:$16 sps:$4 sm:$0xff]   ;;  %vm15299_vm13 = vcmask 1040384  }
 0xc13   : > { %14692 = vmatprep.subr.bf16.mxu0 %v20409_v21  ;;  %v20469_v21 = vld [vmem:[#allocation21 + $0xb2c] ss:$16 sps:$4 sm:$0xff]   ;;  %vm18067_vm12 = vmpackc.low %vm15299_vm13, %vm21306_vm4 }
 0xc14   : > { %14652 = vmatpush1.bf16.msra.mxu1 %v20404_v56  ;;  %v20473_v56 = vld [vmem:[#allocation24 + $0x40] sm:$0xff]  }
 0xc15   : > { %14693 = vmatpush1.bf16.msra.mxu0 %v20407_v17  ;;  %14653 = vmatprep.subr.bf16.mxu1 %v20412_v41  ;;  %v20474_v17 = vld [vmem:[#allocation24] sm:$0xff]   ;;  %v20475_v41 = vld [vmem:[#allocation24 + $0x48] sm:$0xff]  }
 0xc16   : > { %14694 = vmatprep.subr.bf16.mxu0 %v20415_v22  ;;  %v20467_v22 = vld [vmem:[#allocation21 + $0xb28] ss:$16 sps:$4 sm:$0xff]  }
 0xc18   : > { %14654 = vmatpush1.bf16.msra.mxu1 %v20410_v3  ;;  %v20472_v3 = vld [vmem:[#allocation21 + $0xb4c] ss:$16 sps:$4 sm:$0xff]  }
 0xc19   : > { %14695 = vmatpush1.bf16.msra.mxu0 %v20413_v31  ;;  %14655 = vmatprep.subr.bf16.mxu1 %v20418_v14  ;;  %v20476_v31 = vld [vmem:[#allocation24 + $0x8] sm:$0xff]   ;;  %v20477_v14 = vld [vmem:[#allocation24 + $0x50] sm:$0xff]  }
 0xc1a   : > { %v13011_v42 = vpop.f32.mrb[144].mxu0  ;;  %v13052_v39 = vpop.f32.mrb[128].mxu1  ;;  %14696 = vmatprep.subr.bf16.mxu0 %v20421_v29  ;;  %v20470_v29 = vld [vmem:[#allocation21 + $0xb48] ss:$16 sps:$4 sm:$0xff]  }
 0xc1b   : > { %v13012_v8 = vadd.f32 %v13011_v42, %v23085_v24  ;;  %v13013_v45 = vpop.f32.mrb[145].mxu0  ;;  %v13054_v12 = vpop.f32.mrb[129].mxu1  ;;  %v20433_v24 = vld [vmem:[#allocation21 + $0xc0c] ss:$16 sps:$4 sm:$0xff]   ;;  %v20481_v42 = vld [vmem:[#allocation24 + $0x60] sm:$0xff]  }
 0xc1c   : > { %v13014_v18 = vadd.f32 %v13013_v45, %v23087_v7  ;;  %v13015_v33 = vpop.f32.mrb[146].mxu0  ;;  %v13056_v32 = vpop.f32.mrb[130].mxu1  ;;  %14656 = vmatpush1.bf16.msra.mxu1 %v20416_v44  ;;  %v20431_v7 = vld [vmem:[#allocation21 + $0xc08] ss:$16 sps:$4 sm:$0xff]  }
 0xc1d   : > { %v23129_v43 = vadd.f32 %v13052_v39, %v13012_v8  ;;  %14697 = vmatpush1.bf16.msra.mxu0 %v20419_v4  ;;  %v13016_v47 = vpop.f32.mrb[147].mxu0  ;;  %v13057_v59 = vpop.f32.mrb[131].mxu1  ;;  %14657 = vmatprep.subr.bf16.mxu1 %v20424_v5  ;;  %v20478_v44 = vld [vmem:[#allocation24 + $0x10] sm:$0xff]   ;;  %v20479_v4 = vld [vmem:[#allocation24 + $0x58] sm:$0xff]   ;;  %v20482_v39 = vld [vmem:[#allocation24 + $0x20] sm:$0xff]  }
 0xc1e   : > { %v23131_v30 = vadd.f32 %v13054_v12, %v13014_v18  ;;  %14698 = vmatprep.subr.bf16.mxu0 %v20427_v25  ;;  %v20480_v5 = vld [vmem:[#allocation24 + $0x18] sm:$0xff]   ;;  %v20483_v47 = vld [vmem:[#allocation24 + $0x68] sm:$0xff]  }
 0xc1f   : > { %v20484_v59 = vld [vmem:[#allocation24 + $0x28] sm:$0xff]  }
 0xc20   : > { %14658 = vmatpush1.bf16.msra.mxu1 %v20422_v1 }
 0xc21   : > { %14699 = vmatpush1.bf16.msra.mxu0 %v20425_v26  ;;  %14659 = vmatprep.subr.bf16.mxu1 %v20430_v63  ;;  %v20485_v26 = vld [vmem:[#allocation24 + $0x70] sm:$0xff]   ;;  %v20487_v63 = vld [vmem:[#allocation24 + $0x78] sm:$0xff]  }
 0xc22   : > { %14700 = vmatprep.subr.bf16.mxu0 %v20433_v24  ;;  %v20488_v24 = vld [vmem:[#allocation24 + $0x38] sm:$0xff]  }
 0xc24   : > { %14660 = vmatpush1.bf16.msra.mxu1 %v20428_v60 }
 0xc25   : > { %14701 = vmatpush1.bf16.msra.mxu0 %v20431_v7  ;;  %14661 = vmatprep.subr.bf16.mxu1 %v20436_v34 }
 0xc26   : > { %14702 = vmatprep.subr.bf16.mxu0 %v20439_v62 }
 0xc28   : > { %14662 = vmatpush1.bf16.msra.mxu1 %v20434_v54 }
 0xc29   : > { %14703 = vmatpush1.bf16.msra.mxu0 %v20437_v11  ;;  %14663 = vmatprep.subr.bf16.mxu1 %v20442_v0 }
 0xc2a   : > { %14704 = vmatprep.subr.bf16.mxu0 %v20445_v27 }
 0xc2c   : > { %14664 = vmatpush1.bf16.msra.mxu1 %v20440_v61 }
 0xc2d   : > { %14705 = vmatpush1.bf16.msra.mxu0 %v20443_v19  ;;  %14665 = vmatprep.subr.bf16.mxu1 %v20448_v15  ;;  %v20489_v15 = vld [vmem:[#allocation27 + $0x40] sm:$0xff]  }
 0xc2e   : > { %14706 = vmatprep.subr.bf16.mxu0 %v20451_v2  ;;  %v20490_v2 = vld [vmem:[#allocation24 + $0xc0] sm:$0xff]  }
 0xc30   : > { %14666 = vmatpush1.bf16.msra.mxu1 %v20446_v40  ;;  %v20492_v40 = vld [vmem:[#allocation24 + $0x80] sm:$0xff]  }
 0xc31   : > { %14707 = vmatpush1.bf16.msra.mxu0 %v20449_v35  ;;  %14667 = vmatprep.subr.bf16.mxu1 %v20454_v16  ;;  %v20494_v35 = vld [vmem:[#allocation24 + $0xc8] sm:$0xff]  }
 0xc32   : > { %17776 = vmatprep.subr.bf16.mxu0 %v20473_v56  ;;  %v20496_v16 = vld [vmem:[#allocation24 + $0x88] sm:$0xff]   ;;  %v21303_v56 = vmov 0.0|0.0  }
 0xc34   : > { %14723 = vmatmul.mubr.bf16.vlgmr.msra.gmra.mrb[164].mxu0 %v23118_v52  ;;  %14668 = vmatpush1.bf16.msra.mxu1 %v20452_v46  ;;  %v20498_v46 = vld [vmem:[#allocation24 + $0xd0] sm:$0xff]  }
 0xc35   : > { %14669 = vmatprep.subr.bf16.mxu1 %v20457_v10  ;;  %17777 = vmatpush3.bf16.msra.mxu0 %v20474_v17  ;;  %v20500_v10 = vld [vmem:[#allocation24 + $0x90] sm:$0xff]  }
 0xc36   : > { %17778 = vmatprep.subr.bf16.mxu0 %v20475_v41 }
 0xc38   : > { %14670 = vmatpush1.bf16.msra.mxu1 %v20455_v51  ;;  %v20502_v51 = vld [vmem:[#allocation24 + $0xd8] sm:$0xff]  }
 0xc39   : > { %14671 = vmatprep.subr.bf16.mxu1 %v20460_v36  ;;  %17779 = vmatpush3.bf16.msra.mxu0 %v20476_v31  ;;  %v20506_v36 = vld [vmem:[#allocation24 + $0xe0] sm:$0xff]  }
 0xc3a   : > { %17780 = vmatprep.subr.bf16.mxu0 %v20477_v14 }
 0xc3c   : > { %14672 = vmatpush1.bf16.msra.mxu1 %v20458_v28 }
 0xc3d   : > { %14673 = vmatprep.subr.bf16.mxu1 %v20463_v9  ;;  %17781 = vmatpush3.bf16.msra.mxu0 %v20478_v44 }
 0xc3e   : > { %17782 = vmatprep.subr.bf16.mxu0 %v20479_v4  ;;  %v23155_v4 = vld [vmem:[#allocation22] sm:$0xf] }
 0xc3f   : > { %v13134_v6 = vpop.f32.mrb[148].mxu0 }
 0xc40   : > { %v13136_v37 = vpop.f32.mrb[149].mxu0  ;;  %14674 = vmatpush1.bf16.msra.mxu1 %v20461_v57 }
 0xc41   : > { %v13138_v38 = vpop.f32.mrb[150].mxu0  ;;  %14675 = vmatprep.subr.bf16.mxu1 %v20466_v13  ;;  %17783 = vmatpush3.bf16.msra.mxu0 %v20480_v5 }
 0xc42   : > { %v13139_v52 = vpop.f32.mrb[151].mxu0  ;;  %17784 = vmatprep.subr.bf16.mxu0 %v20481_v42  ;;  %v20516_v38 = vld [vmem:[#allocation24 + $0xb0] sm:$0xff]  }
 0xc43   : > { %v20520_v52 = vld [vmem:[#allocation24 + $0xb8] sm:$0xff]  }
 0xc44   : > { %14676 = vmatpush1.bf16.msra.mxu1 %v20464_v23  ;;  %v20514_v23 = vld [vmem:[#allocation24 + $0xf0] sm:$0xff]  }
 0xc45   : > { %14677 = vmatprep.subr.bf16.mxu1 %v20469_v21  ;;  %17785 = vmatpush3.bf16.msra.mxu0 %v20482_v39  ;;  %v20518_v21 = vld [vmem:[#allocation24 + $0xf8] sm:$0xff]  }
 0xc46   : > { %17786 = vmatprep.subr.bf16.mxu0 %v20483_v47 }
 0xc48   : > { %14678 = vmatpush1.bf16.msra.mxu1 %v20467_v22 }
 0xc49   : > { %14679 = vmatprep.subr.bf16.mxu1 %v20472_v3  ;;  %17787 = vmatpush3.bf16.msra.mxu0 %v20484_v59 }
 0xc4a   : > { %17788 = vmatprep.subr.bf16.mxu0 %v20485_v26  ;;  %v15107_v26 = vld [vmem:[%s1188_s20] sm:$0x3] }
 0xc4c   : > { %14680 = vmatpush1.bf16.msra.mxu1 %v20470_v29 }
 0xc4d   : > { %17798 = vmatprep.subr.bf16.mxu1 %v20490_v2  ;;  %v20507_v2 = vld [vmem:[#allocation27 + $0x20] sm:$0xff]  }
 0xc4f   : > { %14682 = vmatmul.mubr.bf16.vlgmr.msra.gmra.mrb[148].mxu1 %v23120_v20  ;;  %v20486_v20 = vld [vmem:[#allocation24 + $0x30] sm:$0xff]  }
 0xc50   : > { %17789 = vmatpush3.bf16.msra.mxu0 %v20486_v20  ;;  %17799 = vmatpush3.bf16.msra.mxu1 %v20492_v40  ;;  %v20509_v40 = vld [vmem:[#allocation27 + $0x68] sm:$0xff]  }
 0xc51   : > { %17790 = vmatprep.subr.bf16.mxu0 %v20487_v63  ;;  %17800 = vmatprep.subr.bf16.mxu1 %v20494_v35  ;;  %v20511_v35 = vld [vmem:[#allocation27 + $0x28] sm:$0xff]  }
 0xc54   : > { %17791 = vmatpush3.bf16.msra.mxu0 %v20488_v24  ;;  %17801 = vmatpush3.bf16.msra.mxu1 %v20496_v16  ;;  %v20513_v16 = vld [vmem:[#allocation27 + $0x70] sm:$0xff]  }
 0xc55   : > { %17820 = vmatprep.subr.bf16.mxu0 %v20489_v15  ;;  %17802 = vmatprep.subr.bf16.mxu1 %v20498_v46  ;;  %v20505_v15 = vld [vmem:[#allocation27 + $0x60] sm:$0xff]   ;;  %v20515_v46 = vld [vmem:[#allocation27 + $0x30] sm:$0xff]  }
 0xc58   : > { %17803 = vmatpush3.bf16.msra.mxu1 %v20500_v10  ;;  %v20517_v10 = vld [vmem:[#allocation27 + $0x78] sm:$0xff]  }
 0xc59   : > { %17804 = vmatprep.subr.bf16.mxu1 %v20502_v51 }
 0xc5a   : > { %v13093_v25 = vpop.f32.mrb[132].mxu1 }
 0xc5b   : > { %v13094_v8 = vadd.f32 %v13093_v25, %v23109_v58  ;;  %v13095_v45 = vpop.f32.mrb[133].mxu1 }
 0xc5c   : > { %v13096_v12 = vadd.f32 %v13095_v45, %v23112_v55  ;;  %v13097_v18 = vpop.f32.mrb[134].mxu1 }
 0xc5d   : > { %v23137_v33 = vadd.f32 %v13134_v6, %v13094_v8  ;;  %v13098_v32 = vpop.f32.mrb[135].mxu1  ;;  %v20510_v6 = vld [vmem:[#allocation24 + $0xe8] sm:$0xff]   ;;  %v14740_v8 = vrot.slane %v23155_v4, %v22308_v50 }
 0xc5e   : > { %v23139_v1 = vadd.f32 %v13136_v37, %v13096_v12  ;;  %v20512_v37 = vld [vmem:[#allocation24 + $0xa8] sm:$0xff]  }
 0xc7e   : > { %v13845_v58 = vpop.f32.mrb[136].mxu1 }
 0xc7f   : > { %v13804_v55 = vpop.f32.mrb[152].mxu0  ;;  %v13847_v60 = vpop.f32.mrb[137].mxu1 }
 0xc80   : > { %v13846_v7 = vadd.f32 %v13845_v58, %v13804_v55  ;;  %v13806_v34 = vpop.f32.mrb[153].mxu0  ;;  %v13849_v62 = vpop.f32.mrb[138].mxu1  ;;  %v15116_v58 = vrot.slane %v15107_v26, %v22313_v53 }
 0xc81   : > { %v13848_v54 = vadd.f32 %v13847_v60, %v13806_v34  ;;  %v13808_v11 = vpop.f32.mrb[154].mxu0  ;;  %v13850_v0 = vpop.f32.mrb[139].mxu1  ;;  %v20491_v34 = vld [vmem:[#allocation27] sm:$0xff]  }
 0xc82   : > { %v23142_v27 = vadd.f32 %v13846_v7, %v23129_v43  ;;  %v13809_v61 = vpop.f32.mrb[155].mxu0  ;;  %v20504_v43 = vld [vmem:[#allocation24 + $0x98] sm:$0xff]   ;;  %v15120_v62 = vpack.c.bf16 %v15116_v58, %v15116_v58  ;;  %v20493_v11 = vld [vmem:[#allocation27 + $0x48] sm:$0xff]  }
 0xc83   : > { %v23145_v19 = vadd.f32 %v13848_v54, %v23131_v30  ;;  %17805 = vmatpush3.bf16.msra.mxu1 %v20504_v43  ;;  %v20508_v30 = vld [vmem:[#allocation24 + $0xa0] sm:$0xff]   ;;  %v20495_v0 = vld [vmem:[#allocation27 + $0x8] sm:$0xff]   ;;  %v20499_v61 = vld [vmem:[#allocation27 + $0x10] sm:$0xff]  }
 0xc84   : > { %17806 = vmatprep.subr.bf16.mxu1 %v20506_v36  ;;  %v15112_v36 = vrot.slane %v15107_v26, %v22308_v50  ;;  %v14748_v50 = vrot.slane %v23155_v4, %v22259_v48  ;;  %v15293_v48 = vld [vmem:[%s23477_s7 + $0x8] sm:$0x1] }
 0xc85   : > { %v15386_v26 = vld [vmem:[#allocation33 + $0x10] sm:$0xff] }
 0xc87   : > { %17807 = vmatpush3.bf16.msra.mxu1 %v20508_v30 }
 0xc88   : > { %17808 = vmatprep.subr.bf16.mxu1 %v20510_v6 }
 0xc8b   : > { %17809 = vmatpush3.bf16.msra.mxu1 %v20512_v37 }
 0xc8c   : > { %17810 = vmatprep.subr.bf16.mxu1 %v20514_v23 }
 0xc8f   : > { %17811 = vmatpush3.bf16.msra.mxu1 %v20516_v38 }
 0xc90   : > { %17812 = vmatprep.subr.bf16.mxu1 %v20518_v21  ;;  %v14752_v21 = vrot.slane %v23155_v4, %v22262_v49 }
 0xc93   : > { %17813 = vmatpush3.bf16.msra.mxu1 %v20520_v52 }
 0xc94   : > { %18065 = vmatprep.subr.bf16.mxu1 %v21303_v56 }
 0xca3   : > { %v13927_v28 = vpop.f32.mrb[156].mxu0 }
 0xca4   : > { %v13929_v9 = vpop.f32.mrb[157].mxu0 }
 0xca5   : > { %v13931_v57 = vpop.f32.mrb[158].mxu0 }
 0xca6   : > { %v13932_v13 = vpop.f32.mrb[159].mxu0  ;;  %v15119_v57 = vpack.c.bf16 %v15112_v36, %v15112_v36  ;;  %v15395_v36 = vld [vmem:[#allocation33 + $0x58] sm:$0xff] }
 0xca7   : > { %v21305_v13 = vmov 0.0  }
 0xcbe   : > { %v13886_v17 = vpop.f32.mrb[140].mxu1 }
 0xcbf   : > { %v13928_v41 = vadd.f32 %v13927_v28, %v13886_v17  ;;  %v13888_v22 = vpop.f32.mrb[141].mxu1  ;;  %v20519_v28 = vld [vmem:[#allocation27 + $0x38] sm:$0xff]  }
 0xcc0   : > { %v13930_v3 = vadd.f32 %v13929_v9, %v13888_v22  ;;  %v13890_v31 = vpop.f32.mrb[142].mxu1 }
 0xcc1   : > { %v23149_v14 = vadd.f32 %v13928_v41, %v23137_v33  ;;  %v13891_v29 = vpop.f32.mrb[143].mxu1  ;;  %v14744_v33 = vrot.slane %v23155_v4, %v22313_v53  ;;  %v20503_v53 = vld [vmem:[#allocation27 + $0x18] sm:$0xff]  }
 0xcc2   : > { %v23152_v44 = vadd.f32 %v13930_v3, %v23139_v1 }
 0xce2   : > { %v14642_v5 = vpop.f32.mrb[144].mxu1 }
 0xce3   : > { %v14601_v42 = vpop.f32.mrb[160].mxu0  ;;  %v14644_v39 = vpop.f32.mrb[145].mxu1 }
 0xce4   : > { %v14643_v25 = vadd.f32 %v14642_v5, %v14601_v42  ;;  %v14603_v45 = vpop.f32.mrb[161].mxu0  ;;  %v14646_v12 = vpop.f32.mrb[146].mxu1  ;;  %v15292_v5 = vld [vmem:[%s23477_s7] sm:$0xff] }
 0xce5   : > { %v14645_v18 = vadd.f32 %v14644_v39, %v14603_v45  ;;  %v14605_v32 = vpop.f32.mrb[162].mxu0  ;;  %v14647_v1 = vpop.f32.mrb[147].mxu1  ;;  %v15374_v39 = vld [vmem:[%s1017_s4] sm:$0x1]  ;;  %s1174_s4 = scalar_lea.vmem [#allocation43], %s21985_s15 }
 0xce6   : > { %v14731_v47 = vadd.f32 %v14643_v25, %v23142_v27  ;;  %v14606_v59 = vpop.f32.mrb[163].mxu0  ;;  %v20497_v27 = vld [vmem:[#allocation27 + $0x50] sm:$0xff]   ;;  %v15375_v25 = vld [vmem:[#allocation31] sm:$0x1]  ;;  %s15767_s2 = sshll.u32 %s1174_s4, 4  ;;  %s23283_s2 = int_to_ptr.vmem [resolvable:$true] %s15767_s2 }
 0xce7   : > { %v14732_v20 = vadd.f32 %v14645_v18, %v23145_v19  ;;  %v20501_v19 = vld [vmem:[#allocation27 + $0x58] sm:$0xff]   ;;  %v15376_v45 = vmul.f32 %v15375_v25, %v15374_v39  ;;  %v15401_v12 = vld [vmem:[#allocation34 + $0x8] sm:$0xff]  ;;  %v15384_v18 = vld [vmem:[#allocation33] sm:$0xff]  ;;  %s21138_s20 = scalar_lea.vmem %s23283_s2, 16 }
 0xce8   : > { %v14757_v63 = vadd.f32 %v14740_v8, %v14731_v47  ;;  %v15400_v8 = vld [vmem:[#allocation34] sm:$0xff]  ;;  %v15402_v47 = vld [vmem:[#allocation34 + $0x10] sm:$0xff]  ;;  %v15403_v59 = vld [vmem:[#allocation34 + $0x18] sm:$0xff]  ;;  %p21139_p2 = scmp.ne.s32.totalorder %s23283_s2, %s21138_s20 }
 0xce9   : > { %v14758_v24 = vadd.f32 %v14744_v33, %v14732_v20  ;;  %v15385_v33 = vld [vmem:[#allocation33 + $0x8] sm:$0xff]  ;;  %v18070_v32 = vpack.c.bf16 %v15401_v12, %v15400_v8  ;;  %v15378_v20 = vsel %vm15377_vm6, %v15376_v45, 0.0  ;;  %v15153_v39 = vld [vmem:[#allocation28] sm:$0x1] }
 0xcea   : > { %v14761_v55 = vmax.f32 %v14757_v63, 0.0  ;;  %v18094_v1 = vpack.c.bf16 %v15385_v33, %v15384_v18  ;;  %v15387_v63 = vld [vmem:[#allocation33 + $0x18] sm:$0xff]  ;;  %15379 = vadd.xlane.f32.xlu1 %v15378_v20  ;;  %p21140_p10 = pnand %p21139_p2, %p23481_p6 }
 0xceb   : > { %v14762_v60 = vmax.f32 %v14758_v24, 0.0  ;;  %v18073_v24 = vpack.c.bf16 %v15403_v59, %v15402_v47  ;;  %v18097_v58 = vpack.c.bf16 %v15387_v63, %v15386_v26 }
 0xcec   : > { %v14765_v54 = vpack.c.bf16 %v14761_v55, %v14761_v55  ;;  %v15404_v55 = vld [vmem:[#allocation34 + $0x20] sm:$0xff]  ;;  %p21141_p5 = pneg %p21140_p10 }
 0xced   : > { %v14766_v7 = vpack.c.bf16 %v14762_v60, %v14762_v60  ;;  %v15405_v60 = vld [vmem:[#allocation34 + $0x28] sm:$0xff] }
 0xcef   : > { %15058 = vmatprep.mubr.bf16.mxu0 %v14766_v7  ;;  %v15388_v7 = vld [vmem:[#allocation33 + $0x20] sm:$0xff] }
 0xcf0   : > { %15059 = vmatmul.mubr.bf16.vlgmr.msra.gmra.mrb[168].mxu0 %v14765_v54 }
 0xcf1   : > { %17821 = vmatpush3.bf16.msra.mxu0 %v20491_v34  ;;  %15282 = vmatprep.mubr.bf16.mxu0 %v15120_v62  ;;  %v15389_v34 = vld [vmem:[#allocation33 + $0x28] sm:$0xff]  ;;  %v18076_v62 = vpack.c.bf16 %v15405_v60, %v15404_v55  ;;  %v15294_v60 = vld [vmem:[#allocation30] sm:$0x1] }
 0xcf2   : > { %17822 = vmatprep.subr.bf16.mxu0 %v20493_v11  ;;  %v18100_v54 = vpack.c.bf16 %v15389_v34, %v15388_v7  ;;  %v15406_v11 = vld [vmem:[#allocation34 + $0x30] sm:$0xff] }
 0xcf3   : > { %v15651_v7 = vld [vmem:[%s23478_s18] sm:$0xff]  ;;  %v15652_v34 = vld [vmem:[%s23478_s18 + $0x8] sm:$0xff] }
 0xcf5   : > { %17823 = vmatpush3.bf16.msra.mxu0 %v20495_v0  ;;  %v15407_v0 = vld [vmem:[#allocation34 + $0x38] sm:$0xff] }
 0xcf6   : > { %17824 = vmatprep.subr.bf16.mxu0 %v20497_v27  ;;  %v15390_v27 = vld [vmem:[#allocation33 + $0x30] sm:$0xff] }
 0xcf9   : > { %17825 = vmatpush3.bf16.msra.mxu0 %v20499_v61  ;;  %v15391_v61 = vld [vmem:[#allocation33 + $0x38] sm:$0xff] }
 0xcfa   : > { %17826 = vmatprep.subr.bf16.mxu0 %v20501_v19  ;;  %v18079_v19 = vpack.c.bf16 %v15407_v0, %v15406_v11  ;;  %v18118_v0 = vpack.c.bf16 %v15652_v34, %v15651_v7 }
 0xcfd   : > { %17827 = vmatpush3.bf16.msra.mxu0 %v20503_v53  ;;  %v18103_v53 = vpack.c.bf16 %v15391_v61, %v15390_v27  ;;  %v15653_v61 = vld [vmem:[%s23478_s18 + $0x10] sm:$0xff] }
 0xcfe   : > { %17828 = vmatprep.subr.bf16.mxu0 %v20505_v15  ;;  %v15408_v15 = vld [vmem:[#allocation34 + $0x40] sm:$0xff] }
 0xd01   : > { %17829 = vmatpush3.bf16.msra.mxu0 %v20507_v2  ;;  %v15409_v2 = vld [vmem:[#allocation34 + $0x48] sm:$0xff] }
 0xd02   : > { %17830 = vmatprep.subr.bf16.mxu0 %v20509_v40  ;;  %v15392_v40 = vld [vmem:[#allocation33 + $0x40] sm:$0xff] }
 0xd05   : > { %17831 = vmatpush3.bf16.msra.mxu0 %v20511_v35  ;;  %v15393_v35 = vld [vmem:[#allocation33 + $0x48] sm:$0xff] }
 0xd06   : > { %17832 = vmatprep.subr.bf16.mxu0 %v20513_v16  ;;  %v18082_v16 = vpack.c.bf16 %v15409_v2, %v15408_v15  ;;  %v15655_v15 = vld [vmem:[%s23478_s18 + $0x20] sm:$0xff]  ;;  %v15656_v2 = vld [vmem:[%s23478_s18 + $0x28] sm:$0xff] }
 0xd07   : > { %v14724_v51 = vpop.f32.mrb[164].mxu0 }
 0xd08   : > { %v14726_v43 = vpop.f32.mrb[165].mxu0 }
 0xd09   : > { %v14728_v30 = vpop.f32.mrb[166].mxu0  ;;  %17833 = vmatpush3.bf16.msra.mxu0 %v20515_v46  ;;  %v18106_v46 = vpack.c.bf16 %v15393_v35, %v15392_v40  ;;  %v18124_v40 = vpack.c.bf16 %v15656_v2, %v15655_v15  ;;  %v15657_v35 = vld [vmem:[%s23478_s18 + $0x30] sm:$0xff] }
 0xd0a   : > { %v14729_v9 = vpop.f32.mrb[167].mxu0  ;;  %17834 = vmatprep.subr.bf16.mxu0 %v20517_v10  ;;  %v15410_v10 = vld [vmem:[#allocation34 + $0x50] sm:$0xff] }
 0xd0b   : > { %v15412_v9 = vld [vmem:[#allocation34 + $0x60] sm:$0xff] }
 0xd0d   : > { %17835 = vmatpush3.bf16.msra.mxu0 %v20519_v28 }
 0xd0e   : > { %18093 = vmatprep.subr.bf16.mxu0 %v21303_v56 }
 0xd10   : > { %15283 = vmatmul.mubr.bf16.vlgmr.msra.gmra.mrb[172].mxu0 %v15119_v57  ;;  %v15413_v57 = vld [vmem:[#allocation34 + $0x68] sm:$0xff] }
 0xd11   : > { %18022 = vmatprep.mubr.msk.f32.mxu0 %vm21304_vm1, %v21305_v13  ;;  %18095 = vmatpush3.bf16.msra.mxu0 %v18094_v1  ;;  %v14833_v1 = vld [vmem:[#allocation25] sm:$0x1] }
 0xd12   : > { %18096 = vmatprep.subr.bf16.mxu0 %v21303_v56 }
 0xd15   : > { %18098 = vmatpush3.bf16.msra.mxu0 %v18097_v58 }
 0xd16   : > { %18099 = vmatprep.subr.bf16.mxu0 %v21303_v56 }
 0xd19   : > { %18101 = vmatpush3.bf16.msra.mxu0 %v18100_v54 }
 0xd1a   : > { %18102 = vmatprep.subr.bf16.mxu0 %v21303_v56 }
 0xd1d   : > { %18104 = vmatpush3.bf16.msra.mxu0 %v18103_v53 }
 0xd1e   : > { %18105 = vmatprep.subr.bf16.mxu0 %v21303_v56 }
 0xd21   : > { %18107 = vmatpush3.bf16.msra.mxu0 %v18106_v46  ;;  %v15659_v46 = vld [vmem:[%s23478_s18 + $0x40] sm:$0xff] }
 0xd22   : > { %v14683_v6 = vpop.f32.mrb[148].mxu1  ;;  %18108 = vmatprep.subr.bf16.mxu0 %v21303_v56 }
 0xd23   : > { %v14725_v37 = vadd.f32 %v14724_v51, %v14683_v6  ;;  %v14685_v23 = vpop.f32.mrb[149].mxu1  ;;  %v15411_v51 = vld [vmem:[#allocation34 + $0x58] sm:$0xff]  ;;  %v15396_v6 = vld [vmem:[#allocation33 + $0x60] sm:$0xff] }
 0xd24   : > { %v14727_v38 = vadd.f32 %v14726_v43, %v14685_v23  ;;  %v14687_v52 = vpop.f32.mrb[150].mxu1  ;;  %v15394_v43 = vld [vmem:[#allocation33 + $0x50] sm:$0xff]  ;;  %v18085_v30 = vpack.c.bf16 %v15411_v51, %v15410_v10 }
 0xd25   : > { %v14733_v17 = vadd.f32 %v14725_v37, %v23149_v14  ;;  %v14688_v41 = vpop.f32.mrb[151].mxu1  ;;  %v18066_v14 = vpack.c.bf16 %v15293_v48, %v15292_v5  ;;  %v18109_v28 = vpack.c.bf16 %v15395_v36, %v15394_v43  ;;  %v18088_v37 = vpack.c.bf16 %v15413_v57, %v15412_v9  ;;  %v15414_v23 = vld [vmem:[#allocation34 + $0x70] sm:$0xff]  ;;  %v15661_v43 = vld [vmem:[%s23478_s18 + $0x50] sm:$0xff]  ;;  %v15662_v36 = vld [vmem:[%s23478_s18 + $0x58] sm:$0xff] }
 0xd26   : > { %v14734_v22 = vadd.f32 %v14727_v38, %v23152_v44  ;;  %v15291_v44 = vld [vmem:[%s1009_s13] sm:$0x1]  ;;  %v15415_v38 = vld [vmem:[#allocation34 + $0x78] sm:$0xff]  ;;  %v15398_v52 = vld [vmem:[#allocation33 + $0x70] sm:$0xff]  ;;  %s17637_s13 = sshll.u32 %s23452_s14, 4  ;;  %s21307_s14 = smov [#allocation43]  }
 0xd27   : > { %v14759_v3 = vadd.f32 %v14748_v50, %v14733_v17  ;;  %18110 = vmatpush3.bf16.msra.mxu0 %v18109_v28  ;;  %v15397_v50 = vld [vmem:[#allocation33 + $0x68] sm:$0xff]  ;;  %v15399_v17 = vld [vmem:[#allocation33 + $0x78] sm:$0xff]  ;;  %v18091_v41 = vpack.c.bf16 %v15415_v38, %v15414_v23  ;;  %s23281_s21 = scalar_lea.hbm %s23480_s16, %s17637_s13  ;;  %s21142_s19 = sshll.u32 %s21307_s14, 4  ;;  %s21143_s19 = int_to_ptr.vmem [resolvable:$false] %s21142_s19 }
 0xd28   : > { %v14760_v31 = vadd.f32 %v14752_v21, %v14734_v22  ;;  %18111 = vmatprep.subr.bf16.mxu0 %v21303_v56  ;;  %v18112_v21 = vpack.c.bf16 %v15397_v50, %v15396_v6  ;;  %v18115_v22 = vpack.c.bf16 %v15399_v17, %v15398_v52  ;;  %v15660_v10 = vld [vmem:[%s23478_s18 + $0x48] sm:$0xff]  ;;  %v15663_v28 = vld [vmem:[%s23478_s18 + $0x60] sm:$0xff]  ;;  %v15665_v57 = vld [vmem:[%s23478_s18 + $0x70] sm:$0xff]  ;;  %s21144_s11 = scalar_lea.vmem %s21143_s19, 32  ;;  %p21145_p9 = scmp.lt.s32.totalorder %s23283_s2, %s21143_s19 }
 0xd29   : > { %v14763_v29 = vmax.f32 %v14759_v3, 0.0  ;;  %v18130_v51 = vpack.c.bf16 %v15660_v10, %v15659_v46  ;;  %v15664_v9 = vld [vmem:[%s23478_s18 + $0x68] sm:$0xff]  ;;  %p21146_p0 = scmp.lt.s32.totalorder %s21144_s11, %s21138_s20 }
 0xd2a   : > { %v14764_v42 = vmax.f32 %v14760_v31, 0.0  ;;  %v18136_v6 = vpack.c.bf16 %v15664_v9, %v15663_v28 }
 0xd2b   : > { %v14767_v4 = vpack.c.bf16 %v14763_v29, %v14763_v29  ;;  %18113 = vmatpush3.bf16.msra.mxu0 %v18112_v21  ;;  %p21147_p8 = por %p21146_p0, %p21145_p9 }
 0xd2c   : > { %v14768_v49 = vpack.c.bf16 %v14764_v42, %v14764_v42  ;;  %18114 = vmatprep.subr.bf16.mxu0 %v21303_v56  ;;  %v15381_v42 = vld [vmem:[#allocation8] sm:$0x1] }
 0xd2d   : > { %p21148_p7 = pnand %p21147_p8, %p21141_p5 }
 0xd2e   : > { %15098 = vmatprep.mubr.bf16.mxu1 %v14768_v49 }
 0xd2f   : > { %15099 = vmatmul.mubr.bf16.vlgmr.msra.gmra.mrb[152].mxu1 %v14767_v4  ;;  %18116 = vmatpush3.bf16.msra.mxu0 %v18115_v22 }
 0xd30   : > { %18068 = vmatpush3.bf16.msk.msra.mxu1 %vm18067_vm12, %v18066_v14  ;;  %17952 = vmatprep.mubr.msk.f32.mxu1 %vm21304_vm1, %v21305_v13 }
 0xd31   : > { %18069 = vmatprep.subr.bf16.mxu1 %v21303_v56 }
 0xd37   : > { %17953 = vmatmul.mubr.msk.f32.vlgmr.msra.gmra.mrb[156].mxu1 %vm15295_vm2, %v15291_v44 }
 0xd38   : > { %17987 = vmatprep.mubr.msk.f32.mxu1 %vm21304_vm1, %v21305_v13  ;;  %18071 = vmatpush3.bf16.msra.mxu1 %v18070_v32  ;;  %v15556_v32 = vld [vmem:[#allocation36] sm:$0xff] }
 0xd39   : > { %18072 = vmatprep.subr.bf16.mxu1 %v21303_v56 }
 0xd3c   : > { %18074 = vmatpush3.bf16.msra.mxu1 %v18073_v24 }
 0xd3d   : > { %18075 = vmatprep.subr.bf16.mxu1 %v21303_v56 }
 0xd40   : > { %18077 = vmatpush3.bf16.msra.mxu1 %v18076_v62 }
 0xd41   : > { %18078 = vmatprep.subr.bf16.mxu1 %v21303_v56 }
 0xd44   : > { %18080 = vmatpush3.bf16.msra.mxu1 %v18079_v19  ;;  %v15654_v19 = vld [vmem:[%s23478_s18 + $0x18] sm:$0xff] }
 0xd45   : > { %18081 = vmatprep.subr.bf16.mxu1 %v21303_v56  ;;  %v18121_v53 = vpack.c.bf16 %v15654_v19, %v15653_v61 }
 0xd48   : > { %18083 = vmatpush3.bf16.msra.mxu1 %v18082_v16 }
 0xd49   : > { %18084 = vmatprep.subr.bf16.mxu1 %v21303_v56 }
 0xd4c   : > { %18086 = vmatpush3.bf16.msra.mxu1 %v18085_v30  ;;  %v18133_v30 = vpack.c.bf16 %v15662_v36, %v15661_v43 }
 0xd4d   : > { %18087 = vmatprep.subr.bf16.mxu1 %v21303_v56 }
 0xd50   : > { %18089 = vmatpush3.bf16.msra.mxu1 %v18088_v37  ;;  %v15666_v37 = vld [vmem:[%s23478_s18 + $0x78] sm:$0xff] }
 0xd51   : > { %18090 = vmatprep.subr.bf16.mxu1 %v21303_v56  ;;  %v18139_v50 = vpack.c.bf16 %v15666_v37, %v15665_v57 }
 0xd54   : > { %18092 = vmatpush3.bf16.msra.mxu1 %v18091_v41  ;;  %v15631_v41 = vld [vmem:[#allocation37] sm:$0x1] }
 0xd55   : > { %18025 = vmatprep.subr.mxu1 %v21305_v13 }
 0xd77   : > { %v15380_v49 = vpop.xlane.xlu1 %15379 }
 0xd78   : > { %v15382_v14 = vadd.f32 %v15381_v42, %v15380_v49 }
 0xd7a   : > { %v15383_v4 = vmax.f32 %v15382_v14, 0.0 }
 0xd7c   : > { %15634 = vperm.xlu0 %18472, %v15383_v4   ;;  %v15667_v4 = vld [vmem:[#allocation42] sm:$0x1] }
 0xdc3   : > { %v17792_v3 = vpop.f32.mrb[168].mxu0 }
 0xdc4   : > { %v17793_v31 = vpop.f32.mrb[169].mxu0 }
 0xdc5   : > { %v17794_v29 = vadd.f32 %v17793_v31, %v17792_v3  ;;  %v17795_v5 = vpop.f32.mrb[170].mxu0 }
 0xdc6   : > { %v17796_v48 = vpop.f32.mrb[171].mxu0 }
 0xdc7   : > { %v15061_v26 = vadd.f32 %v17794_v29, %v14833_v1  ;;  %v15639_v48 = vld [vmem:[#allocation39] sm:$0x1] }
 0xde3   : > { %v17836_v44 = vpop.f32.mrb[172].mxu0 }
 0xde4   : > { %v17837_v25 = vpop.f32.mrb[173].mxu0 }
 0xde5   : > { %v17838_v8 = vadd.f32 %v17837_v25, %v17836_v44  ;;  %v17839_v45 = vpop.f32.mrb[174].mxu0 }
 0xde6   : > { %v17840_v12 = vpop.f32.mrb[175].mxu0 }
 0xde7   : > { %v15285_v18 = vadd.f32 %v17838_v8, %v15153_v39 }
 0xde9   : > { %v15290_v33 = vmax.f32 %v15285_v18, 0.0  ;;  %v15642_v18 = vld [vmem:[#allocation40] sm:$0x1] }
 0xdeb   : > { %17988 = vmatmul.mubr.f32.vlgmr.msra.gmra.mrb[158].mxu1 %v15290_v33 }
 0xdec   : > { %18026 = vmatpush3.msra.mxu1 %v15556_v32  ;;  %18027 = vmatprep.mubr.msk.f32.mxu1 %vm21304_vm1, %v21305_v13 }
 0xded   : > { %18117 = vmatprep.subr.bf16.mxu1 %v21303_v56 }
 0xdfb   : > { %v15635_v22 = vpop.permute.xlu0 %15634 }
 0xdfc   : > { %v15637_v3 = vmul.f32 %v15635_v22, %v15631_v41 }
 0xe02   : > { %v17814_v47 = vpop.f32.mrb[152].mxu1 }
 0xe03   : > { %v17815_v59 = vpop.f32.mrb[153].mxu1 }
 0xe04   : > { %v17816_v20 = vadd.f32 %v17815_v59, %v17814_v47  ;;  %v17817_v63 = vpop.f32.mrb[154].mxu1 }
 0xe05   : > { %v17818_v24 = vpop.f32.mrb[155].mxu1 }
 0xe06   : > { %v15101_v58 = vadd.f32 %v17816_v20, %v15061_v26  ;;  %v15647_v26 = vld [vmem:[#allocation9] sm:$0x1] }
 0xe08   : > { %v15106_v55 = vmax.f32 %v15101_v58, 0.0 }
 0xe0a   : > { %v15369_v62 = vpop.f32.mrb[156].mxu1  ;;  %18023 = vmatmul.mubr.f32.vlgmr.msra.gmra.mrb[176].mxu0 %v15106_v55 }
 0xe0b   : > { %v15370_v54 = vadd.f32 %v15369_v62, %v15294_v60  ;;  %v17954_v11 = vpop.f32.mrb[157].mxu1 }
 0xe0d   : > { %v15373_v27 = vmax.f32 %v15370_v54, 0.0 }
 0xe0f   : > { %18028 = vmatmul.mubr.msk.f32.vlgmr.msra.gmra.mrb[160].mxu1 %vm3406_vm5, %v15373_v27  ;;  %vm15738_vm5 = vcmask 24576  }
 0xe10   : > { %18119 = vmatpush3.bf16.msra.mxu1 %v18118_v0  ;;  %18062 = vmatprep.mubr.msk.f32.mxu1 %vm21304_vm1, %v21305_v13  ;;  %v15658_v13 = vld [vmem:[%s23478_s18 + $0x38] sm:$0xff] }
 0xe11   : > { %18120 = vmatprep.subr.bf16.mxu1 %v21303_v56  ;;  %v18127_v16 = vpack.c.bf16 %v15658_v13, %v15657_v35 }
 0xe14   : > { %18122 = vmatpush3.bf16.msra.mxu1 %v18121_v53 }
 0xe15   : > { %18123 = vmatprep.subr.bf16.mxu1 %v21303_v56 }
 0xe18   : > { %18125 = vmatpush3.bf16.msra.mxu1 %v18124_v40 }
 0xe19   : > { %18126 = vmatprep.subr.bf16.mxu1 %v21303_v56 }
 0xe1c   : > { %18128 = vmatpush3.bf16.msra.mxu1 %v18127_v16 }
 0xe1d   : > { %18129 = vmatprep.subr.bf16.mxu1 %v21303_v56 }
 0xe20   : > { %18131 = vmatpush3.bf16.msra.mxu1 %v18130_v51 }
 0xe21   : > { %18132 = vmatprep.subr.bf16.mxu1 %v21303_v56 }
 0xe24   : > { %18134 = vmatpush3.bf16.msra.mxu1 %v18133_v30 }
 0xe25   : > { %18135 = vmatprep.subr.bf16.mxu1 %v21303_v56 }
 0xe28   : > { %18137 = vmatpush3.bf16.msra.mxu1 %v18136_v6 }
 0xe29   : > { %18138 = vmatprep.subr.bf16.mxu1 %v21303_v56 }
 0xe2c   : > { %18140 = vmatpush3.bf16.msra.mxu1 %v18139_v50 }
 0xebe   : > { %v15482_v23 = vpop.f32.mrb[158].mxu1 }
 0xebf   : > { %v17989_v38 = vpop.f32.mrb[159].mxu1 }
 0xedd   : > { %v15552_v21 = vpop.f32.mrb[176].mxu0 }
 0xede   : > { %v15553_v52 = vadd.f32 %v15552_v21, %v15482_v23  ;;  %v18024_v17 = vpop.f32.mrb[177].mxu0 }
 0xee2   : > { %v15626_v31 = vpop.f32.mrb[160].mxu1 }
 0xee3   : > { %v15630_v29 = vadd.f32 %v15626_v31, %v15553_v52  ;;  %v18029_v5 = vpop.f32.mrb[161].mxu1 }
 0xee5   : > { %v15638_v42 = vadd.f32 %v15637_v3, %v15630_v29 }
 0xee7   : > { %v15640_v49 = vadd.f32 %v15639_v48, %v15638_v42 }
 0xee9   : > { %v15641_v14 = vmax.f32 %v15640_v49, 0.0 }
 0xeeb   : > { %18063 = vmatmul.mubr.f32.vlgmr.msra.gmra.mrb[162].mxu1 %v15641_v14  ;;  %v15643_v1 = vmul.f32 %v15642_v18, %v15641_v14 }
 0xeed   : > { %v15644_v47 = vsel %vm15299_vm13, %v15643_v1, 0.0 }
 0xfbe   : > { %v15734_v44 = vpop.f32.mrb[162].mxu1 }
 0xfbf   : > { %v15735_v56 = vadd.f32 %v15734_v44, %v15667_v4  ;;  %v18064_v39 = vpop.f32.mrb[163].mxu1 }
 0xfc1   : > { %v15739_v25 = vsel %vm15738_vm5, %v15735_v56, -inf }
 0xfc2   : > { %15740 = vmax.xlane.f32.xlu0 %v15739_v25 }
0x104f   : > { %v15741_v8 = vpop.xlane.xlu0 %15740 }
0x1050   : > { %v15742_v45 = vsub.f32 %v15735_v56, %v15741_v8 }
0x1052   : > { %v15743_v12 = vmul.f32 1.442695, %v15742_v45 }
0x1054   : > { %20521 = vpow2.f32 %v15743_v12 }
0x105e   : > { %v20522_v33 = vpop.eup %20521 }
0x105f   : > { %v15745_v32 = vsel %vm15738_vm5, %v20522_v33, 0.0 }
0x1060   : > { %15746 = vadd.xlane.f32.xlu1 %v15745_v32 }
0x1064   : > { %15645 = vadd.xlane.f32.xlu1 %v15644_v47 }
0x10ed   : > { %v15747_v59 = vpop.xlane.xlu1 %15746 }
0x10ee   : > { %20523 = vrcp.f32 %v15747_v59 }
0x10f1   : > { %v15646_v20 = vpop.xlane.xlu1 %15645 }
0x10f2   : > { %v15648_v63 = vadd.f32 %v15647_v26, %v15646_v20 }
0x10f4   : > { %15650 = vst.msk [vmem:[%s1191_s9] sm:$0x1] %vm15649_vm7, %v15648_v63 }
0x10f8   : > { %v20524_v24 = vpop.eup %20523 }
0x10f9   : > { %v15749_v58 = vmul.f32 %v20524_v24, %v20522_v33 }
0x10fb   : > { %15750 = vst.msk [vmem:[%s1174_s4] sm:$0x1] %vm15738_vm5, %v15749_v58 }
0x10fc   : > { %21151 = shalt.err (!%p21148_p7)
}
0x10fd   : > { %s21152_s15 = scalar_lea.hbm %s23281_s21, 16  ;;  %s21156_s13 = scalar_lea.hbm %s23480_s16, 32 }
0x10fe   : > { %p21153_p11 = scmp.ne.s32.totalorder %s23281_s21, %s21152_s15  ;;  %p21157_p13 = scmp.lt.u32.totalorder %s23281_s21, %s23480_s16 }
0x10ff   : > { %p21158_p1 = scmp.lt.u32.totalorder %s21156_s13, %s21152_s15  ;;  %p21160_p2 = scmp.lt.u32.totalorder %s21152_s15, %s23281_s21 }
0x1100   : > { %p21154_p4 = pnand %p21153_p11, %p23481_p6 }
0x1101   : > { %p21159_p3 = por %p21158_p1, %p21157_p13 }
0x1102   : > { %p21155_p12 = pneg %p21154_p4 }
0x1103   : > { %p21161_p10 = por %p21160_p2, %p21159_p3 }
0x1105   : > { %p21162_p5 = pnand %p21161_p10, %p21155_p12 }
0x1107   : > { %21165 = shalt.err (!%p21162_p5)
}
0x1108   : > { %18274 = dma.vmem_to_hbm [thread:$0]  (%p23481_p6), %s23283_s2, 16, %s23281_s21, %s15752_s28  }
0x1109 PF: > { %s23482_s5 = sld [smem:[#allocation57_spill]]  ;;  %p23483_p9 = scmp.ne.s32.totalorder %s23444_s10, 0 }
0x110a   : > { %p23484_p0 = scmp.ge.s32.totalorder %s21248_s6, 2 }
0x110c   : > { %p18342_p8 = pnand %p23484_p0, %p23483_p9 }
0x110f   : > { %s15782_s20 = sand.u32 1, %s23482_s5  }
0x1110   : > { %s15783_s14 = scalar_lea.sflag [#allocation12], %s15782_s20 }
0x1111   : > { %21231 = dma.done.wait (!%p18342_p8), %s15783_s14, 16  }
0x1112   : > { %21233 = vsyncadd (!%p18342_p8), %s15783_s14, 4294967280  ;;  %s23485_s19 = smov %s21895_s17  ;;  %p58_p7 = scmp.ge.s32.totalorder %s21883_s12, 4  }
0x1113   : > { %s23486_s17 = smov %s21240_s24  ;;  %s23487_s24 = smov %s21244_s3 }
0x1114   : > { %s23488_s3 = smov %s23485_s19  ;;  %s23489_s6 = smov %s21883_s12 }
0x1115   :  { %60 = sbr.rel (!%p58_p7) target bundleno = 42 (0x2a), region = 332 }
0x111c   :  { %15793 = vsyncpa [#allocation11], 1 }
0x111d   :  { %15795 = vsyncpa [#allocation11 + $0x1], 1 }
0x111e   :  { %15796 = vsyncpa [#allocation14], 1 }
0x111f   :  { %15798 = vsyncpa [#allocation14 + $0x1], 1 }
0x1120   :  { %15799 = vsyncpa [#allocation17], 1 }
0x1121   :  { %15800 = vsyncpa [#allocation20], 1 }
0x1122   :  { %15801 = vsyncpa [#allocation23], 1 }
0x1123   :  { %15802 = vsyncpa [#allocation26], 1 }
0x1124   :  { %15803 = vsyncpa [#allocation29], 1 }
0x1125   :  { %15804 = vsyncpa [#allocation32], 1 }
0x1126   :  { %15805 = vsyncpa [#allocation35], 1 }
0x1127   :  { %15806 = vsyncpa [#allocation38], 1 }
0x1128   :  { %15807 = vsyncpa [#allocation41], 1 }
0x1129   :  { %15808 = vsyncpa [#allocation12], 1 }
0x112a   :  { %15810 = vsyncpa [#allocation12 + $0x1], 1 }

</bundles_post_ra>
